<compile_context>
chip_gen: v7x
topology: tpu7x:2x2x1
jax: 0.10.0
libtpu: 0.0.40
codegen_flags: <defaults>
</compile_context>

<pallas_src>
import functools
import math

import jax
import jax.numpy as jnp
from jax.experimental import pallas as pl
from jax.experimental.pallas import tpu as pltpu

QUASI_DIM = 256
IMG_HW = 17                              # fixed by Linear(64 * 17 * 17, 512)
FC1_IN = 64 * IMG_HW * IMG_HW            # 18496
FC1_OUT = 512
FC1_TK = 4736                            # 37 * 128 (lane-aligned K tile)
FC1_K_PAD = 4 * FC1_TK                   # 18944 >= FC1_IN, 4 K-steps
FC1_TN = FC1_OUT // 2                    # 256: 2-way output split (v7x 2 TCs)


# ----------------------------------------------------------------------------
# Conv 3x3, stride 1, padding 1 — single wide-K im2col matmul per layer,
# channels-on-sublanes so the wide spatial axis is lane-dense.
# ----------------------------------------------------------------------------
def _conv_kernel(xs_ref, w_ref, b_ref, o_ref, *, apply_relu):
    # xs_ref: [9*Cin, N*H*W]   im2col'd activations
    # w_ref : [Cout, 9*Cin]
    # b_ref : [Cout, 1]
    # o_ref : [Cout, N*H*W]
    acc = jnp.dot(w_ref[...], xs_ref[...], preferred_element_type=jnp.float32)
    acc = acc + b_ref[...]
    if apply_relu:
        acc = jnp.maximum(acc, 0.0)
    o_ref[...] = acc


def _im2col_T(x_chw):
    # XLA glue: [C, N, H, W] -> [9*C, N*H*W], tap-major (dy, dx) then channel.
    c, n, h, w = x_chw.shape
    xp = jnp.pad(x_chw, ((0, 0), (0, 0), (1, 1), (1, 1)))
    shifts = [
        xp[:, :, dy:dy + h, dx:dx + w].reshape(c, n * h * w)
        for dy in range(3) for dx in range(3)
    ]
    return jnp.concatenate(shifts, axis=0)


def conv3x3(x_chw, w_t, b_c, *, apply_relu):
    # x_chw: [Cin, N, H, W]; w_t: [Cout, 9*Cin]; b_c: [Cout, 1]
    c, n, h, w = x_chw.shape
    cout = w_t.shape[0]
    xs = _im2col_T(x_chw)                               # [9*Cin, N*H*W]
    o = pl.pallas_call(
        functools.partial(_conv_kernel, apply_relu=apply_relu),
        out_shape=jax.ShapeDtypeStruct((cout, n * h * w), jnp.float32),
        in_specs=[pl.BlockSpec(memory_space=pltpu.MemorySpace.VMEM)] * 3,
        out_specs=pl.BlockSpec(memory_space=pltpu.MemorySpace.VMEM),
    )(xs, w_t, b_c)
    return o.reshape(cout, n, h, w)


# ----------------------------------------------------------------------------
# fc1: y = relu(x @ W + b), bf16 weight, K-streamed with contiguous slabs,
# 2-way parallel split of the output columns.
# ----------------------------------------------------------------------------
def _fc1_kernel(x_ref, w_ref, b_ref, o_ref, acc_ref):
    kj = pl.program_id(1)

    @pl.when(kj == 0)
    def _():
        acc_ref[...] = jnp.zeros_like(acc_ref)

    acc_ref[...] += jnp.dot(x_ref[...], w_ref[...],
                            preferred_element_type=jnp.float32)

    @pl.when(kj == pl.num_programs(1) - 1)
    def _():
        o_ref[...] = jnp.maximum(acc_ref[...] + b_ref[...], 0.0)


def fc1_relu(x_bf16, w_stacked, b, *, tk=FC1_TK):
    # x_bf16   : [M, K_pad]      bfloat16
    # w_stacked: [2*K_pad, 256]  bfloat16 (output halves stacked along rows so
    #                            every [tk, 256] weight block is contiguous)
    # b        : [1, 512]        float32
    m, kp = x_bf16.shape
    tn = w_stacked.shape[1]
    n_split = w_stacked.shape[0] // kp
    n = n_split * tn
    nk = kp // tk
    return pl.pallas_call(
        _fc1_kernel,
        out_shape=jax.ShapeDtypeStruct((m, n), jnp.float32),
        grid=(n_split, nk),
        in_specs=[
            pl.BlockSpec((m, tk), lambda nj, kj: (0, kj)),
            pl.BlockSpec((tk, tn), lambda nj, kj: (nj * nk + kj, 0)),
            pl.BlockSpec((1, tn), lambda nj, kj: (0, nj)),
        ],
        out_specs=pl.BlockSpec((m, tn), lambda nj, kj: (0, nj)),
        scratch_shapes=[pltpu.VMEM((m, tn), jnp.float32)],
        compiler_params=pltpu.CompilerParams(
            dimension_semantics=("parallel", "arbitrary")),
    )(x_bf16, w_stacked, b)


# ----------------------------------------------------------------------------
# fc2 + pairwise quasimetric distance, fused into one kernel.
# ----------------------------------------------------------------------------
def _fc2_dist_kernel(z_ref, w_ref, b_ref, o_ref, *, nb, d):
    # z_ref: [B+G, 512]; w_ref: [512, 2d]; b_ref: [1, 2d]; o_ref: [B, G]
    z = jnp.dot(z_ref[...], w_ref[...], preferred_element_type=jnp.float32)
    z = z + b_ref[...]
    zx, zy = z[:nb], z[nb:]
    x_sym, x_asym = zx[:, :d], zx[:, d:]
    y_sym, y_asym = zy[:, :d], zy[:, d:]
    # TODO(synk): if B/G ever grow, switch d_sym to the ||x||^2+||y||^2-2x@y^T
    # MXU form and tile B/G via a grid; the broadcast form is fine at B=G=2.
    diff_sym = x_sym[:, None, :] - y_sym[None, :, :]            # [B, G, d]
    d_sym = jnp.sqrt(jnp.sum(diff_sym * diff_sym + 1e-8, axis=-1))
    diff_asym = jnp.maximum(x_asym[:, None, :] - y_asym[None, :, :], 0.0)
    d_asym = jnp.max(diff_asym, axis=-1)
    o_ref[...] = d_sym + d_asym                                  # [B, G]


def fc2_dist(z, w, b, *, nb):
    m = z.shape[0]
    ng = m - nb
    return pl.pallas_call(
        functools.partial(_fc2_dist_kernel, nb=nb, d=QUASI_DIM),
        out_shape=jax.ShapeDtypeStruct((nb, ng), jnp.float32),
        in_specs=[pl.BlockSpec(memory_space=pltpu.MemorySpace.VMEM)] * 3,
        out_specs=pl.BlockSpec(memory_space=pltpu.MemorySpace.VMEM),
    )(z, w, b)


# ----------------------------------------------------------------------------
# Parameters & forward
# ----------------------------------------------------------------------------
def init_params(key):
    keys = jax.random.split(key, 5)

    def w_init(k, shape, fan_in):
        return jax.random.normal(k, shape, jnp.float32) / math.sqrt(fan_in)

    return {
        "w1": w_init(keys[0], (3, 3, 3, 16), 3 * 9),
        "b1": jnp.zeros((16,), jnp.float32),
        "w2": w_init(keys[1], (3, 3, 16, 32), 16 * 9),
        "b2": jnp.zeros((32,), jnp.float32),
        "w3": w_init(keys[2], (3, 3, 32, 64), 32 * 9),
        "b3": jnp.zeros((64,), jnp.float32),
        "wf1": w_init(keys[3], (FC1_IN, FC1_OUT), FC1_IN),
        "bf1": jnp.zeros((FC1_OUT,), jnp.float32),
        "wf2": w_init(keys[4], (FC1_OUT, 2 * QUASI_DIM), FC1_OUT),
        "bf2": jnp.zeros((2 * QUASI_DIM,), jnp.float32),
        # `lam` exists in the module but is not used in forward(); kept for parity.
        "lam": jnp.array([1.0], jnp.float32),
    }


def prepare_params(p):
    """One-time conversion to kernel-friendly layouts (outside the jitted
    forward): conv weights -> [Cout, 9*Cin], fc1 weight -> bf16, zero-padded to
    K_pad, column halves stacked along rows for contiguous K-streaming."""
    def conv_prep(w, b):
        kh, kw, cin, cout = w.shape
        return w.reshape(kh * kw * cin, cout).T, b.reshape(cout, 1)

    w1t, b1 = conv_prep(p["w1"], p["b1"])
    w2t, b2 = conv_prep(p["w2"], p["b2"])
    w3t, b3 = conv_prep(p["w3"], p["b3"])

    wf1 = jnp.pad(p["wf1"], ((0, FC1_K_PAD - FC1_IN), (0, 0)))
    wf1 = jnp.concatenate([wf1[:, :FC1_TN], wf1[:, FC1_TN:]], axis=0)
    wf1 = wf1.astype(jnp.bfloat16)                       # [2*K_pad, 256]

    return {
        "w1t": w1t, "b1": b1, "w2t": w2t, "b2": b2, "w3t": w3t, "b3": b3,
        "wf1": wf1, "bf1": p["bf1"].reshape(1, FC1_OUT),
        "wf2": p["wf2"], "bf2": p["bf2"].reshape(1, 2 * QUASI_DIM),
        "lam": p["lam"],
    }


@jax.jit
def forward(pp, obs, goal):
    nb = obs.shape[0]
    x = jnp.concatenate([obs, goal], axis=0)             # [B+G, 17, 17, 3]
    m = x.shape[0]
    x = jnp.transpose(x, (3, 0, 1, 2))                   # [3, B+G, 17, 17]
    h = conv3x3(x, pp["w1t"], pp["b1"], apply_relu=True)     # [16, M, 17, 17]
    h = conv3x3(h, pp["w2t"], pp["b2"], apply_relu=True)     # [32, M, 17, 17]
    h = conv3x3(h, pp["w3t"], pp["b3"], apply_relu=False)    # [64, M, 17, 17]
    # Flatten in (c, h, w) order (same as PyTorch NCHW Flatten).
    feat = jnp.transpose(h.reshape(64, m, IMG_HW * IMG_HW), (1, 0, 2))
    feat = feat.reshape(m, FC1_IN)
    feat = jnp.pad(feat, ((0, 0), (0, FC1_K_PAD - FC1_IN)))
    feat = feat.astype(jnp.bfloat16)
    z = fc1_relu(feat, pp["wf1"], pp["bf1"])              # [B+G, 512] f32
    return fc2_dist(z, pp["wf2"], pp["bf2"], nb=nb)       # [B, G]


if __name__ == "__main__":
    key = jax.random.PRNGKey(0)
    k_obs, k_goal, k_params = jax.random.split(key, 3)

    B, G = 2, 2  # small batches; spatial 17x17x3 is fixed by the module
    obs = jax.random.normal(k_obs, (B, IMG_HW, IMG_HW, 3), jnp.float32)
    goal = jax.random.normal(k_goal, (G, IMG_HW, IMG_HW, 3), jnp.float32)

    params = prepare_params(init_params(k_params))

    dist = forward(params, obs, goal)
    dist = jax.block_until_ready(dist)

    assert dist.shape == (B, G), dist.shape
    assert bool(jnp.all(jnp.isfinite(dist)))
    print("KERNEL_OK")
</pallas_src>

<mosaic_0001>
module attributes {stable_mosaic.version = 11 : i64} {
  func.func @_conv_kernel(%arg0: memref<27x1156xf32, #tpu.memory_space<vmem>>, %arg1: memref<16x27xf32, #tpu.memory_space<vmem>>, %arg2: memref<16x1xf32, #tpu.memory_space<vmem>>, %arg3: memref<16x1156xf32, #tpu.memory_space<vmem>>) attributes {dimension_semantics = [], scalar_prefetch = 0 : i64, scratch_operands = 0 : i64, tpu.core_type = #tpu.core_type<tc>} {
    %c0 = arith.constant 0 : index
    %c0_0 = arith.constant 0 : index
    %0 = vector.load %arg1[%c0, %c0_0] : memref<16x27xf32, #tpu.memory_space<vmem>>, vector<16x27xf32>
    %c0_1 = arith.constant 0 : index
    %c0_2 = arith.constant 0 : index
    %1 = vector.load %arg0[%c0_1, %c0_2] : memref<27x1156xf32, #tpu.memory_space<vmem>>, vector<27x1156xf32>
    %cst = arith.constant dense<0.000000e+00> : vector<16x1156xf32>
    %2 = tpu.matmul %0, %1, %cst {dimension_numbers = #tpu.dot_dimension_numbers<[1], [0], [0], [1], [0, 0, 1, 1], [], []>} : vector<16x27xf32>, vector<27x1156xf32>, vector<16x1156xf32> -> vector<16x1156xf32>
    %c0_3 = arith.constant 0 : index
    %c0_4 = arith.constant 0 : index
    %3 = vector.load %arg2[%c0_3, %c0_4] : memref<16x1xf32, #tpu.memory_space<vmem>>, vector<16x1xf32>
    %4 = vector.broadcast %3 : vector<16x1xf32> to vector<16x1156xf32>
    %5 = arith.addf %2, %4 : vector<16x1156xf32>
    %cst_5 = arith.constant 0.000000e+00 : f32
    %6 = vector.broadcast %cst_5 : f32 to vector<16x1156xf32>
    %7 = arith.maximumf %5, %6 : vector<16x1156xf32>
    %c0_6 = arith.constant 0 : index
    %c0_7 = arith.constant 0 : index
    %8 = vector.load %arg3[%c0_6, %c0_7] : memref<16x1156xf32, #tpu.memory_space<vmem>>, vector<16x1156xf32>
    tpu.vector_store %arg3[%c0_6, %c0_7], %7 {strides = array<i32>} : memref<16x1156xf32, #tpu.memory_space<vmem>>, vector<16x1156xf32>,
    return
  }
}

module attributes {stable_mosaic.version = 11 : i64} {
  func.func @_conv_kernel(%arg0: memref<144x1156xf32, #tpu.memory_space<vmem>>, %arg1: memref<32x144xf32, #tpu.memory_space<vmem>>, %arg2: memref<32x1xf32, #tpu.memory_space<vmem>>, %arg3: memref<32x1156xf32, #tpu.memory_space<vmem>>) attributes {dimension_semantics = [], scalar_prefetch = 0 : i64, scratch_operands = 0 : i64, tpu.core_type = #tpu.core_type<tc>} {
    %c0 = arith.constant 0 : index
    %c0_0 = arith.constant 0 : index
    %0 = vector.load %arg1[%c0, %c0_0] : memref<32x144xf32, #tpu.memory_space<vmem>>, vector<32x144xf32>
    %c0_1 = arith.constant 0 : index
    %c0_2 = arith.constant 0 : index
    %1 = vector.load %arg0[%c0_1, %c0_2] : memref<144x1156xf32, #tpu.memory_space<vmem>>, vector<144x1156xf32>
    %cst = arith.constant dense<0.000000e+00> : vector<32x1156xf32>
    %2 = tpu.matmul %0, %1, %cst {dimension_numbers = #tpu.dot_dimension_numbers<[1], [0], [0], [1], [0, 0, 1, 1], [], []>} : vector<32x144xf32>, vector<144x1156xf32>, vector<32x1156xf32> -> vector<32x1156xf32>
    %c0_3 = arith.constant 0 : index
    %c0_4 = arith.constant 0 : index
    %3 = vector.load %arg2[%c0_3, %c0_4] : memref<32x1xf32, #tpu.memory_space<vmem>>, vector<32x1xf32>
    %4 = vector.broadcast %3 : vector<32x1xf32> to vector<32x1156xf32>
    %5 = arith.addf %2, %4 : vector<32x1156xf32>
    %cst_5 = arith.constant 0.000000e+00 : f32
    %6 = vector.broadcast %cst_5 : f32 to vector<32x1156xf32>
    %7 = arith.maximumf %5, %6 : vector<32x1156xf32>
    %c0_6 = arith.constant 0 : index
    %c0_7 = arith.constant 0 : index
    %8 = vector.load %arg3[%c0_6, %c0_7] : memref<32x1156xf32, #tpu.memory_space<vmem>>, vector<32x1156xf32>
    tpu.vector_store %arg3[%c0_6, %c0_7], %7 {strides = array<i32>} : memref<32x1156xf32, #tpu.memory_space<vmem>>, vector<32x1156xf32>,
    return
  }
}

module attributes {stable_mosaic.version = 11 : i64} {
  func.func @_conv_kernel(%arg0: memref<288x1156xf32, #tpu.memory_space<vmem>>, %arg1: memref<64x288xf32, #tpu.memory_space<vmem>>, %arg2: memref<64x1xf32, #tpu.memory_space<vmem>>, %arg3: memref<64x1156xf32, #tpu.memory_space<vmem>>) attributes {dimension_semantics = [], scalar_prefetch = 0 : i64, scratch_operands = 0 : i64, tpu.core_type = #tpu.core_type<tc>} {
    %c0 = arith.constant 0 : index
    %c0_0 = arith.constant 0 : index
    %0 = vector.load %arg1[%c0, %c0_0] : memref<64x288xf32, #tpu.memory_space<vmem>>, vector<64x288xf32>
    %c0_1 = arith.constant 0 : index
    %c0_2 = arith.constant 0 : index
    %1 = vector.load %arg0[%c0_1, %c0_2] : memref<288x1156xf32, #tpu.memory_space<vmem>>, vector<288x1156xf32>
    %cst = arith.constant dense<0.000000e+00> : vector<64x1156xf32>
    %2 = tpu.matmul %0, %1, %cst {dimension_numbers = #tpu.dot_dimension_numbers<[1], [0], [0], [1], [0, 0, 1, 1], [], []>} : vector<64x288xf32>, vector<288x1156xf32>, vector<64x1156xf32> -> vector<64x1156xf32>
    %c0_3 = arith.constant 0 : index
    %c0_4 = arith.constant 0 : index
    %3 = vector.load %arg2[%c0_3, %c0_4] : memref<64x1xf32, #tpu.memory_space<vmem>>, vector<64x1xf32>
    %4 = vector.broadcast %3 : vector<64x1xf32> to vector<64x1156xf32>
    %5 = arith.addf %2, %4 : vector<64x1156xf32>
    %c0_5 = arith.constant 0 : index
    %c0_6 = arith.constant 0 : index
    %6 = vector.load %arg3[%c0_5, %c0_6] : memref<64x1156xf32, #tpu.memory_space<vmem>>, vector<64x1156xf32>
    tpu.vector_store %arg3[%c0_5, %c0_6], %5 {strides = array<i32>} : memref<64x1156xf32, #tpu.memory_space<vmem>>, vector<64x1156xf32>,
    return
  }
}

module attributes {stable_mosaic.version = 11 : i64} {
  func.func @_fc1_kernel(%arg0: i32, %arg1: i32, %arg2: memref<4x4736xbf16, #tpu.memory_space<vmem>>, %arg3: memref<4736x256xbf16, #tpu.memory_space<vmem>>, %arg4: memref<1x256xf32, #tpu.memory_space<vmem>>, %arg5: memref<4x256xf32, #tpu.memory_space<vmem>>, %arg6: memref<4x256xf32, #tpu.memory_space<vmem>>) attributes {dimension_semantics = [#tpu.dimension_semantics<parallel>, #tpu.dimension_semantics<arbitrary>], iteration_bounds = array<i64: 2, 4>, scalar_prefetch = 0 : i64, scratch_operands = 1 : i64, tpu.core_type = #tpu.core_type<tc>, window_params = [{transform_indices = @transform_0, window_bounds = array<i64: 4, 4736>}, {transform_indices = @transform_1, window_bounds = array<i64: 4736, 256>}, {transform_indices = @transform_2, window_bounds = array<i64: 1, 256>}, {transform_indices = @transform_3, window_bounds = array<i64: 4, 256>}]} {
    %c0_i32 = arith.constant 0 : i32
    %0 = arith.cmpi eq, %arg1, %c0_i32 : i32
    %1 = arith.extui %0 : i1 to i32
    %c0_i32_0 = arith.constant 0 : i32
    %2 = arith.cmpi ne, %1, %c0_i32_0 : i32
    scf.if %2 {
      %cst_9 = arith.constant 0.000000e+00 : f32
      %12 = vector.broadcast %cst_9 : f32 to vector<4x256xf32>
      %c0_10 = arith.constant 0 : index
      %c0_11 = arith.constant 0 : index
      %13 = vector.load %arg6[%c0_10, %c0_11] : memref<4x256xf32, #tpu.memory_space<vmem>>, vector<4x256xf32>
      tpu.vector_store %arg6[%c0_10, %c0_11], %12 {strides = array<i32>} : memref<4x256xf32, #tpu.memory_space<vmem>>, vector<4x256xf32>,
    } else {
    }
    %c0 = arith.constant 0 : index
    %c0_1 = arith.constant 0 : index
    %3 = vector.load %arg6[%c0, %c0_1] : memref<4x256xf32, #tpu.memory_space<vmem>>, vector<4x256xf32>
    %c0_2 = arith.constant 0 : index
    %c0_3 = arith.constant 0 : index
    %4 = vector.load %arg2[%c0_2, %c0_3] : memref<4x4736xbf16, #tpu.memory_space<vmem>>, vector<4x4736xbf16>
    %c0_4 = arith.constant 0 : index
    %c0_5 = arith.constant 0 : index
    %5 = vector.load %arg3[%c0_4, %c0_5] : memref<4736x256xbf16, #tpu.memory_space<vmem>>, vector<4736x256xbf16>
    %cst = arith.constant dense<0.000000e+00> : vector<4x256xf32>
    %6 = tpu.matmul %4, %5, %cst {dimension_numbers = #tpu.dot_dimension_numbers<[1], [0], [0], [1], [0, 0, 1, 1], [], []>} : vector<4x4736xbf16>, vector<4736x256xbf16>, vector<4x256xf32> -> vector<4x256xf32>
    %7 = arith.addf %3, %6 : vector<4x256xf32>
    %c0_6 = arith.constant 0 : index
    %c0_7 = arith.constant 0 : index
    %8 = vector.load %arg6[%c0_6, %c0_7] : memref<4x256xf32, #tpu.memory_space<vmem>>, vector<4x256xf32>
    tpu.vector_store %arg6[%c0_6, %c0_7], %7 {strides = array<i32>} : memref<4x256xf32, #tpu.memory_space<vmem>>, vector<4x256xf32>,
    %c3_i32 = arith.constant 3 : i32
    %9 = arith.cmpi eq, %arg1, %c3_i32 : i32
    %10 = arith.extui %9 : i1 to i32
    %c0_i32_8 = arith.constant 0 : i32
    %11 = arith.cmpi ne, %10, %c0_i32_8 : i32
    scf.if %11 {
      %c0_9 = arith.constant 0 : index
      %c0_10 = arith.constant 0 : index
      %12 = vector.load %arg6[%c0_9, %c0_10] : memref<4x256xf32, #tpu.memory_space<vmem>>, vector<4x256xf32>
      %c0_11 = arith.constant 0 : index
      %c0_12 = arith.constant 0 : index
      %13 = vector.load %arg4[%c0_11, %c0_12] : memref<1x256xf32, #tpu.memory_space<vmem>>, vector<1x256xf32>
      %14 = vector.broadcast %13 : vector<1x256xf32> to vector<4x256xf32>
      %15 = arith.addf %12, %14 : vector<4x256xf32>
      %cst_13 = arith.constant 0.000000e+00 : f32
      %16 = vector.broadcast %cst_13 : f32 to vector<4x256xf32>
      %17 = arith.maximumf %15, %16 : vector<4x256xf32>
      %c0_14 = arith.constant 0 : index
      %c0_15 = arith.constant 0 : index
      %18 = vector.load %arg5[%c0_14, %c0_15] : memref<4x256xf32, #tpu.memory_space<vmem>>, vector<4x256xf32>
      tpu.vector_store %arg5[%c0_14, %c0_15], %17 {strides = array<i32>} : memref<4x256xf32, #tpu.memory_space<vmem>>, vector<4x256xf32>,
    } else {
    }
    return
  }
  func.func @transform_0(%arg0: i32, %arg1: i32) -> (i32, i32) {
    %c0_i32 = arith.constant 0 : i32
    %c0_i32_0 = arith.constant 0 : i32
    return %c0_i32, %arg1 : i32, i32
  }
  func.func @transform_1(%arg0: i32, %arg1: i32) -> (i32, i32) {
    %c4_i32 = arith.constant 4 : i32
    %0 = arith.muli %arg0, %c4_i32 : i32
    %1 = arith.addi %0, %arg1 : i32
    %c0_i32 = arith.constant 0 : i32
    %c0_i32_0 = arith.constant 0 : i32
    return %1, %c0_i32 : i32, i32
  }
  func.func @transform_2(%arg0: i32, %arg1: i32) -> (i32, i32) {
    %c0_i32 = arith.constant 0 : i32
    %c0_i32_0 = arith.constant 0 : i32
    return %c0_i32, %arg0 : i32, i32
  }
  func.func @transform_3(%arg0: i32, %arg1: i32) -> (i32, i32) {
    %c0_i32 = arith.constant 0 : i32
    %c0_i32_0 = arith.constant 0 : i32
    return %c0_i32, %arg0 : i32, i32
  }
}

module attributes {stable_mosaic.version = 11 : i64} {
  func.func @_fc2_dist_kernel(%arg0: memref<4x512xf32, #tpu.memory_space<vmem>>, %arg1: memref<512x512xf32, #tpu.memory_space<vmem>>, %arg2: memref<1x512xf32, #tpu.memory_space<vmem>>, %arg3: memref<2x2xf32, #tpu.memory_space<vmem>>) attributes {dimension_semantics = [], scalar_prefetch = 0 : i64, scratch_operands = 0 : i64, tpu.core_type = #tpu.core_type<tc>} {
    %c0 = arith.constant 0 : index
    %c0_0 = arith.constant 0 : index
    %0 = vector.load %arg0[%c0, %c0_0] : memref<4x512xf32, #tpu.memory_space<vmem>>, vector<4x512xf32>
    %c0_1 = arith.constant 0 : index
    %c0_2 = arith.constant 0 : index
    %1 = vector.load %arg1[%c0_1, %c0_2] : memref<512x512xf32, #tpu.memory_space<vmem>>, vector<512x512xf32>
    %cst = arith.constant dense<0.000000e+00> : vector<4x512xf32>
    %2 = tpu.matmul %0, %1, %cst {dimension_numbers = #tpu.dot_dimension_numbers<[1], [0], [0], [1], [0, 0, 1, 1], [], []>} : vector<4x512xf32>, vector<512x512xf32>, vector<4x512xf32> -> vector<4x512xf32>
    %c0_3 = arith.constant 0 : index
    %c0_4 = arith.constant 0 : index
    %3 = vector.load %arg2[%c0_3, %c0_4] : memref<1x512xf32, #tpu.memory_space<vmem>>, vector<1x512xf32>
    %4 = vector.broadcast %3 : vector<1x512xf32> to vector<4x512xf32>
    %5 = arith.addf %2, %4 : vector<4x512xf32>
    %6 = vector.extract_strided_slice %5 {offsets = [0, 0], sizes = [2, 512], strides = [1, 1]} : vector<4x512xf32> to vector<2x512xf32>
    %7 = vector.extract_strided_slice %5 {offsets = [2, 0], sizes = [2, 512], strides = [1, 1]} : vector<4x512xf32> to vector<2x512xf32>
    %8 = vector.extract_strided_slice %6 {offsets = [0, 0], sizes = [2, 256], strides = [1, 1]} : vector<2x512xf32> to vector<2x256xf32>
    %9 = vector.extract_strided_slice %6 {offsets = [0, 256], sizes = [2, 256], strides = [1, 1]} : vector<2x512xf32> to vector<2x256xf32>
    %10 = vector.extract_strided_slice %7 {offsets = [0, 0], sizes = [2, 256], strides = [1, 1]} : vector<2x512xf32> to vector<2x256xf32>
    %11 = vector.extract_strided_slice %7 {offsets = [0, 256], sizes = [2, 256], strides = [1, 1]} : vector<2x512xf32> to vector<2x256xf32>
    %12 = vector.shape_cast %8 : vector<2x256xf32> to vector<2x1x256xf32>
    %13 = vector.shape_cast %10 : vector<2x256xf32> to vector<1x2x256xf32>
    %14 = vector.broadcast %12 : vector<2x1x256xf32> to vector<2x2x256xf32>
    %15 = vector.broadcast %13 : vector<1x2x256xf32> to vector<2x2x256xf32>
    %16 = arith.subf %14, %15 : vector<2x2x256xf32>
    %17 = arith.mulf %16, %16 : vector<2x2x256xf32>
    %cst_5 = arith.constant 9.99999993E-9 : f32
    %18 = vector.broadcast %cst_5 : f32 to vector<2x2x256xf32>
    %19 = arith.addf %17, %18 : vector<2x2x256xf32>
    %cst_6 = arith.constant dense<0.000000e+00> : vector<2x2xf32>
    %20 = vector.multi_reduction <add>, %19, %cst_6 [2] : vector<2x2x256xf32> to vector<2x2xf32>
    %21 = math.sqrt %20 : vector<2x2xf32>
    %22 = vector.shape_cast %9 : vector<2x256xf32> to vector<2x1x256xf32>
    %23 = vector.shape_cast %11 : vector<2x256xf32> to vector<1x2x256xf32>
    %24 = vector.broadcast %22 : vector<2x1x256xf32> to vector<2x2x256xf32>
    %25 = vector.broadcast %23 : vector<1x2x256xf32> to vector<2x2x256xf32>
    %26 = arith.subf %24, %25 : vector<2x2x256xf32>
    %cst_7 = arith.constant 0.000000e+00 : f32
    %27 = vector.broadcast %cst_7 : f32 to vector<2x2x256xf32>
    %28 = arith.maximumf %26, %27 : vector<2x2x256xf32>
    %cst_8 = arith.constant dense<0xFF800000> : vector<2x2xf32>
    %29 = vector.multi_reduction <maximumf>, %28, %cst_8 [2] : vector<2x2x256xf32> to vector<2x2xf32>
    %30 = arith.addf %21, %29 : vector<2x2xf32>
    %c0_9 = arith.constant 0 : index
    %c0_10 = arith.constant 0 : index
    %31 = vector.load %arg3[%c0_9, %c0_10] : memref<2x2xf32, #tpu.memory_space<vmem>>, vector<2x2xf32>
    tpu.vector_store %arg3[%c0_9, %c0_10], %30 {strides = array<i32>} : memref<2x2xf32, #tpu.memory_space<vmem>>, vector<2x2xf32>,
    return
  }
}

</mosaic_0001>

<bundles_post_ra>
// kernel: forward.5
= control target key start
LH: loop header
LB: loop body
LE: loop exit
PB: predicated region body
PF: predicated region fallthrough
CT: control target
= control target key end

     0   :  { %vm75_vm0 = vcmask 1042432   ;;  %v614_v3 = vmov 0.0   ;;  %v615_v8 = vmov 0   ;;  %vm616_vm1 = vmmov 1   ;;  %s909_s0 = inlined_call_operand.vmem [shape: f32[27,1156], index: 0, kind: input, shape index: {}]   ;;  %s910_s1 = inlined_call_operand.vmem [shape: f32[16,27], index: 1, kind: input, shape index: {}]   ;;  %s911_s2 = inlined_call_operand.vmem [shape: f32[16,1], index: 2, kind: input, shape index: {}]   ;;  %s912_s3 = inlined_call_operand.vmem [shape: f32[16,1156], index: 3, kind: output, shape index: {}]  }
   0x1   :  { %v17_v0 = vld [vmem:[%s909_s0 + $0x8] sm:$0xff]  ;;  %v27_v1 = vld [vmem:[%s909_s0 + $0x58] sm:$0xff]  ;;  %170 = vmatprep.mubr.f32.mxu0 %v614_v3  ;;  %247 = vmatprep.mubr.f32.mxu1 %v614_v3  ;;  %v16_v6 = vld [vmem:[%s909_s0] sm:$0xff]  ;;  %vm68_vm3 = vcmask 220160   ;;  %vm520_vm4 = vcmask 31744  }
   0x2   :  { %v19_v2 = vld [vmem:[%s909_s0 + $0x18] sm:$0xff]  ;;  %v556_v4 = vpack.c.bf16 %v27_v1, %v17_v0  ;;  %v29_v5 = vld [vmem:[%s909_s0 + $0x68] sm:$0xff]  ;;  %v26_v7 = vld [vmem:[%s909_s0 + $0x50] sm:$0xff]  ;;  %613 = vset.pattern.permute.xlu0 %v615_v8 }
   0x3   :  { %v566_v9 = vpack.c.bf16 %v29_v5, %v19_v2  ;;  %v558_v10 = vpack.c.bf16 %v26_v7, %v16_v6  ;;  %v18_v11 = vld [vmem:[%s909_s0 + $0x10] sm:$0xff]  ;;  %v28_v12 = vld [vmem:[%s909_s0 + $0x60] sm:$0xff]  ;;  %v37_v13 = vld [vmem:[%s909_s0 + $0xa8] sm:$0xff] }
   0x4   :  { %557 = vmatprep.subr.bf16.mxu0 %v556_v4  ;;  %v568_v14 = vpack.c.bf16 %v28_v12, %v18_v11  ;;  %v47_v15 = vld [vmem:[%s909_s0 + $0xf8] sm:$0x7]  ;;  %vm670_vm2 = vmpackc.low %vm75_vm0, %vm616_vm1  ;;  %v49_v19 = vld [vmem:[%s909_s0 + $0x108] sm:$0x7] }
   0x5   :  { %v39_v17 = vld [vmem:[%s909_s0 + $0xb8] sm:$0xff]  ;;  %567 = vmatprep.subr.bf16.mxu1 %v566_v9  ;;  %559 = vmatpush1.bf16.msra.mxu0 %v558_v10  ;;  %v560_v18 = vpack.c.bf16 %v47_v15, %v37_v13  ;;  %v36_v20 = vld [vmem:[%s909_s0 + $0xa0] sm:$0xff]  ;;  %v46_v21 = vld [vmem:[%s909_s0 + $0xf0] sm:$0x7] }
   0x6   :  { %569 = vmatpush1.bf16.msra.mxu1 %v568_v14  ;;  %v570_v22 = vpack.c.bf16 %v49_v19, %v39_v17  ;;  %v563_v23 = vpack.c.bf16 %v46_v21, %v36_v20  ;;  %v38_v24 = vld [vmem:[%s909_s0 + $0xb0] sm:$0xff]  ;;  %v48_v25 = vld [vmem:[%s909_s0 + $0x100] sm:$0x7]  ;;  %v21_v27 = vld [vmem:[%s909_s0 + $0x28] sm:$0xff] }
   0x7   :  { %562 = vmatprep.subr.msk.bf16.mxu0 %vm670_vm2, %v560_v18  ;;  %v573_v26 = vpack.c.bf16 %v48_v25, %v38_v24  ;;  %v31_v28 = vld [vmem:[%s909_s0 + $0x78] sm:$0xff]  ;;  %v33_v31 = vld [vmem:[%s909_s0 + $0x88] sm:$0xff]  ;;  %v20_v32 = vld [vmem:[%s909_s0 + $0x20] sm:$0xff] }
   0x8   :  { %v23_v29 = vld [vmem:[%s909_s0 + $0x38] sm:$0xff]  ;;  %572 = vmatprep.subr.msk.bf16.mxu1 %vm670_vm2, %v570_v22  ;;  %v576_v30 = vpack.c.bf16 %v31_v28, %v21_v27  ;;  %v30_v33 = vld [vmem:[%s909_s0 + $0x70] sm:$0xff]  ;;  %v719_v34 = vld [vmem:[%s910_s1] sm:$0xff] }
   0x9   :  { %565 = vmatpush1.bf16.msk.msra.mxu0 %vm670_vm2, %v563_v23  ;;  %v586_v35 = vpack.c.bf16 %v33_v31, %v23_v29  ;;  %v578_v36 = vpack.c.bf16 %v30_v33, %v20_v32  ;;  %v22_v37 = vld [vmem:[%s909_s0 + $0x30] sm:$0xff]  ;;  %v32_v38 = vld [vmem:[%s909_s0 + $0x80] sm:$0xff]  ;;  %v41_v40 = vld [vmem:[%s909_s0 + $0xc8] sm:$0xff] }
   0xa   :  { %575 = vmatpush1.bf16.msk.msra.mxu1 %vm670_vm2, %v573_v26  ;;  %577 = vmatprep.subr.bf16.mxu0 %v576_v30  ;;  %v588_v39 = vpack.c.bf16 %v32_v38, %v22_v37  ;;  %v51_v41 = vld [vmem:[%s909_s0 + $0x118] sm:$0x7]  ;;  %v53_v44 = vld [vmem:[%s909_s0 + $0x128] sm:$0x7]  ;;  %v40_v45 = vld [vmem:[%s909_s0 + $0xc0] sm:$0xff] }
   0xb   :  { %v43_v42 = vld [vmem:[%s909_s0 + $0xd8] sm:$0xff]  ;;  %587 = vmatprep.subr.bf16.mxu1 %v586_v35  ;;  %v580_v43 = vpack.c.bf16 %v51_v41, %v41_v40  ;;  %v50_v46 = vld [vmem:[%s909_s0 + $0x110] sm:$0x7]  ;;  %v52_v49 = vld [vmem:[%s909_s0 + $0x120] sm:$0x7] }
   0xc   :  { %538 = vmatmul.mubr.msk.f32.vlgmr.msra.gmra.mrb[0].mxu0 %vm68_vm3, %v719_v34  ;;  %v590_v47 = vpack.c.bf16 %v53_v44, %v43_v42  ;;  %v42_v48 = vld [vmem:[%s909_s0 + $0xd0] sm:$0xff]  ;;  %v25_v50 = vld [vmem:[%s909_s0 + $0x48] sm:$0xff]  ;;  %v583_v52 = vpack.c.bf16 %v50_v46, %v40_v45  ;;  %v35_v53 = vld [vmem:[%s909_s0 + $0x98] sm:$0xff] }
   0xd   :  { %542 = vmatmul.mubr.msk.f32.vlgmr.msra.gmra.mrb[0].mxu1 %vm68_vm3, %v719_v34  ;;  %579 = vmatpush1.bf16.msra.mxu0 %v578_v36  ;;  %v15_v51 = vld [vmem:[%s910_s1 + $0x8] sm:$0xff]  ;;  %v593_v54 = vpack.c.bf16 %v52_v49, %v42_v48  ;;  %v24_v55 = vld [vmem:[%s909_s0 + $0x40] sm:$0xff]  ;;  %v34_v56 = vld [vmem:[%s909_s0 + $0x90] sm:$0xff]  ;;  %v596_v57 = vpack.c.bf16 %v35_v53, %v25_v50 }
   0xe   :  { %589 = vmatpush1.bf16.msra.mxu1 %v588_v39  ;;  %176 = vmatprep.mubr.f32.mxu0 %v614_v3  ;;  %v45_v58 = vld [vmem:[%s909_s0 + $0xe8] sm:$0xff]  ;;  %v55_v59 = vld [vmem:[%s909_s0 + $0x138] sm:$0x7]  ;;  %v598_v60 = vpack.c.bf16 %v34_v56, %v24_v55  ;;  %v44_v61 = vld [vmem:[%s909_s0 + $0xe0] sm:$0xff] }
   0xf   :  { %253 = vmatprep.mubr.f32.mxu1 %v614_v3  ;;  %582 = vmatprep.subr.msk.bf16.mxu0 %vm670_vm2, %v580_v43  ;;  %v54_v62 = vld [vmem:[%s909_s0 + $0x130] sm:$0x7]  ;;  %v600_v63 = vpack.c.bf16 %v55_v59, %v45_v58  ;;  %v56_v1 = vld [vmem:[%s911_s2] sm:$0xff]  ;;  %v57_v2 = vld [vmem:[%s911_s2 + $0x8] sm:$0xff] }
  0x10   :  { %539 = vmatmul.mubr.msk.f32.gmra.mrb[2].mxu0 %vm68_vm3, %v15_v51  ;;  %592 = vmatprep.subr.msk.bf16.mxu1 %vm670_vm2, %v590_v47  ;;  %v603_v0 = vpack.c.bf16 %v54_v62, %v44_v61 }
  0x11   :  { %543 = vmatmul.mubr.msk.f32.gmra.mrb[2].mxu1 %vm68_vm3, %v15_v51  ;;  %585 = vmatpush1.bf16.msk.msra.mxu0 %vm670_vm2, %v583_v52 }
  0x12   :  { %595 = vmatpush1.bf16.msk.msra.mxu1 %vm670_vm2, %v593_v54  ;;  %324 = vmatprep.mubr.f32.mxu0 %v614_v3 }
  0x13   :  { %401 = vmatprep.mubr.f32.mxu1 %v614_v3  ;;  %597 = vmatprep.subr.bf16.mxu0 %v596_v57 }
  0x14   :  { %546 = vmatmul.mubr.msk.f32.vlgmr.msra.gmra.mrb[4].mxu0 %vm68_vm3, %v719_v34  ;;  %606 = vmatprep.subr.bf16.mxu1 %v596_v57 }
  0x15   :  { %550 = vmatmul.mubr.msk.f32.vlgmr.msra.gmra.mrb[4].mxu1 %vm68_vm3, %v719_v34  ;;  %599 = vmatpush1.bf16.msra.mxu0 %v598_v60 }
  0x16   :  { %608 = vmatpush1.bf16.msra.mxu1 %v598_v60  ;;  %330 = vmatprep.mubr.f32.mxu0 %v614_v3 }
  0x17   :  { %407 = vmatprep.mubr.f32.mxu1 %v614_v3  ;;  %602 = vmatprep.subr.msk.bf16.mxu0 %vm670_vm2, %v600_v63 }
  0x18   :  { %547 = vmatmul.mubr.msk.f32.gmra.mrb[6].mxu0 %vm68_vm3, %v15_v51  ;;  %607 = vmatprep.subr.msk.bf16.mxu1 %vm670_vm2, %v600_v63 }
  0x19   :  { %551 = vmatmul.mubr.msk.f32.gmra.mrb[6].mxu1 %vm68_vm3, %v15_v51  ;;  %605 = vmatpush1.bf16.msk.msra.mxu0 %vm670_vm2, %v603_v0 }
  0x1a   :  { %609 = vmatpush1.bf16.msk.msra.mxu1 %vm670_vm2, %v603_v0  ;;  %478 = vmatprep.mubr.f32.mxu0 %v614_v3 }
  0x1b   :  { %484 = vmatprep.mubr.f32.mxu1 %v614_v3  ;;  %60 = vperm.xlu0 %613, %v56_v1  }
  0x1c   :  { %554 = vmatmul.mubr.msk.f32.vlgmr.msra.gmra.mrb[8].mxu0 %vm68_vm3, %v719_v34 }
  0x1d   :  { %555 = vmatmul.mubr.msk.f32.vlgmr.msra.gmra.mrb[8].mxu1 %vm68_vm3, %v15_v51 }
  0x1f   :  { %65 = vperm.xlu0 %613, %v57_v2  }
  0x9a   :  { %v825_v4 = vpop.permute.xlu0 %60 }
  0x9e   :  { %v830_v11 = vpop.permute.xlu0 %65 }
  0xdf   :  { %v172_v5 = vpop.f32.mrb[0].mxu0 }
  0xe0   :  { %v249_v6 = vpop.f32.mrb[0].mxu1  ;;  %v173_v7 = vadd.f32 %v172_v5, %v825_v4  ;;  %v174_v8 = vpop.f32.mrb[1].mxu0 }
  0xe1   :  { %v250_v3 = vadd.f32 %v249_v6, %v825_v4  ;;  %v175_v9 = vadd.f32 %v174_v8, %v825_v4  ;;  %v251_v10 = vpop.f32.mrb[1].mxu1 }
  0xe2   :  { %v491_v12 = vmax.f32 %v173_v7, 0.0  ;;  %v252_v13 = vadd.f32 %v251_v10, %v825_v4 }
  0xe3   :  { %v493_v14 = vmax.f32 %v250_v3, 0.0  ;;  %v492_v15 = vmax.f32 %v175_v9, 0.0  ;;  %v178_v16 = vpop.f32.mrb[2].mxu0 }
  0xe4   :  { %511 = vst [vmem:[%s912_s3] sm:$0xff] %v491_v12  ;;  %v494_v17 = vmax.f32 %v252_v13, 0.0  ;;  %v255_v18 = vpop.f32.mrb[2].mxu1  ;;  %v179_v19 = vadd.f32 %v178_v16, %v830_v11  ;;  %v180_v20 = vpop.f32.mrb[3].mxu0 }
  0xe5   :  { %513 = vst [vmem:[%s912_s3 + $0x10] sm:$0xff] %v493_v14  ;;  %512 = vst [vmem:[%s912_s3 + $0x8] sm:$0xff] %v492_v15  ;;  %v256_v21 = vadd.f32 %v255_v18, %v830_v11  ;;  %v181_v22 = vadd.f32 %v180_v20, %v830_v11  ;;  %v257_v23 = vpop.f32.mrb[3].mxu1 }
  0xe6   :  { %514 = vst [vmem:[%s912_s3 + $0x18] sm:$0xff] %v494_v17  ;;  %v501_v24 = vmax.f32 %v179_v19, 0.0  ;;  %v258_v25 = vadd.f32 %v257_v23, %v830_v11 }
  0xe7   :  { %v503_v26 = vmax.f32 %v256_v21, 0.0  ;;  %v502_v27 = vmax.f32 %v181_v22, 0.0  ;;  %v326_v28 = vpop.f32.mrb[4].mxu0 }
  0xe8   :  { %522 = vst [vmem:[%s912_s3 + $0x50] sm:$0xff] %v501_v24  ;;  %v504_v29 = vmax.f32 %v258_v25, 0.0  ;;  %v327_v30 = vadd.f32 %v326_v28, %v825_v4  ;;  %v403_v31 = vpop.f32.mrb[4].mxu1  ;;  %v328_v32 = vpop.f32.mrb[5].mxu0 }
  0xe9   :  { %524 = vst [vmem:[%s912_s3 + $0x60] sm:$0xff] %v503_v26  ;;  %523 = vst [vmem:[%s912_s3 + $0x58] sm:$0xff] %v502_v27  ;;  %v404_v33 = vadd.f32 %v403_v31, %v825_v4  ;;  %v329_v34 = vadd.f32 %v328_v32, %v825_v4  ;;  %v405_v35 = vpop.f32.mrb[5].mxu1 }
  0xea   :  { %525 = vst [vmem:[%s912_s3 + $0x68] sm:$0xff] %v504_v29  ;;  %v495_v36 = vmax.f32 %v327_v30, 0.0  ;;  %v406_v37 = vadd.f32 %v405_v35, %v825_v4 }
  0xeb   :  { %v497_v38 = vmax.f32 %v404_v33, 0.0  ;;  %v496_v39 = vmax.f32 %v329_v34, 0.0  ;;  %v332_v40 = vpop.f32.mrb[6].mxu0 }
  0xec   :  { %515 = vst [vmem:[%s912_s3 + $0x20] sm:$0xff] %v495_v36  ;;  %v498_v41 = vmax.f32 %v406_v37, 0.0  ;;  %v333_v42 = vadd.f32 %v332_v40, %v830_v11  ;;  %v409_v43 = vpop.f32.mrb[6].mxu1  ;;  %v334_v44 = vpop.f32.mrb[7].mxu0 }
  0xed   :  { %517 = vst [vmem:[%s912_s3 + $0x30] sm:$0xff] %v497_v38  ;;  %516 = vst [vmem:[%s912_s3 + $0x28] sm:$0xff] %v496_v39  ;;  %v410_v45 = vadd.f32 %v409_v43, %v830_v11  ;;  %v335_v46 = vadd.f32 %v334_v44, %v830_v11  ;;  %v411_v47 = vpop.f32.mrb[7].mxu1 }
  0xee   :  { %518 = vst [vmem:[%s912_s3 + $0x38] sm:$0xff] %v498_v41  ;;  %v505_v48 = vmax.f32 %v333_v42, 0.0  ;;  %v412_v49 = vadd.f32 %v411_v47, %v830_v11 }
  0xef   :  { %v507_v50 = vmax.f32 %v410_v45, 0.0  ;;  %v506_v51 = vmax.f32 %v335_v46, 0.0  ;;  %v480_v52 = vpop.f32.mrb[8].mxu0 }
  0xf0   :  { %526 = vst [vmem:[%s912_s3 + $0x70] sm:$0xff] %v505_v48  ;;  %v508_v53 = vmax.f32 %v412_v49, 0.0  ;;  %v481_v54 = vadd.f32 %v480_v52, %v825_v4  ;;  %v486_v55 = vpop.f32.mrb[8].mxu1  ;;  %v482_v56 = vpop.f32.mrb[9].mxu0 }
  0xf1   :  { %528 = vst [vmem:[%s912_s3 + $0x80] sm:$0xff] %v507_v50  ;;  %527 = vst [vmem:[%s912_s3 + $0x78] sm:$0xff] %v506_v51  ;;  %v487_v57 = vadd.f32 %v486_v55, %v830_v11  ;;  %v483_v58 = vadd.f32 %v482_v56, %v825_v4  ;;  %v488_v59 = vpop.f32.mrb[9].mxu1 }
  0xf2   :  { %529 = vst [vmem:[%s912_s3 + $0x88] sm:$0xff] %v508_v53  ;;  %v499_v60 = vmax.f32 %v481_v54, 0.0  ;;  %v489_v61 = vadd.f32 %v488_v59, %v830_v11 }
  0xf3   :  { %v509_v62 = vmax.f32 %v487_v57, 0.0  ;;  %v500_v63 = vmax.f32 %v483_v58, 0.0 }
  0xf4   :  { %519 = vst [vmem:[%s912_s3 + $0x40] sm:$0xff] %v499_v60  ;;  %v510_v0 = vmax.f32 %v489_v61, 0.0 }
  0xf5   :  { %530 = vst [vmem:[%s912_s3 + $0x90] sm:$0xff] %v509_v62  ;;  %521 = vst.msk [vmem:[%s912_s3 + $0x48] sm:$0xff] %vm520_vm4, %v500_v63 }
  0xf6   :  { %531 = vst.msk [vmem:[%s912_s3 + $0x98] sm:$0xff] %vm520_vm4, %v510_v0 }

// kernel: forward.6
= control target key start
LH: loop header
LB: loop body
LE: loop exit
PB: predicated region body
PF: predicated region fallthrough
CT: control target
= control target key end

     0   :  { %v990_v3 = vmov 0   ;;  %vm226_vm0 = vcmask 130048   ;;  %vm733_vm1 = vcmask 31744   ;;  %s1835_s0 = inlined_call_operand.vmem [shape: f32[144,1156], index: 0, kind: input, shape index: {}]   ;;  %s1836_s1 = inlined_call_operand.vmem [shape: f32[32,144], index: 1, kind: input, shape index: {}]   ;;  %s1837_s2 = inlined_call_operand.vmem [shape: f32[32,1], index: 2, kind: input, shape index: {}]   ;;  %s1838_s3 = inlined_call_operand.vmem [shape: f32[32,1156], index: 3, kind: output, shape index: {}]  }
   0x1   :  { %v23_v0 = vld [vmem:[%s1835_s0 + $0x8] sm:$0xff]  ;;  %v33_v1 = vld [vmem:[%s1835_s0 + $0x58] sm:$0xff]  ;;  %988 = vset.pattern.permute.xlu0 %v990_v3  ;;  %989 = vset.pattern.permute.xlu1 %v990_v3  ;;  %v22_v6 = vld [vmem:[%s1835_s0] sm:$0xff] }
   0x2   :  { %v25_v2 = vld [vmem:[%s1835_s0 + $0x18] sm:$0xff]  ;;  %v789_v4 = vpack.c.bf16 %v33_v1, %v23_v0  ;;  %v35_v5 = vld [vmem:[%s1835_s0 + $0x68] sm:$0xff]  ;;  %v32_v7 = vld [vmem:[%s1835_s0 + $0x50] sm:$0xff] }
   0x3   :  { %v825_v8 = vpack.c.bf16 %v35_v5, %v25_v2  ;;  %v791_v9 = vpack.c.bf16 %v32_v7, %v22_v6  ;;  %v24_v10 = vld [vmem:[%s1835_s0 + $0x10] sm:$0xff]  ;;  %v34_v11 = vld [vmem:[%s1835_s0 + $0x60] sm:$0xff]  ;;  %v43_v12 = vld [vmem:[%s1835_s0 + $0xa8] sm:$0xff] }
   0x4   :  { %790 = vmatprep.subr.bf16.mxu0 %v789_v4  ;;  %v827_v13 = vpack.c.bf16 %v34_v11, %v24_v10  ;;  %v53_v14 = vld [vmem:[%s1835_s0 + $0xf8] sm:$0xff]  ;;  %v55_v16 = vld [vmem:[%s1835_s0 + $0x108] sm:$0xff]  ;;  %v42_v19 = vld [vmem:[%s1835_s0 + $0xa0] sm:$0xff] }
   0x5   :  { %v45_v15 = vld [vmem:[%s1835_s0 + $0xb8] sm:$0xff]  ;;  %826 = vmatprep.subr.bf16.mxu1 %v825_v8  ;;  %792 = vmatpush1.bf16.msra.mxu0 %v791_v9  ;;  %v793_v17 = vpack.c.bf16 %v53_v14, %v43_v12  ;;  %v52_v20 = vld [vmem:[%s1835_s0 + $0xf0] sm:$0xff]  ;;  %v54_v23 = vld [vmem:[%s1835_s0 + $0x100] sm:$0xff] }
   0x6   :  { %v829_v18 = vpack.c.bf16 %v55_v16, %v45_v15  ;;  %v44_v21 = vld [vmem:[%s1835_s0 + $0xb0] sm:$0xff]  ;;  %828 = vmatpush1.bf16.msra.mxu1 %v827_v13  ;;  %v795_v22 = vpack.c.bf16 %v52_v20, %v42_v19  ;;  %v63_v24 = vld [vmem:[%s1835_s0 + $0x148] sm:$0xff]  ;;  %v73_v25 = vld [vmem:[%s1835_s0 + $0x198] sm:$0xff] }
   0x7   :  { %794 = vmatprep.subr.bf16.mxu0 %v793_v17  ;;  %v831_v26 = vpack.c.bf16 %v54_v23, %v44_v21  ;;  %v797_v27 = vpack.c.bf16 %v73_v25, %v63_v24  ;;  %v65_v28 = vld [vmem:[%s1835_s0 + $0x158] sm:$0xff]  ;;  %v75_v29 = vld [vmem:[%s1835_s0 + $0x1a8] sm:$0xff]  ;;  %v62_v30 = vld [vmem:[%s1835_s0 + $0x140] sm:$0xff] }
   0x8   :  { %830 = vmatprep.subr.bf16.mxu1 %v829_v18  ;;  %v833_v31 = vpack.c.bf16 %v75_v29, %v65_v28  ;;  %v72_v32 = vld [vmem:[%s1835_s0 + $0x190] sm:$0xff]  ;;  %v74_v34 = vld [vmem:[%s1835_s0 + $0x1a0] sm:$0xff]  ;;  %v83_v36 = vld [vmem:[%s1835_s0 + $0x1e8] sm:$0xff] }
   0x9   :  { %v64_v33 = vld [vmem:[%s1835_s0 + $0x150] sm:$0xff]  ;;  %796 = vmatpush1.bf16.msra.mxu0 %v795_v22  ;;  %v799_v35 = vpack.c.bf16 %v72_v32, %v62_v30  ;;  %v93_v37 = vld [vmem:[%s1835_s0 + $0x238] sm:$0xff]  ;;  %v95_v41 = vld [vmem:[%s1835_s0 + $0x248] sm:$0xff] }
   0xa   :  { %v85_v38 = vld [vmem:[%s1835_s0 + $0x1f8] sm:$0xff]  ;;  %832 = vmatpush1.bf16.msra.mxu1 %v831_v26  ;;  %798 = vmatprep.subr.bf16.mxu0 %v797_v27  ;;  %v835_v39 = vpack.c.bf16 %v74_v34, %v64_v33  ;;  %v801_v40 = vpack.c.bf16 %v93_v37, %v83_v36  ;;  %v82_v42 = vld [vmem:[%s1835_s0 + $0x1e0] sm:$0xff]  ;;  %v92_v43 = vld [vmem:[%s1835_s0 + $0x230] sm:$0xff] }
   0xb   :  { %834 = vmatprep.subr.bf16.mxu1 %v833_v31  ;;  %v837_v44 = vpack.c.bf16 %v95_v41, %v85_v38  ;;  %v84_v45 = vld [vmem:[%s1835_s0 + $0x1f0] sm:$0xff]  ;;  %v94_v46 = vld [vmem:[%s1835_s0 + $0x240] sm:$0xff]  ;;  %v103_v47 = vld [vmem:[%s1835_s0 + $0x288] sm:$0xff]  ;;  %v803_v51 = vpack.c.bf16 %v92_v43, %v82_v42 }
   0xc   :  { %v113_v48 = vld [vmem:[%s1835_s0 + $0x2d8] sm:$0xff]  ;;  %v115_v50 = vld [vmem:[%s1835_s0 + $0x2e8] sm:$0xff]  ;;  %v839_v52 = vpack.c.bf16 %v94_v46, %v84_v45  ;;  %v102_v54 = vld [vmem:[%s1835_s0 + $0x280] sm:$0xff] }
   0xd   :  { %v105_v49 = vld [vmem:[%s1835_s0 + $0x298] sm:$0xff]  ;;  %800 = vmatpush1.bf16.msra.mxu0 %v799_v35  ;;  %v805_v53 = vpack.c.bf16 %v113_v48, %v103_v47  ;;  %v112_v55 = vld [vmem:[%s1835_s0 + $0x2d0] sm:$0xff]  ;;  %v114_v58 = vld [vmem:[%s1835_s0 + $0x2e0] sm:$0xff] }
   0xe   :  { %836 = vmatpush1.bf16.msra.mxu1 %v835_v39  ;;  %802 = vmatprep.subr.bf16.mxu0 %v801_v40  ;;  %v104_v56 = vld [vmem:[%s1835_s0 + $0x290] sm:$0xff]  ;;  %v841_v57 = vpack.c.bf16 %v115_v50, %v105_v49  ;;  %v123_v59 = vld [vmem:[%s1835_s0 + $0x328] sm:$0xff]  ;;  %v133_v60 = vld [vmem:[%s1835_s0 + $0x378] sm:$0xff]  ;;  %v807_v63 = vpack.c.bf16 %v112_v55, %v102_v54 }
   0xf   :  { %838 = vmatprep.subr.bf16.mxu1 %v837_v44  ;;  %v125_v61 = vld [vmem:[%s1835_s0 + $0x338] sm:$0xff]  ;;  %v135_v62 = vld [vmem:[%s1835_s0 + $0x388] sm:$0xff]  ;;  %v843_v0 = vpack.c.bf16 %v114_v58, %v104_v56  ;;  %v809_v1 = vpack.c.bf16 %v133_v60, %v123_v59  ;;  %v122_v2 = vld [vmem:[%s1835_s0 + $0x320] sm:$0xff] }
  0x10   :  { %v132_v3 = vld [vmem:[%s1835_s0 + $0x370] sm:$0xff]  ;;  %v845_v5 = vpack.c.bf16 %v135_v62, %v125_v61  ;;  %v134_v6 = vld [vmem:[%s1835_s0 + $0x380] sm:$0xff]  ;;  %v143_v7 = vld [vmem:[%s1835_s0 + $0x3c8] sm:$0xff] }
  0x11   :  { %804 = vmatpush1.bf16.msra.mxu0 %v803_v51  ;;  %v124_v4 = vld [vmem:[%s1835_s0 + $0x330] sm:$0xff]  ;;  %v153_v8 = vld [vmem:[%s1835_s0 + $0x418] sm:$0xff]  ;;  %v155_v10 = vld [vmem:[%s1835_s0 + $0x428] sm:$0xff]  ;;  %v811_v11 = vpack.c.bf16 %v132_v3, %v122_v2 }
  0x12   :  { %840 = vmatpush1.bf16.msra.mxu1 %v839_v52  ;;  %806 = vmatprep.subr.bf16.mxu0 %v805_v53  ;;  %v145_v9 = vld [vmem:[%s1835_s0 + $0x3d8] sm:$0xff]  ;;  %v847_v12 = vpack.c.bf16 %v134_v6, %v124_v4  ;;  %v813_v13 = vpack.c.bf16 %v153_v8, %v143_v7  ;;  %v142_v14 = vld [vmem:[%s1835_s0 + $0x3c0] sm:$0xff]  ;;  %v152_v15 = vld [vmem:[%s1835_s0 + $0x410] sm:$0xff] }
  0x13   :  { %842 = vmatprep.subr.bf16.mxu1 %v841_v57  ;;  %v144_v16 = vld [vmem:[%s1835_s0 + $0x3d0] sm:$0xff]  ;;  %v849_v17 = vpack.c.bf16 %v155_v10, %v145_v9  ;;  %v154_v18 = vld [vmem:[%s1835_s0 + $0x420] sm:$0xff]  ;;  %v163_v19 = vld [vmem:[%s1835_s0 + $0x468] sm:$0xff]  ;;  %v815_v23 = vpack.c.bf16 %v152_v15, %v142_v14 }
  0x14   :  { %v173_v20 = vld [vmem:[%s1835_s0 + $0x4b8] sm:$0xff]  ;;  %v175_v22 = vld [vmem:[%s1835_s0 + $0x4c8] sm:$0xff]  ;;  %v851_v25 = vpack.c.bf16 %v154_v18, %v144_v16  ;;  %v162_v27 = vld [vmem:[%s1835_s0 + $0x460] sm:$0xff] }
  0x15   :  { %808 = vmatpush1.bf16.msra.mxu0 %v807_v63  ;;  %v165_v21 = vld [vmem:[%s1835_s0 + $0x478] sm:$0xff]  ;;  %v1194_v24 = vld [vmem:[%s1836_s1 + $0x8] sm:$0xff]  ;;  %v817_v26 = vpack.c.bf16 %v173_v20, %v163_v19  ;;  %v172_v28 = vld [vmem:[%s1835_s0 + $0x4b0] sm:$0xff] }
  0x16   :  { %844 = vmatpush1.bf16.msra.mxu1 %v843_v0  ;;  %810 = vmatprep.subr.bf16.mxu0 %v809_v1  ;;  %v164_v29 = vld [vmem:[%s1835_s0 + $0x470] sm:$0xff]  ;;  %v853_v30 = vpack.c.bf16 %v175_v22, %v165_v21  ;;  %v174_v31 = vld [vmem:[%s1835_s0 + $0x4c0] sm:$0xff]  ;;  %v183_v32 = vld [vmem:[%s1835_s0 + $0x508] sm:$0xff]  ;;  %v819_v36 = vpack.c.bf16 %v172_v28, %v162_v27 }
  0x17   :  { %846 = vmatprep.subr.bf16.mxu1 %v845_v5  ;;  %v193_v33 = vld [vmem:[%s1835_s0 + $0x558] sm:$0xff]  ;;  %769 = vmatprep.mubr.msk.f32.mxu0 %vm226_vm0, %v1194_v24  ;;  %v195_v35 = vld [vmem:[%s1835_s0 + $0x568] sm:$0xff]  ;;  %v855_v37 = vpack.c.bf16 %v174_v31, %v164_v29  ;;  %v182_v39 = vld [vmem:[%s1835_s0 + $0x500] sm:$0xff] }
  0x18   :  { %v185_v34 = vld [vmem:[%s1835_s0 + $0x518] sm:$0xff]  ;;  %773 = vmatprep.mubr.msk.f32.mxu1 %vm226_vm0, %v1194_v24  ;;  %v821_v38 = vpack.c.bf16 %v193_v33, %v183_v32  ;;  %v192_v40 = vld [vmem:[%s1835_s0 + $0x550] sm:$0xff]  ;;  %v194_v43 = vld [vmem:[%s1835_s0 + $0x560] sm:$0xff] }
  0x19   :  { %812 = vmatpush1.bf16.msra.mxu0 %v811_v11  ;;  %v184_v41 = vld [vmem:[%s1835_s0 + $0x510] sm:$0xff]  ;;  %v857_v42 = vpack.c.bf16 %v195_v35, %v185_v34  ;;  %v27_v44 = vld [vmem:[%s1835_s0 + $0x28] sm:$0xff]  ;;  %v37_v45 = vld [vmem:[%s1835_s0 + $0x78] sm:$0xff]  ;;  %v823_v48 = vpack.c.bf16 %v192_v40, %v182_v39 }
  0x1a   :  { %848 = vmatpush1.bf16.msra.mxu1 %v847_v12  ;;  %814 = vmatprep.subr.bf16.mxu0 %v813_v13  ;;  %v29_v46 = vld [vmem:[%s1835_s0 + $0x38] sm:$0xff]  ;;  %v39_v47 = vld [vmem:[%s1835_s0 + $0x88] sm:$0xff]  ;;  %v859_v49 = vpack.c.bf16 %v194_v43, %v184_v41  ;;  %v861_v50 = vpack.c.bf16 %v37_v45, %v27_v44  ;;  %v26_v51 = vld [vmem:[%s1835_s0 + $0x20] sm:$0xff] }
  0x1b   :  { %850 = vmatprep.subr.bf16.mxu1 %v849_v17  ;;  %v36_v52 = vld [vmem:[%s1835_s0 + $0x70] sm:$0xff]  ;;  %v897_v54 = vpack.c.bf16 %v39_v47, %v29_v46  ;;  %v38_v55 = vld [vmem:[%s1835_s0 + $0x80] sm:$0xff]  ;;  %v47_v56 = vld [vmem:[%s1835_s0 + $0xc8] sm:$0xff] }
  0x1c   :  { %v28_v53 = vld [vmem:[%s1835_s0 + $0x30] sm:$0xff]  ;;  %v57_v57 = vld [vmem:[%s1835_s0 + $0x118] sm:$0xff]  ;;  %v59_v59 = vld [vmem:[%s1835_s0 + $0x128] sm:$0xff]  ;;  %v863_v61 = vpack.c.bf16 %v36_v52, %v26_v51 }
  0x1d   :  { %816 = vmatpush1.bf16.msra.mxu0 %v815_v23  ;;  %v49_v58 = vld [vmem:[%s1835_s0 + $0xd8] sm:$0xff]  ;;  %v1275_v60 = vld [vmem:[%s1836_s1] sm:$0xff]  ;;  %v899_v62 = vpack.c.bf16 %v38_v55, %v28_v53  ;;  %v865_v63 = vpack.c.bf16 %v57_v57, %v47_v56  ;;  %v56_v1 = vld [vmem:[%s1835_s0 + $0x110] sm:$0xff] }
  0x1e   :  { %852 = vmatpush1.bf16.msra.mxu1 %v851_v25  ;;  %818 = vmatprep.subr.bf16.mxu0 %v817_v26  ;;  %v46_v0 = vld [vmem:[%s1835_s0 + $0xc0] sm:$0xff]  ;;  %v48_v2 = vld [vmem:[%s1835_s0 + $0xd0] sm:$0xff]  ;;  %v901_v3 = vpack.c.bf16 %v59_v59, %v49_v58  ;;  %v67_v5 = vld [vmem:[%s1835_s0 + $0x168] sm:$0xff] }
  0x1f   :  { %854 = vmatprep.subr.bf16.mxu1 %v853_v30  ;;  %v58_v4 = vld [vmem:[%s1835_s0 + $0x120] sm:$0xff]  ;;  %v77_v6 = vld [vmem:[%s1835_s0 + $0x1b8] sm:$0xff]  ;;  %v79_v8 = vld [vmem:[%s1835_s0 + $0x1c8] sm:$0xff]  ;;  %v867_v9 = vpack.c.bf16 %v56_v1, %v46_v0 }
  0x20   :  { %v69_v7 = vld [vmem:[%s1835_s0 + $0x178] sm:$0xff]  ;;  %v66_v10 = vld [vmem:[%s1835_s0 + $0x160] sm:$0xff]  ;;  %v903_v12 = vpack.c.bf16 %v58_v4, %v48_v2  ;;  %v869_v13 = vpack.c.bf16 %v77_v6, %v67_v5  ;;  %v76_v14 = vld [vmem:[%s1835_s0 + $0x1b0] sm:$0xff] }
  0x21   :  { %820 = vmatpush1.bf16.msra.mxu0 %v819_v36  ;;  %v1309_v11 = vld [vmem:[%s1836_s1 + $0x18] sm:$0xff]  ;;  %v68_v15 = vld [vmem:[%s1835_s0 + $0x170] sm:$0xff]  ;;  %v905_v17 = vpack.c.bf16 %v79_v8, %v69_v7  ;;  %v78_v18 = vld [vmem:[%s1835_s0 + $0x1c0] sm:$0xff]  ;;  %v871_v23 = vpack.c.bf16 %v76_v14, %v66_v10 }
  0x22   :  { %856 = vmatpush1.bf16.msra.mxu1 %v855_v37  ;;  %822 = vmatprep.subr.bf16.mxu0 %v821_v38  ;;  %v1320_v16 = vld [vmem:[%s1836_s1 + $0x10] sm:$0xff]  ;;  %v87_v19 = vld [vmem:[%s1835_s0 + $0x208] sm:$0xff]  ;;  %v97_v20 = vld [vmem:[%s1835_s0 + $0x258] sm:$0xff]  ;;  %v907_v27 = vpack.c.bf16 %v78_v18, %v68_v15 }
  0x23   :  { %858 = vmatprep.subr.bf16.mxu1 %v857_v42  ;;  %v89_v21 = vld [vmem:[%s1835_s0 + $0x218] sm:$0xff]  ;;  %v99_v22 = vld [vmem:[%s1835_s0 + $0x268] sm:$0xff]  ;;  %v1351_v26 = vld [vmem:[%s1836_s1 + $0x20] sm:$0xff]  ;;  %v873_v28 = vpack.c.bf16 %v97_v20, %v87_v19 }
  0x24   :  { %v1346_v25 = vld [vmem:[%s1836_s1 + $0x28] sm:$0xff]  ;;  %v86_v29 = vld [vmem:[%s1835_s0 + $0x200] sm:$0xff]  ;;  %v96_v30 = vld [vmem:[%s1835_s0 + $0x250] sm:$0xff]  ;;  %v909_v32 = vpack.c.bf16 %v99_v22, %v89_v21 }
  0x25   :  { %824 = vmatpush1.bf16.msra.mxu0 %v823_v48  ;;  %v88_v31 = vld [vmem:[%s1835_s0 + $0x210] sm:$0xff]  ;;  %v98_v33 = vld [vmem:[%s1835_s0 + $0x260] sm:$0xff]  ;;  %v107_v34 = vld [vmem:[%s1835_s0 + $0x2a8] sm:$0xff]  ;;  %v875_v39 = vpack.c.bf16 %v96_v30, %v86_v29 }
  0x26   :  { %860 = vmatpush1.bf16.msra.mxu1 %v859_v49  ;;  %862 = vmatprep.subr.bf16.mxu0 %v861_v50  ;;  %v117_v35 = vld [vmem:[%s1835_s0 + $0x2f8] sm:$0xff]  ;;  %v119_v37 = vld [vmem:[%s1835_s0 + $0x308] sm:$0xff]  ;;  %v1391_v40 = vld [vmem:[%s1836_s1 + $0x30] sm:$0xff]  ;;  %v911_v41 = vpack.c.bf16 %v98_v33, %v88_v31 }
  0x27   :  { %898 = vmatprep.subr.bf16.mxu1 %v897_v54  ;;  %v109_v36 = vld [vmem:[%s1835_s0 + $0x2b8] sm:$0xff]  ;;  %v877_v42 = vpack.c.bf16 %v117_v35, %v107_v34  ;;  %v106_v43 = vld [vmem:[%s1835_s0 + $0x2a0] sm:$0xff]  ;;  %v116_v44 = vld [vmem:[%s1835_s0 + $0x2f0] sm:$0xff] }
  0x28   :  { %304 = vmatmul.mubr.f32.vlgmr.msra.gmra.mrb[0].mxu0 %v1275_v60  ;;  %v1385_v38 = vld [vmem:[%s1836_s1 + $0x38] sm:$0xff]  ;;  %v108_v45 = vld [vmem:[%s1835_s0 + $0x2b0] sm:$0xff]  ;;  %v913_v46 = vpack.c.bf16 %v119_v37, %v109_v36  ;;  %v118_v47 = vld [vmem:[%s1835_s0 + $0x300] sm:$0xff]  ;;  %v879_v52 = vpack.c.bf16 %v116_v44, %v106_v43 }
  0x29   :  { %393 = vmatmul.mubr.f32.vlgmr.msra.gmra.mrb[0].mxu1 %v1275_v60  ;;  %864 = vmatpush1.bf16.msra.mxu0 %v863_v61  ;;  %v127_v48 = vld [vmem:[%s1835_s0 + $0x348] sm:$0xff]  ;;  %v137_v49 = vld [vmem:[%s1835_s0 + $0x398] sm:$0xff]  ;;  %v915_v53 = vpack.c.bf16 %v118_v47, %v108_v45  ;;  %v126_v55 = vld [vmem:[%s1835_s0 + $0x340] sm:$0xff] }
  0x2a   :  { %900 = vmatpush1.bf16.msra.mxu1 %v899_v62  ;;  %866 = vmatprep.subr.bf16.mxu0 %v865_v63  ;;  %v129_v50 = vld [vmem:[%s1835_s0 + $0x358] sm:$0xff]  ;;  %v139_v51 = vld [vmem:[%s1835_s0 + $0x3a8] sm:$0xff]  ;;  %v881_v54 = vpack.c.bf16 %v137_v49, %v127_v48  ;;  %v136_v56 = vld [vmem:[%s1835_s0 + $0x390] sm:$0xff] }
  0x2b   :  { %902 = vmatprep.subr.bf16.mxu1 %v901_v3  ;;  %770 = vmatprep.mubr.msk.f32.mxu0 %vm226_vm0, %v1309_v11  ;;  %v128_v57 = vld [vmem:[%s1835_s0 + $0x350] sm:$0xff]  ;;  %v917_v58 = vpack.c.bf16 %v139_v51, %v129_v50  ;;  %v138_v59 = vld [vmem:[%s1835_s0 + $0x3a0] sm:$0xff]  ;;  %v147_v61 = vld [vmem:[%s1835_s0 + $0x3e8] sm:$0xff]  ;;  %v883_v1 = vpack.c.bf16 %v136_v56, %v126_v55 }
  0x2c   :  { %774 = vmatprep.mubr.msk.f32.mxu1 %vm226_vm0, %v1309_v11  ;;  %310 = vmatmul.mubr.f32.gmra.mrb[2].mxu0 %v1320_v16  ;;  %v157_v62 = vld [vmem:[%s1835_s0 + $0x438] sm:$0xff]  ;;  %v159_v0 = vld [vmem:[%s1835_s0 + $0x448] sm:$0xff]  ;;  %v919_v2 = vpack.c.bf16 %v138_v59, %v128_v57  ;;  %v146_v4 = vld [vmem:[%s1835_s0 + $0x3e0] sm:$0xff] }
  0x2d   :  { %868 = vmatpush1.bf16.msra.mxu0 %v867_v9  ;;  %399 = vmatmul.mubr.f32.gmra.mrb[2].mxu1 %v1320_v16  ;;  %v149_v63 = vld [vmem:[%s1835_s0 + $0x3f8] sm:$0xff]  ;;  %v885_v3 = vpack.c.bf16 %v157_v62, %v147_v61  ;;  %v156_v5 = vld [vmem:[%s1835_s0 + $0x430] sm:$0xff]  ;;  %v158_v8 = vld [vmem:[%s1835_s0 + $0x440] sm:$0xff] }
  0x2e   :  { %904 = vmatpush1.bf16.msra.mxu1 %v903_v12  ;;  %870 = vmatprep.subr.bf16.mxu0 %v869_v13  ;;  %v148_v6 = vld [vmem:[%s1835_s0 + $0x3f0] sm:$0xff]  ;;  %v921_v7 = vpack.c.bf16 %v159_v0, %v149_v63  ;;  %v167_v9 = vld [vmem:[%s1835_s0 + $0x488] sm:$0xff]  ;;  %v177_v10 = vld [vmem:[%s1835_s0 + $0x4d8] sm:$0xff]  ;;  %v887_v14 = vpack.c.bf16 %v156_v5, %v146_v4 }
  0x2f   :  { %906 = vmatprep.subr.bf16.mxu1 %v905_v17  ;;  %771 = vmatprep.mubr.msk.f32.mxu0 %vm226_vm0, %v1346_v25  ;;  %v169_v12 = vld [vmem:[%s1835_s0 + $0x498] sm:$0xff]  ;;  %v179_v13 = vld [vmem:[%s1835_s0 + $0x4e8] sm:$0xff]  ;;  %v166_v15 = vld [vmem:[%s1835_s0 + $0x480] sm:$0xff]  ;;  %v923_v17 = vpack.c.bf16 %v158_v8, %v148_v6  ;;  %v889_v18 = vpack.c.bf16 %v177_v10, %v167_v9 }
  0x30   :  { %775 = vmatprep.mubr.msk.f32.mxu1 %vm226_vm0, %v1346_v25  ;;  %316 = vmatmul.mubr.f32.gmra.mrb[4].mxu0 %v1351_v26  ;;  %v176_v19 = vld [vmem:[%s1835_s0 + $0x4d0] sm:$0xff]  ;;  %v178_v21 = vld [vmem:[%s1835_s0 + $0x4e0] sm:$0xff]  ;;  %v925_v22 = vpack.c.bf16 %v179_v13, %v169_v12  ;;  %v189_v29 = vld [vmem:[%s1835_s0 + $0x538] sm:$0xff] }
  0x31   :  { %872 = vmatpush1.bf16.msra.mxu0 %v871_v23  ;;  %405 = vmatmul.mubr.f32.gmra.mrb[4].mxu1 %v1351_v26  ;;  %v168_v20 = vld [vmem:[%s1835_s0 + $0x490] sm:$0xff]  ;;  %v187_v23 = vld [vmem:[%s1835_s0 + $0x528] sm:$0xff]  ;;  %v186_v33 = vld [vmem:[%s1835_s0 + $0x520] sm:$0xff] }
  0x32   :  { %908 = vmatpush1.bf16.msra.mxu1 %v907_v27  ;;  %874 = vmatprep.subr.bf16.mxu0 %v873_v28  ;;  %v197_v27 = vld [vmem:[%s1835_s0 + $0x578] sm:$0xff]  ;;  %v202_v28 = vld [vmem:[%s1837_s2] sm:$0xff]  ;;  %v199_v30 = vld [vmem:[%s1835_s0 + $0x588] sm:$0xff]  ;;  %v927_v35 = vpack.c.bf16 %v178_v21, %v168_v20 }
  0x33   :  { %910 = vmatprep.subr.bf16.mxu1 %v909_v32  ;;  %772 = vmatprep.mubr.msk.f32.mxu0 %vm226_vm0, %v1385_v38  ;;  %v204_v31 = vld [vmem:[%s1837_s2 + $0x10] sm:$0xff]  ;;  %v891_v32 = vpack.c.bf16 %v176_v19, %v166_v15  ;;  %v203_v34 = vld [vmem:[%s1837_s2 + $0x8] sm:$0xff]  ;;  %v893_v36 = vpack.c.bf16 %v197_v27, %v187_v23  ;;  %v198_v43 = vld [vmem:[%s1835_s0 + $0x580] sm:$0xff] }
  0x34   :  { %776 = vmatprep.mubr.msk.f32.mxu1 %vm226_vm0, %v1385_v38  ;;  %322 = vmatmul.mubr.f32.gmra.mrb[6].mxu0 %v1391_v40  ;;  %v196_v37 = vld [vmem:[%s1835_s0 + $0x570] sm:$0xff]  ;;  %v31_v44 = vld [vmem:[%s1835_s0 + $0x48] sm:$0xff]  ;;  %v41_v45 = vld [vmem:[%s1835_s0 + $0x98] sm:$0xff] }
  0x35   :  { %876 = vmatpush1.bf16.msra.mxu0 %v875_v39  ;;  %411 = vmatmul.mubr.f32.gmra.mrb[6].mxu1 %v1391_v40  ;;  %v188_v39 = vld [vmem:[%s1835_s0 + $0x530] sm:$0xff]  ;;  %v933_v48 = vpack.c.bf16 %v41_v45, %v31_v44  ;;  %v30_v49 = vld [vmem:[%s1835_s0 + $0x40] sm:$0xff]  ;;  %v51_v51 = vld [vmem:[%s1835_s0 + $0xe8] sm:$0xff] }
  0x36   :  { %912 = vmatpush1.bf16.msra.mxu1 %v911_v41  ;;  %878 = vmatprep.subr.bf16.mxu0 %v877_v42  ;;  %v205_v41 = vld [vmem:[%s1837_s2 + $0x18] sm:$0xff]  ;;  %v929_v42 = vpack.c.bf16 %v199_v30, %v189_v29  ;;  %v931_v47 = vpack.c.bf16 %v198_v43, %v188_v39  ;;  %v40_v50 = vld [vmem:[%s1835_s0 + $0x90] sm:$0xff]  ;;  %v50_v55 = vld [vmem:[%s1835_s0 + $0xe0] sm:$0xff] }
  0x37   :  { %914 = vmatprep.subr.bf16.mxu1 %v913_v46  ;;  %777 = vmatprep.mubr.msk.f32.mxu0 %vm226_vm0, %v1194_v24  ;;  %v895_v46 = vpack.c.bf16 %v196_v37, %v186_v33  ;;  %v60_v56 = vld [vmem:[%s1835_s0 + $0x130] sm:$0xff]  ;;  %v71_v57 = vld [vmem:[%s1835_s0 + $0x188] sm:$0xff]  ;;  %v70_v62 = vld [vmem:[%s1835_s0 + $0x180] sm:$0xff] }
  0x38   :  { %781 = vmatprep.mubr.msk.f32.mxu1 %vm226_vm0, %v1194_v24  ;;  %208 = vperm.xlu0 %988, %v202_v28   ;;  %v939_v59 = vpack.c.bf16 %v60_v56, %v50_v55  ;;  %v80_v63 = vld [vmem:[%s1835_s0 + $0x1d0] sm:$0xff]  ;;  %v91_v0 = vld [vmem:[%s1835_s0 + $0x228] sm:$0xff]  ;;  %v90_v4 = vld [vmem:[%s1835_s0 + $0x220] sm:$0xff] }
  0x39   :  { %880 = vmatpush1.bf16.msra.mxu0 %v879_v52  ;;  %218 = vperm.xlu1 %989, %v204_v31   ;;  %v61_v52 = vld [vmem:[%s1835_s0 + $0x138] sm:$0xff]  ;;  %v100_v5 = vld [vmem:[%s1835_s0 + $0x270] sm:$0xff]  ;;  %v111_v6 = vld [vmem:[%s1835_s0 + $0x2c8] sm:$0xff] }
  0x3a   :  { %916 = vmatpush1.bf16.msra.mxu1 %v915_v53  ;;  %882 = vmatprep.subr.bf16.mxu0 %v881_v54  ;;  %v935_v53 = vpack.c.bf16 %v40_v50, %v30_v49  ;;  %v937_v54 = vpack.c.bf16 %v61_v52, %v51_v51  ;;  %v947_v8 = vpack.c.bf16 %v100_v5, %v90_v4  ;;  %v110_v10 = vld [vmem:[%s1835_s0 + $0x2c0] sm:$0xff]  ;;  %v120_v12 = vld [vmem:[%s1835_s0 + $0x310] sm:$0xff]  ;;  %v131_v13 = vld [vmem:[%s1835_s0 + $0x368] sm:$0xff] }
  0x3b   :  { %918 = vmatprep.subr.bf16.mxu1 %v917_v58  ;;  %v81_v58 = vld [vmem:[%s1835_s0 + $0x1d8] sm:$0xff]  ;;  %v951_v15 = vpack.c.bf16 %v120_v12, %v110_v10  ;;  %v140_v19 = vld [vmem:[%s1835_s0 + $0x3b0] sm:$0xff]  ;;  %v151_v20 = vld [vmem:[%s1835_s0 + $0x408] sm:$0xff] }
  0x3c   :  { %213 = vperm.xlu0 %988, %v203_v34   ;;  %v941_v61 = vpack.c.bf16 %v81_v58, %v71_v57  ;;  %v161_v21 = vld [vmem:[%s1835_s0 + $0x458] sm:$0xff]  ;;  %v150_v27 = vld [vmem:[%s1835_s0 + $0x400] sm:$0xff]  ;;  %v160_v28 = vld [vmem:[%s1835_s0 + $0x450] sm:$0xff] }
  0x3d   :  { %884 = vmatpush1.bf16.msra.mxu0 %v883_v1  ;;  %223 = vperm.xlu1 %989, %v205_v41   ;;  %v101_v1 = vld [vmem:[%s1835_s0 + $0x278] sm:$0xff]  ;;  %v957_v23 = vpack.c.bf16 %v161_v21, %v151_v20  ;;  %v959_v29 = vpack.c.bf16 %v160_v28, %v150_v27  ;;  %v170_v31 = vld [vmem:[%s1835_s0 + $0x4a0] sm:$0xff]  ;;  %v191_v33 = vld [vmem:[%s1835_s0 + $0x548] sm:$0xff] }
  0x3e   :  { %920 = vmatpush1.bf16.msra.mxu1 %v919_v2  ;;  %886 = vmatprep.subr.bf16.mxu0 %v885_v3  ;;  %v943_v2 = vpack.c.bf16 %v80_v63, %v70_v62  ;;  %v945_v3 = vpack.c.bf16 %v101_v1, %v91_v0  ;;  %v201_v34 = vld [vmem:[%s1835_s0 + $0x598] sm:$0xff]  ;;  %v190_v37 = vld [vmem:[%s1835_s0 + $0x540] sm:$0xff]  ;;  %v200_v39 = vld [vmem:[%s1835_s0 + $0x590] sm:$0xff] }
  0x3f   :  { %922 = vmatprep.subr.bf16.mxu1 %v921_v7  ;;  %v121_v7 = vld [vmem:[%s1835_s0 + $0x318] sm:$0xff]  ;;  %v967_v41 = vpack.c.bf16 %v200_v39, %v190_v37 }
  0x40   :  { %v949_v9 = vpack.c.bf16 %v121_v7, %v111_v6 }
  0x41   :  { %888 = vmatpush1.bf16.msra.mxu0 %v887_v14  ;;  %v141_v14 = vld [vmem:[%s1835_s0 + $0x3b8] sm:$0xff] }
  0x42   :  { %924 = vmatpush1.bf16.msra.mxu1 %v923_v17  ;;  %890 = vmatprep.subr.bf16.mxu0 %v889_v18  ;;  %v953_v17 = vpack.c.bf16 %v141_v14, %v131_v13  ;;  %v130_v18 = vld [vmem:[%s1835_s0 + $0x360] sm:$0xff] }
  0x43   :  { %926 = vmatprep.subr.bf16.mxu1 %v925_v22  ;;  %v955_v22 = vpack.c.bf16 %v140_v19, %v130_v18 }
  0x45   :  { %892 = vmatpush1.bf16.msra.mxu0 %v891_v32  ;;  %v180_v32 = vld [vmem:[%s1835_s0 + $0x4f0] sm:$0xff] }
  0x46   :  { %928 = vmatpush1.bf16.msra.mxu1 %v927_v35  ;;  %894 = vmatprep.subr.bf16.mxu0 %v893_v36  ;;  %v963_v35 = vpack.c.bf16 %v180_v32, %v170_v31  ;;  %v965_v36 = vpack.c.bf16 %v201_v34, %v191_v33 }
  0x47   :  { %930 = vmatprep.subr.bf16.mxu1 %v929_v42 }
  0x49   :  { %896 = vmatpush1.bf16.msra.mxu0 %v895_v46 }
  0x4a   :  { %932 = vmatpush1.bf16.msra.mxu1 %v931_v47  ;;  %934 = vmatprep.subr.bf16.mxu0 %v933_v48 }
  0x4b   :  { %969 = vmatprep.subr.bf16.mxu1 %v933_v48 }
  0x4c   :  { %482 = vmatmul.mubr.f32.vlgmr.msra.gmra.mrb[8].mxu0 %v1275_v60 }
  0x4d   :  { %571 = vmatmul.mubr.f32.vlgmr.msra.gmra.mrb[8].mxu1 %v1275_v60  ;;  %936 = vmatpush1.bf16.msra.mxu0 %v935_v53 }
  0x4e   :  { %978 = vmatpush1.bf16.msra.mxu1 %v935_v53  ;;  %938 = vmatprep.subr.bf16.mxu0 %v937_v54 }
  0x4f   :  { %970 = vmatprep.subr.bf16.mxu1 %v937_v54  ;;  %778 = vmatprep.mubr.msk.f32.mxu0 %vm226_vm0, %v1309_v11 }
  0x50   :  { %782 = vmatprep.mubr.msk.f32.mxu1 %vm226_vm0, %v1309_v11  ;;  %488 = vmatmul.mubr.f32.gmra.mrb[10].mxu0 %v1320_v16 }
  0x51   :  { %940 = vmatpush1.bf16.msra.mxu0 %v939_v59  ;;  %577 = vmatmul.mubr.f32.gmra.mrb[10].mxu1 %v1320_v16 }
  0x52   :  { %979 = vmatpush1.bf16.msra.mxu1 %v939_v59  ;;  %942 = vmatprep.subr.bf16.mxu0 %v941_v61 }
  0x53   :  { %971 = vmatprep.subr.bf16.mxu1 %v941_v61  ;;  %779 = vmatprep.mubr.msk.f32.mxu0 %vm226_vm0, %v1346_v25 }
  0x54   :  { %783 = vmatprep.mubr.msk.f32.mxu1 %vm226_vm0, %v1346_v25  ;;  %494 = vmatmul.mubr.f32.gmra.mrb[12].mxu0 %v1351_v26 }
  0x55   :  { %944 = vmatpush1.bf16.msra.mxu0 %v943_v2  ;;  %583 = vmatmul.mubr.f32.gmra.mrb[12].mxu1 %v1351_v26 }
  0x56   :  { %980 = vmatpush1.bf16.msra.mxu1 %v943_v2  ;;  %946 = vmatprep.subr.bf16.mxu0 %v945_v3 }
  0x57   :  { %972 = vmatprep.subr.bf16.mxu1 %v945_v3  ;;  %780 = vmatprep.mubr.msk.f32.mxu0 %vm226_vm0, %v1385_v38 }
  0x58   :  { %784 = vmatprep.mubr.msk.f32.mxu1 %vm226_vm0, %v1385_v38  ;;  %500 = vmatmul.mubr.f32.gmra.mrb[14].mxu0 %v1391_v40 }
  0x59   :  { %948 = vmatpush1.bf16.msra.mxu0 %v947_v8  ;;  %589 = vmatmul.mubr.f32.gmra.mrb[14].mxu1 %v1391_v40 }
  0x5a   :  { %981 = vmatpush1.bf16.msra.mxu1 %v947_v8  ;;  %950 = vmatprep.subr.bf16.mxu0 %v949_v9 }
  0x5b   :  { %973 = vmatprep.subr.bf16.mxu1 %v949_v9  ;;  %785 = vmatprep.mubr.msk.f32.mxu0 %vm226_vm0, %v1194_v24  ;;  %v171_v24 = vld [vmem:[%s1835_s0 + $0x4a8] sm:$0xff] }
  0x5c   :  { %787 = vmatprep.mubr.msk.f32.mxu1 %vm226_vm0, %v1346_v25  ;;  %v181_v25 = vld [vmem:[%s1835_s0 + $0x4f8] sm:$0xff] }
  0x5d   :  { %952 = vmatpush1.bf16.msra.mxu0 %v951_v15  ;;  %v961_v30 = vpack.c.bf16 %v181_v25, %v171_v24 }
  0x5e   :  { %982 = vmatpush1.bf16.msra.mxu1 %v951_v15  ;;  %954 = vmatprep.subr.bf16.mxu0 %v953_v17 }
  0x5f   :  { %974 = vmatprep.subr.bf16.mxu1 %v953_v17 }
  0x61   :  { %956 = vmatpush1.bf16.msra.mxu0 %v955_v22 }
  0x62   :  { %983 = vmatpush1.bf16.msra.mxu1 %v955_v22  ;;  %958 = vmatprep.subr.bf16.mxu0 %v957_v23 }
  0x63   :  { %975 = vmatprep.subr.bf16.mxu1 %v957_v23 }
  0x65   :  { %960 = vmatpush1.bf16.msra.mxu0 %v959_v29 }
  0x66   :  { %984 = vmatpush1.bf16.msra.mxu1 %v959_v29  ;;  %962 = vmatprep.subr.bf16.mxu0 %v961_v30 }
  0x67   :  { %976 = vmatprep.subr.bf16.mxu1 %v961_v30 }
  0x69   :  { %964 = vmatpush1.bf16.msra.mxu0 %v963_v35 }
  0x6a   :  { %985 = vmatpush1.bf16.msra.mxu1 %v963_v35  ;;  %966 = vmatprep.subr.bf16.mxu0 %v965_v36 }
  0x6b   :  { %977 = vmatprep.subr.bf16.mxu1 %v965_v36 }
  0x6d   :  { %968 = vmatpush1.bf16.msra.mxu0 %v967_v41 }
  0x6e   :  { %986 = vmatpush1.bf16.msra.mxu1 %v967_v41 }
  0x70   :  { %660 = vmatmul.mubr.f32.vlgmr.msra.gmra.mrb[16].mxu0 %v1275_v60 }
  0x71   :  { %672 = vmatmul.mubr.f32.vlgmr.msra.gmra.mrb[16].mxu1 %v1351_v26  ;;  %786 = vmatprep.mubr.msk.f32.mxu0 %vm226_vm0, %v1309_v11 }
  0x72   :  { %788 = vmatprep.mubr.msk.f32.mxu1 %vm226_vm0, %v1385_v38 }
  0x74   :  { %666 = vmatmul.mubr.f32.gmra.mrb[18].mxu0 %v1320_v16 }
  0x75   :  { %678 = vmatmul.mubr.f32.gmra.mrb[18].mxu1 %v1391_v40 }
  0xb7   :  { %v1663_v42 = vpop.permute.xlu0 %208 }
  0xb8   :  { %v1671_v50 = vpop.permute.xlu1 %218 }
  0xbb   :  { %v1668_v11 = vpop.permute.xlu0 %213 }
  0xbc   :  { %v1701_v7 = vpop.permute.xlu1 %223 }
  0xfb   :  { %v305_v43 = vpop.f32.mrb[0].mxu0 }
  0xfc   :  { %v394_v44 = vpop.f32.mrb[0].mxu1  ;;  %v306_v45 = vadd.f32 %v305_v43, %v1663_v42  ;;  %v307_v46 = vpop.f32.mrb[1].mxu0 }
  0xfd   :  { %v395_v60 = vadd.f32 %v394_v44, %v1663_v42  ;;  %v308_v26 = vadd.f32 %v307_v46, %v1663_v42  ;;  %v396_v47 = vpop.f32.mrb[1].mxu1 }
  0xfe   :  { %v684_v48 = vmax.f32 %v306_v45, 0.0  ;;  %v397_v38 = vadd.f32 %v396_v47, %v1663_v42 }
  0xff   :  { %v686_v16 = vmax.f32 %v395_v60, 0.0  ;;  %v685_v49 = vmax.f32 %v308_v26, 0.0  ;;  %v311_v40 = vpop.f32.mrb[2].mxu0 }
 0x100   :  { %724 = vst [vmem:[%s1838_s3] sm:$0xff] %v684_v48  ;;  %v687_v51 = vmax.f32 %v397_v38, 0.0  ;;  %v400_v52 = vpop.f32.mrb[2].mxu1  ;;  %v312_v53 = vadd.f32 %v311_v40, %v1668_v11  ;;  %v313_v54 = vpop.f32.mrb[3].mxu0 }
 0x101   :  { %726 = vst [vmem:[%s1838_s3 + $0x10] sm:$0xff] %v686_v16  ;;  %725 = vst [vmem:[%s1838_s3 + $0x8] sm:$0xff] %v685_v49  ;;  %v401_v55 = vadd.f32 %v400_v52, %v1668_v11  ;;  %v314_v56 = vadd.f32 %v313_v54, %v1668_v11  ;;  %v402_v57 = vpop.f32.mrb[3].mxu1 }
 0x102   :  { %727 = vst [vmem:[%s1838_s3 + $0x18] sm:$0xff] %v687_v51  ;;  %v694_v58 = vmax.f32 %v312_v53, 0.0  ;;  %v403_v59 = vadd.f32 %v402_v57, %v1668_v11 }
 0x103   :  { %v696_v61 = vmax.f32 %v401_v55, 0.0  ;;  %v695_v62 = vmax.f32 %v314_v56, 0.0  ;;  %v317_v63 = vpop.f32.mrb[4].mxu0 }
 0x104   :  { %735 = vst [vmem:[%s1838_s3 + $0x50] sm:$0xff] %v694_v58  ;;  %v697_v0 = vmax.f32 %v403_v59, 0.0  ;;  %v406_v1 = vpop.f32.mrb[4].mxu1  ;;  %v318_v2 = vadd.f32 %v317_v63, %v1671_v50  ;;  %v319_v3 = vpop.f32.mrb[5].mxu0 }
 0x105   :  { %737 = vst [vmem:[%s1838_s3 + $0x60] sm:$0xff] %v696_v61  ;;  %736 = vst [vmem:[%s1838_s3 + $0x58] sm:$0xff] %v695_v62  ;;  %v407_v4 = vadd.f32 %v406_v1, %v1671_v50  ;;  %v320_v5 = vadd.f32 %v319_v3, %v1671_v50  ;;  %v408_v6 = vpop.f32.mrb[5].mxu1 }
 0x106   :  { %738 = vst [vmem:[%s1838_s3 + $0x68] sm:$0xff] %v697_v0  ;;  %v704_v8 = vmax.f32 %v318_v2, 0.0  ;;  %v409_v9 = vadd.f32 %v408_v6, %v1671_v50 }
 0x107   :  { %v706_v10 = vmax.f32 %v407_v4, 0.0  ;;  %v705_v12 = vmax.f32 %v320_v5, 0.0  ;;  %v323_v13 = vpop.f32.mrb[6].mxu0 }
 0x108   :  { %745 = vst [vmem:[%s1838_s3 + $0xa0] sm:$0xff] %v704_v8  ;;  %v707_v14 = vmax.f32 %v409_v9, 0.0  ;;  %v412_v15 = vpop.f32.mrb[6].mxu1  ;;  %v324_v17 = vadd.f32 %v323_v13, %v1701_v7  ;;  %v325_v18 = vpop.f32.mrb[7].mxu0 }
 0x109   :  { %747 = vst [vmem:[%s1838_s3 + $0xb0] sm:$0xff] %v706_v10  ;;  %746 = vst [vmem:[%s1838_s3 + $0xa8] sm:$0xff] %v705_v12  ;;  %v413_v19 = vadd.f32 %v412_v15, %v1701_v7  ;;  %v326_v20 = vadd.f32 %v325_v18, %v1701_v7  ;;  %v414_v21 = vpop.f32.mrb[7].mxu1 }
 0x10a   :  { %748 = vst [vmem:[%s1838_s3 + $0xb8] sm:$0xff] %v707_v14  ;;  %v714_v22 = vmax.f32 %v324_v17, 0.0  ;;  %v415_v23 = vadd.f32 %v414_v21, %v1701_v7 }
 0x10b   :  { %v716_v27 = vmax.f32 %v413_v19, 0.0  ;;  %v715_v28 = vmax.f32 %v326_v20, 0.0 }
 0x10c   :  { %755 = vst [vmem:[%s1838_s3 + $0xf0] sm:$0xff] %v714_v22  ;;  %v717_v24 = vmax.f32 %v415_v23, 0.0 }
 0x10d   :  { %757 = vst [vmem:[%s1838_s3 + $0x100] sm:$0xff] %v716_v27  ;;  %756 = vst [vmem:[%s1838_s3 + $0xf8] sm:$0xff] %v715_v28 }
 0x10e   :  { %758 = vst [vmem:[%s1838_s3 + $0x108] sm:$0xff] %v717_v24 }
 0x11f   :  { %v483_v25 = vpop.f32.mrb[8].mxu0 }
 0x120   :  { %v484_v29 = vadd.f32 %v483_v25, %v1663_v42  ;;  %v572_v30 = vpop.f32.mrb[8].mxu1  ;;  %v485_v31 = vpop.f32.mrb[9].mxu0 }
 0x121   :  { %v573_v32 = vadd.f32 %v572_v30, %v1663_v42  ;;  %v486_v33 = vadd.f32 %v485_v31, %v1663_v42  ;;  %v574_v34 = vpop.f32.mrb[9].mxu1 }
 0x122   :  { %v688_v35 = vmax.f32 %v484_v29, 0.0  ;;  %v575_v36 = vadd.f32 %v574_v34, %v1663_v42 }
 0x123   :  { %v690_v37 = vmax.f32 %v573_v32, 0.0  ;;  %v689_v39 = vmax.f32 %v486_v33, 0.0  ;;  %v489_v41 = vpop.f32.mrb[10].mxu0 }
 0x124   :  { %728 = vst [vmem:[%s1838_s3 + $0x20] sm:$0xff] %v688_v35  ;;  %v691_v43 = vmax.f32 %v575_v36, 0.0  ;;  %v490_v44 = vadd.f32 %v489_v41, %v1668_v11  ;;  %v578_v45 = vpop.f32.mrb[10].mxu1  ;;  %v491_v46 = vpop.f32.mrb[11].mxu0 }
 0x125   :  { %730 = vst [vmem:[%s1838_s3 + $0x30] sm:$0xff] %v690_v37  ;;  %729 = vst [vmem:[%s1838_s3 + $0x28] sm:$0xff] %v689_v39  ;;  %v579_v60 = vadd.f32 %v578_v45, %v1668_v11  ;;  %v492_v26 = vadd.f32 %v491_v46, %v1668_v11  ;;  %v580_v47 = vpop.f32.mrb[11].mxu1 }
 0x126   :  { %731 = vst [vmem:[%s1838_s3 + $0x38] sm:$0xff] %v691_v43  ;;  %v698_v48 = vmax.f32 %v490_v44, 0.0  ;;  %v581_v38 = vadd.f32 %v580_v47, %v1668_v11 }
 0x127   :  { %v700_v16 = vmax.f32 %v579_v60, 0.0  ;;  %v699_v49 = vmax.f32 %v492_v26, 0.0  ;;  %v495_v40 = vpop.f32.mrb[12].mxu0 }
 0x128   :  { %739 = vst [vmem:[%s1838_s3 + $0x70] sm:$0xff] %v698_v48  ;;  %v701_v51 = vmax.f32 %v581_v38, 0.0  ;;  %v496_v52 = vadd.f32 %v495_v40, %v1671_v50  ;;  %v584_v53 = vpop.f32.mrb[12].mxu1  ;;  %v497_v54 = vpop.f32.mrb[13].mxu0 }
 0x129   :  { %741 = vst [vmem:[%s1838_s3 + $0x80] sm:$0xff] %v700_v16  ;;  %740 = vst [vmem:[%s1838_s3 + $0x78] sm:$0xff] %v699_v49  ;;  %v585_v55 = vadd.f32 %v584_v53, %v1671_v50  ;;  %v498_v56 = vadd.f32 %v497_v54, %v1671_v50  ;;  %v586_v57 = vpop.f32.mrb[13].mxu1 }
 0x12a   :  { %742 = vst [vmem:[%s1838_s3 + $0x88] sm:$0xff] %v701_v51  ;;  %v708_v58 = vmax.f32 %v496_v52, 0.0  ;;  %v587_v59 = vadd.f32 %v586_v57, %v1671_v50 }
 0x12b   :  { %v710_v61 = vmax.f32 %v585_v55, 0.0  ;;  %v709_v62 = vmax.f32 %v498_v56, 0.0  ;;  %v501_v63 = vpop.f32.mrb[14].mxu0 }
 0x12c   :  { %749 = vst [vmem:[%s1838_s3 + $0xc0] sm:$0xff] %v708_v58  ;;  %v711_v0 = vmax.f32 %v587_v59, 0.0  ;;  %v502_v1 = vadd.f32 %v501_v63, %v1701_v7  ;;  %v590_v2 = vpop.f32.mrb[14].mxu1  ;;  %v503_v3 = vpop.f32.mrb[15].mxu0 }
 0x12d   :  { %751 = vst [vmem:[%s1838_s3 + $0xd0] sm:$0xff] %v710_v61  ;;  %750 = vst [vmem:[%s1838_s3 + $0xc8] sm:$0xff] %v709_v62  ;;  %v591_v4 = vadd.f32 %v590_v2, %v1701_v7  ;;  %v504_v5 = vadd.f32 %v503_v3, %v1701_v7  ;;  %v592_v6 = vpop.f32.mrb[15].mxu1 }
 0x12e   :  { %752 = vst [vmem:[%s1838_s3 + $0xd8] sm:$0xff] %v711_v0  ;;  %v718_v8 = vmax.f32 %v502_v1, 0.0  ;;  %v593_v9 = vadd.f32 %v592_v6, %v1701_v7 }
 0x12f   :  { %v720_v10 = vmax.f32 %v591_v4, 0.0  ;;  %v719_v12 = vmax.f32 %v504_v5, 0.0 }
 0x130   :  { %759 = vst [vmem:[%s1838_s3 + $0x110] sm:$0xff] %v718_v8  ;;  %v721_v13 = vmax.f32 %v593_v9, 0.0 }
 0x131   :  { %761 = vst [vmem:[%s1838_s3 + $0x120] sm:$0xff] %v720_v10  ;;  %760 = vst [vmem:[%s1838_s3 + $0x118] sm:$0xff] %v719_v12 }
 0x132   :  { %762 = vst [vmem:[%s1838_s3 + $0x128] sm:$0xff] %v721_v13 }
 0x143   :  { %v661_v14 = vpop.f32.mrb[16].mxu0 }
 0x144   :  { %v662_v15 = vadd.f32 %v661_v14, %v1663_v42  ;;  %v673_v17 = vpop.f32.mrb[16].mxu1  ;;  %v663_v18 = vpop.f32.mrb[17].mxu0 }
 0x145   :  { %v674_v19 = vadd.f32 %v673_v17, %v1671_v50  ;;  %v664_v20 = vadd.f32 %v663_v18, %v1663_v42  ;;  %v675_v21 = vpop.f32.mrb[17].mxu1 }
 0x146   :  { %v692_v22 = vmax.f32 %v662_v15, 0.0  ;;  %v676_v23 = vadd.f32 %v675_v21, %v1671_v50 }
 0x147   :  { %v712_v27 = vmax.f32 %v674_v19, 0.0  ;;  %v693_v28 = vmax.f32 %v664_v20, 0.0  ;;  %v667_v24 = vpop.f32.mrb[18].mxu0 }
 0x148   :  { %732 = vst [vmem:[%s1838_s3 + $0x40] sm:$0xff] %v692_v22  ;;  %v713_v25 = vmax.f32 %v676_v23, 0.0  ;;  %v668_v29 = vadd.f32 %v667_v24, %v1668_v11  ;;  %v679_v30 = vpop.f32.mrb[18].mxu1  ;;  %v669_v31 = vpop.f32.mrb[19].mxu0 }
 0x149   :  { %753 = vst [vmem:[%s1838_s3 + $0xe0] sm:$0xff] %v712_v27  ;;  %734 = vst.msk [vmem:[%s1838_s3 + $0x48] sm:$0xff] %vm733_vm1, %v693_v28  ;;  %v680_v42 = vadd.f32 %v679_v30, %v1701_v7  ;;  %v670_v50 = vadd.f32 %v669_v31, %v1668_v11  ;;  %v681_v32 = vpop.f32.mrb[19].mxu1 }
 0x14a   :  { %754 = vst.msk [vmem:[%s1838_s3 + $0xe8] sm:$0xff] %vm733_vm1, %v713_v25  ;;  %v702_v33 = vmax.f32 %v668_v29, 0.0  ;;  %v682_v34 = vadd.f32 %v681_v32, %v1701_v7 }
 0x14b   :  { %v722_v35 = vmax.f32 %v680_v42, 0.0  ;;  %v703_v36 = vmax.f32 %v670_v50, 0.0 }
 0x14c   :  { %743 = vst [vmem:[%s1838_s3 + $0x90] sm:$0xff] %v702_v33  ;;  %v723_v37 = vmax.f32 %v682_v34, 0.0 }
 0x14d   :  { %763 = vst [vmem:[%s1838_s3 + $0x130] sm:$0xff] %v722_v35  ;;  %744 = vst.msk [vmem:[%s1838_s3 + $0x98] sm:$0xff] %vm733_vm1, %v703_v36 }
 0x14e   :  { %764 = vst.msk [vmem:[%s1838_s3 + $0x138] sm:$0xff] %vm733_vm1, %v723_v37 }

// kernel: forward.7
= control target key start
LH: loop header
LB: loop body
LE: loop exit
PB: predicated region body
PF: predicated region fallthrough
CT: control target
= control target key end

     0   :  { %v2275_v3 = vmov 0.0   ;;  %vm446_vm0 = vcmask 261120   ;;  %vm1610_vm1 = vcmask 31744   ;;  %s4220_s0 = inlined_call_operand.vmem [shape: f32[288,1156], index: 0, kind: input, shape index: {}]   ;;  %s4221_s1 = inlined_call_operand.vmem [shape: f32[64,288], index: 1, kind: input, shape index: {}]   ;;  %s4222_s2 = inlined_call_operand.vmem [shape: f32[64,1], index: 2, kind: input, shape index: {}]   ;;  %s4223_s3 = inlined_call_operand.vmem [shape: f32[64,1156], index: 3, kind: output, shape index: {}]  }
   0x1   :  { %v39_v0 = vld [vmem:[%s4220_s0 + $0x8] sm:$0xff]  ;;  %v49_v1 = vld [vmem:[%s4220_s0 + $0x58] sm:$0xff]  ;;  %648 = vmatprep.mubr.f32.mxu0 %v2275_v3  ;;  %v38_v6 = vld [vmem:[%s4220_s0] sm:$0xff] }
   0x2   :  { %v359_v2 = vld [vmem:[%s4220_s0 + $0xa08] sm:$0xff]  ;;  %v1726_v4 = vpack.c.bf16 %v49_v1, %v39_v0  ;;  %v369_v5 = vld [vmem:[%s4220_s0 + $0xa58] sm:$0xff]  ;;  %v48_v7 = vld [vmem:[%s4220_s0 + $0x50] sm:$0xff] }
   0x3   :  { %v1790_v8 = vpack.c.bf16 %v369_v5, %v359_v2  ;;  %v1728_v9 = vpack.c.bf16 %v48_v7, %v38_v6  ;;  %v358_v10 = vld [vmem:[%s4220_s0 + $0xa00] sm:$0xff]  ;;  %v368_v11 = vld [vmem:[%s4220_s0 + $0xa50] sm:$0xff]  ;;  %v59_v12 = vld [vmem:[%s4220_s0 + $0xa8] sm:$0xff] }
   0x4   :  { %1727 = vmatprep.subr.bf16.mxu1 %v1726_v4  ;;  %v1792_v13 = vpack.c.bf16 %v368_v11, %v358_v10  ;;  %v69_v14 = vld [vmem:[%s4220_s0 + $0xf8] sm:$0xff]  ;;  %v379_v15 = vld [vmem:[%s4220_s0 + $0xaa8] sm:$0xff]  ;;  %v58_v19 = vld [vmem:[%s4220_s0 + $0xa0] sm:$0xff] }
   0x5   :  { %v389_v16 = vld [vmem:[%s4220_s0 + $0xaf8] sm:$0xff]  ;;  %1791 = vmatprep.subr.bf16.mxu0 %v1790_v8  ;;  %1729 = vmatpush1.bf16.msra.mxu1 %v1728_v9  ;;  %v1730_v17 = vpack.c.bf16 %v69_v14, %v59_v12  ;;  %v68_v20 = vld [vmem:[%s4220_s0 + $0xf0] sm:$0xff]  ;;  %v378_v21 = vld [vmem:[%s4220_s0 + $0xaa0] sm:$0xff]  ;;  %v2276_v12 = vmov 0  }
   0x6   :  { %v1794_v18 = vpack.c.bf16 %v389_v16, %v379_v15  ;;  %1793 = vmatpush1.bf16.msra.mxu0 %v1792_v13  ;;  %v1732_v22 = vpack.c.bf16 %v68_v20, %v58_v19  ;;  %v388_v23 = vld [vmem:[%s4220_s0 + $0xaf0] sm:$0xff]  ;;  %v79_v24 = vld [vmem:[%s4220_s0 + $0x148] sm:$0xff]  ;;  %v89_v25 = vld [vmem:[%s4220_s0 + $0x198] sm:$0xff]  ;;  %2252 = vset.pattern.permute.xlu0 %v2276_v12 }
   0x7   :  { %1731 = vmatprep.subr.bf16.mxu1 %v1730_v17  ;;  %v1796_v26 = vpack.c.bf16 %v388_v23, %v378_v21  ;;  %v1734_v27 = vpack.c.bf16 %v89_v25, %v79_v24  ;;  %v78_v28 = vld [vmem:[%s4220_s0 + $0x140] sm:$0xff]  ;;  %v88_v29 = vld [vmem:[%s4220_s0 + $0x190] sm:$0xff]  ;;  %v361_v30 = vld [vmem:[%s4220_s0 + $0xa18] sm:$0xff]  ;;  %2253 = vset.pattern.permute.xlu1 %v2276_v12 }
   0x8   :  { %1795 = vmatprep.subr.bf16.mxu0 %v1794_v18  ;;  %v371_v31 = vld [vmem:[%s4220_s0 + $0xa68] sm:$0xff]  ;;  %v360_v32 = vld [vmem:[%s4220_s0 + $0xa10] sm:$0xff]  ;;  %v1736_v33 = vpack.c.bf16 %v88_v29, %v78_v28  ;;  %v370_v35 = vld [vmem:[%s4220_s0 + $0xa60] sm:$0xff] }
   0x9   :  { %1733 = vmatpush1.bf16.msra.mxu1 %v1732_v22  ;;  %v1862_v34 = vpack.c.bf16 %v371_v31, %v361_v30  ;;  %v99_v36 = vld [vmem:[%s4220_s0 + $0x1e8] sm:$0xff]  ;;  %v109_v37 = vld [vmem:[%s4220_s0 + $0x238] sm:$0xff]  ;;  %v2379_v38 = vld [vmem:[%s4221_s1 + $0x10] sm:$0xff]  ;;  %v1864_v39 = vpack.c.bf16 %v370_v35, %v360_v32 }
   0xa   :  { %1797 = vmatpush1.bf16.msra.mxu0 %v1796_v26  ;;  %1735 = vmatprep.subr.bf16.mxu1 %v1734_v27  ;;  %v98_v40 = vld [vmem:[%s4220_s0 + $0x1e0] sm:$0xff]  ;;  %v108_v41 = vld [vmem:[%s4220_s0 + $0x230] sm:$0xff]  ;;  %v1738_v42 = vpack.c.bf16 %v109_v37, %v99_v36  ;;  %v119_v43 = vld [vmem:[%s4220_s0 + $0x288] sm:$0xff] }
   0xb   :  { %1863 = vmatprep.subr.bf16.mxu0 %v1862_v34  ;;  %v129_v44 = vld [vmem:[%s4220_s0 + $0x2d8] sm:$0xff]  ;;  %v1740_v45 = vpack.c.bf16 %v108_v41, %v98_v40  ;;  %v2399_v46 = vld [vmem:[%s4221_s1 + $0x28] sm:$0xff]  ;;  %v118_v48 = vld [vmem:[%s4220_s0 + $0x280] sm:$0xff] }
   0xc   :  { %v1742_v47 = vpack.c.bf16 %v129_v44, %v119_v43  ;;  %v128_v49 = vld [vmem:[%s4220_s0 + $0x2d0] sm:$0xff]  ;;  %v139_v50 = vld [vmem:[%s4220_s0 + $0x328] sm:$0xff]  ;;  %v149_v51 = vld [vmem:[%s4220_s0 + $0x378] sm:$0xff] }
   0xd   :  { %1686 = vmatmul.mubr.msk.f32.vlgmr.msra.gmra.mrb[0].mxu0 %vm446_vm0, %v2379_v38  ;;  %1737 = vmatpush1.bf16.msra.mxu1 %v1736_v33  ;;  %v381_v52 = vld [vmem:[%s4220_s0 + $0xab8] sm:$0xff]  ;;  %v391_v53 = vld [vmem:[%s4220_s0 + $0xb08] sm:$0xff]  ;;  %v380_v54 = vld [vmem:[%s4220_s0 + $0xab0] sm:$0xff]  ;;  %v1744_v55 = vpack.c.bf16 %v128_v49, %v118_v48  ;;  %v1746_v59 = vpack.c.bf16 %v149_v51, %v139_v50 }
   0xe   :  { %654 = vmatprep.mubr.f32.mxu0 %v2275_v3  ;;  %1865 = vmatpush1.bf16.msra.mxu0 %v1864_v39  ;;  %v1866_v56 = vpack.c.bf16 %v391_v53, %v381_v52  ;;  %v390_v57 = vld [vmem:[%s4220_s0 + $0xb00] sm:$0xff]  ;;  %v148_v61 = vld [vmem:[%s4220_s0 + $0x370] sm:$0xff]  ;;  %v159_v63 = vld [vmem:[%s4220_s0 + $0x3c8] sm:$0xff] }
   0xf   :  { %1739 = vmatprep.subr.bf16.mxu1 %v1738_v42  ;;  %v2431_v58 = vld [vmem:[%s4221_s1 + $0x40] sm:$0xff]  ;;  %v1868_v62 = vpack.c.bf16 %v390_v57, %v380_v54  ;;  %v169_v0 = vld [vmem:[%s4220_s0 + $0x418] sm:$0xff]  ;;  %v168_v6 = vld [vmem:[%s4220_s0 + $0x410] sm:$0xff] }
  0x10   :  { %v138_v60 = vld [vmem:[%s4220_s0 + $0x320] sm:$0xff]  ;;  %1867 = vmatprep.subr.bf16.mxu0 %v1866_v56  ;;  %v2450_v1 = vld [vmem:[%s4221_s1 + $0x58] sm:$0xff]  ;;  %v1750_v5 = vpack.c.bf16 %v169_v0, %v159_v63  ;;  %v43_v7 = vld [vmem:[%s4220_s0 + $0x28] sm:$0xff] }
  0x11   :  { %1687 = vmatmul.mubr.msk.f32.gmra.mrb[2].mxu0 %vm446_vm0, %v2399_v46  ;;  %1741 = vmatpush1.bf16.msra.mxu1 %v1740_v45  ;;  %v1748_v2 = vpack.c.bf16 %v148_v61, %v138_v60  ;;  %v158_v4 = vld [vmem:[%s4220_s0 + $0x3c0] sm:$0xff]  ;;  %v53_v8 = vld [vmem:[%s4220_s0 + $0x78] sm:$0xff]  ;;  %v179_v9 = vld [vmem:[%s4220_s0 + $0x468] sm:$0xff] }
  0x12   :  { %660 = vmatprep.mubr.f32.mxu0 %v2275_v3  ;;  %1743 = vmatprep.subr.bf16.mxu1 %v1742_v47  ;;  %v189_v10 = vld [vmem:[%s4220_s0 + $0x4b8] sm:$0xff]  ;;  %v1870_v11 = vpack.c.bf16 %v53_v8, %v43_v7  ;;  %v1752_v13 = vpack.c.bf16 %v168_v6, %v158_v4  ;;  %v2477_v14 = vld [vmem:[%s4221_s1 + $0x70] sm:$0xff]  ;;  %v178_v16 = vld [vmem:[%s4220_s0 + $0x460] sm:$0xff] }
  0x13   :  { %1869 = vmatpush1.bf16.msra.mxu0 %v1868_v62  ;;  %v1754_v15 = vpack.c.bf16 %v189_v10, %v179_v9  ;;  %v188_v17 = vld [vmem:[%s4220_s0 + $0x4b0] sm:$0xff]  ;;  %v199_v18 = vld [vmem:[%s4220_s0 + $0x508] sm:$0xff]  ;;  %v209_v19 = vld [vmem:[%s4220_s0 + $0x558] sm:$0xff] }
  0x14   :  { %1871 = vmatprep.subr.bf16.mxu0 %v1870_v11  ;;  %v1756_v20 = vpack.c.bf16 %v188_v17, %v178_v16  ;;  %v2497_v21 = vld [vmem:[%s4221_s1 + $0x88] sm:$0xff]  ;;  %v1758_v22 = vpack.c.bf16 %v209_v19, %v199_v18  ;;  %v198_v23 = vld [vmem:[%s4220_s0 + $0x500] sm:$0xff]  ;;  %v208_v24 = vld [vmem:[%s4220_s0 + $0x550] sm:$0xff] }
  0x15   :  { %1688 = vmatmul.mubr.msk.f32.gmra.mrb[4].mxu0 %vm446_vm0, %v2431_v58  ;;  %1745 = vmatpush1.bf16.msra.mxu1 %v1744_v55  ;;  %v219_v25 = vld [vmem:[%s4220_s0 + $0x5a8] sm:$0xff]  ;;  %v229_v26 = vld [vmem:[%s4220_s0 + $0x5f8] sm:$0xff]  ;;  %v1760_v27 = vpack.c.bf16 %v208_v24, %v198_v23  ;;  %v2517_v28 = vld [vmem:[%s4221_s1 + $0xa0] sm:$0xff] }
  0x16   :  { %666 = vmatprep.mubr.f32.mxu0 %v2275_v3  ;;  %1747 = vmatprep.subr.bf16.mxu1 %v1746_v59  ;;  %v1762_v29 = vpack.c.bf16 %v229_v26, %v219_v25  ;;  %v218_v30 = vld [vmem:[%s4220_s0 + $0x5a0] sm:$0xff]  ;;  %v228_v31 = vld [vmem:[%s4220_s0 + $0x5f0] sm:$0xff]  ;;  %v239_v32 = vld [vmem:[%s4220_s0 + $0x648] sm:$0xff] }
  0x17   :  { %v249_v33 = vld [vmem:[%s4220_s0 + $0x698] sm:$0xff]  ;;  %v1764_v35 = vpack.c.bf16 %v228_v31, %v218_v30  ;;  %v42_v36 = vld [vmem:[%s4220_s0 + $0x20] sm:$0xff]  ;;  %v248_v40 = vld [vmem:[%s4220_s0 + $0x690] sm:$0xff] }
  0x18   :  { %v2536_v34 = vld [vmem:[%s4221_s1 + $0xb8] sm:$0xff]  ;;  %v1766_v37 = vpack.c.bf16 %v249_v33, %v239_v32  ;;  %v238_v39 = vld [vmem:[%s4220_s0 + $0x640] sm:$0xff]  ;;  %v2551_v41 = vld [vmem:[%s4221_s1 + $0x8] sm:$0xff] }
  0x19   :  { %1689 = vmatmul.mubr.msk.f32.gmra.mrb[6].mxu0 %vm446_vm0, %v2450_v1  ;;  %1749 = vmatpush1.bf16.msra.mxu1 %v1748_v2  ;;  %v52_v42 = vld [vmem:[%s4220_s0 + $0x70] sm:$0xff]  ;;  %v259_v43 = vld [vmem:[%s4220_s0 + $0x6e8] sm:$0xff]  ;;  %v269_v44 = vld [vmem:[%s4220_s0 + $0x738] sm:$0xff]  ;;  %v1768_v48 = vpack.c.bf16 %v248_v40, %v238_v39 }
  0x1a   :  { %672 = vmatprep.mubr.f32.mxu0 %v2275_v3  ;;  %1751 = vmatprep.subr.bf16.mxu1 %v1750_v5  ;;  %v63_v45 = vld [vmem:[%s4220_s0 + $0xc8] sm:$0xff]  ;;  %v73_v47 = vld [vmem:[%s4220_s0 + $0x118] sm:$0xff]  ;;  %v1872_v49 = vpack.c.bf16 %v52_v42, %v42_v36  ;;  %v1770_v50 = vpack.c.bf16 %v269_v44, %v259_v43  ;;  %v62_v51 = vld [vmem:[%s4220_s0 + $0xc0] sm:$0xff] }
  0x1b   :  { %535 = vmatprep.mubr.f32.mxu1 %v2551_v41  ;;  %v258_v52 = vld [vmem:[%s4220_s0 + $0x6e0] sm:$0xff]  ;;  %v268_v53 = vld [vmem:[%s4220_s0 + $0x730] sm:$0xff]  ;;  %v1874_v54 = vpack.c.bf16 %v73_v47, %v63_v45  ;;  %v279_v56 = vld [vmem:[%s4220_s0 + $0x788] sm:$0xff] }
  0x1c   :  { %v72_v55 = vld [vmem:[%s4220_s0 + $0x110] sm:$0xff]  ;;  %v289_v57 = vld [vmem:[%s4220_s0 + $0x7d8] sm:$0xff]  ;;  %v83_v59 = vld [vmem:[%s4220_s0 + $0x168] sm:$0xff]  ;;  %v1772_v61 = vpack.c.bf16 %v268_v53, %v258_v52 }
  0x1d   :  { %1690 = vmatmul.mubr.msk.f32.gmra.mrb[8].mxu0 %vm446_vm0, %v2477_v14  ;;  %1753 = vmatpush1.bf16.msra.mxu1 %v1752_v13  ;;  %v93_v60 = vld [vmem:[%s4220_s0 + $0x1b8] sm:$0xff]  ;;  %v1876_v62 = vpack.c.bf16 %v72_v55, %v62_v51  ;;  %v1774_v63 = vpack.c.bf16 %v289_v57, %v279_v56  ;;  %v82_v0 = vld [vmem:[%s4220_s0 + $0x160] sm:$0xff]  ;;  %v288_v4 = vld [vmem:[%s4220_s0 + $0x7d0] sm:$0xff] }
  0x1e   :  { %678 = vmatprep.mubr.f32.mxu0 %v2275_v3  ;;  %1755 = vmatprep.subr.bf16.mxu1 %v1754_v15  ;;  %v278_v2 = vld [vmem:[%s4220_s0 + $0x780] sm:$0xff]  ;;  %v92_v5 = vld [vmem:[%s4220_s0 + $0x1b0] sm:$0xff]  ;;  %v299_v6 = vld [vmem:[%s4220_s0 + $0x828] sm:$0xff] }
  0x1f   :  { %v309_v7 = vld [vmem:[%s4220_s0 + $0x878] sm:$0xff]  ;;  %v103_v8 = vld [vmem:[%s4220_s0 + $0x208] sm:$0xff]  ;;  %v1776_v10 = vpack.c.bf16 %v288_v4, %v278_v2  ;;  %v1880_v11 = vpack.c.bf16 %v92_v5, %v82_v0  ;;  %v102_v13 = vld [vmem:[%s4220_s0 + $0x200] sm:$0xff] }
  0x20   :  { %v113_v9 = vld [vmem:[%s4220_s0 + $0x258] sm:$0xff]  ;;  %v1778_v12 = vpack.c.bf16 %v309_v7, %v299_v6  ;;  %v298_v15 = vld [vmem:[%s4220_s0 + $0x820] sm:$0xff]  ;;  %v308_v16 = vld [vmem:[%s4220_s0 + $0x870] sm:$0xff] }
  0x21   :  { %1691 = vmatmul.mubr.msk.f32.gmra.mrb[10].mxu0 %vm446_vm0, %v2497_v21  ;;  %1757 = vmatpush1.bf16.msra.mxu1 %v1756_v20  ;;  %v1882_v17 = vpack.c.bf16 %v113_v9, %v103_v8  ;;  %v319_v18 = vld [vmem:[%s4220_s0 + $0x8c8] sm:$0xff]  ;;  %v329_v19 = vld [vmem:[%s4220_s0 + $0x918] sm:$0xff]  ;;  %v1780_v23 = vpack.c.bf16 %v308_v16, %v298_v15  ;;  %v122_v26 = vld [vmem:[%s4220_s0 + $0x2a0] sm:$0xff] }
  0x22   :  { %684 = vmatprep.mubr.f32.mxu0 %v2275_v3  ;;  %1759 = vmatprep.subr.bf16.mxu1 %v1758_v22  ;;  %v123_v20 = vld [vmem:[%s4220_s0 + $0x2a8] sm:$0xff]  ;;  %v133_v22 = vld [vmem:[%s4220_s0 + $0x2f8] sm:$0xff]  ;;  %v1782_v25 = vpack.c.bf16 %v329_v19, %v319_v18  ;;  %v142_v40 = vld [vmem:[%s4220_s0 + $0x340] sm:$0xff] }
  0x23   :  { %v1886_v30 = vpack.c.bf16 %v133_v22, %v123_v20  ;;  %v339_v31 = vld [vmem:[%s4220_s0 + $0x968] sm:$0xff]  ;;  %v349_v32 = vld [vmem:[%s4220_s0 + $0x9b8] sm:$0xff]  ;;  %v338_v42 = vld [vmem:[%s4220_s0 + $0x960] sm:$0xff] }
  0x24   :  { %v143_v33 = vld [vmem:[%s4220_s0 + $0x348] sm:$0xff]  ;;  %v1786_v39 = vpack.c.bf16 %v349_v32, %v339_v31  ;;  %v348_v43 = vld [vmem:[%s4220_s0 + $0x9b0] sm:$0xff]  ;;  %v41_v45 = vld [vmem:[%s4220_s0 + $0x18] sm:$0xff] }
  0x25   :  { %1692 = vmatmul.mubr.msk.f32.gmra.mrb[12].mxu0 %vm446_vm0, %v2517_v28  ;;  %1761 = vmatpush1.bf16.msra.mxu1 %v1760_v27  ;;  %v318_v27 = vld [vmem:[%s4220_s0 + $0x8c0] sm:$0xff]  ;;  %v51_v47 = vld [vmem:[%s4220_s0 + $0x68] sm:$0xff]  ;;  %v61_v57 = vld [vmem:[%s4220_s0 + $0xb8] sm:$0xff] }
  0x26   :  { %690 = vmatprep.mubr.f32.mxu0 %v2275_v3  ;;  %1763 = vmatprep.subr.bf16.mxu1 %v1762_v29  ;;  %v328_v29 = vld [vmem:[%s4220_s0 + $0x910] sm:$0xff]  ;;  %v1798_v52 = vpack.c.bf16 %v51_v47, %v41_v45  ;;  %v162_v53 = vld [vmem:[%s4220_s0 + $0x3e0] sm:$0xff]  ;;  %v81_v8 = vld [vmem:[%s4220_s0 + $0x158] sm:$0xff] }
  0x27   :  { %v1784_v36 = vpack.c.bf16 %v328_v29, %v318_v27  ;;  %v50_v55 = vld [vmem:[%s4220_s0 + $0x60] sm:$0xff]  ;;  %v60_v5 = vld [vmem:[%s4220_s0 + $0xb0] sm:$0xff]  ;;  %v91_v9 = vld [vmem:[%s4220_s0 + $0x1a8] sm:$0xff] }
  0x28   :  { %v2739_v0 = vld [vmem:[%s4221_s1 + $0x20] sm:$0xff]  ;;  %v2778_v15 = vld [vmem:[%s4221_s1 + $0x38] sm:$0xff]  ;;  %v80_v18 = vld [vmem:[%s4220_s0 + $0x150] sm:$0xff] }
  0x29   :  { %1693 = vmatmul.mubr.msk.f32.gmra.mrb[14].mxu0 %vm446_vm0, %v2536_v34  ;;  %1765 = vmatpush1.bf16.msra.mxu1 %v1764_v35  ;;  %v153_v35 = vld [vmem:[%s4220_s0 + $0x398] sm:$0xff]  ;;  %v70_v6 = vld [vmem:[%s4220_s0 + $0x100] sm:$0xff]  ;;  %v212_v22 = vld [vmem:[%s4220_s0 + $0x570] sm:$0xff] }
  0x2a   :  { %874 = vmatprep.mubr.f32.mxu0 %v2275_v3  ;;  %1767 = vmatprep.subr.bf16.mxu1 %v1766_v37  ;;  %v1890_v44 = vpack.c.bf16 %v153_v35, %v143_v33  ;;  %v90_v19 = vld [vmem:[%s4220_s0 + $0x1a0] sm:$0xff]  ;;  %v2812_v27 = vld [vmem:[%s4221_s1 + $0x30] sm:$0xff] }
  0x2b   :  { %v2817_v29 = vld [vmem:[%s4221_s1 + $0x50] sm:$0xff]  ;;  %v222_v31 = vld [vmem:[%s4220_s0 + $0x5c0] sm:$0xff] }
  0x2c   :  { %v100_v32 = vld [vmem:[%s4220_s0 + $0x1f0] sm:$0xff]  ;;  %v110_v33 = vld [vmem:[%s4220_s0 + $0x240] sm:$0xff] }
  0x2d   :  { %1694 = vmatmul.mubr.msk.f32.vlgmr.msra.gmra.mrb[16].mxu0 %vm446_vm0, %v2379_v38  ;;  %1769 = vmatpush1.bf16.msra.mxu1 %v1768_v48  ;;  %v1878_v38 = vpack.c.bf16 %v93_v60, %v83_v59  ;;  %v163_v48 = vld [vmem:[%s4220_s0 + $0x3e8] sm:$0xff]  ;;  %v242_v47 = vld [vmem:[%s4220_s0 + $0x660] sm:$0xff] }
  0x2e   :  { %1873 = vmatpush1.bf16.msra.mxu0 %v1872_v49  ;;  %1771 = vmatprep.subr.bf16.mxu1 %v1770_v50  ;;  %v173_v49 = vld [vmem:[%s4220_s0 + $0x438] sm:$0xff]  ;;  %v1788_v50 = vpack.c.bf16 %v348_v43, %v338_v42  ;;  %v71_v59 = vld [vmem:[%s4220_s0 + $0x108] sm:$0xff] }
  0x2f   :  { %1875 = vmatprep.subr.bf16.mxu0 %v1874_v54  ;;  %880 = vmatprep.mubr.f32.mxu0 %v2275_v3  ;;  %v40_v54 = vld [vmem:[%s4220_s0 + $0x10] sm:$0xff]  ;;  %v1894_v56 = vpack.c.bf16 %v173_v49, %v163_v48  ;;  %v183_v60 = vld [vmem:[%s4220_s0 + $0x488] sm:$0xff]  ;;  %v1802_v4 = vpack.c.bf16 %v71_v59, %v61_v57  ;;  %v253_v42 = vld [vmem:[%s4220_s0 + $0x6b8] sm:$0xff] }
  0x30   :  { %v2851_v43 = vld [vmem:[%s4221_s1 + $0x48] sm:$0xff]  ;;  %v120_v48 = vld [vmem:[%s4220_s0 + $0x290] sm:$0xff]  ;;  %v130_v49 = vld [vmem:[%s4220_s0 + $0x2e0] sm:$0xff] }
  0x31   :  { %1773 = vmatpush1.bf16.msra.mxu1 %v1772_v61  ;;  %1695 = vmatmul.mubr.msk.f32.gmra.mrb[18].mxu0 %vm446_vm0, %v2399_v46  ;;  %v112_v46 = vld [vmem:[%s4220_s0 + $0x250] sm:$0xff]  ;;  %v193_v61 = vld [vmem:[%s4220_s0 + $0x4d8] sm:$0xff]  ;;  %v2892_v57 = vld [vmem:[%s4221_s1 + $0x80] sm:$0xff] }
  0x32   :  { %1877 = vmatpush1.bf16.msra.mxu0 %v1876_v62  ;;  %1775 = vmatprep.subr.bf16.mxu1 %v1774_v63  ;;  %v1884_v24 = vpack.c.bf16 %v112_v46, %v102_v13  ;;  %v2734_v62 = vld [vmem:[%s4221_s1] sm:$0xff]  ;;  %v1800_v63 = vpack.c.bf16 %v50_v55, %v40_v54  ;;  %v1898_v7 = vpack.c.bf16 %v193_v61, %v183_v60  ;;  %v263_v54 = vld [vmem:[%s4220_s0 + $0x708] sm:$0xff]  ;;  %v273_v55 = vld [vmem:[%s4220_s0 + $0x758] sm:$0xff] }
  0x33   :  { %1879 = vmatprep.subr.bf16.mxu0 %v1878_v38  ;;  %886 = vmatprep.mubr.f32.mxu0 %v2275_v3  ;;  %v182_v38 = vld [vmem:[%s4220_s0 + $0x480] sm:$0xff]  ;;  %v1804_v13 = vpack.c.bf16 %v70_v6, %v60_v5  ;;  %v161_v5 = vld [vmem:[%s4220_s0 + $0x3d8] sm:$0xff]  ;;  %v171_v6 = vld [vmem:[%s4220_s0 + $0x428] sm:$0xff] }
  0x34   :  { %v202_v46 = vld [vmem:[%s4220_s0 + $0x520] sm:$0xff] }
  0x35   :  { %1777 = vmatpush1.bf16.msra.mxu1 %v1776_v10  ;;  %1696 = vmatmul.mubr.msk.f32.gmra.mrb[20].mxu0 %vm446_vm0, %v2431_v58  ;;  %v132_v58 = vld [vmem:[%s4220_s0 + $0x2f0] sm:$0xff]  ;;  %v203_v10 = vld [vmem:[%s4220_s0 + $0x528] sm:$0xff]  ;;  %v262_v61 = vld [vmem:[%s4220_s0 + $0x700] sm:$0xff] }
  0x36   :  { %1881 = vmatpush1.bf16.msra.mxu0 %v1880_v11  ;;  %1779 = vmatprep.subr.bf16.mxu1 %v1778_v12  ;;  %v1888_v37 = vpack.c.bf16 %v132_v58, %v122_v26  ;;  %v213_v11 = vld [vmem:[%s4220_s0 + $0x578] sm:$0xff] }
  0x37   :  { %1883 = vmatprep.subr.bf16.mxu0 %v1882_v17  ;;  %892 = vmatprep.mubr.f32.mxu0 %v2275_v3  ;;  %v2773_v12 = vld [vmem:[%s4221_s1 + $0x18] sm:$0xff]  ;;  %v1806_v17 = vpack.c.bf16 %v91_v9, %v81_v8  ;;  %v1902_v20 = vpack.c.bf16 %v213_v11, %v203_v10 }
  0x38   :  { %v233_v26 = vld [vmem:[%s4220_s0 + $0x618] sm:$0xff] }
  0x39   :  { %1781 = vmatpush1.bf16.msra.mxu1 %v1780_v23  ;;  %1697 = vmatmul.mubr.msk.f32.gmra.mrb[22].mxu0 %vm446_vm0, %v2450_v1  ;;  %v152_v1 = vld [vmem:[%s4220_s0 + $0x390] sm:$0xff]  ;;  %v101_v23 = vld [vmem:[%s4220_s0 + $0x1f8] sm:$0xff] }
  0x3a   :  { %1885 = vmatpush1.bf16.msra.mxu0 %v1884_v24  ;;  %1783 = vmatprep.subr.bf16.mxu1 %v1782_v25  ;;  %v1892_v51 = vpack.c.bf16 %v152_v1, %v142_v40  ;;  %v111_v24 = vld [vmem:[%s4220_s0 + $0x248] sm:$0xff]  ;;  %v2923_v8 = vld [vmem:[%s4221_s1 + $0x78] sm:$0xff] }
  0x3b   :  { %1887 = vmatprep.subr.bf16.mxu0 %v1886_v30  ;;  %898 = vmatprep.mubr.f32.mxu0 %v2275_v3  ;;  %v223_v25 = vld [vmem:[%s4220_s0 + $0x5c8] sm:$0xff]  ;;  %v1904_v30 = vpack.c.bf16 %v212_v22, %v202_v46  ;;  %v1810_v58 = vpack.c.bf16 %v111_v24, %v101_v23  ;;  %v2928_v10 = vld [vmem:[%s4221_s1 + $0x98] sm:$0xff]  ;;  %v170_v46 = vld [vmem:[%s4220_s0 + $0x420] sm:$0xff] }
  0x3c   :  { %v1906_v35 = vpack.c.bf16 %v233_v26, %v223_v25  ;;  %v243_v40 = vld [vmem:[%s4220_s0 + $0x668] sm:$0xff]  ;;  %v313_v24 = vld [vmem:[%s4220_s0 + $0x898] sm:$0xff]  ;;  %v2959_v25 = vld [vmem:[%s4221_s1 + $0x90] sm:$0xff] }
  0x3d   :  { %1785 = vmatpush1.bf16.msra.mxu1 %v1784_v36  ;;  %1698 = vmatmul.mubr.msk.f32.gmra.mrb[24].mxu0 %vm446_vm0, %v2477_v14  ;;  %v172_v14 = vld [vmem:[%s4220_s0 + $0x430] sm:$0xff]  ;;  %v191_v22 = vld [vmem:[%s4220_s0 + $0x4c8] sm:$0xff] }
  0x3e   :  { %1889 = vmatpush1.bf16.msra.mxu0 %v1888_v37  ;;  %1787 = vmatprep.subr.bf16.mxu1 %v1786_v39  ;;  %v1896_v2 = vpack.c.bf16 %v172_v14, %v162_v53  ;;  %v232_v36 = vld [vmem:[%s4220_s0 + $0x610] sm:$0xff]  ;;  %v121_v37 = vld [vmem:[%s4220_s0 + $0x298] sm:$0xff]  ;;  %v131_v39 = vld [vmem:[%s4220_s0 + $0x2e8] sm:$0xff]  ;;  %v1816_v14 = vpack.c.bf16 %v130_v49, %v120_v48 }
  0x3f   :  { %1891 = vmatprep.subr.bf16.mxu0 %v1890_v44  ;;  %904 = vmatprep.mubr.f32.mxu0 %v2275_v3  ;;  %v2856_v44 = vld [vmem:[%s4221_s1 + $0x68] sm:$0xff]  ;;  %v1908_v1 = vpack.c.bf16 %v232_v36, %v222_v31  ;;  %v1814_v45 = vpack.c.bf16 %v131_v39, %v121_v37  ;;  %v302_v31 = vld [vmem:[%s4220_s0 + $0x840] sm:$0xff]  ;;  %v312_v36 = vld [vmem:[%s4220_s0 + $0x890] sm:$0xff] }
  0x40   :  { %v151_v53 = vld [vmem:[%s4220_s0 + $0x388] sm:$0xff]  ;;  %v201_v37 = vld [vmem:[%s4220_s0 + $0x518] sm:$0xff]  ;;  %v322_v49 = vld [vmem:[%s4220_s0 + $0x8e0] sm:$0xff] }
  0x41   :  { %1789 = vmatpush1.bf16.msra.mxu1 %v1788_v50  ;;  %1699 = vmatmul.mubr.msk.f32.gmra.mrb[26].mxu0 %vm446_vm0, %v2497_v21  ;;  %v192_v21 = vld [vmem:[%s4220_s0 + $0x4d0] sm:$0xff]  ;;  %v1910_v50 = vpack.c.bf16 %v253_v42, %v243_v40  ;;  %v303_v23 = vld [vmem:[%s4220_s0 + $0x848] sm:$0xff]  ;;  %v333_v42 = vld [vmem:[%s4220_s0 + $0x938] sm:$0xff] }
  0x42   :  { %1893 = vmatpush1.bf16.msra.mxu0 %v1892_v51  ;;  %1799 = vmatprep.subr.bf16.mxu1 %v1798_v52  ;;  %v1900_v16 = vpack.c.bf16 %v192_v21, %v182_v38  ;;  %v252_v51 = vld [vmem:[%s4220_s0 + $0x6b0] sm:$0xff]  ;;  %v141_v52 = vld [vmem:[%s4220_s0 + $0x338] sm:$0xff]  ;;  %v211_v39 = vld [vmem:[%s4220_s0 + $0x568] sm:$0xff] }
  0x43   :  { %1895 = vmatprep.subr.bf16.mxu0 %v1894_v56  ;;  %910 = vmatprep.mubr.f32.mxu0 %v2275_v3  ;;  %v2887_v56 = vld [vmem:[%s4221_s1 + $0x60] sm:$0xff]  ;;  %v1912_v59 = vpack.c.bf16 %v252_v51, %v242_v47  ;;  %v1818_v60 = vpack.c.bf16 %v151_v53, %v141_v52  ;;  %v272_v38 = vld [vmem:[%s4220_s0 + $0x750] sm:$0xff]  ;;  %v293_v21 = vld [vmem:[%s4220_s0 + $0x7f8] sm:$0xff]  ;;  %v1924_v47 = vpack.c.bf16 %v312_v36, %v302_v31 }
  0x44   :  { %536 = vmatmul.mubr.f32.vlgmr.msra.gmra.mrb[0].mxu1 %v2734_v62  ;;  %v1916_v11 = vpack.c.bf16 %v272_v38, %v262_v61  ;;  %v323_v40 = vld [vmem:[%s4220_s0 + $0x8e8] sm:$0xff]  ;;  %v1830_v48 = vpack.c.bf16 %v211_v39, %v201_v37  ;;  %v210_v51 = vld [vmem:[%s4220_s0 + $0x560] sm:$0xff]  ;;  %v332_v53 = vld [vmem:[%s4220_s0 + $0x930] sm:$0xff] }
  0x45   :  { %1801 = vmatpush1.bf16.msra.mxu1 %v1800_v63  ;;  %541 = vmatprep.mubr.f32.mxu1 %v2739_v0  ;;  %v140_v63 = vld [vmem:[%s4220_s0 + $0x330] sm:$0xff]  ;;  %v1926_v52 = vpack.c.bf16 %v333_v42, %v323_v40  ;;  %v393_v31 = vld [vmem:[%s4220_s0 + $0xb18] sm:$0xff]  ;;  %v270_v37 = vld [vmem:[%s4220_s0 + $0x740] sm:$0xff] }
  0x46   :  { %1897 = vmatpush1.bf16.msra.mxu0 %v1896_v2  ;;  %1803 = vmatprep.subr.bf16.mxu1 %v1802_v4  ;;  %v150_v2 = vld [vmem:[%s4220_s0 + $0x380] sm:$0xff]  ;;  %v1914_v4 = vpack.c.bf16 %v273_v55, %v263_v54  ;;  %v221_v54 = vld [vmem:[%s4220_s0 + $0x5b8] sm:$0xff]  ;;  %v231_v55 = vld [vmem:[%s4220_s0 + $0x608] sm:$0xff] }
  0x47   :  { %1899 = vmatprep.subr.bf16.mxu0 %v1898_v7  ;;  %1700 = vmatmul.mubr.msk.f32.gmra.mrb[28].mxu0 %vm446_vm0, %v2517_v28  ;;  %v1808_v28 = vpack.c.bf16 %v90_v19, %v80_v18  ;;  %v283_v7 = vld [vmem:[%s4220_s0 + $0x7a8] sm:$0xff]  ;;  %v1820_v9 = vpack.c.bf16 %v150_v2, %v140_v63  ;;  %v292_v19 = vld [vmem:[%s4220_s0 + $0x7f0] sm:$0xff]  ;;  %v342_v63 = vld [vmem:[%s4220_s0 + $0x980] sm:$0xff]  ;;  %v1928_v2 = vpack.c.bf16 %v332_v53, %v322_v49 }
  0x48   :  { %542 = vmatmul.mubr.f32.gmra.mrb[2].mxu1 %v2773_v12  ;;  %916 = vmatprep.mubr.f32.mxu0 %v2275_v3  ;;  %v1918_v18 = vpack.c.bf16 %v293_v21, %v283_v7  ;;  %v352_v38 = vld [vmem:[%s4220_s0 + $0x9d0] sm:$0xff]  ;;  %v251_v21 = vld [vmem:[%s4220_s0 + $0x6a8] sm:$0xff]  ;;  %v281_v40 = vld [vmem:[%s4220_s0 + $0x798] sm:$0xff] }
  0x49   :  { %1805 = vmatpush1.bf16.msra.mxu1 %v1804_v13  ;;  %547 = vmatprep.mubr.f32.mxu1 %v2778_v15  ;;  %v1822_v13 = vpack.c.bf16 %v171_v6, %v161_v5  ;;  %v220_v5 = vld [vmem:[%s4220_s0 + $0x5b0] sm:$0xff]  ;;  %v230_v6 = vld [vmem:[%s4220_s0 + $0x600] sm:$0xff]  ;;  %v291_v42 = vld [vmem:[%s4220_s0 + $0x7e8] sm:$0xff] }
  0x4a   :  { %1901 = vmatpush1.bf16.msra.mxu0 %v1900_v16  ;;  %1807 = vmatprep.subr.bf16.mxu1 %v1806_v17  ;;  %v282_v16 = vld [vmem:[%s4220_s0 + $0x7a0] sm:$0xff]  ;;  %v160_v17 = vld [vmem:[%s4220_s0 + $0x3d0] sm:$0xff]  ;;  %v47_v49 = vld [vmem:[%s4220_s0 + $0x48] sm:$0xff] }
  0x4b   :  { %1903 = vmatprep.subr.bf16.mxu0 %v1902_v20  ;;  %1701 = vmatmul.mubr.msk.f32.gmra.mrb[30].mxu0 %vm446_vm0, %v2536_v34  ;;  %v1812_v34 = vpack.c.bf16 %v110_v33, %v100_v32  ;;  %v181_v20 = vld [vmem:[%s4220_s0 + $0x478] sm:$0xff]  ;;  %v1824_v26 = vpack.c.bf16 %v170_v46, %v160_v17  ;;  %v180_v32 = vld [vmem:[%s4220_s0 + $0x470] sm:$0xff]  ;;  %v190_v33 = vld [vmem:[%s4220_s0 + $0x4c0] sm:$0xff]  ;;  %v1932_v17 = vpack.c.bf16 %v352_v38, %v342_v63 }
  0x4c   :  { %548 = vmatmul.mubr.f32.gmra.mrb[4].mxu1 %v2812_v27  ;;  %987 = vmatprep.mubr.f32.mxu0 %v2551_v41  ;;  %v260_v36 = vld [vmem:[%s4220_s0 + $0x6f0] sm:$0xff]  ;;  %v310_v38 = vld [vmem:[%s4220_s0 + $0x880] sm:$0xff] }
  0x4d   :  { %1809 = vmatpush1.bf16.msra.mxu1 %v1808_v28  ;;  %553 = vmatprep.mubr.f32.mxu1 %v2817_v29  ;;  %v2964_v28 = vld [vmem:[%s4221_s1 + $0xb0] sm:$0xff] }
  0x4e   :  { %1905 = vmatpush1.bf16.msra.mxu0 %v1904_v30  ;;  %1811 = vmatprep.subr.bf16.mxu1 %v1810_v58  ;;  %v1920_v30 = vpack.c.bf16 %v292_v19, %v282_v16  ;;  %v1826_v58 = vpack.c.bf16 %v191_v22, %v181_v20  ;;  %v1836_v16 = vpack.c.bf16 %v230_v6, %v220_v5  ;;  %v250_v19 = vld [vmem:[%s4220_s0 + $0x6a0] sm:$0xff]  ;;  %v401_v20 = vld [vmem:[%s4222_s2 + $0x18] sm:$0xff]  ;;  %v280_v53 = vld [vmem:[%s4220_s0 + $0x790] sm:$0xff] }
  0x4f   :  { %1907 = vmatprep.subr.bf16.mxu0 %v1906_v35  ;;  %v1922_v35 = vpack.c.bf16 %v313_v24, %v303_v23  ;;  %v362_v23 = vld [vmem:[%s4220_s0 + $0xa20] sm:$0xff]  ;;  %v372_v24 = vld [vmem:[%s4220_s0 + $0xa70] sm:$0xff]  ;;  %v405_v5 = vld [vmem:[%s4222_s2 + $0x38] sm:$0xff] }
  0x50   :  { %554 = vmatmul.mubr.f32.gmra.mrb[6].mxu1 %v2851_v43  ;;  %v321_v6 = vld [vmem:[%s4220_s0 + $0x8d8] sm:$0xff] }
  0x51   :  { %1813 = vmatpush1.bf16.msra.mxu1 %v1812_v34  ;;  %559 = vmatprep.mubr.f32.mxu1 %v2856_v44  ;;  %v2995_v34 = vld [vmem:[%s4221_s1 + $0xa8] sm:$0xff] }
  0x52   :  { %1909 = vmatpush1.bf16.msra.mxu0 %v1908_v1  ;;  %1815 = vmatprep.subr.bf16.mxu1 %v1814_v45  ;;  %v1828_v1 = vpack.c.bf16 %v190_v33, %v180_v32  ;;  %v398_v45 = vld [vmem:[%s4222_s2] sm:$0xff] }
  0x53   :  { %1911 = vmatprep.subr.bf16.mxu0 %v1910_v50  ;;  %v200_v50 = vld [vmem:[%s4220_s0 + $0x510] sm:$0xff]  ;;  %408 = vperm.xlu0 %2252, %v398_v45   ;;  %v402_v33 = vld [vmem:[%s4222_s2 + $0x20] sm:$0xff] }
  0x54   :  { %560 = vmatmul.mubr.f32.gmra.mrb[8].mxu1 %v2887_v56  ;;  %v1832_v61 = vpack.c.bf16 %v210_v51, %v200_v50  ;;  %v382_v45 = vld [vmem:[%s4220_s0 + $0xac0] sm:$0xff]  ;;  %v57_v50 = vld [vmem:[%s4220_s0 + $0x98] sm:$0xff]  ;;  %v403_v51 = vld [vmem:[%s4222_s2 + $0x28] sm:$0xff] }
  0x55   :  { %1817 = vmatpush1.bf16.msra.mxu1 %v1816_v14  ;;  %565 = vmatprep.mubr.f32.mxu1 %v2892_v57  ;;  %v343_v14 = vld [vmem:[%s4220_s0 + $0x988] sm:$0xff] }
  0x56   :  { %1913 = vmatpush1.bf16.msra.mxu0 %v1912_v59  ;;  %1819 = vmatprep.subr.bf16.mxu1 %v1818_v60  ;;  %v353_v59 = vld [vmem:[%s4220_s0 + $0x9d8] sm:$0xff]  ;;  %v399_v60 = vld [vmem:[%s4222_s2 + $0x8] sm:$0xff] }
  0x57   :  { %1915 = vmatprep.subr.bf16.mxu0 %v1914_v4  ;;  %v1834_v4 = vpack.c.bf16 %v231_v55, %v221_v54  ;;  %v1930_v7 = vpack.c.bf16 %v353_v59, %v343_v14  ;;  %413 = vperm.xlu0 %2252, %v399_v60   ;;  %v290_v54 = vld [vmem:[%s4220_s0 + $0x7e0] sm:$0xff]  ;;  %v301_v55 = vld [vmem:[%s4220_s0 + $0x838] sm:$0xff]  ;;  %v311_v14 = vld [vmem:[%s4220_s0 + $0x888] sm:$0xff] }
  0x58   :  { %566 = vmatmul.mubr.f32.gmra.mrb[10].mxu1 %v2923_v8  ;;  %v404_v60 = vld [vmem:[%s4222_s2 + $0x30] sm:$0xff]  ;;  %v1848_v63 = vpack.c.bf16 %v290_v54, %v280_v53  ;;  %v114_v53 = vld [vmem:[%s4220_s0 + $0x260] sm:$0xff] }
  0x59   :  { %1821 = vmatpush1.bf16.msra.mxu1 %v1820_v9  ;;  %571 = vmatprep.mubr.f32.mxu1 %v2928_v10  ;;  %v400_v9 = vld [vmem:[%s4222_s2 + $0x10] sm:$0xff] }
  0x5a   :  { %1917 = vmatpush1.bf16.msra.mxu0 %v1916_v11  ;;  %1823 = vmatprep.subr.bf16.mxu1 %v1822_v13  ;;  %v363_v11 = vld [vmem:[%s4220_s0 + $0xa28] sm:$0xff]  ;;  %v373_v13 = vld [vmem:[%s4220_s0 + $0xa78] sm:$0xff] }
  0x5b   :  { %1919 = vmatprep.subr.bf16.mxu0 %v1918_v18  ;;  %418 = vperm.xlu1 %2253, %v400_v9   ;;  %v240_v18 = vld [vmem:[%s4220_s0 + $0x650] sm:$0xff]  ;;  %v1934_v22 = vpack.c.bf16 %v373_v13, %v363_v11  ;;  %v330_v11 = vld [vmem:[%s4220_s0 + $0x920] sm:$0xff]  ;;  %v341_v13 = vld [vmem:[%s4220_s0 + $0x978] sm:$0xff] }
  0x5c   :  { %572 = vmatmul.mubr.f32.gmra.mrb[12].mxu1 %v2959_v25  ;;  %v1840_v32 = vpack.c.bf16 %v250_v19, %v240_v18  ;;  %428 = vperm.xlu0 %2252, %v402_v33   ;;  %v320_v9 = vld [vmem:[%s4220_s0 + $0x8d0] sm:$0xff]  ;;  %v350_v19 = vld [vmem:[%s4220_s0 + $0x9c0] sm:$0xff] }
  0x5d   :  { %1825 = vmatpush1.bf16.msra.mxu1 %v1824_v26  ;;  %577 = vmatprep.mubr.f32.mxu1 %v2964_v28  ;;  %v261_v26 = vld [vmem:[%s4220_s0 + $0x6f8] sm:$0xff]  ;;  %v340_v18 = vld [vmem:[%s4220_s0 + $0x970] sm:$0xff] }
  0x5e   :  { %1921 = vmatpush1.bf16.msra.mxu0 %v1920_v30  ;;  %1827 = vmatprep.subr.bf16.mxu1 %v1826_v58  ;;  %v271_v30 = vld [vmem:[%s4220_s0 + $0x748] sm:$0xff]  ;;  %v64_v33 = vld [vmem:[%s4220_s0 + $0xd0] sm:$0xff] }
  0x5f   :  { %1923 = vmatprep.subr.bf16.mxu0 %v1922_v35  ;;  %v383_v58 = vld [vmem:[%s4220_s0 + $0xac8] sm:$0xff]  ;;  %423 = vperm.xlu1 %2253, %v401_v20   ;;  %v1936_v35 = vpack.c.bf16 %v372_v24, %v362_v23  ;;  %v1842_v39 = vpack.c.bf16 %v271_v30, %v261_v26  ;;  %v45_v20 = vld [vmem:[%s4220_s0 + $0x38] sm:$0xff]  ;;  %v1860_v23 = vpack.c.bf16 %v350_v19, %v340_v18  ;;  %v44_v26 = vld [vmem:[%s4220_s0 + $0x30] sm:$0xff] }
  0x60   :  { %578 = vmatmul.mubr.f32.gmra.mrb[14].mxu1 %v2995_v34  ;;  %438 = vperm.xlu0 %2252, %v404_v60   ;;  %v54_v30 = vld [vmem:[%s4220_s0 + $0x80] sm:$0xff]  ;;  %v97_v60 = vld [vmem:[%s4220_s0 + $0x1d8] sm:$0xff] }
  0x61   :  { %1829 = vmatpush1.bf16.msra.mxu1 %v1828_v1  ;;  %761 = vmatprep.mubr.f32.mxu1 %v2551_v41  ;;  %v241_v41 = vld [vmem:[%s4220_s0 + $0x658] sm:$0xff]  ;;  %v1938_v1 = vpack.c.bf16 %v393_v31, %v383_v58  ;;  %v75_v31 = vld [vmem:[%s4220_s0 + $0x128] sm:$0xff]  ;;  %v154_v18 = vld [vmem:[%s4220_s0 + $0x3a0] sm:$0xff] }
  0x62   :  { %1925 = vmatpush1.bf16.msra.mxu0 %v1924_v47  ;;  %1831 = vmatprep.subr.bf16.mxu1 %v1830_v48  ;;  %v1838_v46 = vpack.c.bf16 %v251_v21, %v241_v41  ;;  %v392_v47 = vld [vmem:[%s4220_s0 + $0xb10] sm:$0xff]  ;;  %v1844_v48 = vpack.c.bf16 %v270_v37, %v260_v36  ;;  %v65_v58 = vld [vmem:[%s4220_s0 + $0xd8] sm:$0xff] }
  0x63   :  { %1927 = vmatprep.subr.bf16.mxu0 %v1926_v52  ;;  %v1846_v52 = vpack.c.bf16 %v291_v42, %v281_v40  ;;  %v1940_v59 = vpack.c.bf16 %v392_v47, %v382_v45  ;;  %433 = vperm.xlu1 %2253, %v403_v51   ;;  %v1946_v36 = vpack.c.bf16 %v75_v31, %v65_v58  ;;  %v85_v37 = vld [vmem:[%s4220_s0 + $0x178] sm:$0xff]  ;;  %v94_v42 = vld [vmem:[%s4220_s0 + $0x1c0] sm:$0xff]  ;;  %v56_v45 = vld [vmem:[%s4220_s0 + $0x90] sm:$0xff] }
  0x64   :  { %v175_v58 = vld [vmem:[%s4220_s0 + $0x448] sm:$0xff] }
  0x65   :  { %1833 = vmatpush1.bf16.msra.mxu1 %v1832_v61  ;;  %v2014_v61 = vpack.c.bf16 %v57_v50, %v47_v49  ;;  %v105_v50 = vld [vmem:[%s4220_s0 + $0x218] sm:$0xff] }
  0x66   :  { %1929 = vmatpush1.bf16.msra.mxu0 %v1928_v2  ;;  %1835 = vmatprep.subr.bf16.mxu1 %v1834_v4  ;;  %v1850_v2 = vpack.c.bf16 %v311_v14, %v301_v55  ;;  %v300_v4 = vld [vmem:[%s4220_s0 + $0x830] sm:$0xff]  ;;  %v66_v55 = vld [vmem:[%s4220_s0 + $0xe0] sm:$0xff] }
  0x67   :  { %1931 = vmatprep.subr.bf16.mxu0 %v1930_v7  ;;  %v331_v7 = vld [vmem:[%s4220_s0 + $0x928] sm:$0xff]  ;;  %443 = vperm.xlu1 %2253, %v405_v5   ;;  %v1852_v41 = vpack.c.bf16 %v310_v38, %v300_v4  ;;  %v76_v14 = vld [vmem:[%s4220_s0 + $0x130] sm:$0xff]  ;;  %v134_v5 = vld [vmem:[%s4220_s0 + $0x300] sm:$0xff] }
  0x68   :  { %v1854_v21 = vpack.c.bf16 %v331_v7, %v321_v6  ;;  %v2020_v4 = vpack.c.bf16 %v76_v14, %v66_v55  ;;  %v124_v38 = vld [vmem:[%s4220_s0 + $0x2b0] sm:$0xff]  ;;  %v86_v7 = vld [vmem:[%s4220_s0 + $0x180] sm:$0xff] }
  0x69   :  { %1837 = vmatpush1.bf16.msra.mxu1 %v1836_v16  ;;  %v351_v16 = vld [vmem:[%s4220_s0 + $0x9c8] sm:$0xff] }
  0x6a   :  { %1933 = vmatpush1.bf16.msra.mxu0 %v1932_v17  ;;  %1839 = vmatprep.subr.bf16.mxu1 %v1838_v46  ;;  %v1856_v17 = vpack.c.bf16 %v330_v11, %v320_v9  ;;  %v1858_v46 = vpack.c.bf16 %v351_v16, %v341_v13  ;;  %v107_v9 = vld [vmem:[%s4220_s0 + $0x228] sm:$0xff]  ;;  %v145_v13 = vld [vmem:[%s4220_s0 + $0x358] sm:$0xff] }
  0x6b   :  { %1935 = vmatprep.subr.bf16.mxu0 %v1934_v22  ;;  %v55_v22 = vld [vmem:[%s4220_s0 + $0x88] sm:$0xff] }
  0x6c   :  { %v1942_v24 = vpack.c.bf16 %v55_v22, %v45_v20  ;;  %v3291_v11 = vld [vmem:[%s4221_s1 + $0x28] sm:$0xff]  ;;  %v106_v20 = vld [vmem:[%s4220_s0 + $0x220] sm:$0xff]  ;;  %v116_v22 = vld [vmem:[%s4220_s0 + $0x270] sm:$0xff] }
  0x6d   :  { %988 = vmatmul.mubr.f32.vlgmr.msra.gmra.mrb[32].mxu0 %v2734_v62  ;;  %1841 = vmatpush1.bf16.msra.mxu1 %v1840_v32  ;;  %v1944_v32 = vpack.c.bf16 %v54_v30, %v44_v26  ;;  %v155_v16 = vld [vmem:[%s4220_s0 + $0x3a8] sm:$0xff]  ;;  %v3325_v26 = vld [vmem:[%s4221_s1 + $0x40] sm:$0xff]  ;;  %v165_v30 = vld [vmem:[%s4220_s0 + $0x3f8] sm:$0xff]  ;;  %v2028_v31 = vpack.c.bf16 %v116_v22, %v106_v20 }
  0x6e   :  { %993 = vmatprep.mubr.f32.mxu0 %v2739_v0  ;;  %1937 = vmatpush1.bf16.msra.mxu0 %v1936_v35  ;;  %v74_v35 = vld [vmem:[%s4220_s0 + $0x120] sm:$0xff]  ;;  %v217_v20 = vld [vmem:[%s4220_s0 + $0x598] sm:$0xff]  ;;  %v2260_v22 = vld [vmem:[%s4221_s1 + $0x8] sm:$0xff] }
  0x6f   :  { %1843 = vmatprep.subr.bf16.mxu1 %v1842_v39  ;;  %1939 = vmatprep.subr.bf16.mxu0 %v1938_v1  ;;  %v95_v39 = vld [vmem:[%s4220_s0 + $0x1c8] sm:$0xff]  ;;  %v1948_v40 = vpack.c.bf16 %v74_v35, %v64_v33  ;;  %v46_v1 = vld [vmem:[%s4220_s0 + $0x40] sm:$0xff] }
  0x70   :  { %v1950_v47 = vpack.c.bf16 %v95_v39, %v85_v37  ;;  %v2016_v51 = vpack.c.bf16 %v56_v45, %v46_v1  ;;  %v174_v33 = vld [vmem:[%s4220_s0 + $0x440] sm:$0xff]  ;;  %v136_v37 = vld [vmem:[%s4220_s0 + $0x310] sm:$0xff]  ;;  %v1966_v39 = vpack.c.bf16 %v175_v58, %v165_v30  ;;  %v195_v1 = vld [vmem:[%s4220_s0 + $0x4e8] sm:$0xff] }
  0x71   :  { %994 = vmatmul.mubr.f32.gmra.mrb[34].mxu0 %v2773_v12  ;;  %1845 = vmatpush1.bf16.msra.mxu1 %v1844_v48  ;;  %v77_v48 = vld [vmem:[%s4220_s0 + $0x138] sm:$0xff]  ;;  %v244_v58 = vld [vmem:[%s4220_s0 + $0x670] sm:$0xff] }
  0x72   :  { %999 = vmatprep.mubr.f32.mxu0 %v2778_v15  ;;  %1847 = vmatprep.subr.bf16.mxu1 %v1846_v52  ;;  %v104_v52 = vld [vmem:[%s4220_s0 + $0x210] sm:$0xff] }
  0x73   :  { %1941 = vmatpush1.bf16.msra.mxu0 %v1940_v59  ;;  %v87_v59 = vld [vmem:[%s4220_s0 + $0x188] sm:$0xff] }
  0x74   :  { %2015 = vmatprep.subr.bf16.mxu0 %v2014_v61  ;;  %v3257_v61 = vld [vmem:[%s4221_s1 + $0x10] sm:$0xff]  ;;  %v2022_v6 = vpack.c.bf16 %v97_v60, %v87_v59  ;;  %v214_v59 = vld [vmem:[%s4220_s0 + $0x580] sm:$0xff] }
  0x75   :  { %1000 = vmatmul.mubr.f32.gmra.mrb[36].mxu0 %v2812_v27  ;;  %1849 = vmatpush1.bf16.msra.mxu1 %v1848_v63  ;;  %v1956_v63 = vpack.c.bf16 %v114_v53, %v104_v52  ;;  %v205_v52 = vld [vmem:[%s4220_s0 + $0x538] sm:$0xff]  ;;  %v215_v53 = vld [vmem:[%s4220_s0 + $0x588] sm:$0xff] }
  0x76   :  { %1005 = vmatprep.mubr.f32.mxu0 %v2817_v29  ;;  %1851 = vmatprep.subr.bf16.mxu1 %v1850_v2  ;;  %v135_v2 = vld [vmem:[%s4220_s0 + $0x308] sm:$0xff] }
  0x79   :  { %1006 = vmatmul.mubr.f32.gmra.mrb[38].mxu0 %v2851_v43  ;;  %1853 = vmatpush1.bf16.msra.mxu1 %v1852_v41  ;;  %v96_v41 = vld [vmem:[%s4220_s0 + $0x1d0] sm:$0xff] }
  0x7a   :  { %1011 = vmatprep.mubr.f32.mxu0 %v2856_v44  ;;  %1855 = vmatprep.subr.bf16.mxu1 %v1854_v21 }
  0x7d   :  { %1012 = vmatmul.mubr.f32.gmra.mrb[40].mxu0 %v2887_v56  ;;  %1857 = vmatpush1.bf16.msra.mxu1 %v1856_v17  ;;  %v2024_v17 = vpack.c.bf16 %v96_v41, %v86_v7  ;;  %v3433_v7 = vld [vmem:[%s4221_s1 + $0x88] sm:$0xff] }
  0x7e   :  { %1017 = vmatprep.mubr.f32.mxu0 %v2892_v57  ;;  %1859 = vmatprep.subr.bf16.mxu1 %v1858_v46  ;;  %v144_v46 = vld [vmem:[%s4220_s0 + $0x350] sm:$0xff] }
  0x81   :  { %1018 = vmatmul.mubr.f32.gmra.mrb[42].mxu0 %v2923_v8  ;;  %1861 = vmatpush1.bf16.msra.mxu1 %v1860_v23  ;;  %v1962_v23 = vpack.c.bf16 %v155_v16, %v145_v13  ;;  %v196_v16 = vld [vmem:[%s4220_s0 + $0x4f0] sm:$0xff] }
  0x82   :  { %1023 = vmatprep.mubr.f32.mxu0 %v2928_v10  ;;  %1943 = vmatprep.subr.bf16.mxu1 %v1942_v24  ;;  %v127_v24 = vld [vmem:[%s4220_s0 + $0x2c8] sm:$0xff] }
  0x84   :  { %762 = vmatmul.mubr.f32.vlgmr.msra.gmra.mrb[16].mxu1 %v2734_v62  ;;  %v84_v62 = vld [vmem:[%s4220_s0 + $0x170] sm:$0xff] }
  0x85   :  { %1024 = vmatmul.mubr.f32.gmra.mrb[44].mxu0 %v2959_v25  ;;  %1945 = vmatpush1.bf16.msra.mxu1 %v1944_v32  ;;  %v1952_v49 = vpack.c.bf16 %v94_v42, %v84_v62  ;;  %v164_v32 = vld [vmem:[%s4220_s0 + $0x3f0] sm:$0xff]  ;;  %v3359_v62 = vld [vmem:[%s4221_s1 + $0x58] sm:$0xff] }
  0x86   :  { %1029 = vmatprep.mubr.f32.mxu0 %v2964_v28  ;;  %767 = vmatprep.mubr.f32.mxu1 %v2739_v0  ;;  %v67_v0 = vld [vmem:[%s4220_s0 + $0xe8] sm:$0xff]  ;;  %v185_v42 = vld [vmem:[%s4220_s0 + $0x498] sm:$0xff] }
  0x87   :  { %1947 = vmatprep.subr.bf16.mxu1 %v1946_v36  ;;  %v2018_v54 = vpack.c.bf16 %v77_v48, %v67_v0  ;;  %v126_v36 = vld [vmem:[%s4220_s0 + $0x2c0] sm:$0xff] }
  0x88   :  { %768 = vmatmul.mubr.f32.gmra.mrb[18].mxu1 %v2773_v12  ;;  %v115_v12 = vld [vmem:[%s4220_s0 + $0x268] sm:$0xff]  ;;  %v2032_v45 = vpack.c.bf16 %v136_v37, %v126_v36  ;;  %v194_v0 = vld [vmem:[%s4220_s0 + $0x4e0] sm:$0xff] }
  0x89   :  { %1030 = vmatmul.mubr.f32.gmra.mrb[46].mxu0 %v2995_v34  ;;  %1949 = vmatpush1.bf16.msra.mxu1 %v1948_v40  ;;  %v147_v40 = vld [vmem:[%s4220_s0 + $0x368] sm:$0xff] }
  0x8a   :  { %1100 = vmatprep.mubr.f32.mxu0 %v2275_v3  ;;  %773 = vmatprep.mubr.f32.mxu1 %v2778_v15  ;;  %v1954_v15 = vpack.c.bf16 %v115_v12, %v105_v50  ;;  %v156_v50 = vld [vmem:[%s4220_s0 + $0x3b0] sm:$0xff]  ;;  %v167_v12 = vld [vmem:[%s4220_s0 + $0x408] sm:$0xff] }
  0x8b   :  { %1951 = vmatprep.subr.bf16.mxu1 %v1950_v47  ;;  %v184_v47 = vld [vmem:[%s4220_s0 + $0x490] sm:$0xff]  ;;  %v275_v36 = vld [vmem:[%s4220_s0 + $0x768] sm:$0xff] }
  0x8c   :  { %774 = vmatmul.mubr.f32.gmra.mrb[20].mxu1 %v2812_v27  ;;  %v125_v27 = vld [vmem:[%s4220_s0 + $0x2b8] sm:$0xff]  ;;  %v1972_v55 = vpack.c.bf16 %v194_v0, %v184_v47  ;;  %v227_v37 = vld [vmem:[%s4220_s0 + $0x5e8] sm:$0xff]  ;;  %v274_v47 = vld [vmem:[%s4220_s0 + $0x760] sm:$0xff] }
  0x8d   :  { %1702 = vmatmul.mubr.msk.f32.vlgmr.msra.gmra.mrb[32].mxu0 %vm446_vm0, %v3257_v61  ;;  %1953 = vmatpush1.bf16.msra.mxu1 %v1952_v49  ;;  %v1958_v21 = vpack.c.bf16 %v135_v2, %v125_v27  ;;  %v146_v49 = vld [vmem:[%s4220_s0 + $0x360] sm:$0xff]  ;;  %v176_v27 = vld [vmem:[%s4220_s0 + $0x450] sm:$0xff]  ;;  %v1974_v2 = vpack.c.bf16 %v215_v53, %v205_v52 }
  0x8e   :  { %2017 = vmatpush1.bf16.msra.mxu0 %v2016_v51  ;;  %1106 = vmatprep.mubr.f32.mxu0 %v2275_v3  ;;  %v1970_v51 = vpack.c.bf16 %v195_v1, %v185_v42  ;;  %v2036_v14 = vpack.c.bf16 %v156_v50, %v146_v49  ;;  %v226_v42 = vld [vmem:[%s4220_s0 + $0x5e0] sm:$0xff]  ;;  %v285_v49 = vld [vmem:[%s4220_s0 + $0x7b8] sm:$0xff]  ;;  %v295_v50 = vld [vmem:[%s4220_s0 + $0x808] sm:$0xff] }
  0x8f   :  { %2019 = vmatprep.subr.bf16.mxu0 %v2018_v54  ;;  %779 = vmatprep.mubr.f32.mxu1 %v2817_v29  ;;  %v117_v29 = vld [vmem:[%s4220_s0 + $0x278] sm:$0xff]  ;;  %v3399_v54 = vld [vmem:[%s4221_s1 + $0x70] sm:$0xff]  ;;  %v246_v53 = vld [vmem:[%s4220_s0 + $0x680] sm:$0xff] }
  0x90   :  { %780 = vmatmul.mubr.f32.gmra.mrb[22].mxu1 %v2851_v43  ;;  %1955 = vmatprep.subr.bf16.mxu1 %v1954_v15  ;;  %v1960_v43 = vpack.c.bf16 %v134_v5, %v124_v38  ;;  %v2026_v19 = vpack.c.bf16 %v117_v29, %v107_v9  ;;  %v204_v15 = vld [vmem:[%s4220_s0 + $0x530] sm:$0xff]  ;;  %v197_v38 = vld [vmem:[%s4220_s0 + $0x4f8] sm:$0xff]  ;;  %v186_v9 = vld [vmem:[%s4220_s0 + $0x4a0] sm:$0xff] }
  0x91   :  { %1703 = vmatmul.mubr.msk.f32.gmra.mrb[34].mxu0 %vm446_vm0, %v3291_v11  ;;  %1957 = vmatpush1.bf16.msra.mxu1 %v1956_v63  ;;  %v166_v63 = vld [vmem:[%s4220_s0 + $0x400] sm:$0xff]  ;;  %v225_v5 = vld [vmem:[%s4220_s0 + $0x5d8] sm:$0xff]  ;;  %v1976_v41 = vpack.c.bf16 %v214_v59, %v204_v15  ;;  %v224_v29 = vld [vmem:[%s4220_s0 + $0x5d0] sm:$0xff] }
  0x92   :  { %2021 = vmatpush1.bf16.msra.mxu0 %v2020_v4  ;;  %1112 = vmatprep.mubr.f32.mxu0 %v2275_v3  ;;  %v187_v4 = vld [vmem:[%s4220_s0 + $0x4a8] sm:$0xff]  ;;  %v294_v15 = vld [vmem:[%s4220_s0 + $0x800] sm:$0xff] }
  0x93   :  { %2023 = vmatprep.subr.bf16.mxu0 %v2022_v6  ;;  %785 = vmatprep.mubr.f32.mxu1 %v2856_v44  ;;  %v137_v44 = vld [vmem:[%s4220_s0 + $0x318] sm:$0xff]  ;;  %v235_v6 = vld [vmem:[%s4220_s0 + $0x628] sm:$0xff]  ;;  %v2042_v13 = vpack.c.bf16 %v197_v38, %v187_v4 }
  0x94   :  { %786 = vmatmul.mubr.f32.gmra.mrb[24].mxu1 %v2887_v56  ;;  %1959 = vmatprep.subr.bf16.mxu1 %v1958_v21  ;;  %v1964_v56 = vpack.c.bf16 %v154_v18, %v144_v46  ;;  %v2030_v35 = vpack.c.bf16 %v137_v44, %v127_v24  ;;  %v2040_v21 = vpack.c.bf16 %v176_v27, %v166_v63  ;;  %v245_v46 = vld [vmem:[%s4220_s0 + $0x678] sm:$0xff]  ;;  %v255_v18 = vld [vmem:[%s4220_s0 + $0x6c8] sm:$0xff] }
  0x95   :  { %1704 = vmatmul.mubr.msk.f32.gmra.mrb[36].mxu0 %vm446_vm0, %v3325_v26  ;;  %1961 = vmatpush1.bf16.msra.mxu1 %v1960_v43  ;;  %v234_v43 = vld [vmem:[%s4220_s0 + $0x620] sm:$0xff]  ;;  %v2044_v44 = vpack.c.bf16 %v196_v16, %v186_v9  ;;  %v1982_v30 = vpack.c.bf16 %v255_v18, %v245_v46  ;;  %v305_v63 = vld [vmem:[%s4220_s0 + $0x858] sm:$0xff]  ;;  %v315_v27 = vld [vmem:[%s4220_s0 + $0x8a8] sm:$0xff] }
  0x96   :  { %2025 = vmatpush1.bf16.msra.mxu0 %v2024_v17  ;;  %1118 = vmatprep.mubr.f32.mxu0 %v2275_v3  ;;  %v1978_v17 = vpack.c.bf16 %v235_v6, %v225_v5  ;;  %v1980_v24 = vpack.c.bf16 %v234_v43, %v224_v29  ;;  %v277_v4 = vld [vmem:[%s4220_s0 + $0x778] sm:$0xff]  ;;  %v266_v6 = vld [vmem:[%s4220_s0 + $0x720] sm:$0xff]  ;;  %v276_v43 = vld [vmem:[%s4220_s0 + $0x770] sm:$0xff] }
  0x97   :  { %2027 = vmatprep.subr.bf16.mxu0 %v2026_v19  ;;  %791 = vmatprep.mubr.f32.mxu1 %v2892_v57  ;;  %v157_v57 = vld [vmem:[%s4220_s0 + $0x3b8] sm:$0xff]  ;;  %v207_v19 = vld [vmem:[%s4220_s0 + $0x548] sm:$0xff]  ;;  %v314_v9 = vld [vmem:[%s4220_s0 + $0x8a0] sm:$0xff] }
  0x98   :  { %792 = vmatmul.mubr.f32.gmra.mrb[26].mxu1 %v2923_v8  ;;  %1963 = vmatprep.subr.bf16.mxu1 %v1962_v23  ;;  %v1968_v8 = vpack.c.bf16 %v174_v33, %v164_v32  ;;  %v2034_v48 = vpack.c.bf16 %v157_v57, %v147_v40  ;;  %v3468_v23 = vld [vmem:[%s4221_s1 + $0xa0] sm:$0xff]  ;;  %v2046_v32 = vpack.c.bf16 %v217_v20, %v207_v19  ;;  %v216_v33 = vld [vmem:[%s4220_s0 + $0x590] sm:$0xff]  ;;  %v3500_v40 = vld [vmem:[%s4221_s1 + $0xb8] sm:$0xff] }
  0x99   :  { %1705 = vmatmul.mubr.msk.f32.gmra.mrb[38].mxu0 %vm446_vm0, %v3359_v62  ;;  %1965 = vmatpush1.bf16.msra.mxu1 %v1964_v56  ;;  %v206_v56 = vld [vmem:[%s4220_s0 + $0x540] sm:$0xff]  ;;  %v335_v16 = vld [vmem:[%s4220_s0 + $0x948] sm:$0xff]  ;;  %v297_v46 = vld [vmem:[%s4220_s0 + $0x818] sm:$0xff]  ;;  %v2060_v19 = vpack.c.bf16 %v276_v43, %v266_v6 }
  0x9a   :  { %2029 = vmatpush1.bf16.msra.mxu0 %v2028_v31  ;;  %1124 = vmatprep.mubr.f32.mxu0 %v2275_v3  ;;  %v254_v31 = vld [vmem:[%s4220_s0 + $0x6c0] sm:$0xff] }
  0x9b   :  { %2031 = vmatprep.subr.bf16.mxu0 %v2030_v35  ;;  %797 = vmatprep.mubr.f32.mxu1 %v2928_v10  ;;  %v177_v10 = vld [vmem:[%s4220_s0 + $0x458] sm:$0xff]  ;;  %v1984_v57 = vpack.c.bf16 %v254_v31, %v244_v58  ;;  %v286_v20 = vld [vmem:[%s4220_s0 + $0x7c0] sm:$0xff]  ;;  %v355_v31 = vld [vmem:[%s4220_s0 + $0x9e8] sm:$0xff] }
  0x9c   :  { %798 = vmatmul.mubr.f32.gmra.mrb[28].mxu1 %v2959_v25  ;;  %1967 = vmatprep.subr.bf16.mxu1 %v1966_v39  ;;  %v2038_v60 = vpack.c.bf16 %v177_v10, %v167_v12  ;;  %v265_v35 = vld [vmem:[%s4220_s0 + $0x718] sm:$0xff]  ;;  %v247_v12 = vld [vmem:[%s4220_s0 + $0x688] sm:$0xff]  ;;  %v346_v6 = vld [vmem:[%s4220_s0 + $0x9a0] sm:$0xff] }
  0x9d   :  { %1706 = vmatmul.mubr.msk.f32.gmra.mrb[40].mxu0 %vm446_vm0, %v3399_v54  ;;  %1969 = vmatpush1.bf16.msra.mxu1 %v1968_v8  ;;  %v237_v39 = vld [vmem:[%s4220_s0 + $0x638] sm:$0xff]  ;;  %v2048_v8 = vpack.c.bf16 %v216_v33, %v206_v56  ;;  %v1986_v1 = vpack.c.bf16 %v275_v36, %v265_v35  ;;  %v2264_v43 = vld [vmem:[%s4221_s1 + $0x20] sm:$0xff] }
  0x9e   :  { %2033 = vmatpush1.bf16.msra.mxu0 %v2032_v45  ;;  %1130 = vmatprep.mubr.f32.mxu0 %v2275_v3  ;;  %v264_v45 = vld [vmem:[%s4220_s0 + $0x710] sm:$0xff]  ;;  %v2050_v0 = vpack.c.bf16 %v237_v39, %v227_v37  ;;  %v345_v58 = vld [vmem:[%s4220_s0 + $0x998] sm:$0xff]  ;;  %v306_v37 = vld [vmem:[%s4220_s0 + $0x860] sm:$0xff] }
  0x9f   :  { %2035 = vmatprep.subr.bf16.mxu0 %v2034_v48  ;;  %803 = vmatprep.mubr.f32.mxu1 %v2964_v28  ;;  %v236_v48 = vld [vmem:[%s4220_s0 + $0x630] sm:$0xff]  ;;  %v1988_v10 = vpack.c.bf16 %v274_v47, %v264_v45  ;;  %v317_v33 = vld [vmem:[%s4220_s0 + $0x8b8] sm:$0xff]  ;;  %v2002_v39 = vpack.c.bf16 %v355_v31, %v345_v58  ;;  %v375_v47 = vld [vmem:[%s4220_s0 + $0xa88] sm:$0xff] }
  0xa0   :  { %804 = vmatmul.mubr.f32.gmra.mrb[30].mxu1 %v2995_v34  ;;  %1971 = vmatprep.subr.bf16.mxu1 %v1970_v51  ;;  %v257_v51 = vld [vmem:[%s4220_s0 + $0x6d8] sm:$0xff]  ;;  %v2052_v52 = vpack.c.bf16 %v236_v48, %v226_v42  ;;  %v396_v58 = vld [vmem:[%s4220_s0 + $0xb30] sm:$0xff] }
  0xa1   :  { %1707 = vmatmul.mubr.msk.f32.gmra.mrb[42].mxu0 %vm446_vm0, %v3433_v7  ;;  %1973 = vmatpush1.bf16.msra.mxu1 %v1972_v55  ;;  %v1990_v55 = vpack.c.bf16 %v295_v50, %v285_v49  ;;  %v2054_v59 = vpack.c.bf16 %v257_v51, %v247_v12  ;;  %v365_v45 = vld [vmem:[%s4220_s0 + $0xa38] sm:$0xff]  ;;  %v326_v12 = vld [vmem:[%s4220_s0 + $0x900] sm:$0xff]  ;;  %v2267_v31 = vld [vmem:[%s4221_s1 + $0x30] sm:$0xff] }
  0xa2   :  { %2037 = vmatpush1.bf16.msra.mxu0 %v2036_v14  ;;  %1136 = vmatprep.mubr.f32.mxu0 %v2275_v3  ;;  %v284_v14 = vld [vmem:[%s4220_s0 + $0x7b0] sm:$0xff]  ;;  %v337_v48 = vld [vmem:[%s4220_s0 + $0x958] sm:$0xff]  ;;  %v2006_v51 = vpack.c.bf16 %v375_v47, %v365_v45 }
  0xa3   :  { %2039 = vmatprep.subr.bf16.mxu0 %v2038_v60  ;;  %1975 = vmatprep.subr.bf16.mxu1 %v1974_v2  ;;  %v256_v60 = vld [vmem:[%s4220_s0 + $0x6d0] sm:$0xff]  ;;  %v267_v2 = vld [vmem:[%s4220_s0 + $0x728] sm:$0xff]  ;;  %v1992_v38 = vpack.c.bf16 %v294_v15, %v284_v14  ;;  %v385_v14 = vld [vmem:[%s4220_s0 + $0xad8] sm:$0xff] }
  0xa4   :  { %1213 = vmatprep.mubr.f32.mxu1 %v2260_v22  ;;  %v2056_v5 = vpack.c.bf16 %v256_v60, %v246_v53  ;;  %v2058_v29 = vpack.c.bf16 %v277_v4, %v267_v2  ;;  %v395_v15 = vld [vmem:[%s4220_s0 + $0xb28] sm:$0xff]  ;;  %v357_v60 = vld [vmem:[%s4220_s0 + $0x9f8] sm:$0xff]  ;;  %v384_v4 = vld [vmem:[%s4220_s0 + $0xad0] sm:$0xff] }
  0xa5   :  { %1708 = vmatmul.mubr.msk.f32.gmra.mrb[44].mxu0 %vm446_vm0, %v3468_v23  ;;  %1977 = vmatpush1.bf16.msra.mxu1 %v1976_v41  ;;  %v1994_v41 = vpack.c.bf16 %v315_v27, %v305_v63  ;;  %v2010_v2 = vpack.c.bf16 %v395_v15, %v385_v14 }
  0xa6   :  { %2041 = vmatpush1.bf16.msra.mxu0 %v2040_v21  ;;  %1142 = vmatprep.mubr.f32.mxu0 %v2275_v3  ;;  %v304_v21 = vld [vmem:[%s4220_s0 + $0x850] sm:$0xff] }
  0xa7   :  { %2043 = vmatprep.subr.bf16.mxu0 %v2042_v13  ;;  %1979 = vmatprep.subr.bf16.mxu1 %v1978_v17  ;;  %v325_v13 = vld [vmem:[%s4220_s0 + $0x8f8] sm:$0xff]  ;;  %v287_v17 = vld [vmem:[%s4220_s0 + $0x7c8] sm:$0xff]  ;;  %v1996_v18 = vpack.c.bf16 %v314_v9, %v304_v21  ;;  %v2263_v21 = vld [vmem:[%s4221_s1] sm:$0xff] }
  0xa8   :  { %v2062_v56 = vpack.c.bf16 %v297_v46, %v287_v17  ;;  %v367_v9 = vld [vmem:[%s4220_s0 + $0xa48] sm:$0xff]  ;;  %v366_v46 = vld [vmem:[%s4220_s0 + $0xa40] sm:$0xff] }
  0xa9   :  { %1709 = vmatmul.mubr.msk.f32.gmra.mrb[46].mxu0 %vm446_vm0, %v3500_v40  ;;  %1981 = vmatpush1.bf16.msra.mxu1 %v1980_v24  ;;  %v324_v24 = vld [vmem:[%s4220_s0 + $0x8f0] sm:$0xff] }
  0xaa   :  { %2045 = vmatpush1.bf16.msra.mxu0 %v2044_v44  ;;  %1983 = vmatprep.subr.bf16.mxu1 %v1982_v30  ;;  %v334_v44 = vld [vmem:[%s4220_s0 + $0x940] sm:$0xff]  ;;  %v296_v30 = vld [vmem:[%s4220_s0 + $0x810] sm:$0xff] }
  0xab   :  { %2047 = vmatprep.subr.bf16.mxu0 %v2046_v32  ;;  %1439 = vmatprep.mubr.f32.mxu0 %v2260_v22  ;;  %v1998_v22 = vpack.c.bf16 %v335_v16, %v325_v13  ;;  %v307_v32 = vld [vmem:[%s4220_s0 + $0x868] sm:$0xff]  ;;  %v2000_v35 = vpack.c.bf16 %v334_v44, %v324_v24  ;;  %v2064_v36 = vpack.c.bf16 %v296_v30, %v286_v20  ;;  %v2266_v24 = vld [vmem:[%s4221_s1 + $0x38] sm:$0xff]  ;;  %v386_v30 = vld [vmem:[%s4220_s0 + $0xae0] sm:$0xff] }
  0xac   :  { %v2066_v42 = vpack.c.bf16 %v317_v33, %v307_v32  ;;  %v387_v20 = vld [vmem:[%s4220_s0 + $0xae8] sm:$0xff]  ;;  %v2268_v32 = vld [vmem:[%s4221_s1 + $0x50] sm:$0xff]  ;;  %v2084_v33 = vpack.c.bf16 %v396_v58, %v386_v30 }
  0xad   :  { %1985 = vmatpush1.bf16.msra.mxu1 %v1984_v57  ;;  %v344_v57 = vld [vmem:[%s4220_s0 + $0x990] sm:$0xff] }
  0xae   :  { %2049 = vmatpush1.bf16.msra.mxu0 %v2048_v8  ;;  %1987 = vmatprep.subr.bf16.mxu1 %v1986_v1  ;;  %v354_v8 = vld [vmem:[%s4220_s0 + $0x9e0] sm:$0xff]  ;;  %v316_v1 = vld [vmem:[%s4220_s0 + $0x8b0] sm:$0xff] }
  0xaf   :  { %2051 = vmatprep.subr.bf16.mxu0 %v2050_v0  ;;  %v327_v0 = vld [vmem:[%s4220_s0 + $0x908] sm:$0xff]  ;;  %v2004_v49 = vpack.c.bf16 %v354_v8, %v344_v57  ;;  %v2068_v50 = vpack.c.bf16 %v316_v1, %v306_v37  ;;  %v2271_v37 = vld [vmem:[%s4221_s1 + $0x60] sm:$0xff]  ;;  %v2273_v57 = vld [vmem:[%s4221_s1 + $0x78] sm:$0xff] }
  0xb0   :  { %v2070_v53 = vpack.c.bf16 %v337_v48, %v327_v0  ;;  %v2274_v8 = vld [vmem:[%s4221_s1 + $0x98] sm:$0xff] }
  0xb1   :  { %1989 = vmatpush1.bf16.msra.mxu1 %v1988_v10  ;;  %v364_v10 = vld [vmem:[%s4220_s0 + $0xa30] sm:$0xff] }
  0xb2   :  { %2053 = vmatpush1.bf16.msra.mxu0 %v2052_v52  ;;  %1991 = vmatprep.subr.bf16.mxu1 %v1990_v55  ;;  %v374_v52 = vld [vmem:[%s4220_s0 + $0xa80] sm:$0xff]  ;;  %v336_v55 = vld [vmem:[%s4220_s0 + $0x950] sm:$0xff] }
  0xb3   :  { %2055 = vmatprep.subr.bf16.mxu0 %v2054_v59  ;;  %v347_v59 = vld [vmem:[%s4220_s0 + $0x9a8] sm:$0xff]  ;;  %v2008_v63 = vpack.c.bf16 %v374_v52, %v364_v10  ;;  %v2072_v27 = vpack.c.bf16 %v336_v55, %v326_v12 }
  0xb5   :  { %1993 = vmatpush1.bf16.msra.mxu1 %v1992_v38  ;;  %v394_v38 = vld [vmem:[%s4220_s0 + $0xb20] sm:$0xff] }
  0xb6   :  { %2057 = vmatpush1.bf16.msra.mxu0 %v2056_v5  ;;  %1995 = vmatprep.subr.bf16.mxu1 %v1994_v41  ;;  %v2074_v5 = vpack.c.bf16 %v357_v60, %v347_v59  ;;  %v356_v41 = vld [vmem:[%s4220_s0 + $0x9f0] sm:$0xff]  ;;  %v2012_v13 = vpack.c.bf16 %v394_v38, %v384_v4 }
  0xb7   :  { %2059 = vmatprep.subr.bf16.mxu0 %v2058_v29  ;;  %v377_v29 = vld [vmem:[%s4220_s0 + $0xa98] sm:$0xff]  ;;  %v2076_v16 = vpack.c.bf16 %v356_v41, %v346_v6 }
  0xb8   :  { %v2078_v17 = vpack.c.bf16 %v377_v29, %v367_v9 }
  0xb9   :  { %1997 = vmatpush1.bf16.msra.mxu1 %v1996_v18  ;;  %v376_v18 = vld [vmem:[%s4220_s0 + $0xa90] sm:$0xff] }
  0xba   :  { %2061 = vmatpush1.bf16.msra.mxu0 %v2060_v19  ;;  %1999 = vmatprep.subr.bf16.mxu1 %v1998_v22  ;;  %v2265_v19 = vld [vmem:[%s4221_s1 + $0x18] sm:$0xff]  ;;  %v2080_v44 = vpack.c.bf16 %v376_v18, %v366_v46 }
  0xbb   :  { %2063 = vmatprep.subr.bf16.mxu0 %v2062_v56  ;;  %v397_v22 = vld [vmem:[%s4220_s0 + $0xb38] sm:$0xff] }
  0xbc   :  { %v2082_v56 = vpack.c.bf16 %v397_v22, %v387_v20 }
  0xbd   :  { %2001 = vmatpush1.bf16.msra.mxu1 %v2000_v35  ;;  %v2269_v35 = vld [vmem:[%s4221_s1 + $0x48] sm:$0xff] }
  0xbe   :  { %2065 = vmatpush1.bf16.msra.mxu0 %v2064_v36  ;;  %2003 = vmatprep.subr.bf16.mxu1 %v2002_v39  ;;  %v2270_v36 = vld [vmem:[%s4221_s1 + $0x68] sm:$0xff]  ;;  %v2272_v39 = vld [vmem:[%s4221_s1 + $0x80] sm:$0xff] }
  0xbf   :  { %2067 = vmatprep.subr.bf16.mxu0 %v2066_v42 }
  0xc1   :  { %2005 = vmatpush1.bf16.msra.mxu1 %v2004_v49 }
  0xc2   :  { %2069 = vmatpush1.bf16.msra.mxu0 %v2068_v50  ;;  %2007 = vmatprep.subr.bf16.mxu1 %v2006_v51 }
  0xc3   :  { %2071 = vmatprep.subr.bf16.mxu0 %v2070_v53 }
  0xc4   :  { %1214 = vmatmul.mubr.f32.vlgmr.msra.gmra.mrb[32].mxu1 %v2263_v21 }
  0xc5   :  { %2009 = vmatpush1.bf16.msra.mxu1 %v2008_v63  ;;  %1219 = vmatprep.mubr.f32.mxu1 %v2264_v43 }
  0xc6   :  { %2073 = vmatpush1.bf16.msra.mxu0 %v2072_v27  ;;  %2011 = vmatprep.subr.bf16.mxu1 %v2010_v2 }
  0xc7   :  { %2075 = vmatprep.subr.bf16.mxu0 %v2074_v5 }
  0xc8   :  { %1220 = vmatmul.mubr.f32.gmra.mrb[34].mxu1 %v2265_v19 }
  0xc9   :  { %1225 = vmatprep.mubr.f32.mxu1 %v2266_v24  ;;  %2013 = vmatpush1.bf16.msra.mxu1 %v2012_v13 }
  0xca   :  { %2077 = vmatpush1.bf16.msra.mxu0 %v2076_v16  ;;  %2086 = vmatprep.subr.bf16.mxu1 %v2078_v17 }
  0xcb   :  { %2079 = vmatprep.subr.bf16.mxu0 %v2078_v17 }
  0xcc   :  { %1226 = vmatmul.mubr.f32.gmra.mrb[36].mxu1 %v2267_v31 }
  0xcd   :  { %1440 = vmatmul.mubr.f32.vlgmr.msra.gmra.mrb[48].mxu0 %v2263_v21  ;;  %1231 = vmatprep.mubr.f32.mxu1 %v2268_v32 }
  0xce   :  { %1445 = vmatprep.mubr.f32.mxu0 %v2264_v43  ;;  %2081 = vmatpush1.bf16.msra.mxu0 %v2080_v44 }
  0xcf   :  { %2083 = vmatprep.subr.bf16.mxu0 %v2082_v56 }
  0xd0   :  { %1232 = vmatmul.mubr.f32.gmra.mrb[38].mxu1 %v2269_v35 }
  0xd1   :  { %1446 = vmatmul.mubr.f32.gmra.mrb[50].mxu0 %v2265_v19  ;;  %1237 = vmatprep.mubr.f32.mxu1 %v2270_v36 }
  0xd2   :  { %1451 = vmatprep.mubr.f32.mxu0 %v2266_v24  ;;  %2085 = vmatpush1.bf16.msra.mxu0 %v2084_v33 }
  0xd4   :  { %1238 = vmatmul.mubr.f32.gmra.mrb[40].mxu1 %v2271_v37 }
  0xd5   :  { %1452 = vmatmul.mubr.f32.gmra.mrb[52].mxu0 %v2267_v31  ;;  %1243 = vmatprep.mubr.f32.mxu1 %v2272_v39 }
  0xd6   :  { %1457 = vmatprep.mubr.f32.mxu0 %v2268_v32 }
  0xd8   :  { %1244 = vmatmul.mubr.f32.gmra.mrb[42].mxu1 %v2273_v57 }
  0xd9   :  { %1458 = vmatmul.mubr.f32.gmra.mrb[54].mxu0 %v2269_v35  ;;  %1249 = vmatprep.mubr.f32.mxu1 %v2274_v8 }
  0xda   :  { %1463 = vmatprep.mubr.f32.mxu0 %v2270_v36  ;;  %v3837_v5 = vpop.permute.xlu1 %418 }
  0xdc   :  { %1250 = vmatmul.mubr.f32.gmra.mrb[44].mxu1 %v2959_v25 }
  0xdd   :  { %1464 = vmatmul.mubr.f32.gmra.mrb[56].mxu0 %v2271_v37  ;;  %1255 = vmatprep.mubr.f32.mxu1 %v2964_v28 }
  0xde   :  { %1469 = vmatprep.mubr.f32.mxu0 %v2272_v39 }
  0xe0   :  { %v3722_v42 = vpop.f32.mrb[0].mxu0  ;;  %1256 = vmatmul.mubr.f32.gmra.mrb[46].mxu1 %v2995_v34 }
  0xe1   :  { %1470 = vmatmul.mubr.f32.gmra.mrb[58].mxu0 %v2273_v57  ;;  %v3725_v1 = vpop.f32.mrb[1].mxu0  ;;  %1326 = vmatprep.mubr.f32.mxu1 %v2275_v3 }
  0xe2   :  { %1475 = vmatprep.mubr.f32.mxu0 %v2274_v8 }
  0xe4   :  { %v3728_v45 = vpop.f32.mrb[2].mxu0  ;;  %1710 = vmatmul.mubr.msk.f32.vlgmr.msra.gmra.mrb[32].mxu1 %vm446_vm0, %v3257_v61 }
  0xe5   :  { %1476 = vmatmul.mubr.f32.gmra.mrb[60].mxu0 %v2959_v25  ;;  %v3733_v47 = vpop.f32.mrb[3].mxu0  ;;  %2088 = vmatpush1.bf16.msra.mxu1 %v2080_v44  ;;  %v3866_v44 = vpop.permute.xlu1 %423 }
  0xe6   :  { %1481 = vmatprep.mubr.f32.mxu0 %v2964_v28  ;;  %1332 = vmatprep.mubr.f32.mxu1 %v2275_v3 }
  0xe7   :  { %2087 = vmatprep.subr.bf16.mxu1 %v2082_v56 }
  0xe8   :  { %v3737_v0 = vpop.f32.mrb[4].mxu0  ;;  %1711 = vmatmul.mubr.msk.f32.gmra.mrb[34].mxu1 %vm446_vm0, %v3291_v11 }
  0xe9   :  { %1482 = vmatmul.mubr.f32.gmra.mrb[62].mxu0 %v2995_v34  ;;  %v3742_v48 = vpop.f32.mrb[5].mxu0  ;;  %1338 = vmatprep.mubr.f32.mxu1 %v2275_v3 }
  0xea   :  { %1552 = vmatprep.mubr.f32.mxu0 %v2275_v3  ;;  %2089 = vmatpush1.bf16.msra.mxu1 %v2084_v33 }
  0xec   :  { %v3746_v25 = vpop.f32.mrb[6].mxu0  ;;  %1712 = vmatmul.mubr.msk.f32.gmra.mrb[36].mxu1 %vm446_vm0, %v3325_v26 }
  0xed   :  { %1718 = vmatmul.mubr.msk.f32.vlgmr.msra.gmra.mrb[48].mxu0 %vm446_vm0, %v3257_v61  ;;  %v3752_v28 = vpop.f32.mrb[7].mxu0  ;;  %1344 = vmatprep.mubr.f32.mxu1 %v2275_v3 }
  0xee   :  { %1558 = vmatprep.mubr.f32.mxu0 %v2275_v3 }
  0xf0   :  { %v3756_v34 = vpop.f32.mrb[8].mxu0  ;;  %1713 = vmatmul.mubr.msk.f32.gmra.mrb[38].mxu1 %vm446_vm0, %v3359_v62 }
  0xf1   :  { %1719 = vmatmul.mubr.msk.f32.gmra.mrb[50].mxu0 %vm446_vm0, %v3291_v11  ;;  %v3762_v49 = vpop.f32.mrb[9].mxu0  ;;  %1350 = vmatprep.mubr.f32.mxu1 %v2275_v3 }
  0xf2   :  { %1564 = vmatprep.mubr.f32.mxu0 %v2275_v3 }
  0xf4   :  { %v3766_v61 = vpop.f32.mrb[10].mxu0  ;;  %1714 = vmatmul.mubr.msk.f32.gmra.mrb[40].mxu1 %vm446_vm0, %v3399_v54 }
  0xf5   :  { %1720 = vmatmul.mubr.msk.f32.gmra.mrb[52].mxu0 %vm446_vm0, %v3325_v26  ;;  %v3772_v50 = vpop.f32.mrb[11].mxu0  ;;  %1356 = vmatprep.mubr.f32.mxu1 %v2275_v3 }
  0xf6   :  { %1570 = vmatprep.mubr.f32.mxu0 %v2275_v3 }
  0xf8   :  { %v3776_v11 = vpop.f32.mrb[12].mxu0  ;;  %1715 = vmatmul.mubr.msk.f32.gmra.mrb[42].mxu1 %vm446_vm0, %v3433_v7 }
  0xf9   :  { %1721 = vmatmul.mubr.msk.f32.gmra.mrb[54].mxu0 %vm446_vm0, %v3359_v62  ;;  %v3782_v12 = vpop.f32.mrb[13].mxu0  ;;  %1362 = vmatprep.mubr.f32.mxu1 %v2275_v3 }
  0xfa   :  { %1576 = vmatprep.mubr.f32.mxu0 %v2275_v3 }
  0xfc   :  { %v3786_v26 = vpop.f32.mrb[14].mxu0  ;;  %1716 = vmatmul.mubr.msk.f32.gmra.mrb[44].mxu1 %vm446_vm0, %v3468_v23 }
  0xfd   :  { %1722 = vmatmul.mubr.msk.f32.gmra.mrb[56].mxu0 %vm446_vm0, %v3399_v54  ;;  %v3792_v51 = vpop.f32.mrb[15].mxu0  ;;  %1368 = vmatprep.mubr.f32.mxu1 %v2275_v3 }
  0xfe   :  { %1582 = vmatprep.mubr.f32.mxu0 %v2275_v3 }
 0x100   :  { %v3796_v62 = vpop.f32.mrb[16].mxu0  ;;  %1717 = vmatmul.mubr.msk.f32.gmra.mrb[46].mxu1 %vm446_vm0, %v3500_v40 }
 0x101   :  { %1723 = vmatmul.mubr.msk.f32.gmra.mrb[58].mxu0 %vm446_vm0, %v3433_v7  ;;  %v3802_v10 = vpop.f32.mrb[17].mxu0  ;;  %1594 = vmatprep.mubr.f32.mxu1 %v2275_v3 }
 0x102   :  { %1588 = vmatprep.mubr.f32.mxu0 %v2275_v3 }
 0x104   :  { %1725 = vmatmul.mubr.msk.f32.vlgmr.msra.gmra.mrb[48].mxu1 %vm446_vm0, %v3500_v40  ;;  %v3808_v54 = vpop.f32.mrb[18].mxu0  ;;  %v3826_v40 = vpop.permute.xlu0 %408 }
 0x105   :  { %1724 = vmatmul.mubr.msk.f32.gmra.mrb[60].mxu0 %vm446_vm0, %v3468_v23  ;;  %v3812_v52 = vpop.f32.mrb[19].mxu0 }
 0x108   :  { %v3814_v53 = vpop.f32.mrb[20].mxu0  ;;  %v3834_v4 = vpop.permute.xlu0 %413 }
 0x109   :  { %v3816_v55 = vpop.f32.mrb[21].mxu0 }
 0x10c   :  { %v3818_v7 = vpop.f32.mrb[22].mxu0  ;;  %v3878_v35 = vpop.permute.xlu0 %428 }
 0x10d   :  { %v3820_v14 = vpop.f32.mrb[23].mxu0 }
 0x110   :  { %v3822_v15 = vpop.f32.mrb[24].mxu0 }
 0x111   :  { %v3824_v3 = vpop.f32.mrb[25].mxu0 }
 0x114   :  { %v3828_v59 = vpop.f32.mrb[26].mxu0 }
 0x115   :  { %v3830_v60 = vpop.f32.mrb[27].mxu0 }
 0x117   :  { %v537_v23 = vpop.f32.mrb[0].mxu1 }
 0x118   :  { %v538_v63 = vadd.f32 %v537_v23, %v3826_v40  ;;  %v539_v27 = vpop.f32.mrb[1].mxu1  ;;  %v3902_v23 = vpop.permute.xlu0 %438 }
 0x119   :  { %v540_v2 = vadd.f32 %v539_v27, %v3826_v40 }
 0x11a   :  { %v651_v38 = vadd.f32 %v3722_v42, %v538_v63  ;;  %v3839_v6 = vpop.f32.mrb[28].mxu0 }
 0x11b   :  { %v653_v41 = vadd.f32 %v3725_v1, %v540_v2  ;;  %v543_v21 = vpop.f32.mrb[2].mxu1  ;;  %v3842_v9 = vpop.f32.mrb[29].mxu0 }
 0x11c   :  { %1601 = vst [vmem:[%s4223_s3] sm:$0xff] %v651_v38  ;;  %v544_v29 = vadd.f32 %v543_v21, %v3834_v4  ;;  %v545_v43 = vpop.f32.mrb[3].mxu1  ;;  %v3890_v1 = vpop.permute.xlu1 %433 }
 0x11d   :  { %1602 = vst [vmem:[%s4223_s3 + $0x8] sm:$0xff] %v653_v41  ;;  %v546_v13 = vadd.f32 %v545_v43, %v3834_v4 }
 0x11e   :  { %v657_v16 = vadd.f32 %v3728_v45, %v544_v29  ;;  %v3853_v17 = vpop.f32.mrb[30].mxu0 }
 0x11f   :  { %v659_v46 = vadd.f32 %v3733_v47, %v546_v13  ;;  %v549_v18 = vpop.f32.mrb[4].mxu1  ;;  %v3856_v19 = vpop.f32.mrb[31].mxu0 }
 0x120   :  { %1612 = vst [vmem:[%s4223_s3 + $0x50] sm:$0xff] %v657_v16  ;;  %v550_v20 = vadd.f32 %v549_v18, %v3837_v5  ;;  %v551_v22 = vpop.f32.mrb[5].mxu1  ;;  %v3914_v41 = vpop.permute.xlu1 %443 }
 0x121   :  { %1613 = vst [vmem:[%s4223_s3 + $0x58] sm:$0xff] %v659_v46  ;;  %v552_v24 = vadd.f32 %v551_v22, %v3837_v5 }
 0x122   :  { %v663_v56 = vadd.f32 %v3737_v0, %v550_v20 }
 0x123   :  { %v665_v30 = vadd.f32 %v3742_v48, %v552_v24  ;;  %v555_v58 = vpop.f32.mrb[6].mxu1 }
 0x124   :  { %1622 = vst [vmem:[%s4223_s3 + $0xa0] sm:$0xff] %v663_v56  ;;  %v556_v31 = vadd.f32 %v555_v58, %v3866_v44  ;;  %v557_v32 = vpop.f32.mrb[7].mxu1 }
 0x125   :  { %1623 = vst [vmem:[%s4223_s3 + $0xa8] sm:$0xff] %v665_v30  ;;  %v558_v33 = vadd.f32 %v557_v32, %v3866_v44 }
 0x126   :  { %v669_v36 = vadd.f32 %v3746_v25, %v556_v31 }
 0x127   :  { %v671_v37 = vadd.f32 %v3752_v28, %v558_v33  ;;  %v561_v39 = vpop.f32.mrb[8].mxu1 }
 0x128   :  { %1632 = vst [vmem:[%s4223_s3 + $0xf0] sm:$0xff] %v669_v36  ;;  %v562_v57 = vadd.f32 %v561_v39, %v3878_v35  ;;  %v563_v8 = vpop.f32.mrb[9].mxu1 }
 0x129   :  { %1633 = vst [vmem:[%s4223_s3 + $0xf8] sm:$0xff] %v671_v37  ;;  %v564_v42 = vadd.f32 %v563_v8, %v3878_v35 }
 0x12a   :  { %v675_v45 = vadd.f32 %v3756_v34, %v562_v57 }
 0x12b   :  { %v677_v47 = vadd.f32 %v3762_v49, %v564_v42  ;;  %v567_v0 = vpop.f32.mrb[10].mxu1 }
 0x12c   :  { %1642 = vst [vmem:[%s4223_s3 + $0x140] sm:$0xff] %v675_v45  ;;  %v568_v48 = vadd.f32 %v567_v0, %v3890_v1  ;;  %v569_v25 = vpop.f32.mrb[11].mxu1 }
 0x12d   :  { %1643 = vst [vmem:[%s4223_s3 + $0x148] sm:$0xff] %v677_v47  ;;  %v570_v28 = vadd.f32 %v569_v25, %v3890_v1 }
 0x12e   :  { %v681_v34 = vadd.f32 %v3766_v61, %v568_v48 }
 0x12f   :  { %v683_v49 = vadd.f32 %v3772_v50, %v570_v28  ;;  %v573_v63 = vpop.f32.mrb[12].mxu1 }
 0x130   :  { %1652 = vst [vmem:[%s4223_s3 + $0x190] sm:$0xff] %v681_v34  ;;  %v574_v27 = vadd.f32 %v573_v63, %v3902_v23  ;;  %v575_v2 = vpop.f32.mrb[13].mxu1 }
 0x131   :  { %1653 = vst [vmem:[%s4223_s3 + $0x198] sm:$0xff] %v683_v49  ;;  %v576_v38 = vadd.f32 %v575_v2, %v3902_v23 }
 0x132   :  { %v687_v61 = vadd.f32 %v3776_v11, %v574_v27 }
 0x133   :  { %v689_v50 = vadd.f32 %v3782_v12, %v576_v38  ;;  %v579_v21 = vpop.f32.mrb[14].mxu1 }
 0x134   :  { %1662 = vst [vmem:[%s4223_s3 + $0x1e0] sm:$0xff] %v687_v61  ;;  %v580_v29 = vadd.f32 %v579_v21, %v3914_v41  ;;  %v581_v43 = vpop.f32.mrb[15].mxu1 }
 0x135   :  { %1663 = vst [vmem:[%s4223_s3 + $0x1e8] sm:$0xff] %v689_v50  ;;  %v582_v13 = vadd.f32 %v581_v43, %v3914_v41 }
 0x136   :  { %v693_v16 = vadd.f32 %v3786_v26, %v580_v29 }
 0x137   :  { %v695_v11 = vadd.f32 %v3792_v51, %v582_v13 }
 0x138   :  { %1672 = vst [vmem:[%s4223_s3 + $0x230] sm:$0xff] %v693_v16 }
 0x139   :  { %1673 = vst [vmem:[%s4223_s3 + $0x238] sm:$0xff] %v695_v11 }
 0x157   :  { %v763_v12 = vpop.f32.mrb[16].mxu1 }
 0x158   :  { %v764_v46 = vadd.f32 %v763_v12, %v3826_v40  ;;  %v765_v18 = vpop.f32.mrb[17].mxu1 }
 0x159   :  { %v766_v20 = vadd.f32 %v765_v18, %v3826_v40 }
 0x15a   :  { %v877_v22 = vadd.f32 %v3796_v62, %v764_v46 }
 0x15b   :  { %v879_v26 = vadd.f32 %v3802_v10, %v766_v20  ;;  %v769_v24 = vpop.f32.mrb[18].mxu1 }
 0x15c   :  { %1603 = vst [vmem:[%s4223_s3 + $0x10] sm:$0xff] %v877_v22  ;;  %v770_v51 = vadd.f32 %v769_v24, %v3834_v4  ;;  %v771_v56 = vpop.f32.mrb[19].mxu1 }
 0x15d   :  { %1604 = vst [vmem:[%s4223_s3 + $0x18] sm:$0xff] %v879_v26  ;;  %v772_v30 = vadd.f32 %v771_v56, %v3834_v4 }
 0x15e   :  { %v883_v58 = vadd.f32 %v3808_v54, %v770_v51 }
 0x15f   :  { %v885_v62 = vadd.f32 %v3812_v52, %v772_v30  ;;  %v775_v31 = vpop.f32.mrb[20].mxu1 }
 0x160   :  { %1614 = vst [vmem:[%s4223_s3 + $0x60] sm:$0xff] %v883_v58  ;;  %v1102_v10 = vpop.f32.mrb[32].mxu0  ;;  %v776_v32 = vadd.f32 %v775_v31, %v3837_v5  ;;  %v777_v33 = vpop.f32.mrb[21].mxu1 }
 0x161   :  { %1615 = vst [vmem:[%s4223_s3 + $0x68] sm:$0xff] %v885_v62  ;;  %v2154_v36 = vadd.f32 %v1102_v10, %v3826_v40  ;;  %v1104_v37 = vpop.f32.mrb[33].mxu0  ;;  %v778_v54 = vadd.f32 %v777_v33, %v3837_v5 }
 0x162   :  { %v889_v52 = vadd.f32 %v3814_v53, %v776_v32  ;;  %v2155_v39 = vadd.f32 %v1104_v37, %v3826_v40 }
 0x163   :  { %1605 = vst [vmem:[%s4223_s3 + $0x20] sm:$0xff] %v2154_v36  ;;  %v891_v57 = vadd.f32 %v3816_v55, %v778_v54  ;;  %v781_v8 = vpop.f32.mrb[22].mxu1 }
 0x164   :  { %1624 = vst [vmem:[%s4223_s3 + $0xb0] sm:$0xff] %v889_v52  ;;  %1606 = vst [vmem:[%s4223_s3 + $0x28] sm:$0xff] %v2155_v39  ;;  %v1108_v42 = vpop.f32.mrb[34].mxu0  ;;  %v782_v53 = vadd.f32 %v781_v8, %v3866_v44  ;;  %v783_v45 = vpop.f32.mrb[23].mxu1 }
 0x165   :  { %1625 = vst [vmem:[%s4223_s3 + $0xb8] sm:$0xff] %v891_v57  ;;  %v2156_v47 = vadd.f32 %v1108_v42, %v3834_v4  ;;  %v1110_v55 = vpop.f32.mrb[35].mxu0  ;;  %v784_v0 = vadd.f32 %v783_v45, %v3866_v44 }
 0x166   :  { %v895_v48 = vadd.f32 %v3818_v7, %v782_v53  ;;  %v2157_v25 = vadd.f32 %v1110_v55, %v3834_v4 }
 0x167   :  { %1616 = vst [vmem:[%s4223_s3 + $0x70] sm:$0xff] %v2156_v47  ;;  %v897_v28 = vadd.f32 %v3820_v14, %v784_v0  ;;  %v787_v34 = vpop.f32.mrb[24].mxu1 }
 0x168   :  { %1634 = vst [vmem:[%s4223_s3 + $0x100] sm:$0xff] %v895_v48  ;;  %1617 = vst [vmem:[%s4223_s3 + $0x78] sm:$0xff] %v2157_v25  ;;  %v1114_v49 = vpop.f32.mrb[36].mxu0  ;;  %v788_v7 = vadd.f32 %v787_v34, %v3878_v35  ;;  %v789_v63 = vpop.f32.mrb[25].mxu1 }
 0x169   :  { %1635 = vst [vmem:[%s4223_s3 + $0x108] sm:$0xff] %v897_v28  ;;  %v2158_v27 = vadd.f32 %v1114_v49, %v3837_v5  ;;  %v1116_v14 = vpop.f32.mrb[37].mxu0  ;;  %v790_v2 = vadd.f32 %v789_v63, %v3878_v35 }
 0x16a   :  { %v901_v38 = vadd.f32 %v3822_v15, %v788_v7  ;;  %v2159_v61 = vadd.f32 %v1116_v14, %v3837_v5 }
 0x16b   :  { %1626 = vst [vmem:[%s4223_s3 + $0xc0] sm:$0xff] %v2158_v27  ;;  %v903_v50 = vadd.f32 %v3824_v3, %v790_v2  ;;  %v793_v21 = vpop.f32.mrb[26].mxu1 }
 0x16c   :  { %1644 = vst [vmem:[%s4223_s3 + $0x150] sm:$0xff] %v901_v38  ;;  %1627 = vst [vmem:[%s4223_s3 + $0xc8] sm:$0xff] %v2159_v61  ;;  %v1120_v29 = vpop.f32.mrb[38].mxu0  ;;  %v794_v15 = vadd.f32 %v793_v21, %v3890_v1  ;;  %v795_v43 = vpop.f32.mrb[27].mxu1 }
 0x16d   :  { %1645 = vst [vmem:[%s4223_s3 + $0x158] sm:$0xff] %v903_v50  ;;  %v2160_v13 = vadd.f32 %v1120_v29, %v3866_v44  ;;  %v1122_v3 = vpop.f32.mrb[39].mxu0  ;;  %v796_v16 = vadd.f32 %v795_v43, %v3890_v1 }
 0x16e   :  { %v907_v11 = vadd.f32 %v3828_v59, %v794_v15  ;;  %v2161_v12 = vadd.f32 %v1122_v3, %v3866_v44 }
 0x16f   :  { %1636 = vst [vmem:[%s4223_s3 + $0x110] sm:$0xff] %v2160_v13  ;;  %v909_v46 = vadd.f32 %v3830_v60, %v796_v16  ;;  %v799_v18 = vpop.f32.mrb[28].mxu1 }
 0x170   :  { %1654 = vst [vmem:[%s4223_s3 + $0x1a0] sm:$0xff] %v907_v11  ;;  %1637 = vst [vmem:[%s4223_s3 + $0x118] sm:$0xff] %v2161_v12  ;;  %v1126_v20 = vpop.f32.mrb[40].mxu0  ;;  %v800_v59 = vadd.f32 %v799_v18, %v3902_v23  ;;  %v801_v22 = vpop.f32.mrb[29].mxu1 }
 0x171   :  { %1655 = vst [vmem:[%s4223_s3 + $0x1a8] sm:$0xff] %v909_v46  ;;  %v2162_v26 = vadd.f32 %v1126_v20, %v3878_v35  ;;  %v1128_v60 = vpop.f32.mrb[41].mxu0  ;;  %v802_v24 = vadd.f32 %v801_v22, %v3902_v23 }
 0x172   :  { %v913_v51 = vadd.f32 %v3839_v6, %v800_v59  ;;  %v2163_v56 = vadd.f32 %v1128_v60, %v3878_v35 }
 0x173   :  { %1646 = vst [vmem:[%s4223_s3 + $0x160] sm:$0xff] %v2162_v26  ;;  %v915_v30 = vadd.f32 %v3842_v9, %v802_v24  ;;  %v805_v58 = vpop.f32.mrb[30].mxu1 }
 0x174   :  { %1664 = vst [vmem:[%s4223_s3 + $0x1f0] sm:$0xff] %v913_v51  ;;  %1647 = vst [vmem:[%s4223_s3 + $0x168] sm:$0xff] %v2163_v56  ;;  %v1132_v62 = vpop.f32.mrb[42].mxu0  ;;  %v806_v6 = vadd.f32 %v805_v58, %v3914_v41  ;;  %v807_v31 = vpop.f32.mrb[31].mxu1 }
 0x175   :  { %1665 = vst [vmem:[%s4223_s3 + $0x1f8] sm:$0xff] %v915_v30  ;;  %v2164_v10 = vadd.f32 %v1132_v62, %v3890_v1  ;;  %v1134_v9 = vpop.f32.mrb[43].mxu0  ;;  %v808_v32 = vadd.f32 %v807_v31, %v3914_v41 }
 0x176   :  { %v919_v33 = vadd.f32 %v3853_v17, %v806_v6  ;;  %v2165_v36 = vadd.f32 %v1134_v9, %v3890_v1 }
 0x177   :  { %1656 = vst [vmem:[%s4223_s3 + $0x1b0] sm:$0xff] %v2164_v10  ;;  %v921_v37 = vadd.f32 %v3856_v19, %v808_v32 }
 0x178   :  { %1674 = vst [vmem:[%s4223_s3 + $0x240] sm:$0xff] %v919_v33  ;;  %1657 = vst [vmem:[%s4223_s3 + $0x1b8] sm:$0xff] %v2165_v36  ;;  %v1138_v54 = vpop.f32.mrb[44].mxu0 }
 0x179   :  { %1675 = vst [vmem:[%s4223_s3 + $0x248] sm:$0xff] %v921_v37  ;;  %v2166_v17 = vadd.f32 %v1138_v54, %v3902_v23  ;;  %v1140_v52 = vpop.f32.mrb[45].mxu0 }
 0x17a   :  { %v2167_v39 = vadd.f32 %v1140_v52, %v3902_v23 }
 0x17b   :  { %1666 = vst [vmem:[%s4223_s3 + $0x200] sm:$0xff] %v2166_v17 }
 0x17c   :  { %1667 = vst [vmem:[%s4223_s3 + $0x208] sm:$0xff] %v2167_v39  ;;  %v1144_v19 = vpop.f32.mrb[46].mxu0 }
 0x17d   :  { %v2168_v57 = vadd.f32 %v1144_v19, %v3914_v41  ;;  %v1146_v8 = vpop.f32.mrb[47].mxu0 }
 0x17e   :  { %v2169_v42 = vadd.f32 %v1146_v8, %v3914_v41 }
 0x17f   :  { %1676 = vst [vmem:[%s4223_s3 + $0x250] sm:$0xff] %v2168_v57 }
 0x180   :  { %1677 = vst [vmem:[%s4223_s3 + $0x258] sm:$0xff] %v2169_v42 }
 0x1b7   :  { %v1328_v53 = vpop.f32.mrb[32].mxu1 }
 0x1b8   :  { %v2170_v45 = vadd.f32 %v1328_v53, %v3826_v40  ;;  %v1330_v47 = vpop.f32.mrb[33].mxu1 }
 0x1b9   :  { %v2171_v55 = vadd.f32 %v1330_v47, %v3826_v40 }
 0x1ba   :  { %1607 = vst [vmem:[%s4223_s3 + $0x30] sm:$0xff] %v2170_v45 }
 0x1bb   :  { %1608 = vst [vmem:[%s4223_s3 + $0x38] sm:$0xff] %v2171_v55  ;;  %v1334_v0 = vpop.f32.mrb[34].mxu1 }
 0x1bc   :  { %v2172_v48 = vadd.f32 %v1334_v0, %v3834_v4  ;;  %v4087_v25 = vpop.f32.mrb[62].mxu0  ;;  %v1336_v28 = vpop.f32.mrb[35].mxu1 }
 0x1bd   :  { %v2173_v34 = vadd.f32 %v1336_v28, %v3834_v4  ;;  %v4090_v49 = vpop.f32.mrb[63].mxu0  ;;  %v1484_v19 = vadd.f32 %v4087_v25, %v3914_v41 }
 0x1be   :  { %1618 = vst [vmem:[%s4223_s3 + $0x80] sm:$0xff] %v2172_v48  ;;  %v1486_v8 = vadd.f32 %v4090_v49, %v3914_v41 }
 0x1bf   :  { %1619 = vst [vmem:[%s4223_s3 + $0x88] sm:$0xff] %v2173_v34  ;;  %v1340_v7 = vpop.f32.mrb[36].mxu1 }
 0x1c0   :  { %v1554_v63 = vpop.f32.mrb[48].mxu0  ;;  %v2174_v27 = vadd.f32 %v1340_v7, %v3837_v5  ;;  %v1342_v14 = vpop.f32.mrb[37].mxu1 }
 0x1c1   :  { %v2186_v2 = vadd.f32 %v1554_v63, %v3826_v40  ;;  %v1556_v38 = vpop.f32.mrb[49].mxu0  ;;  %v2175_v61 = vadd.f32 %v1342_v14, %v3837_v5 }
 0x1c2   :  { %v2187_v50 = vadd.f32 %v1556_v38, %v3826_v40  ;;  %1628 = vst [vmem:[%s4223_s3 + $0xd0] sm:$0xff] %v2174_v27 }
 0x1c3   :  { %1609 = vst [vmem:[%s4223_s3 + $0x40] sm:$0xff] %v2186_v2  ;;  %1629 = vst [vmem:[%s4223_s3 + $0xd8] sm:$0xff] %v2175_v61  ;;  %v1346_v21 = vpop.f32.mrb[38].mxu1 }
 0x1c4   :  { %1611 = vst.msk [vmem:[%s4223_s3 + $0x48] sm:$0xff] %vm1610_vm1, %v2187_v50  ;;  %v1560_v29 = vpop.f32.mrb[50].mxu0  ;;  %v2176_v40 = vadd.f32 %v1346_v21, %v3866_v44  ;;  %v1348_v15 = vpop.f32.mrb[39].mxu1 }
 0x1c5   :  { %v2188_v43 = vadd.f32 %v1560_v29, %v3834_v4  ;;  %v1562_v13 = vpop.f32.mrb[51].mxu0  ;;  %v2177_v3 = vadd.f32 %v1348_v15, %v3866_v44 }
 0x1c6   :  { %v2189_v16 = vadd.f32 %v1562_v13, %v3834_v4  ;;  %1638 = vst [vmem:[%s4223_s3 + $0x120] sm:$0xff] %v2176_v40 }
 0x1c7   :  { %1620 = vst [vmem:[%s4223_s3 + $0x90] sm:$0xff] %v2188_v43  ;;  %1639 = vst [vmem:[%s4223_s3 + $0x128] sm:$0xff] %v2177_v3  ;;  %v1352_v11 = vpop.f32.mrb[40].mxu1 }
 0x1c8   :  { %1621 = vst.msk [vmem:[%s4223_s3 + $0x98] sm:$0xff] %vm1610_vm1, %v2189_v16  ;;  %v1566_v12 = vpop.f32.mrb[52].mxu0  ;;  %v2178_v4 = vadd.f32 %v1352_v11, %v3878_v35  ;;  %v1354_v46 = vpop.f32.mrb[41].mxu1 }
 0x1c9   :  { %v2190_v18 = vadd.f32 %v1566_v12, %v3837_v5  ;;  %v1568_v20 = vpop.f32.mrb[53].mxu0  ;;  %v2179_v59 = vadd.f32 %v1354_v46, %v3878_v35 }
 0x1ca   :  { %v2191_v22 = vadd.f32 %v1568_v20, %v3837_v5  ;;  %1648 = vst [vmem:[%s4223_s3 + $0x170] sm:$0xff] %v2178_v4 }
 0x1cb   :  { %1630 = vst [vmem:[%s4223_s3 + $0xe0] sm:$0xff] %v2190_v18  ;;  %1649 = vst [vmem:[%s4223_s3 + $0x178] sm:$0xff] %v2179_v59  ;;  %v1358_v26 = vpop.f32.mrb[42].mxu1 }
 0x1cc   :  { %1631 = vst.msk [vmem:[%s4223_s3 + $0xe8] sm:$0xff] %vm1610_vm1, %v2191_v22  ;;  %v1572_v60 = vpop.f32.mrb[54].mxu0  ;;  %v2180_v5 = vadd.f32 %v1358_v26, %v3890_v1  ;;  %v1360_v24 = vpop.f32.mrb[43].mxu1 }
 0x1cd   :  { %v2192_v51 = vadd.f32 %v1572_v60, %v3866_v44  ;;  %v1574_v56 = vpop.f32.mrb[55].mxu0  ;;  %v2181_v30 = vadd.f32 %v1360_v24, %v3890_v1 }
 0x1ce   :  { %v2193_v58 = vadd.f32 %v1574_v56, %v3866_v44  ;;  %1658 = vst [vmem:[%s4223_s3 + $0x1c0] sm:$0xff] %v2180_v5 }
 0x1cf   :  { %1640 = vst [vmem:[%s4223_s3 + $0x130] sm:$0xff] %v2192_v51  ;;  %1659 = vst [vmem:[%s4223_s3 + $0x1c8] sm:$0xff] %v2181_v30  ;;  %v1364_v62 = vpop.f32.mrb[44].mxu1 }
 0x1d0   :  { %1641 = vst.msk [vmem:[%s4223_s3 + $0x138] sm:$0xff] %vm1610_vm1, %v2193_v58  ;;  %v1578_v6 = vpop.f32.mrb[56].mxu0  ;;  %v2182_v44 = vadd.f32 %v1364_v62, %v3902_v23  ;;  %v1366_v31 = vpop.f32.mrb[45].mxu1 }
 0x1d1   :  { %v2194_v10 = vadd.f32 %v1578_v6, %v3878_v35  ;;  %v1580_v9 = vpop.f32.mrb[57].mxu0  ;;  %v2183_v32 = vadd.f32 %v1366_v31, %v3902_v23 }
 0x1d2   :  { %v2195_v33 = vadd.f32 %v1580_v9, %v3878_v35  ;;  %1668 = vst [vmem:[%s4223_s3 + $0x210] sm:$0xff] %v2182_v44 }
 0x1d3   :  { %1650 = vst [vmem:[%s4223_s3 + $0x180] sm:$0xff] %v2194_v10  ;;  %1669 = vst [vmem:[%s4223_s3 + $0x218] sm:$0xff] %v2183_v32  ;;  %v1370_v36 = vpop.f32.mrb[46].mxu1 }
 0x1d4   :  { %1651 = vst.msk [vmem:[%s4223_s3 + $0x188] sm:$0xff] %vm1610_vm1, %v2195_v33  ;;  %v1584_v37 = vpop.f32.mrb[58].mxu0  ;;  %v2184_v35 = vadd.f32 %v1370_v36, %v3914_v41  ;;  %v1372_v54 = vpop.f32.mrb[47].mxu1 }
 0x1d5   :  { %v2196_v17 = vadd.f32 %v1584_v37, %v3890_v1  ;;  %v1586_v52 = vpop.f32.mrb[59].mxu0  ;;  %v2185_v39 = vadd.f32 %v1372_v54, %v3914_v41 }
 0x1d6   :  { %v2197_v57 = vadd.f32 %v1586_v52, %v3890_v1  ;;  %1678 = vst [vmem:[%s4223_s3 + $0x260] sm:$0xff] %v2184_v35 }
 0x1d7   :  { %1660 = vst [vmem:[%s4223_s3 + $0x1d0] sm:$0xff] %v2196_v17  ;;  %1679 = vst [vmem:[%s4223_s3 + $0x268] sm:$0xff] %v2185_v39  ;;  %v1596_v42 = vpop.f32.mrb[48].mxu1 }
 0x1d8   :  { %1661 = vst.msk [vmem:[%s4223_s3 + $0x1d8] sm:$0xff] %vm1610_vm1, %v2197_v57  ;;  %v1590_v1 = vpop.f32.mrb[60].mxu0  ;;  %v1597_v53 = vadd.f32 %v1596_v42, %v1484_v19  ;;  %v1598_v45 = vpop.f32.mrb[49].mxu1 }
 0x1d9   :  { %v2198_v47 = vadd.f32 %v1590_v1, %v3902_v23  ;;  %v1592_v41 = vpop.f32.mrb[61].mxu0  ;;  %v1599_v55 = vadd.f32 %v1598_v45, %v1486_v8 }
 0x1da   :  { %v2199_v0 = vadd.f32 %v1592_v41, %v3902_v23  ;;  %1680 = vst [vmem:[%s4223_s3 + $0x270] sm:$0xff] %v1597_v53 }
 0x1db   :  { %1670 = vst [vmem:[%s4223_s3 + $0x220] sm:$0xff] %v2198_v47  ;;  %1681 = vst.msk [vmem:[%s4223_s3 + $0x278] sm:$0xff] %vm1610_vm1, %v1599_v55 }
 0x1dc   :  { %1671 = vst.msk [vmem:[%s4223_s3 + $0x228] sm:$0xff] %vm1610_vm1, %v2199_v0 }

// kernel: forward.9
= control target key start
LH: loop header
LB: loop body
LE: loop exit
PB: predicated region body
PF: predicated region fallthrough
CT: control target
= control target key end

     0   :  { %s1901_s0 = inlined_call_operand.vmem [shape: f32[4,512], index: 0, kind: input, shape index: {}]   ;;  %s1902_s1 = inlined_call_operand.vmem [shape: f32[512,512], index: 1, kind: input, shape index: {}]   ;;  %s1903_s2 = inlined_call_operand.vmem [shape: f32[1,512], index: 2, kind: input, shape index: {}]   ;;  %s1904_s3 = inlined_call_operand.hbm [shape: f32[2,2], index: 3, kind: output, shape index: {}]  }
   0x1   :  { %v18_v0 = vld [vmem:[%s1902_s1 + $0x8] sm:$0xff]  ;;  %v20_v2 = vld [vmem:[%s1902_s1 + $0x18] sm:$0xff]  ;;  %v17_v5 = vld [vmem:[%s1902_s1] sm:$0xff] }
   0x2   :  { %v22_v1 = vld [vmem:[%s1902_s1 + $0x28] sm:$0xff]  ;;  %v24_v4 = vld [vmem:[%s1902_s1 + $0x38] sm:$0xff]  ;;  %v21_v6 = vld [vmem:[%s1902_s1 + $0x20] sm:$0xff] }
   0x3   :  { %v764_v3 = vpack.c.bf16 %v22_v1, %v18_v0  ;;  %v892_v7 = vpack.c.bf16 %v24_v4, %v20_v2  ;;  %v766_v8 = vpack.c.bf16 %v21_v6, %v17_v5  ;;  %v19_v9 = vld [vmem:[%s1902_s1 + $0x10] sm:$0xff]  ;;  %v26_v11 = vld [vmem:[%s1902_s1 + $0x48] sm:$0xff]  ;;  %v28_v14 = vld [vmem:[%s1902_s1 + $0x58] sm:$0xff] }
   0x4   :  { %v23_v10 = vld [vmem:[%s1902_s1 + $0x30] sm:$0xff]  ;;  %v30_v13 = vld [vmem:[%s1902_s1 + $0x68] sm:$0xff]  ;;  %v32_v15 = vld [vmem:[%s1902_s1 + $0x78] sm:$0xff] }
   0x5   :  { %765 = vmatprep.subr.bf16.mxu0 %v764_v3  ;;  %v894_v12 = vpack.c.bf16 %v23_v10, %v19_v9  ;;  %893 = vmatprep.subr.bf16.mxu1 %v892_v7  ;;  %v768_v16 = vpack.c.bf16 %v30_v13, %v26_v11  ;;  %v896_v17 = vpack.c.bf16 %v32_v15, %v28_v14  ;;  %v25_v18 = vld [vmem:[%s1902_s1 + $0x40] sm:$0xff]  ;;  %v27_v20 = vld [vmem:[%s1902_s1 + $0x50] sm:$0xff]  ;;  %v34_v23 = vld [vmem:[%s1902_s1 + $0x88] sm:$0xff] }
   0x6   :  { %767 = vmatpush1.bf16.msra.mxu0 %v766_v8  ;;  %v29_v19 = vld [vmem:[%s1902_s1 + $0x60] sm:$0xff]  ;;  %v31_v22 = vld [vmem:[%s1902_s1 + $0x70] sm:$0xff]  ;;  %v38_v24 = vld [vmem:[%s1902_s1 + $0xa8] sm:$0xff] }
   0x7   :  { %895 = vmatpush1.bf16.msra.mxu1 %v894_v12  ;;  %v770_v21 = vpack.c.bf16 %v29_v19, %v25_v18  ;;  %769 = vmatprep.subr.bf16.mxu0 %v768_v16  ;;  %v898_v25 = vpack.c.bf16 %v31_v22, %v27_v20  ;;  %v772_v26 = vpack.c.bf16 %v38_v24, %v34_v23  ;;  %v36_v27 = vld [vmem:[%s1902_s1 + $0x98] sm:$0xff]  ;;  %v33_v29 = vld [vmem:[%s1902_s1 + $0x80] sm:$0xff]  ;;  %v35_v32 = vld [vmem:[%s1902_s1 + $0x90] sm:$0xff] }
   0x8   :  { %897 = vmatprep.subr.bf16.mxu1 %v896_v17  ;;  %v40_v28 = vld [vmem:[%s1902_s1 + $0xb8] sm:$0xff]  ;;  %v37_v31 = vld [vmem:[%s1902_s1 + $0xa0] sm:$0xff]  ;;  %v39_v33 = vld [vmem:[%s1902_s1 + $0xb0] sm:$0xff] }
   0x9   :  { %v900_v30 = vpack.c.bf16 %v40_v28, %v36_v27  ;;  %v774_v34 = vpack.c.bf16 %v37_v31, %v33_v29  ;;  %v42_v35 = vld [vmem:[%s1902_s1 + $0xc8] sm:$0xff]  ;;  %v44_v37 = vld [vmem:[%s1902_s1 + $0xd8] sm:$0xff]  ;;  %v902_v38 = vpack.c.bf16 %v39_v33, %v35_v32  ;;  %v41_v41 = vld [vmem:[%s1902_s1 + $0xc0] sm:$0xff] }
   0xa   :  { %771 = vmatpush1.bf16.msra.mxu0 %v770_v21  ;;  %v46_v36 = vld [vmem:[%s1902_s1 + $0xe8] sm:$0xff]  ;;  %v48_v40 = vld [vmem:[%s1902_s1 + $0xf8] sm:$0xff]  ;;  %v45_v42 = vld [vmem:[%s1902_s1 + $0xe0] sm:$0xff] }
   0xb   :  { %899 = vmatpush1.bf16.msra.mxu1 %v898_v25  ;;  %773 = vmatprep.subr.bf16.mxu0 %v772_v26  ;;  %v776_v39 = vpack.c.bf16 %v46_v36, %v42_v35  ;;  %v904_v43 = vpack.c.bf16 %v48_v40, %v44_v37  ;;  %v43_v44 = vld [vmem:[%s1902_s1 + $0xd0] sm:$0xff]  ;;  %v50_v46 = vld [vmem:[%s1902_s1 + $0x108] sm:$0xff]  ;;  %v52_v48 = vld [vmem:[%s1902_s1 + $0x118] sm:$0xff]  ;;  %v778_v50 = vpack.c.bf16 %v45_v42, %v41_v41 }
   0xc   :  { %901 = vmatprep.subr.bf16.mxu1 %v900_v30  ;;  %v47_v45 = vld [vmem:[%s1902_s1 + $0xf0] sm:$0xff]  ;;  %v54_v47 = vld [vmem:[%s1902_s1 + $0x128] sm:$0xff]  ;;  %v56_v49 = vld [vmem:[%s1902_s1 + $0x138] sm:$0xff] }
   0xd   :  { %v906_v51 = vpack.c.bf16 %v47_v45, %v43_v44  ;;  %v780_v52 = vpack.c.bf16 %v54_v47, %v50_v46  ;;  %v49_v53 = vld [vmem:[%s1902_s1 + $0x100] sm:$0xff]  ;;  %v51_v55 = vld [vmem:[%s1902_s1 + $0x110] sm:$0xff]  ;;  %v908_v56 = vpack.c.bf16 %v56_v49, %v52_v48  ;;  %v58_v58 = vld [vmem:[%s1902_s1 + $0x148] sm:$0xff] }
   0xe   :  { %775 = vmatpush1.bf16.msra.mxu0 %v774_v34  ;;  %v53_v54 = vld [vmem:[%s1902_s1 + $0x120] sm:$0xff]  ;;  %v55_v57 = vld [vmem:[%s1902_s1 + $0x130] sm:$0xff]  ;;  %v62_v59 = vld [vmem:[%s1902_s1 + $0x168] sm:$0xff] }
   0xf   :  { %903 = vmatpush1.bf16.msra.mxu1 %v902_v38  ;;  %777 = vmatprep.subr.bf16.mxu0 %v776_v39  ;;  %v60_v60 = vld [vmem:[%s1902_s1 + $0x158] sm:$0xff]  ;;  %v782_v62 = vpack.c.bf16 %v53_v54, %v49_v53  ;;  %v910_v63 = vpack.c.bf16 %v55_v57, %v51_v55  ;;  %v784_v0 = vpack.c.bf16 %v62_v59, %v58_v58  ;;  %v57_v1 = vld [vmem:[%s1902_s1 + $0x140] sm:$0xff]  ;;  %v59_v3 = vld [vmem:[%s1902_s1 + $0x150] sm:$0xff] }
  0x10   :  { %905 = vmatprep.subr.bf16.mxu1 %v904_v43  ;;  %v64_v61 = vld [vmem:[%s1902_s1 + $0x178] sm:$0xff]  ;;  %v61_v2 = vld [vmem:[%s1902_s1 + $0x160] sm:$0xff]  ;;  %v63_v5 = vld [vmem:[%s1902_s1 + $0x170] sm:$0xff] }
  0x11   :  { %v912_v4 = vpack.c.bf16 %v64_v61, %v60_v60  ;;  %v66_v6 = vld [vmem:[%s1902_s1 + $0x188] sm:$0xff]  ;;  %v68_v8 = vld [vmem:[%s1902_s1 + $0x198] sm:$0xff]  ;;  %v786_v10 = vpack.c.bf16 %v61_v2, %v57_v1  ;;  %v914_v11 = vpack.c.bf16 %v63_v5, %v59_v3  ;;  %v65_v13 = vld [vmem:[%s1902_s1 + $0x180] sm:$0xff] }
  0x12   :  { %779 = vmatpush1.bf16.msra.mxu0 %v778_v50  ;;  %v70_v7 = vld [vmem:[%s1902_s1 + $0x1a8] sm:$0xff]  ;;  %v72_v9 = vld [vmem:[%s1902_s1 + $0x1b8] sm:$0xff]  ;;  %v69_v14 = vld [vmem:[%s1902_s1 + $0x1a0] sm:$0xff] }
  0x13   :  { %907 = vmatpush1.bf16.msra.mxu1 %v906_v51  ;;  %781 = vmatprep.subr.bf16.mxu0 %v780_v52  ;;  %v788_v12 = vpack.c.bf16 %v70_v7, %v66_v6  ;;  %v67_v15 = vld [vmem:[%s1902_s1 + $0x190] sm:$0xff]  ;;  %v916_v16 = vpack.c.bf16 %v72_v9, %v68_v8  ;;  %v74_v18 = vld [vmem:[%s1902_s1 + $0x1c8] sm:$0xff]  ;;  %v76_v20 = vld [vmem:[%s1902_s1 + $0x1d8] sm:$0xff]  ;;  %v790_v22 = vpack.c.bf16 %v69_v14, %v65_v13 }
  0x14   :  { %909 = vmatprep.subr.bf16.mxu1 %v908_v56  ;;  %v71_v17 = vld [vmem:[%s1902_s1 + $0x1b0] sm:$0xff]  ;;  %v78_v19 = vld [vmem:[%s1902_s1 + $0x1e8] sm:$0xff]  ;;  %v80_v21 = vld [vmem:[%s1902_s1 + $0x1f8] sm:$0xff] }
  0x15   :  { %v918_v23 = vpack.c.bf16 %v71_v17, %v67_v15  ;;  %v792_v24 = vpack.c.bf16 %v78_v19, %v74_v18  ;;  %v73_v25 = vld [vmem:[%s1902_s1 + $0x1c0] sm:$0xff]  ;;  %v75_v27 = vld [vmem:[%s1902_s1 + $0x1d0] sm:$0xff]  ;;  %v920_v28 = vpack.c.bf16 %v80_v21, %v76_v20  ;;  %v82_v30 = vld [vmem:[%s1902_s1 + $0x208] sm:$0xff] }
  0x16   :  { %783 = vmatpush1.bf16.msra.mxu0 %v782_v62  ;;  %v77_v26 = vld [vmem:[%s1902_s1 + $0x1e0] sm:$0xff]  ;;  %v79_v29 = vld [vmem:[%s1902_s1 + $0x1f0] sm:$0xff]  ;;  %v86_v31 = vld [vmem:[%s1902_s1 + $0x228] sm:$0xff] }
  0x17   :  { %911 = vmatpush1.bf16.msra.mxu1 %v910_v63  ;;  %785 = vmatprep.subr.bf16.mxu0 %v784_v0  ;;  %v84_v32 = vld [vmem:[%s1902_s1 + $0x218] sm:$0xff]  ;;  %v794_v34 = vpack.c.bf16 %v77_v26, %v73_v25  ;;  %v922_v35 = vpack.c.bf16 %v79_v29, %v75_v27  ;;  %v796_v36 = vpack.c.bf16 %v86_v31, %v82_v30  ;;  %v81_v37 = vld [vmem:[%s1902_s1 + $0x200] sm:$0xff]  ;;  %v83_v39 = vld [vmem:[%s1902_s1 + $0x210] sm:$0xff] }
  0x18   :  { %913 = vmatprep.subr.bf16.mxu1 %v912_v4  ;;  %v88_v33 = vld [vmem:[%s1902_s1 + $0x238] sm:$0xff]  ;;  %v85_v38 = vld [vmem:[%s1902_s1 + $0x220] sm:$0xff]  ;;  %v87_v41 = vld [vmem:[%s1902_s1 + $0x230] sm:$0xff] }
  0x19   :  { %v924_v40 = vpack.c.bf16 %v88_v33, %v84_v32  ;;  %v90_v42 = vld [vmem:[%s1902_s1 + $0x248] sm:$0xff]  ;;  %v92_v44 = vld [vmem:[%s1902_s1 + $0x258] sm:$0xff]  ;;  %v798_v46 = vpack.c.bf16 %v85_v38, %v81_v37  ;;  %v926_v47 = vpack.c.bf16 %v87_v41, %v83_v39  ;;  %v89_v49 = vld [vmem:[%s1902_s1 + $0x240] sm:$0xff] }
  0x1a   :  { %787 = vmatpush1.bf16.msra.mxu0 %v786_v10  ;;  %v94_v43 = vld [vmem:[%s1902_s1 + $0x268] sm:$0xff]  ;;  %v96_v45 = vld [vmem:[%s1902_s1 + $0x278] sm:$0xff]  ;;  %v93_v50 = vld [vmem:[%s1902_s1 + $0x260] sm:$0xff] }
  0x1b   :  { %915 = vmatpush1.bf16.msra.mxu1 %v914_v11  ;;  %789 = vmatprep.subr.bf16.mxu0 %v788_v12  ;;  %v800_v48 = vpack.c.bf16 %v94_v43, %v90_v42  ;;  %v91_v51 = vld [vmem:[%s1902_s1 + $0x250] sm:$0xff]  ;;  %v928_v52 = vpack.c.bf16 %v96_v45, %v92_v44  ;;  %v98_v54 = vld [vmem:[%s1902_s1 + $0x288] sm:$0xff]  ;;  %v100_v56 = vld [vmem:[%s1902_s1 + $0x298] sm:$0xff]  ;;  %v802_v58 = vpack.c.bf16 %v93_v50, %v89_v49 }
  0x1c   :  { %917 = vmatprep.subr.bf16.mxu1 %v916_v16  ;;  %v95_v53 = vld [vmem:[%s1902_s1 + $0x270] sm:$0xff]  ;;  %v102_v55 = vld [vmem:[%s1902_s1 + $0x2a8] sm:$0xff]  ;;  %v104_v57 = vld [vmem:[%s1902_s1 + $0x2b8] sm:$0xff] }
  0x1d   :  { %v930_v59 = vpack.c.bf16 %v95_v53, %v91_v51  ;;  %v804_v60 = vpack.c.bf16 %v102_v55, %v98_v54  ;;  %v97_v61 = vld [vmem:[%s1902_s1 + $0x280] sm:$0xff]  ;;  %v99_v63 = vld [vmem:[%s1902_s1 + $0x290] sm:$0xff]  ;;  %v932_v0 = vpack.c.bf16 %v104_v57, %v100_v56  ;;  %v106_v2 = vld [vmem:[%s1902_s1 + $0x2c8] sm:$0xff] }
  0x1e   :  { %791 = vmatpush1.bf16.msra.mxu0 %v790_v22  ;;  %v101_v62 = vld [vmem:[%s1902_s1 + $0x2a0] sm:$0xff]  ;;  %v103_v1 = vld [vmem:[%s1902_s1 + $0x2b0] sm:$0xff]  ;;  %v110_v3 = vld [vmem:[%s1902_s1 + $0x2e8] sm:$0xff] }
  0x1f   :  { %919 = vmatpush1.bf16.msra.mxu1 %v918_v23  ;;  %793 = vmatprep.subr.bf16.mxu0 %v792_v24  ;;  %v108_v4 = vld [vmem:[%s1902_s1 + $0x2d8] sm:$0xff]  ;;  %v806_v6 = vpack.c.bf16 %v101_v62, %v97_v61  ;;  %v105_v7 = vld [vmem:[%s1902_s1 + $0x2c0] sm:$0xff]  ;;  %v934_v8 = vpack.c.bf16 %v103_v1, %v99_v63  ;;  %v808_v9 = vpack.c.bf16 %v110_v3, %v106_v2  ;;  %v107_v11 = vld [vmem:[%s1902_s1 + $0x2d0] sm:$0xff] }
  0x20   :  { %921 = vmatprep.subr.bf16.mxu1 %v920_v28  ;;  %v112_v5 = vld [vmem:[%s1902_s1 + $0x2f8] sm:$0xff]  ;;  %v109_v10 = vld [vmem:[%s1902_s1 + $0x2e0] sm:$0xff]  ;;  %v111_v12 = vld [vmem:[%s1902_s1 + $0x2f0] sm:$0xff] }
  0x21   :  { %v936_v13 = vpack.c.bf16 %v112_v5, %v108_v4  ;;  %v114_v14 = vld [vmem:[%s1902_s1 + $0x308] sm:$0xff]  ;;  %v1379_v16 = vld [vmem:[%s1901_s0] sm:$0xff]  ;;  %v116_v17 = vld [vmem:[%s1902_s1 + $0x318] sm:$0xff]  ;;  %v810_v20 = vpack.c.bf16 %v109_v10, %v105_v7  ;;  %v938_v21 = vpack.c.bf16 %v111_v12, %v107_v11 }
  0x22   :  { %795 = vmatpush1.bf16.msra.mxu0 %v794_v34  ;;  %v118_v15 = vld [vmem:[%s1902_s1 + $0x328] sm:$0xff]  ;;  %v120_v18 = vld [vmem:[%s1902_s1 + $0x338] sm:$0xff]  ;;  %v297_v19 = vcombine.high %v1379_v16, %v1379_v16  ;;  %v113_v23 = vld [vmem:[%s1902_s1 + $0x300] sm:$0xff] }
  0x23   :  { %923 = vmatpush1.bf16.msra.mxu1 %v922_v35  ;;  %797 = vmatprep.subr.bf16.mxu0 %v796_v36  ;;  %v812_v22 = vpack.c.bf16 %v118_v15, %v114_v14  ;;  %v117_v24 = vld [vmem:[%s1902_s1 + $0x320] sm:$0xff]  ;;  %v115_v25 = vld [vmem:[%s1902_s1 + $0x310] sm:$0xff]  ;;  %v940_v26 = vpack.c.bf16 %v120_v18, %v116_v17  ;;  %v122_v28 = vld [vmem:[%s1902_s1 + $0x348] sm:$0xff] }
  0x24   :  { %925 = vmatprep.subr.bf16.mxu1 %v924_v40  ;;  %v119_v27 = vld [vmem:[%s1902_s1 + $0x330] sm:$0xff]  ;;  %v126_v29 = vld [vmem:[%s1902_s1 + $0x368] sm:$0xff]  ;;  %365 = vmatprep.mubr.f32.mxu0 %v297_v19  ;;  %v124_v30 = vld [vmem:[%s1902_s1 + $0x358] sm:$0xff]  ;;  %v814_v32 = vpack.c.bf16 %v117_v24, %v113_v23 }
  0x25   :  { %v128_v31 = vld [vmem:[%s1902_s1 + $0x378] sm:$0xff]  ;;  %507 = vmatprep.mubr.f32.mxu1 %v297_v19  ;;  %v942_v33 = vpack.c.bf16 %v119_v27, %v115_v25  ;;  %v816_v34 = vpack.c.bf16 %v126_v29, %v122_v28  ;;  %v121_v35 = vld [vmem:[%s1902_s1 + $0x340] sm:$0xff]  ;;  %v123_v37 = vld [vmem:[%s1902_s1 + $0x350] sm:$0xff] }
  0x26   :  { %799 = vmatpush1.bf16.msra.mxu0 %v798_v46  ;;  %v125_v36 = vld [vmem:[%s1902_s1 + $0x360] sm:$0xff]  ;;  %v944_v38 = vpack.c.bf16 %v128_v31, %v124_v30  ;;  %v127_v39 = vld [vmem:[%s1902_s1 + $0x370] sm:$0xff]  ;;  %v130_v40 = vld [vmem:[%s1902_s1 + $0x388] sm:$0xff] }
  0x27   :  { %927 = vmatpush1.bf16.msra.mxu1 %v926_v47  ;;  %801 = vmatprep.subr.bf16.mxu0 %v800_v48  ;;  %v134_v41 = vld [vmem:[%s1902_s1 + $0x3a8] sm:$0xff]  ;;  %v132_v42 = vld [vmem:[%s1902_s1 + $0x398] sm:$0xff]  ;;  %v818_v44 = vpack.c.bf16 %v125_v36, %v121_v35  ;;  %v946_v45 = vpack.c.bf16 %v127_v39, %v123_v37  ;;  %v129_v47 = vld [vmem:[%s1902_s1 + $0x380] sm:$0xff] }
  0x28   :  { %929 = vmatprep.subr.bf16.mxu1 %v928_v52  ;;  %v136_v43 = vld [vmem:[%s1902_s1 + $0x3b8] sm:$0xff]  ;;  %v820_v46 = vpack.c.bf16 %v134_v41, %v130_v40  ;;  %v133_v48 = vld [vmem:[%s1902_s1 + $0x3a0] sm:$0xff]  ;;  %v131_v49 = vld [vmem:[%s1902_s1 + $0x390] sm:$0xff] }
  0x29   :  { %v948_v50 = vpack.c.bf16 %v136_v43, %v132_v42  ;;  %v135_v51 = vld [vmem:[%s1902_s1 + $0x3b0] sm:$0xff]  ;;  %v138_v52 = vld [vmem:[%s1902_s1 + $0x3c8] sm:$0xff]  ;;  %v140_v54 = vld [vmem:[%s1902_s1 + $0x3d8] sm:$0xff]  ;;  %v822_v56 = vpack.c.bf16 %v133_v48, %v129_v47 }
  0x2a   :  { %803 = vmatpush1.bf16.msra.mxu0 %v802_v58  ;;  %v142_v53 = vld [vmem:[%s1902_s1 + $0x3e8] sm:$0xff]  ;;  %v144_v55 = vld [vmem:[%s1902_s1 + $0x3f8] sm:$0xff]  ;;  %v950_v57 = vpack.c.bf16 %v135_v51, %v131_v49  ;;  %v139_v61 = vld [vmem:[%s1902_s1 + $0x3d0] sm:$0xff] }
  0x2b   :  { %931 = vmatpush1.bf16.msra.mxu1 %v930_v59  ;;  %805 = vmatprep.subr.bf16.mxu0 %v804_v60  ;;  %v824_v58 = vpack.c.bf16 %v142_v53, %v138_v52  ;;  %v137_v59 = vld [vmem:[%s1902_s1 + $0x3c0] sm:$0xff]  ;;  %v952_v62 = vpack.c.bf16 %v144_v55, %v140_v54  ;;  %v143_v63 = vld [vmem:[%s1902_s1 + $0x3f0] sm:$0xff]  ;;  %v150_v1 = vld [vmem:[%s1902_s1 + $0x428] sm:$0xff] }
  0x2c   :  { %933 = vmatprep.subr.bf16.mxu1 %v932_v0  ;;  %v141_v60 = vld [vmem:[%s1902_s1 + $0x3e0] sm:$0xff]  ;;  %v146_v0 = vld [vmem:[%s1902_s1 + $0x408] sm:$0xff]  ;;  %v148_v2 = vld [vmem:[%s1902_s1 + $0x418] sm:$0xff]  ;;  %v954_v5 = vpack.c.bf16 %v143_v63, %v139_v61 }
  0x2d   :  { %v152_v3 = vld [vmem:[%s1902_s1 + $0x438] sm:$0xff]  ;;  %v826_v4 = vpack.c.bf16 %v141_v60, %v137_v59  ;;  %v145_v7 = vld [vmem:[%s1902_s1 + $0x400] sm:$0xff]  ;;  %v151_v11 = vld [vmem:[%s1902_s1 + $0x430] sm:$0xff] }
  0x2e   :  { %807 = vmatpush1.bf16.msra.mxu0 %v806_v6  ;;  %v828_v6 = vpack.c.bf16 %v150_v1, %v146_v0  ;;  %v956_v10 = vpack.c.bf16 %v152_v3, %v148_v2  ;;  %v154_v12 = vld [vmem:[%s1902_s1 + $0x448] sm:$0xff]  ;;  %v156_v14 = vld [vmem:[%s1902_s1 + $0x458] sm:$0xff]  ;;  %v159_v24 = vld [vmem:[%s1902_s1 + $0x470] sm:$0xff] }
  0x2f   :  { %935 = vmatpush1.bf16.msra.mxu1 %v934_v8  ;;  %809 = vmatprep.subr.bf16.mxu0 %v808_v9  ;;  %v149_v8 = vld [vmem:[%s1902_s1 + $0x420] sm:$0xff]  ;;  %v147_v9 = vld [vmem:[%s1902_s1 + $0x410] sm:$0xff]  ;;  %v160_v15 = vld [vmem:[%s1902_s1 + $0x478] sm:$0xff] }
  0x30   :  { %937 = vmatprep.subr.bf16.mxu1 %v936_v13  ;;  %v158_v13 = vld [vmem:[%s1902_s1 + $0x468] sm:$0xff]  ;;  %v830_v17 = vpack.c.bf16 %v149_v8, %v145_v7  ;;  %v958_v18 = vpack.c.bf16 %v151_v11, %v147_v9  ;;  %v960_v23 = vpack.c.bf16 %v160_v15, %v156_v14  ;;  %v164_v27 = vld [vmem:[%s1902_s1 + $0x498] sm:$0xff]  ;;  %v169_v43 = vld [vmem:[%s1902_s1 + $0x4c0] sm:$0xff] }
  0x31   :  { %v832_v19 = vpack.c.bf16 %v158_v13, %v154_v12  ;;  %v162_v25 = vld [vmem:[%s1902_s1 + $0x488] sm:$0xff]  ;;  %v168_v28 = vld [vmem:[%s1902_s1 + $0x4b8] sm:$0xff]  ;;  %v175_v47 = vld [vmem:[%s1902_s1 + $0x4f0] sm:$0xff] }
  0x32   :  { %811 = vmatpush1.bf16.msra.mxu0 %v810_v20  ;;  %v153_v20 = vld [vmem:[%s1902_s1 + $0x440] sm:$0xff]  ;;  %v964_v35 = vpack.c.bf16 %v168_v28, %v164_v27  ;;  %v170_v36 = vld [vmem:[%s1902_s1 + $0x4c8] sm:$0xff]  ;;  %v176_v39 = vld [vmem:[%s1902_s1 + $0x4f8] sm:$0xff] }
  0x33   :  { %939 = vmatpush1.bf16.msra.mxu1 %v938_v21  ;;  %813 = vmatprep.subr.bf16.mxu0 %v812_v22  ;;  %v157_v21 = vld [vmem:[%s1902_s1 + $0x460] sm:$0xff]  ;;  %v155_v22 = vld [vmem:[%s1902_s1 + $0x450] sm:$0xff]  ;;  %v174_v37 = vld [vmem:[%s1902_s1 + $0x4e8] sm:$0xff] }
  0x34   :  { %941 = vmatprep.subr.bf16.mxu1 %v940_v26  ;;  %v166_v26 = vld [vmem:[%s1902_s1 + $0x4a8] sm:$0xff]  ;;  %v834_v29 = vpack.c.bf16 %v157_v21, %v153_v20  ;;  %v962_v30 = vpack.c.bf16 %v159_v24, %v155_v22  ;;  %v840_v42 = vpack.c.bf16 %v174_v37, %v170_v36  ;;  %v184_v51 = vld [vmem:[%s1902_s1 + $0x538] sm:$0xff]  ;;  %v177_v55 = vld [vmem:[%s1902_s1 + $0x500] sm:$0xff] }
  0x35   :  { %v836_v31 = vpack.c.bf16 %v166_v26, %v162_v25  ;;  %v178_v48 = vld [vmem:[%s1902_s1 + $0x508] sm:$0xff]  ;;  %v183_v59 = vld [vmem:[%s1902_s1 + $0x530] sm:$0xff]  ;;  %v192_v63 = vld [vmem:[%s1902_s1 + $0x578] sm:$0xff] }
  0x36   :  { %815 = vmatpush1.bf16.msra.mxu0 %v814_v32  ;;  %v161_v32 = vld [vmem:[%s1902_s1 + $0x480] sm:$0xff]  ;;  %v182_v49 = vld [vmem:[%s1902_s1 + $0x528] sm:$0xff]  ;;  %v191_v7 = vld [vmem:[%s1902_s1 + $0x570] sm:$0xff] }
  0x37   :  { %943 = vmatpush1.bf16.msra.mxu1 %v942_v33  ;;  %817 = vmatprep.subr.bf16.mxu0 %v816_v34  ;;  %v165_v33 = vld [vmem:[%s1902_s1 + $0x4a0] sm:$0xff]  ;;  %v163_v34 = vld [vmem:[%s1902_s1 + $0x490] sm:$0xff]  ;;  %v844_v54 = vpack.c.bf16 %v182_v49, %v178_v48  ;;  %v186_v60 = vld [vmem:[%s1902_s1 + $0x548] sm:$0xff] }
  0x38   :  { %945 = vmatprep.subr.bf16.mxu1 %v944_v38  ;;  %v172_v38 = vld [vmem:[%s1902_s1 + $0x4d8] sm:$0xff]  ;;  %v838_v40 = vpack.c.bf16 %v165_v33, %v161_v32  ;;  %v190_v61 = vld [vmem:[%s1902_s1 + $0x568] sm:$0xff]  ;;  %v185_v3 = vld [vmem:[%s1902_s1 + $0x540] sm:$0xff] }
  0x39   :  { %v848_v2 = vpack.c.bf16 %v190_v61, %v186_v60  ;;  %v194_v8 = vld [vmem:[%s1902_s1 + $0x588] sm:$0xff]  ;;  %v200_v11 = vld [vmem:[%s1902_s1 + $0x5b8] sm:$0xff]  ;;  %v193_v13 = vld [vmem:[%s1902_s1 + $0x580] sm:$0xff] }
  0x3a   :  { %819 = vmatpush1.bf16.msra.mxu0 %v818_v44  ;;  %v173_v44 = vld [vmem:[%s1902_s1 + $0x4e0] sm:$0xff]  ;;  %v198_v9 = vld [vmem:[%s1902_s1 + $0x5a8] sm:$0xff] }
  0x3b   :  { %947 = vmatpush1.bf16.msra.mxu1 %v946_v45  ;;  %821 = vmatprep.subr.bf16.mxu0 %v820_v46  ;;  %v171_v45 = vld [vmem:[%s1902_s1 + $0x4d0] sm:$0xff]  ;;  %v968_v46 = vpack.c.bf16 %v176_v39, %v172_v38  ;;  %v842_v52 = vpack.c.bf16 %v173_v44, %v169_v43  ;;  %v197_v14 = vld [vmem:[%s1902_s1 + $0x5a0] sm:$0xff]  ;;  %v1646_v20 = vld [vmem:[%s1901_s0 + $0x8] sm:$0xff] }
  0x3c   :  { %949 = vmatprep.subr.bf16.mxu1 %v948_v50  ;;  %v180_v50 = vld [vmem:[%s1902_s1 + $0x518] sm:$0xff]  ;;  %v970_v53 = vpack.c.bf16 %v175_v47, %v171_v45  ;;  %v202_v22 = vld [vmem:[%s1902_s1 + $0x5c8] sm:$0xff]  ;;  %v298_v24 = vcombine.high %v1646_v20, %v1646_v20 }
  0x3e   :  { %823 = vmatpush1.bf16.msra.mxu0 %v822_v56  ;;  %v181_v56 = vld [vmem:[%s1902_s1 + $0x520] sm:$0xff] }
  0x3f   :  { %951 = vmatpush1.bf16.msra.mxu1 %v950_v57  ;;  %825 = vmatprep.subr.bf16.mxu0 %v824_v58  ;;  %v179_v57 = vld [vmem:[%s1902_s1 + $0x510] sm:$0xff]  ;;  %v972_v58 = vpack.c.bf16 %v184_v51, %v180_v50  ;;  %v846_v0 = vpack.c.bf16 %v181_v56, %v177_v55 }
  0x40   :  { %953 = vmatprep.subr.bf16.mxu1 %v952_v62  ;;  %v188_v62 = vld [vmem:[%s1902_s1 + $0x558] sm:$0xff]  ;;  %v974_v1 = vpack.c.bf16 %v183_v59, %v179_v57 }
  0x42   :  { %827 = vmatpush1.bf16.msra.mxu0 %v826_v4  ;;  %v189_v4 = vld [vmem:[%s1902_s1 + $0x560] sm:$0xff] }
  0x43   :  { %955 = vmatpush1.bf16.msra.mxu1 %v954_v5  ;;  %829 = vmatprep.subr.bf16.mxu0 %v828_v6  ;;  %v187_v5 = vld [vmem:[%s1902_s1 + $0x550] sm:$0xff]  ;;  %v976_v6 = vpack.c.bf16 %v192_v63, %v188_v62  ;;  %v850_v12 = vpack.c.bf16 %v189_v4, %v185_v3 }
  0x44   :  { %957 = vmatprep.subr.bf16.mxu1 %v956_v10  ;;  %v196_v10 = vld [vmem:[%s1902_s1 + $0x598] sm:$0xff]  ;;  %v978_v15 = vpack.c.bf16 %v191_v7, %v187_v5 }
  0x45   :  { %366 = vmatmul.mubr.f32.vlgmr.msra.gmra.mrb[0].mxu0 %v1379_v16  ;;  %v980_v21 = vpack.c.bf16 %v200_v11, %v196_v10 }
  0x46   :  { %831 = vmatpush1.bf16.msra.mxu0 %v830_v17  ;;  %508 = vmatmul.mubr.f32.vlgmr.msra.gmra.mrb[0].mxu1 %v1379_v16  ;;  %v167_v16 = vld [vmem:[%s1902_s1 + $0x4b0] sm:$0xff]  ;;  %v852_v17 = vpack.c.bf16 %v198_v9, %v194_v8 }
  0x47   :  { %959 = vmatpush1.bf16.msra.mxu1 %v958_v18  ;;  %833 = vmatprep.subr.bf16.mxu0 %v832_v19  ;;  %v966_v41 = vpack.c.bf16 %v167_v16, %v163_v34  ;;  %v195_v18 = vld [vmem:[%s1902_s1 + $0x590] sm:$0xff] }
  0x48   :  { %961 = vmatprep.subr.bf16.mxu1 %v960_v23  ;;  %v199_v19 = vld [vmem:[%s1902_s1 + $0x5b0] sm:$0xff]  ;;  %v206_v23 = vld [vmem:[%s1902_s1 + $0x5e8] sm:$0xff] }
  0x4a   :  { %835 = vmatpush1.bf16.msra.mxu0 %v834_v29 }
  0x4b   :  { %963 = vmatpush1.bf16.msra.mxu1 %v962_v30  ;;  %837 = vmatprep.subr.bf16.mxu0 %v836_v31 }
  0x4c   :  { %965 = vmatprep.subr.bf16.mxu1 %v964_v35 }
  0x4e   :  { %839 = vmatpush1.bf16.msra.mxu0 %v838_v40 }
  0x4f   :  { %967 = vmatpush1.bf16.msra.mxu1 %v966_v41  ;;  %841 = vmatprep.subr.bf16.mxu0 %v840_v42 }
  0x50   :  { %969 = vmatprep.subr.bf16.mxu1 %v968_v46 }
  0x52   :  { %843 = vmatpush1.bf16.msra.mxu0 %v842_v52 }
  0x53   :  { %971 = vmatpush1.bf16.msra.mxu1 %v970_v53  ;;  %845 = vmatprep.subr.bf16.mxu0 %v844_v54 }
  0x54   :  { %973 = vmatprep.subr.bf16.mxu1 %v972_v58 }
  0x56   :  { %847 = vmatpush1.bf16.msra.mxu0 %v846_v0 }
  0x57   :  { %975 = vmatpush1.bf16.msra.mxu1 %v974_v1  ;;  %849 = vmatprep.subr.bf16.mxu0 %v848_v2 }
  0x58   :  { %977 = vmatprep.subr.bf16.mxu1 %v976_v6 }
  0x59   :  { %8 = vsyncpa [#allocation3], 0  ;;  %v204_v25 = vld [vmem:[%s1902_s1 + $0x5d8] sm:$0xff]  ;;  %v854_v27 = vpack.c.bf16 %v197_v14, %v193_v13  ;;  %436 = vmatprep.mubr.f32.mxu0 %v298_v24  ;;  %v982_v28 = vpack.c.bf16 %v199_v19, %v195_v18  ;;  %v856_v29 = vpack.c.bf16 %v206_v23, %v202_v22  ;;  %v201_v30 = vld [vmem:[%s1902_s1 + $0x5c0] sm:$0xff]  ;;  %578 = vmatprep.mubr.f32.mxu1 %v298_v24  ;;  %vm642_vm0 = vcmask 1043458  }
  0x5a   :  { %v208_v26 = vld [vmem:[%s1902_s1 + $0x5f8] sm:$0xff]  ;;  %851 = vmatpush1.bf16.msra.mxu0 %v850_v12  ;;  %v205_v31 = vld [vmem:[%s1902_s1 + $0x5e0] sm:$0xff]  ;;  %v203_v32 = vld [vmem:[%s1902_s1 + $0x5d0] sm:$0xff]  ;;  %vm745_vm5 = vcmask 1043459   ;;  %vm748_vm6 = vcmask 11266  }
  0x5b   :  { %979 = vmatpush1.bf16.msra.mxu1 %v978_v15  ;;  %853 = vmatprep.subr.bf16.mxu0 %v852_v17  ;;  %v984_v33 = vpack.c.bf16 %v208_v26, %v204_v25  ;;  %v207_v34 = vld [vmem:[%s1902_s1 + $0x5f0] sm:$0xff]  ;;  %v210_v35 = vld [vmem:[%s1902_s1 + $0x608] sm:$0xff]  ;;  %v212_v36 = vld [vmem:[%s1902_s1 + $0x618] sm:$0xff]  ;;  %v858_v38 = vpack.c.bf16 %v205_v31, %v201_v30 }
  0x5c   :  { %981 = vmatprep.subr.bf16.mxu1 %v980_v21  ;;  %v214_v16 = vld [vmem:[%s1902_s1 + $0x628] sm:$0xff]  ;;  %v216_v37 = vld [vmem:[%s1902_s1 + $0x638] sm:$0xff]  ;;  %v986_v39 = vpack.c.bf16 %v207_v34, %v203_v32  ;;  %v209_v41 = vld [vmem:[%s1902_s1 + $0x600] sm:$0xff] }
  0x5d   :  { %v860_v40 = vpack.c.bf16 %v214_v16, %v210_v35  ;;  %v213_v42 = vld [vmem:[%s1902_s1 + $0x620] sm:$0xff]  ;;  %v211_v43 = vld [vmem:[%s1902_s1 + $0x610] sm:$0xff]  ;;  %v988_v44 = vpack.c.bf16 %v216_v37, %v212_v36  ;;  %v218_v46 = vld [vmem:[%s1902_s1 + $0x648] sm:$0xff] }
  0x5e   :  { %855 = vmatpush1.bf16.msra.mxu0 %v854_v27  ;;  %v215_v45 = vld [vmem:[%s1902_s1 + $0x630] sm:$0xff]  ;;  %v222_v47 = vld [vmem:[%s1902_s1 + $0x668] sm:$0xff]  ;;  %v220_v48 = vld [vmem:[%s1902_s1 + $0x658] sm:$0xff]  ;;  %v862_v50 = vpack.c.bf16 %v213_v42, %v209_v41 }
  0x5f   :  { %983 = vmatpush1.bf16.msra.mxu1 %v982_v28  ;;  %857 = vmatprep.subr.bf16.mxu0 %v856_v29  ;;  %v224_v49 = vld [vmem:[%s1902_s1 + $0x678] sm:$0xff]  ;;  %v990_v51 = vpack.c.bf16 %v215_v45, %v211_v43  ;;  %v864_v52 = vpack.c.bf16 %v222_v47, %v218_v46  ;;  %v217_v53 = vld [vmem:[%s1902_s1 + $0x640] sm:$0xff]  ;;  %v219_v55 = vld [vmem:[%s1902_s1 + $0x650] sm:$0xff] }
  0x60   :  { %985 = vmatprep.subr.bf16.mxu1 %v984_v33  ;;  %v221_v54 = vld [vmem:[%s1902_s1 + $0x660] sm:$0xff]  ;;  %v992_v56 = vpack.c.bf16 %v224_v49, %v220_v48  ;;  %v223_v57 = vld [vmem:[%s1902_s1 + $0x670] sm:$0xff]  ;;  %v226_v58 = vld [vmem:[%s1902_s1 + $0x688] sm:$0xff] }
  0x61   :  { %v230_v59 = vld [vmem:[%s1902_s1 + $0x6a8] sm:$0xff]  ;;  %v228_v60 = vld [vmem:[%s1902_s1 + $0x698] sm:$0xff]  ;;  %v866_v62 = vpack.c.bf16 %v221_v54, %v217_v53  ;;  %v994_v63 = vpack.c.bf16 %v223_v57, %v219_v55  ;;  %v225_v1 = vld [vmem:[%s1902_s1 + $0x680] sm:$0xff] }
  0x62   :  { %859 = vmatpush1.bf16.msra.mxu0 %v858_v38  ;;  %v232_v61 = vld [vmem:[%s1902_s1 + $0x6b8] sm:$0xff]  ;;  %v868_v0 = vpack.c.bf16 %v230_v59, %v226_v58  ;;  %v229_v2 = vld [vmem:[%s1902_s1 + $0x6a0] sm:$0xff]  ;;  %v227_v3 = vld [vmem:[%s1902_s1 + $0x690] sm:$0xff] }
  0x63   :  { %987 = vmatpush1.bf16.msra.mxu1 %v986_v39  ;;  %861 = vmatprep.subr.bf16.mxu0 %v860_v40  ;;  %v996_v4 = vpack.c.bf16 %v232_v61, %v228_v60  ;;  %v231_v5 = vld [vmem:[%s1902_s1 + $0x6b0] sm:$0xff]  ;;  %v234_v6 = vld [vmem:[%s1902_s1 + $0x6c8] sm:$0xff]  ;;  %v236_v8 = vld [vmem:[%s1902_s1 + $0x6d8] sm:$0xff]  ;;  %v870_v10 = vpack.c.bf16 %v229_v2, %v225_v1 }
  0x64   :  { %989 = vmatprep.subr.bf16.mxu1 %v988_v44  ;;  %v238_v7 = vld [vmem:[%s1902_s1 + $0x6e8] sm:$0xff]  ;;  %v240_v9 = vld [vmem:[%s1902_s1 + $0x6f8] sm:$0xff]  ;;  %v998_v11 = vpack.c.bf16 %v231_v5, %v227_v3  ;;  %v233_v13 = vld [vmem:[%s1902_s1 + $0x6c0] sm:$0xff]  ;;  %v275_v5 = vlaneseq }
  0x65   :  { %v872_v12 = vpack.c.bf16 %v238_v7, %v234_v6  ;;  %v237_v14 = vld [vmem:[%s1902_s1 + $0x6e0] sm:$0xff]  ;;  %v235_v15 = vld [vmem:[%s1902_s1 + $0x6d0] sm:$0xff]  ;;  %v1000_v17 = vpack.c.bf16 %v240_v9, %v236_v8  ;;  %v242_v19 = vld [vmem:[%s1902_s1 + $0x708] sm:$0xff] }
  0x66   :  { %863 = vmatpush1.bf16.msra.mxu0 %v862_v50  ;;  %v239_v18 = vld [vmem:[%s1902_s1 + $0x6f0] sm:$0xff]  ;;  %v246_v21 = vld [vmem:[%s1902_s1 + $0x728] sm:$0xff]  ;;  %v244_v22 = vld [vmem:[%s1902_s1 + $0x718] sm:$0xff]  ;;  %v874_v24 = vpack.c.bf16 %v237_v14, %v233_v13  ;;  %v1869_v6 = vshrl.u32 %v275_v5, 7 }
  0x67   :  { %991 = vmatpush1.bf16.msra.mxu1 %v990_v51  ;;  %865 = vmatprep.subr.bf16.mxu0 %v864_v52  ;;  %v248_v23 = vld [vmem:[%s1902_s1 + $0x738] sm:$0xff]  ;;  %v1002_v25 = vpack.c.bf16 %v239_v18, %v235_v15  ;;  %v876_v26 = vpack.c.bf16 %v246_v21, %v242_v19  ;;  %v241_v27 = vld [vmem:[%s1902_s1 + $0x700] sm:$0xff]  ;;  %v243_v29 = vld [vmem:[%s1902_s1 + $0x710] sm:$0xff] }
  0x68   :  { %993 = vmatprep.subr.bf16.mxu1 %v992_v56  ;;  %v245_v28 = vld [vmem:[%s1902_s1 + $0x720] sm:$0xff]  ;;  %v1004_v30 = vpack.c.bf16 %v248_v23, %v244_v22  ;;  %v247_v31 = vld [vmem:[%s1902_s1 + $0x730] sm:$0xff]  ;;  %v250_v32 = vld [vmem:[%s1902_s1 + $0x748] sm:$0xff]  ;;  %v277_v7 = vsub.s32 0, %v1869_v6  ;;  %v285_v9 = vsub.s32 2, %v1869_v6  ;;  %v289_v13 = vsub.s32 3, %v1869_v6 }
  0x69   :  { %v254_v33 = vld [vmem:[%s1902_s1 + $0x768] sm:$0xff]  ;;  %v252_v34 = vld [vmem:[%s1902_s1 + $0x758] sm:$0xff]  ;;  %v878_v16 = vpack.c.bf16 %v245_v28, %v241_v27  ;;  %v1006_v36 = vpack.c.bf16 %v247_v31, %v243_v29  ;;  %v249_v38 = vld [vmem:[%s1902_s1 + $0x740] sm:$0xff] }
  0x6a   :  { %867 = vmatpush1.bf16.msra.mxu0 %v866_v62  ;;  %v256_v35 = vld [vmem:[%s1902_s1 + $0x778] sm:$0xff]  ;;  %v880_v37 = vpack.c.bf16 %v254_v33, %v250_v32  ;;  %v253_v39 = vld [vmem:[%s1902_s1 + $0x760] sm:$0xff]  ;;  %v251_v40 = vld [vmem:[%s1902_s1 + $0x750] sm:$0xff] }
  0x6b   :  { %995 = vmatpush1.bf16.msra.mxu1 %v994_v63  ;;  %869 = vmatprep.subr.bf16.mxu0 %v868_v0  ;;  %v1008_v41 = vpack.c.bf16 %v256_v35, %v252_v34  ;;  %v255_v42 = vld [vmem:[%s1902_s1 + $0x770] sm:$0xff]  ;;  %v258_v43 = vld [vmem:[%s1902_s1 + $0x788] sm:$0xff]  ;;  %v260_v45 = vld [vmem:[%s1902_s1 + $0x798] sm:$0xff]  ;;  %v882_v47 = vpack.c.bf16 %v253_v39, %v249_v38 }
  0x6c   :  { %997 = vmatprep.subr.bf16.mxu1 %v996_v4  ;;  %v262_v44 = vld [vmem:[%s1902_s1 + $0x7a8] sm:$0xff]  ;;  %v264_v46 = vld [vmem:[%s1902_s1 + $0x7b8] sm:$0xff]  ;;  %v1010_v48 = vpack.c.bf16 %v255_v42, %v251_v40  ;;  %v257_v50 = vld [vmem:[%s1902_s1 + $0x780] sm:$0xff] }
  0x6d   :  { %v884_v49 = vpack.c.bf16 %v262_v44, %v258_v43  ;;  %v261_v51 = vld [vmem:[%s1902_s1 + $0x7a0] sm:$0xff]  ;;  %v259_v52 = vld [vmem:[%s1902_s1 + $0x790] sm:$0xff]  ;;  %v1012_v53 = vpack.c.bf16 %v264_v46, %v260_v45  ;;  %v266_v55 = vld [vmem:[%s1902_s1 + $0x7c8] sm:$0xff] }
  0x6e   :  { %871 = vmatpush1.bf16.msra.mxu0 %v870_v10  ;;  %v263_v54 = vld [vmem:[%s1902_s1 + $0x7b0] sm:$0xff]  ;;  %v270_v56 = vld [vmem:[%s1902_s1 + $0x7e8] sm:$0xff]  ;;  %v268_v57 = vld [vmem:[%s1902_s1 + $0x7d8] sm:$0xff]  ;;  %v886_v59 = vpack.c.bf16 %v261_v51, %v257_v50  ;;  %v281_v10 = vsub.s32 1, %v1869_v6 }
  0x6f   :  { %999 = vmatpush1.bf16.msra.mxu1 %v998_v11  ;;  %873 = vmatprep.subr.bf16.mxu0 %v872_v12  ;;  %v272_v58 = vld [vmem:[%s1902_s1 + $0x7f8] sm:$0xff]  ;;  %v1014_v60 = vpack.c.bf16 %v263_v54, %v259_v52  ;;  %v888_v61 = vpack.c.bf16 %v270_v56, %v266_v55  ;;  %v265_v62 = vld [vmem:[%s1902_s1 + $0x7c0] sm:$0xff]  ;;  %v267_v1 = vld [vmem:[%s1902_s1 + $0x7d0] sm:$0xff]  ;;  %v1060_v11 = vmov 1966171168  }
  0x70   :  { %1001 = vmatprep.subr.bf16.mxu1 %v1000_v17  ;;  %v269_v63 = vld [vmem:[%s1902_s1 + $0x7e0] sm:$0xff]  ;;  %v1016_v0 = vpack.c.bf16 %v272_v58, %v268_v57  ;;  %v271_v2 = vld [vmem:[%s1902_s1 + $0x7f0] sm:$0xff]  ;;  %v589_v12 = vunpack.c.l.s4 %v1060_v11 }
  0x71   :  { %v890_v3 = vpack.c.bf16 %v269_v63, %v265_v62  ;;  %v1018_v4 = vpack.c.bf16 %v271_v2, %v267_v1  ;;  %v273_v8 = vld [vmem:[%s1903_s2] sm:$0xf]  ;;  %s1061_s2 = smov [#allocation2]  }
  0x72   :  { %875 = vmatpush1.bf16.msra.mxu0 %v874_v24  ;;  %v278_v14 = vrot.slane %v273_v8, %v277_v7  ;;  %v282_v15 = vrot.slane %v273_v8, %v281_v10  ;;  %v590_v17 = vunpack.c.0.s8 %v589_v12  ;;  %v290_v18 = vrot.slane %v273_v8, %v289_v13  ;;  %s756_s11 = sshll.u32 %s1061_s2, 4  ;;  %s757_s11 = int_to_ptr.vmem [resolvable:$true] %s756_s11 }
  0x73   :  { %1003 = vmatpush1.bf16.msra.mxu1 %v1002_v25  ;;  %877 = vmatprep.subr.bf16.mxu0 %v876_v26  ;;  %s1036_s0 = scalar_lea.vmem %s757_s11, 32  ;;  %p1041_p1 = scmp.lt.s32.totalorder %s757_s11, %s757_s11 }
  0x74   :  { %1005 = vmatprep.subr.bf16.mxu1 %v1004_v30  ;;  %v593_v26 = vsub.s32 %v590_v17, %v1869_v6  ;;  %p1037_p0 = scmp.ne.s32.totalorder %s757_s11, %s1036_s0  ;;  %p1042_p2 = scmp.lt.s32.totalorder %s1036_s0, %s1036_s0 }
  0x76   :  { %879 = vmatpush1.bf16.msra.mxu0 %v878_v16  ;;  %p1043_p3 = por %p1042_p2, %p1041_p1 }
  0x77   :  { %1007 = vmatpush1.bf16.msra.mxu1 %v1006_v36  ;;  %881 = vmatprep.subr.bf16.mxu0 %v880_v37 }
  0x78   :  { %1009 = vmatprep.subr.bf16.mxu1 %v1008_v41  ;;  %p1044_p4 = pnand %p1043_p3, %p1037_p0 }
  0x7a   :  { %883 = vmatpush1.bf16.msra.mxu0 %v882_v47 }
  0x7b   :  { %1011 = vmatpush1.bf16.msra.mxu1 %v1010_v48  ;;  %885 = vmatprep.subr.bf16.mxu0 %v884_v49 }
  0x7c   :  { %1013 = vmatprep.subr.bf16.mxu1 %v1012_v53 }
  0x7e   :  { %887 = vmatpush1.bf16.msra.mxu0 %v886_v59 }
  0x7f   :  { %1015 = vmatpush1.bf16.msra.mxu1 %v1014_v60  ;;  %889 = vmatprep.subr.bf16.mxu0 %v888_v61 }
  0x80   :  { %1017 = vmatprep.subr.bf16.mxu1 %v1016_v0 }
  0x82   :  { %891 = vmatpush1.bf16.msra.mxu0 %v890_v3 }
  0x83   :  { %1019 = vmatpush1.bf16.msra.mxu1 %v1018_v4 }
  0x85   :  { %437 = vmatmul.mubr.f32.vlgmr.msra.gmra.mrb[0].mxu0 %v1646_v20 }
  0x86   :  { %579 = vmatmul.mubr.f32.vlgmr.msra.gmra.mrb[0].mxu1 %v1646_v20  ;;  %v286_v20 = vrot.slane %v273_v8, %v285_v9 }
 0x158   :  { %v438_v19 = vpop.f32.mrb[0].mxu0 }
 0x159   :  { %v1020_v21 = vadd.f32 %v438_v19, %v278_v14  ;;  %v580_v22 = vpop.f32.mrb[0].mxu1  ;;  %v440_v23 = vpop.f32.mrb[1].mxu0 }
 0x15a   :  { %v1022_v24 = vadd.f32 %v580_v22, %v286_v20  ;;  %v1021_v25 = vadd.f32 %v440_v23, %v282_v15  ;;  %v582_v27 = vpop.f32.mrb[1].mxu1 }
 0x15b   :  { %v1023_v28 = vadd.f32 %v582_v27, %v290_v18  ;;  %v735_v18 = vand.u32 127, %v275_v5 }
 0x15c   :  { %v587_v29 = vcombine.low %v1020_v21, %v1021_v25 }
 0x15d   :  { %v669_v30 = vcombine.low %v1022_v24, %v1023_v28 }
 0x15e   :  { %v594_v31 = vrot.slane %v587_v29, %v593_v26 }
 0x15f   :  { %v676_v32 = vrot.slane %v669_v30, %v593_v26 }
 0x160   :  { %v595_v33 = vcombine.high %v594_v31, %v594_v31  ;;  %v602_v34 = vrot.slane %v594_v31, %v593_v26 }
 0x161   :  { %v677_v35 = vcombine.high %v676_v32, %v676_v32  ;;  %v684_v16 = vrot.slane %v676_v32, %v593_v26 }
 0x162   :  { %v609_v36 = vrot.slane %v595_v33, %v593_v26  ;;  %v613_v37 = vrot.slane %v602_v34, %v277_v7  ;;  %v617_v38 = vrot.slane %v602_v34, %v281_v10 }
 0x163   :  { %v695_v39 = vrot.slane %v684_v16, %v277_v7  ;;  %v699_v40 = vrot.slane %v684_v16, %v281_v10  ;;  %v691_v41 = vrot.slane %v677_v35, %v593_v26 }
 0x164   :  { %v625_v42 = vrot.slane %v609_v36, %v281_v10  ;;  %v630_v43 = vsub.f32 %v613_v37, %v1020_v21  ;;  %v631_v44 = vsub.f32 %v617_v38, %v1021_v25  ;;  %v621_v45 = vrot.slane %v609_v36, %v277_v7 }
 0x165   :  { %v712_v46 = vsub.f32 %v695_v39, %v1022_v24  ;;  %v713_v47 = vsub.f32 %v699_v40, %v1023_v28  ;;  %v703_v48 = vrot.slane %v691_v41, %v277_v7  ;;  %v707_v49 = vrot.slane %v691_v41, %v281_v10 }
 0x166   :  { %v633_v50 = vsub.f32 %v625_v42, %v1021_v25  ;;  %v634_v51 = vmul.f32 %v630_v43, %v630_v43  ;;  %v635_v52 = vmul.f32 %v631_v44, %v631_v44  ;;  %v632_v53 = vsub.f32 %v621_v45, %v1020_v21 }
 0x167   :  { %v716_v54 = vmax.f32 %v712_v46, 0.0  ;;  %v717_v55 = vmax.f32 %v713_v47, 0.0  ;;  %v714_v56 = vsub.f32 %v703_v48, %v1022_v24  ;;  %v715_v57 = vsub.f32 %v707_v49, %v1023_v28 }
 0x168   :  { %v638_v58 = vadd.f32 1e-08, %v634_v51  ;;  %v639_v59 = vadd.f32 1e-08, %v635_v52  ;;  %v636_v60 = vmul.f32 %v632_v53, %v632_v53  ;;  %v637_v61 = vmul.f32 %v633_v50, %v633_v50 }
 0x169   :  { %v720_v62 = vsel %vm642_vm0, %v716_v54, -inf  ;;  %v721_v63 = vsel %vm642_vm0, %v717_v55, -inf  ;;  %v718_v0 = vmax.f32 %v714_v56, 0.0  ;;  %v719_v1 = vmax.f32 %v715_v57, 0.0 }
 0x16a   :  { %v722_v2 = vmax.f32 %v720_v62, %v721_v63  ;;  %v643_v3 = vsel %vm642_vm0, %v638_v58, 0.0  ;;  %v644_v4 = vsel %vm642_vm0, %v639_v59, 0.0  ;;  %v640_v7 = vadd.f32 1e-08, %v636_v60 }
 0x16b   :  { %v645_v8 = vadd.f32 %v644_v4, %v643_v3  ;;  %v725_v9 = vsel %vm642_vm0, %v718_v0, -inf  ;;  %v726_v10 = vsel %vm642_vm0, %v719_v1, -inf  ;;  %v641_v11 = vadd.f32 1e-08, %v637_v61 }
 0x16c   :  { %723 = vmax.xlane.f32.xlu1 %v722_v2  ;;  %v727_v12 = vmax.f32 %v725_v9, %v726_v10  ;;  %v648_v13 = vsel %vm642_vm0, %v640_v7, 0.0  ;;  %v736_v25 = vadd.s32 2, %v735_v18 }
 0x16d   :  { %646 = vadd.xlane.f32.xlu0 %v645_v8  ;;  %v649_v14 = vsel %vm642_vm0, %v641_v11, 0.0 }
 0x16e   :  { %v650_v20 = vadd.f32 %v649_v14, %v648_v13  ;;  %v739_v32 = vsub.s32 %v736_v25, %v1869_v6 }
 0x170   :  { %728 = vmax.xlane.f32.xlu1 %v727_v12 }
 0x171   :  { %651 = vadd.xlane.f32.xlu0 %v650_v20 }
 0x1f9   :  { %v724_v22 = vpop.xlane.xlu1 %723 }
 0x1fa   :  { %v647_v15 = vpop.xlane.xlu0 %646 }
 0x1fb   :  { %1032 = vrsqrt.f32 %v647_v15  ;;  %vm655_vm1 = vcmp.eq.f32.partialorder %v647_v15, inf  ;;  %v658_v23 = vand.u32 2147483648, %v647_v15  ;;  %vm657_vm2 = vcmp.eq.f32.partialorder %v647_v15, 0.0 }
 0x1fd   :  { %v729_v33 = vpop.xlane.xlu1 %728 }
 0x1fe   :  { %v652_v17 = vpop.xlane.xlu0 %651 }
 0x1ff   :  { %1034 = vrsqrt.f32 %v652_v17  ;;  %vm662_vm3 = vcmp.eq.f32.partialorder %v652_v17, inf  ;;  %v665_v29 = vand.u32 2147483648, %v652_v17  ;;  %vm664_vm4 = vcmp.eq.f32.partialorder %v652_v17, 0.0 }
 0x205   :  { %v1033_v19 = vpop.eup %1032 }
 0x206   :  { %v654_v21 = vmul.f32 %v1033_v19, %v647_v15 }
 0x208   :  { %v656_v24 = vsel %vm655_vm1, %v647_v15, %v654_v21 }
 0x209   :  { %v1035_v26 = vpop.eup %1034  ;;  %v659_v27 = vsel %vm657_vm2, %v658_v23, %v656_v24 }
 0x20a   :  { %v661_v28 = vmul.f32 %v1035_v26, %v652_v17  ;;  %v730_v31 = vadd.f32 %v724_v22, %v659_v27 }
 0x20c   :  { %v663_v30 = vsel %vm662_vm3, %v652_v17, %v661_v28  ;;  %v740_v35 = vrot.slane %v730_v31, %v739_v32 }
 0x20d   :  { %v666_v5 = vsel %vm664_vm4, %v665_v29, %v663_v30 }
 0x20e   :  { %v731_v34 = vadd.f32 %v729_v33, %v666_v5 }
 0x210   :  { %v744_v16 = vrot.slane %v731_v34, %v739_v32 }
 0x212   :  { %v746_v36 = vsel %vm745_vm5, %v744_v16, %v740_v35 }
 0x213   :  { %749 = vst.msk [vmem:[#allocation2 - $0x2] sm:$0xc] %vm748_vm6, %v746_v36 }
 0x214   :  { %1047 = shalt.err (!%p1044_p4)
}
 0x215   :  { %s1048_s14 = scalar_lea.hbm %s1904_s3, 32 }
 0x216   :  { %p1049_p5 = scmp.ne.s32.totalorder %s1904_s3, %s1048_s14  ;;  %p1052_p6 = scmp.lt.u32.totalorder %s1048_s14, %s1904_s3 }
 0x218   :  { %p1054_p7 = pnand %p1052_p6, %p1049_p5 }
 0x21a   :  { %1057 = shalt.err (!%p1054_p7)
}
 0x21b   :  { %759 = dma.vmem_to_hbm [thread:$0]  %s757_s11, 32, %s1904_s3, [#allocation3]  }
 0x21c   :  { %1058 = dma.done.wait [#allocation3], 32  }
 0x21d   :  { %1059 = vsyncadd [#allocation3], 4294967264 }
 0x21e   :  { %763 = vsyncpa [#allocation3], 1 }

// kernel: forward.8
= control target key start
LH: loop header
LB: loop body
LE: loop exit
PB: predicated region body
PF: predicated region fallthrough
CT: control target
= control target key end

     0   :  { %s6601_s12 = smov 0   ;;  %s6603_s13 = smov 0   ;;  %s7422_s0 = inlined_call_operand.vmem [shape: bf16[4,18944], index: 0, kind: input, shape index: {}]   ;;  %s7423_s1 = inlined_call_operand.vmem [shape: bf16[37888,256], index: 1, kind: input, shape index: {}]   ;;  %s7424_s2 = inlined_call_operand.vmem [shape: f32[1,512], index: 2, kind: input, shape index: {}]   ;;  %s7425_s3 = inlined_call_operand.vmem [shape: f32[4,512], index: 3, kind: output, shape index: {}]  }
   0x1   :  { %s6605_s14 = smov 0   ;;  %s6607_s15 = smov 0  }
   0x2   :  { %s6609_s16 = smov 0  }
   0x3 LB: > { %s22_s17 = sadd.s32 1, %s6568_s14  ;;  %s25_s18 = sadd.s32 1, %s6572_s15  ;;  %s6576_s16 = sphi %s6609_s16, %s13_s16   ;;  %s6572_s15 = sphi %s6607_s15, %s7429_s15   ;;  %s6568_s14 = sphi %s6605_s14, %s7428_s14   ;;  %s6564_s13 = sphi %s6603_s13, %s7427_s13   ;;  %s6560_s12 = sphi %s6601_s12, %s7426_s12  }
   0x4   : > { %p23_p0 = scmp.ge.s32.totalorder %s22_s17, 4  ;;  %p4920_p1 = scmp.ge.s32.totalorder %s6576_s16, 1 }
   0x5   : > { %p180_p2 = scmp.lt.s32.totalorder %s6576_s16, 9 }
   0x6   : > { %s7431_s17 = smov (%p23_p0, %s22_s17), 0  ;;  %s7433_s18 = smov (!%p23_p0, %s25_s18), %s6572_s15 }
   0x7   : > { %p181_p3 = pnand %p4920_p1, %p180_p2  ;;  %p27_p4 = scmp.ge.s32.totalorder %s7433_s18, 2 }
   0x8   : > { %s216_s19 = smul.u32 (!%p181_p3), 37, %s6560_s12  ;;  %s4922_s20 = sshll.u32 (!%p181_p3), %s6564_s13, 2 }
   0x9   : > { %s7435_s18 = smov (%p27_p4, %s7433_s18), 0  ;;  %184 = sbr.rel (%p181_p3) target bundleno = 869 (0x365), region = 32 }
   0xa   : > { %s223_s21 = sadd.s32 (!%p181_p3), %s6560_s12, %s4922_s20  ;;  %s4925_s22 = sshll.u32 (!%p181_p3), %s6564_s13, 1 }
   0xb   : > { %p217_p5 = scmp.lt.s32.totalorder (!%p181_p3), %s216_s19, 147  ;;  %s224_s23 = smul.u32 (!%p181_p3), 592, %s223_s21 }
   0xc   : > { %p234_p7 = scmp.lt.s32.totalorder (!%p181_p3), %s4925_s22, 3  ;;  %p4928_p8 = scmp.ne.s32.totalorder (!%p181_p3), %s6560_s12, 0 }
   0xd   : > { %p225_p6 = scmp.lt.s32.totalorder (!%p181_p3), %s224_s23, 4735 }
  0x10   : > { %s7437_s19 = smov (!%p217_p5, %s216_s19), 147  ;;  %s7439_s23 = smov (!%p225_p6, %s224_s23), 4735 }
  0x11   : > { %s4921_s24 = sshll.u32 %s7437_s19, 1  ;;  %s7441_s22 = smov (!%p234_p7, %s4925_s22), 3  ;;  %v6578_v0 = vmov (!%p4928_p8), 0.0  }
  0x12   : > { %s6638_s27 = scalar_lea.vmem %s7422_s0, %s4921_s24  ;;  %s5525_s28 = sshll.u32 %s7439_s23, 3  ;;  %249 = vst [vmem:[#allocation2] sm:$0xff] (!%p4928_p8), %v6578_v0 }
  0x13   : > { %s6645_s4 = scalar_lea.vmem %s7423_s1, %s5525_s28  ;;  %s236_s7 = scalar_lea.vmem %s7424_s2, %s7441_s22 }
  0x14   : > { %s4927_s8 = sshll.u32 %s7441_s22, 2  ;;  %248 = sbr.rel (%p4928_p8) target bundleno = 27 (0x1b), region = 36 }
  0x15   : > { %s6655_s11 = scalar_lea.vmem %s7425_s3, %s4927_s8 }
  0x1b PF: > { %v5639_v1 = vld [vmem:[%s6645_s4 + $0x4] ss:$8 sps:$4 sm:$0xff]   ;;  %v5643_v3 = vld [vmem:[%s6645_s4] ss:$8 sps:$4 sm:$0xff]   ;;  %v5645_v5 = vld [vmem:[%s6645_s4 + $0x14] ss:$8 sps:$4 sm:$0xff]   ;;  %v867_v39 = vlaneseq }
  0x1c   : > { %v5641_v2 = vld [vmem:[%s6645_s4 + $0x904] ss:$8 sps:$4 sm:$0xff]   ;;  %4020 = vmatprep.subr.bf16.mxu1 %v5639_v1  ;;  %v5644_v4 = vld [vmem:[%s6645_s4 + $0x900] ss:$8 sps:$4 sm:$0xff]   ;;  %v5647_v6 = vld [vmem:[%s6645_s4 + $0x914] ss:$8 sps:$4 sm:$0xff]  }
  0x1d   : > { %4389 = vmatprep.subr.bf16.mxu0 %v5641_v2  ;;  %4021 = vmatpush1.bf16.msra.mxu1 %v5643_v3  ;;  %v5649_v7 = vld [vmem:[%s6645_s4 + $0x10] ss:$8 sps:$4 sm:$0xff]   ;;  %v5651_v9 = vld [vmem:[%s6645_s4 + $0x24] ss:$8 sps:$4 sm:$0xff]   ;;  %v5655_v11 = vld [vmem:[%s6645_s4 + $0x20] ss:$8 sps:$4 sm:$0xff]  }
  0x1e   : > { %4390 = vmatpush1.bf16.msra.mxu0 %v5644_v4  ;;  %4022 = vmatprep.subr.bf16.mxu1 %v5645_v5  ;;  %v5650_v8 = vld [vmem:[%s6645_s4 + $0x910] ss:$8 sps:$4 sm:$0xff]   ;;  %v5653_v10 = vld [vmem:[%s6645_s4 + $0x924] ss:$8 sps:$4 sm:$0xff]   ;;  %v5656_v12 = vld [vmem:[%s6645_s4 + $0x920] ss:$8 sps:$4 sm:$0xff]  }
  0x1f   : > { %4391 = vmatprep.subr.bf16.mxu0 %v5647_v6  ;;  %v5657_v13 = vld [vmem:[%s6645_s4 + $0x34] ss:$8 sps:$4 sm:$0xff]   ;;  %v5661_v15 = vld [vmem:[%s6645_s4 + $0x30] ss:$8 sps:$4 sm:$0xff]   ;;  %v5663_v17 = vld [vmem:[%s6645_s4 + $0x44] ss:$8 sps:$4 sm:$0xff]  }
  0x20   : > { %v5659_v14 = vld [vmem:[%s6645_s4 + $0x934] ss:$8 sps:$4 sm:$0xff]   ;;  %v5662_v16 = vld [vmem:[%s6645_s4 + $0x930] ss:$8 sps:$4 sm:$0xff]   ;;  %v5665_v18 = vld [vmem:[%s6645_s4 + $0x944] ss:$8 sps:$4 sm:$0xff]  }
  0x21   : > { %4023 = vmatpush1.bf16.msra.mxu1 %v5649_v7  ;;  %v5667_v19 = vld [vmem:[%s6645_s4 + $0x40] ss:$8 sps:$4 sm:$0xff]   ;;  %v5669_v21 = vld [vmem:[%s6645_s4 + $0x54] ss:$8 sps:$4 sm:$0xff]   ;;  %v5673_v23 = vld [vmem:[%s6645_s4 + $0x50] ss:$8 sps:$4 sm:$0xff]  }
  0x22   : > { %4392 = vmatpush1.bf16.msra.mxu0 %v5650_v8  ;;  %4024 = vmatprep.subr.bf16.mxu1 %v5651_v9  ;;  %v5668_v20 = vld [vmem:[%s6645_s4 + $0x940] ss:$8 sps:$4 sm:$0xff]   ;;  %v5671_v22 = vld [vmem:[%s6645_s4 + $0x954] ss:$8 sps:$4 sm:$0xff]   ;;  %v5674_v24 = vld [vmem:[%s6645_s4 + $0x950] ss:$8 sps:$4 sm:$0xff]  }
  0x23   : > { %4393 = vmatprep.subr.bf16.mxu0 %v5653_v10  ;;  %v5675_v25 = vld [vmem:[%s6645_s4 + $0x64] ss:$8 sps:$4 sm:$0xff]   ;;  %v5679_v27 = vld [vmem:[%s6645_s4 + $0x60] ss:$8 sps:$4 sm:$0xff]   ;;  %v5681_v29 = vld [vmem:[%s6645_s4 + $0x74] ss:$8 sps:$4 sm:$0xff]  }
  0x24   : > { %v5677_v26 = vld [vmem:[%s6645_s4 + $0x964] ss:$8 sps:$4 sm:$0xff]   ;;  %v5680_v28 = vld [vmem:[%s6645_s4 + $0x960] ss:$8 sps:$4 sm:$0xff]   ;;  %v5683_v30 = vld [vmem:[%s6645_s4 + $0x974] ss:$8 sps:$4 sm:$0xff]  }
  0x25   : > { %4025 = vmatpush1.bf16.msra.mxu1 %v5655_v11  ;;  %v5685_v31 = vld [vmem:[%s6645_s4 + $0x70] ss:$8 sps:$4 sm:$0xff]   ;;  %v5687_v33 = vld [vmem:[%s6645_s4 + $0x84] ss:$8 sps:$4 sm:$0xff]   ;;  %v5691_v35 = vld [vmem:[%s6645_s4 + $0x80] ss:$8 sps:$4 sm:$0xff]  }
  0x26   : > { %4394 = vmatpush1.bf16.msra.mxu0 %v5656_v12  ;;  %4026 = vmatprep.subr.bf16.mxu1 %v5657_v13  ;;  %v5686_v32 = vld [vmem:[%s6645_s4 + $0x970] ss:$8 sps:$4 sm:$0xff]   ;;  %v5689_v34 = vld [vmem:[%s6645_s4 + $0x984] ss:$8 sps:$4 sm:$0xff]   ;;  %v5692_v36 = vld [vmem:[%s6645_s4 + $0x980] ss:$8 sps:$4 sm:$0xff]  }
  0x27   : > { %4395 = vmatprep.subr.bf16.mxu0 %v5659_v14  ;;  %v6579_v37 = vmov 1983009808   ;;  %v5693_v40 = vld [vmem:[%s6645_s4 + $0x94] ss:$8 sps:$4 sm:$0xff]   ;;  %v5697_v42 = vld [vmem:[%s6645_s4 + $0x90] ss:$8 sps:$4 sm:$0xff]  }
  0x28   : > { %v865_v38 = vunpack.c.l.s4 %v6579_v37  ;;  %v5695_v41 = vld [vmem:[%s6645_s4 + $0x994] ss:$8 sps:$4 sm:$0xff]   ;;  %v6697_v44 = vshrl.u32 %v867_v39, 7  ;;  %v5698_v45 = vld [vmem:[%s6645_s4 + $0x990] ss:$8 sps:$4 sm:$0xff]   ;;  %v251_v53 = vld [vmem:[%s6638_s27] sm:$0xff] }
  0x29   : > { %4027 = vmatpush1.bf16.msra.mxu1 %v5661_v15  ;;  %v5699_v46 = vld [vmem:[%s6645_s4 + $0xa4] ss:$8 sps:$4 sm:$0xff]   ;;  %v5703_v48 = vld [vmem:[%s6645_s4 + $0xa0] ss:$8 sps:$4 sm:$0xff]   ;;  %v5705_v51 = vld [vmem:[%s6645_s4 + $0xb4] ss:$8 sps:$4 sm:$0xff]   ;;  %v863_v12 = vcombine.high %v251_v53, %v251_v53 }
  0x2a   : > { %4396 = vmatpush1.bf16.msra.mxu0 %v5662_v16  ;;  %4028 = vmatprep.subr.bf16.mxu1 %v5663_v17  ;;  %v866_v43 = vunpack.c.0.s8 %v865_v38  ;;  %v5701_v47 = vld [vmem:[%s6645_s4 + $0x9a4] ss:$8 sps:$4 sm:$0xff]   ;;  %v5704_v49 = vld [vmem:[%s6645_s4 + $0x9a0] ss:$8 sps:$4 sm:$0xff]   ;;  %v5707_v52 = vld [vmem:[%s6645_s4 + $0x9b4] ss:$8 sps:$4 sm:$0xff]  }
  0x2b   : > { %4397 = vmatprep.subr.bf16.mxu0 %v5665_v18  ;;  %v5709_v54 = vld [vmem:[%s6645_s4 + $0xb0] ss:$8 sps:$4 sm:$0xff]   ;;  %v255_v57 = vld [vmem:[%s6638_s27 + $0x20] sm:$0xff]  ;;  %v5717_v1 = vld [vmem:[%s6645_s4 + $0xd4] ss:$8 sps:$4 sm:$0xff]   ;;  %p5522_p9 = scmp.ne.s32.totalorder %s6560_s12, 3 }
  0x2c   : > { %v6705_v50 = vsub.s32 %v866_v43, %v6697_v44  ;;  %v5710_v56 = vld [vmem:[%s6645_s4 + $0x9b0] ss:$8 sps:$4 sm:$0xff]   ;;  %v5711_v58 = vld [vmem:[%s6645_s4 + $0xc4] ss:$8 sps:$4 sm:$0xff]   ;;  %v931_v61 = vcombine.high %v255_v57, %v255_v57  ;;  %v5715_v63 = vld [vmem:[%s6645_s4 + $0xc0] ss:$8 sps:$4 sm:$0xff]  }
  0x2d   : > { %4029 = vmatpush1.bf16.msra.mxu1 %v5667_v19  ;;  %v5713_v59 = vld [vmem:[%s6645_s4 + $0x9c4] ss:$8 sps:$4 sm:$0xff]   ;;  %v5716_v0 = vld [vmem:[%s6645_s4 + $0x9c0] ss:$8 sps:$4 sm:$0xff]   ;;  %v5719_v2 = vld [vmem:[%s6645_s4 + $0x9d4] ss:$8 sps:$4 sm:$0xff]  }
  0x2e   : > { %4398 = vmatpush1.bf16.msra.mxu0 %v5668_v20  ;;  %4030 = vmatprep.subr.bf16.mxu1 %v5669_v21  ;;  %v870_v55 = vrot.slane %v251_v53, %v6705_v50  ;;  %v945_v62 = vrot.slane %v931_v61, %v6705_v50  ;;  %v5721_v4 = vld [vmem:[%s6645_s4 + $0xd0] ss:$8 sps:$4 sm:$0xff]   ;;  %v5723_v6 = vld [vmem:[%s6645_s4 + $0xe4] ss:$8 sps:$4 sm:$0xff]   ;;  %v5727_v8 = vld [vmem:[%s6645_s4 + $0xe0] ss:$8 sps:$4 sm:$0xff]   ;;  %v6734_v17 = vrot.slane %v863_v12, %v6705_v50 }
  0x2f   : > { %4399 = vmatprep.subr.bf16.mxu0 %v5671_v22  ;;  %v5722_v5 = vld [vmem:[%s6645_s4 + $0x9d0] ss:$8 sps:$4 sm:$0xff]   ;;  %v5725_v7 = vld [vmem:[%s6645_s4 + $0x9e4] ss:$8 sps:$4 sm:$0xff]   ;;  %v5728_v9 = vld [vmem:[%s6645_s4 + $0x9e0] ss:$8 sps:$4 sm:$0xff]  }
  0x30   : > { %v878_v60 = vcombine.high %v870_v55, %v870_v55  ;;  %v947_v3 = vcombine.high %v945_v62, %v945_v62  ;;  %v5729_v10 = vld [vmem:[%s6645_s4 + $0xf4] ss:$8 sps:$4 sm:$0xff]   ;;  %v5733_v13 = vld [vmem:[%s6645_s4 + $0xf0] ss:$8 sps:$4 sm:$0xff]   ;;  %v5738_v15 = vld [vmem:[%s6645_s4 + $0x104] ss:$8 sps:$4 sm:$0xff]   ;;  %v879_v22 = vcombine.high %v6734_v17, %v6734_v17 }
  0x31   : > { %4031 = vmatpush1.bf16.msra.mxu1 %v5673_v23  ;;  %v5731_v11 = vld [vmem:[%s6645_s4 + $0x9f4] ss:$8 sps:$4 sm:$0xff]   ;;  %v5734_v14 = vld [vmem:[%s6645_s4 + $0x9f0] ss:$8 sps:$4 sm:$0xff]   ;;  %v5742_v16 = vld [vmem:[%s6645_s4 + $0xa04] ss:$8 sps:$4 sm:$0xff]  }
  0x32   : > { %4400 = vmatpush1.bf16.msra.mxu0 %v5674_v24  ;;  %4032 = vmatprep.subr.bf16.mxu1 %v5675_v25  ;;  %v5736_v18 = vld [vmem:[%s6645_s4 + $0x100] ss:$8 sps:$4 sm:$0xff]   ;;  %v5745_v20 = vld [vmem:[%s6645_s4 + $0x114] ss:$8 sps:$4 sm:$0xff]   ;;  %v5743_v23 = vld [vmem:[%s6645_s4 + $0x110] ss:$8 sps:$4 sm:$0xff]  }
  0x33   : > { %4401 = vmatprep.subr.bf16.mxu0 %v5677_v26  ;;  %4052 = vmatprep.mubr.bf16.mxu1 %v878_v60  ;;  %v5740_v19 = vld [vmem:[%s6645_s4 + $0xa00] ss:$8 sps:$4 sm:$0xff]   ;;  %v5748_v21 = vld [vmem:[%s6645_s4 + $0xa14] ss:$8 sps:$4 sm:$0xff]   ;;  %v5746_v24 = vld [vmem:[%s6645_s4 + $0xa10] ss:$8 sps:$4 sm:$0xff]  }
  0x34   : > { %4421 = vmatprep.mubr.bf16.mxu0 %v947_v3  ;;  %v5751_v25 = vld [vmem:[%s6645_s4 + $0x124] ss:$8 sps:$4 sm:$0xff]   ;;  %v5769_v37 = vld [vmem:[%s6645_s4 + $0x154] ss:$8 sps:$4 sm:$0xff]   ;;  %v5767_v39 = vld [vmem:[%s6645_s4 + $0x150] ss:$8 sps:$4 sm:$0xff]  }
  0x35   : > { %4033 = vmatpush1.bf16.msra.mxu1 %v5679_v27  ;;  %v5754_v26 = vld [vmem:[%s6645_s4 + $0xa24] ss:$8 sps:$4 sm:$0xff]   ;;  %v5749_v27 = vld [vmem:[%s6645_s4 + $0x120] ss:$8 sps:$4 sm:$0xff]   ;;  %v5772_v38 = vld [vmem:[%s6645_s4 + $0xa54] ss:$8 sps:$4 sm:$0xff]  }
  0x36   : > { %4402 = vmatpush1.bf16.msra.mxu0 %v5680_v28  ;;  %4034 = vmatprep.subr.bf16.mxu1 %v5681_v29  ;;  %v5752_v28 = vld [vmem:[%s6645_s4 + $0xa20] ss:$8 sps:$4 sm:$0xff]   ;;  %v5757_v29 = vld [vmem:[%s6645_s4 + $0x134] ss:$8 sps:$4 sm:$0xff]   ;;  %v5782_v53 = vld [vmem:[%s6645_s4 + $0xa70] ss:$8 sps:$4 sm:$0xff]  }
  0x37   : > { %4403 = vmatprep.subr.bf16.mxu0 %v5683_v30  ;;  %v5760_v30 = vld [vmem:[%s6645_s4 + $0xa34] ss:$8 sps:$4 sm:$0xff]   ;;  %v5773_v43 = vld [vmem:[%s6645_s4 + $0x160] ss:$8 sps:$4 sm:$0xff]   ;;  %v5791_v60 = vld [vmem:[%s6645_s4 + $0x190] ss:$8 sps:$4 sm:$0xff]  }
  0x38   : > { %v5788_v57 = vld [vmem:[%s6645_s4 + $0xa80] ss:$8 sps:$4 sm:$0xff]   ;;  %v5794_v61 = vld [vmem:[%s6645_s4 + $0xa90] ss:$8 sps:$4 sm:$0xff]   ;;  %v5808_v3 = vld [vmem:[%s6645_s4 + $0xab4] ss:$8 sps:$4 sm:$0xff]  }
  0x39   : > { %4035 = vmatpush1.bf16.msra.mxu1 %v5685_v31  ;;  %v5755_v31 = vld [vmem:[%s6645_s4 + $0x130] ss:$8 sps:$4 sm:$0xff]  }
  0x3a   : > { %4404 = vmatpush1.bf16.msra.mxu0 %v5686_v32  ;;  %4036 = vmatprep.subr.bf16.mxu1 %v5687_v33  ;;  %v5758_v32 = vld [vmem:[%s6645_s4 + $0xa30] ss:$8 sps:$4 sm:$0xff]   ;;  %v5763_v33 = vld [vmem:[%s6645_s4 + $0x144] ss:$8 sps:$4 sm:$0xff]  }
  0x3b   : > { %4405 = vmatprep.subr.bf16.mxu0 %v5689_v34  ;;  %v5766_v34 = vld [vmem:[%s6645_s4 + $0xa44] ss:$8 sps:$4 sm:$0xff]   ;;  %v5815_v12 = vld [vmem:[%s6645_s4 + $0x1d0] ss:$8 sps:$4 sm:$0xff]  }
  0x3d   : > { %4037 = vmatpush1.bf16.msra.mxu1 %v5691_v35  ;;  %v5761_v35 = vld [vmem:[%s6645_s4 + $0x140] ss:$8 sps:$4 sm:$0xff]  }
  0x3e   : > { %4406 = vmatpush1.bf16.msra.mxu0 %v5692_v36  ;;  %4038 = vmatprep.subr.bf16.mxu1 %v5693_v40  ;;  %v5764_v36 = vld [vmem:[%s6645_s4 + $0xa40] ss:$8 sps:$4 sm:$0xff]   ;;  %v5770_v40 = vld [vmem:[%s6645_s4 + $0xa50] ss:$8 sps:$4 sm:$0xff]  }
  0x3f   : > { %4407 = vmatprep.subr.bf16.mxu0 %v5695_v41  ;;  %v5775_v41 = vld [vmem:[%s6645_s4 + $0x164] ss:$8 sps:$4 sm:$0xff]  }
  0x41   : > { %4039 = vmatpush1.bf16.msra.mxu1 %v5697_v42  ;;  %v5778_v42 = vld [vmem:[%s6645_s4 + $0xa64] ss:$8 sps:$4 sm:$0xff]  }
  0x42   : > { %4408 = vmatpush1.bf16.msra.mxu0 %v5698_v45  ;;  %4040 = vmatprep.subr.bf16.mxu1 %v5699_v46  ;;  %v6764_v45 = vld [vmem:[%s6638_s27 + $0x28] sm:$0xff] }
  0x43   : > { %4409 = vmatprep.subr.bf16.mxu0 %v5701_v47  ;;  %v5776_v46 = vld [vmem:[%s6645_s4 + $0xa60] ss:$8 sps:$4 sm:$0xff]   ;;  %v5781_v47 = vld [vmem:[%s6645_s4 + $0x174] ss:$8 sps:$4 sm:$0xff]  }
  0x45   : > { %4041 = vmatpush1.bf16.msra.mxu1 %v5703_v48  ;;  %v6770_v48 = vrot.slane %v6764_v45, %v6705_v50 }
  0x46   : > { %4410 = vmatpush1.bf16.msra.mxu0 %v5704_v49  ;;  %4042 = vmatprep.subr.bf16.mxu1 %v5705_v51  ;;  %v5784_v49 = vld [vmem:[%s6645_s4 + $0xa74] ss:$8 sps:$4 sm:$0xff]  }
  0x47   : > { %4411 = vmatprep.subr.bf16.mxu0 %v5707_v52  ;;  %v963_v51 = vcombine.high %v6770_v48, %v6770_v48  ;;  %v5779_v52 = vld [vmem:[%s6645_s4 + $0x170] ss:$8 sps:$4 sm:$0xff]  }
  0x49   : > { %4043 = vmatpush1.bf16.msra.mxu1 %v5709_v54  ;;  %v5787_v54 = vld [vmem:[%s6645_s4 + $0x184] ss:$8 sps:$4 sm:$0xff]  }
  0x4a   : > { %4412 = vmatpush1.bf16.msra.mxu0 %v5710_v56  ;;  %4044 = vmatprep.subr.bf16.mxu1 %v5711_v58  ;;  %v5785_v56 = vld [vmem:[%s6645_s4 + $0x180] ss:$8 sps:$4 sm:$0xff]   ;;  %v5793_v58 = vld [vmem:[%s6645_s4 + $0x194] ss:$8 sps:$4 sm:$0xff]  }
  0x4b   : > { %4413 = vmatprep.subr.bf16.mxu0 %v5713_v59  ;;  %v5796_v59 = vld [vmem:[%s6645_s4 + $0xa94] ss:$8 sps:$4 sm:$0xff]  }
  0x4d   : > { %4045 = vmatpush1.bf16.msra.mxu1 %v5715_v63  ;;  %v5802_v63 = vld [vmem:[%s6645_s4 + $0xaa4] ss:$8 sps:$4 sm:$0xff]  }
  0x4e   : > { %4414 = vmatpush1.bf16.msra.mxu0 %v5716_v0  ;;  %4046 = vmatprep.subr.bf16.mxu1 %v5717_v1  ;;  %v5797_v0 = vld [vmem:[%s6645_s4 + $0x1a0] ss:$8 sps:$4 sm:$0xff]  }
  0x4f   : > { %4415 = vmatprep.subr.bf16.mxu0 %v5719_v2  ;;  %v5800_v1 = vld [vmem:[%s6645_s4 + $0xaa0] ss:$8 sps:$4 sm:$0xff]   ;;  %v5805_v2 = vld [vmem:[%s6645_s4 + $0x1b4] ss:$8 sps:$4 sm:$0xff]  }
  0x51   : > { %4047 = vmatpush1.bf16.msra.mxu1 %v5721_v4  ;;  %v5803_v4 = vld [vmem:[%s6645_s4 + $0x1b0] ss:$8 sps:$4 sm:$0xff]  }
  0x52   : > { %4416 = vmatpush1.bf16.msra.mxu0 %v5722_v5  ;;  %4048 = vmatprep.subr.bf16.mxu1 %v5723_v6  ;;  %v5806_v5 = vld [vmem:[%s6645_s4 + $0xab0] ss:$8 sps:$4 sm:$0xff]   ;;  %v5811_v6 = vld [vmem:[%s6645_s4 + $0x1c4] ss:$8 sps:$4 sm:$0xff]  }
  0x53   : > { %4417 = vmatprep.subr.bf16.mxu0 %v5725_v7  ;;  %v5814_v7 = vld [vmem:[%s6645_s4 + $0xac4] ss:$8 sps:$4 sm:$0xff]  }
  0x55   : > { %4049 = vmatpush1.bf16.msra.mxu1 %v5727_v8  ;;  %v5809_v8 = vld [vmem:[%s6645_s4 + $0x1c0] ss:$8 sps:$4 sm:$0xff]  }
  0x56   : > { %4418 = vmatpush1.bf16.msra.mxu0 %v5728_v9  ;;  %4050 = vmatprep.subr.bf16.mxu1 %v5729_v10  ;;  %v5812_v9 = vld [vmem:[%s6645_s4 + $0xac0] ss:$8 sps:$4 sm:$0xff]   ;;  %v5817_v10 = vld [vmem:[%s6645_s4 + $0x1d4] ss:$8 sps:$4 sm:$0xff]  }
  0x57   : > { %4419 = vmatprep.subr.bf16.mxu0 %v5731_v11  ;;  %v5820_v11 = vld [vmem:[%s6645_s4 + $0xad4] ss:$8 sps:$4 sm:$0xff]  }
  0x59   : > { %4051 = vmatpush1.bf16.msra.mxu1 %v5733_v13  ;;  %v5818_v13 = vld [vmem:[%s6645_s4 + $0xad0] ss:$8 sps:$4 sm:$0xff]  }
  0x5a   : > { %4420 = vmatpush1.bf16.msra.mxu0 %v5734_v14  ;;  %4061 = vmatprep.subr.bf16.mxu1 %v5738_v15  ;;  %v5823_v14 = vld [vmem:[%s6645_s4 + $0x1e4] ss:$8 sps:$4 sm:$0xff]  }
  0x5b   : > { %4430 = vmatprep.subr.bf16.mxu0 %v5742_v16  ;;  %v5826_v15 = vld [vmem:[%s6645_s4 + $0xae4] ss:$8 sps:$4 sm:$0xff]   ;;  %v5821_v16 = vld [vmem:[%s6645_s4 + $0x1e0] ss:$8 sps:$4 sm:$0xff]  }
  0x5c   : > { %4053 = vmatmul.mubr.bf16.vlgmr.msra.gmra.mrb[0].mxu1 %v870_v55  ;;  %v5790_v55 = vld [vmem:[%s6645_s4 + $0xa84] ss:$8 sps:$4 sm:$0xff]  }
  0x5d   : > { %4422 = vmatmul.mubr.bf16.vlgmr.msra.gmra.mrb[0].mxu0 %v945_v62  ;;  %4062 = vmatpush1.bf16.msra.mxu1 %v5736_v18  ;;  %v5799_v62 = vld [vmem:[%s6645_s4 + $0x1a4] ss:$8 sps:$4 sm:$0xff]   ;;  %v5824_v18 = vld [vmem:[%s6645_s4 + $0xae0] ss:$8 sps:$4 sm:$0xff]  }
  0x5e   : > { %4431 = vmatpush1.bf16.msra.mxu0 %v5740_v19  ;;  %4063 = vmatprep.subr.bf16.mxu1 %v5745_v20  ;;  %v5829_v19 = vld [vmem:[%s6645_s4 + $0x1f4] ss:$8 sps:$4 sm:$0xff]  }
  0x5f   : > { %4432 = vmatprep.subr.bf16.mxu0 %v5748_v21  ;;  %4093 = vmatprep.mubr.bf16.mxu1 %v879_v22  ;;  %v5832_v20 = vld [vmem:[%s6645_s4 + $0xaf4] ss:$8 sps:$4 sm:$0xff]   ;;  %v948_v21 = vcombine.high %v6764_v45, %v6764_v45  ;;  %v5827_v22 = vld [vmem:[%s6645_s4 + $0x1f0] ss:$8 sps:$4 sm:$0xff]   ;;  %v5859_v45 = vld [vmem:[%s6645_s4 + $0x244] ss:$8 sps:$4 sm:$0xff]  }
  0x60   : > { %4462 = vmatprep.mubr.bf16.mxu0 %v963_v51  ;;  %v5868_v51 = vld [vmem:[%s6645_s4 + $0xb54] ss:$8 sps:$4 sm:$0xff]  }
  0x61   : > { %4064 = vmatpush1.bf16.msra.mxu1 %v5743_v23  ;;  %v5830_v23 = vld [vmem:[%s6645_s4 + $0xaf0] ss:$8 sps:$4 sm:$0xff]  }
  0x62   : > { %4433 = vmatpush1.bf16.msra.mxu0 %v5746_v24  ;;  %4065 = vmatprep.subr.bf16.mxu1 %v5751_v25  ;;  %v5835_v24 = vld [vmem:[%s6645_s4 + $0x204] ss:$8 sps:$4 sm:$0xff]  }
  0x63   : > { %4434 = vmatprep.subr.bf16.mxu0 %v5754_v26  ;;  %v5838_v25 = vld [vmem:[%s6645_s4 + $0xb04] ss:$8 sps:$4 sm:$0xff]   ;;  %v6814_v26 = vrot.slane %v948_v21, %v6705_v50  ;;  %v5911_v21 = vld [vmem:[%s6645_s4 + $0x2d0] ss:$8 sps:$4 sm:$0xff]  }
  0x65   : > { %4066 = vmatpush1.bf16.msra.mxu1 %v5749_v27  ;;  %v5833_v27 = vld [vmem:[%s6645_s4 + $0x200] ss:$8 sps:$4 sm:$0xff]  }
  0x66   : > { %4435 = vmatpush1.bf16.msra.mxu0 %v5752_v28  ;;  %4067 = vmatprep.subr.bf16.mxu1 %v5757_v29  ;;  %v5836_v28 = vld [vmem:[%s6645_s4 + $0xb00] ss:$8 sps:$4 sm:$0xff]   ;;  %v5841_v29 = vld [vmem:[%s6645_s4 + $0x214] ss:$8 sps:$4 sm:$0xff]  }
  0x67   : > { %4436 = vmatprep.subr.bf16.mxu0 %v5760_v30  ;;  %v5844_v30 = vld [vmem:[%s6645_s4 + $0xb14] ss:$8 sps:$4 sm:$0xff]  }
  0x69   : > { %4068 = vmatpush1.bf16.msra.mxu1 %v5755_v31  ;;  %v6821_v31 = vld [vmem:[%s6638_s27 + $0x8] sm:$0xff] }
  0x6a   : > { %4437 = vmatpush1.bf16.msra.mxu0 %v5758_v32  ;;  %4069 = vmatprep.subr.bf16.mxu1 %v5763_v33  ;;  %v6825_v32 = vrot.slane %v6821_v31, %v6705_v50  ;;  %v964_v33 = vcombine.high %v6814_v26, %v6814_v26 }
  0x6b   : > { %4438 = vmatprep.subr.bf16.mxu0 %v5766_v34  ;;  %v5839_v34 = vld [vmem:[%s6645_s4 + $0x210] ss:$8 sps:$4 sm:$0xff]  }
  0x6d   : > { %4070 = vmatpush1.bf16.msra.mxu1 %v5761_v35  ;;  %v5842_v35 = vld [vmem:[%s6645_s4 + $0xb10] ss:$8 sps:$4 sm:$0xff]  }
  0x6e   : > { %4439 = vmatpush1.bf16.msra.mxu0 %v5764_v36  ;;  %4071 = vmatprep.subr.bf16.mxu1 %v5769_v37  ;;  %v5847_v36 = vld [vmem:[%s6645_s4 + $0x224] ss:$8 sps:$4 sm:$0xff]   ;;  %v895_v37 = vcombine.high %v6825_v32, %v6825_v32 }
  0x6f   : > { %4440 = vmatprep.subr.bf16.mxu0 %v5772_v38  ;;  %v5850_v38 = vld [vmem:[%s6645_s4 + $0xb24] ss:$8 sps:$4 sm:$0xff]  }
  0x71   : > { %4072 = vmatpush1.bf16.msra.mxu1 %v5767_v39  ;;  %v5848_v39 = vld [vmem:[%s6645_s4 + $0xb20] ss:$8 sps:$4 sm:$0xff]  }
  0x72   : > { %4441 = vmatpush1.bf16.msra.mxu0 %v5770_v40  ;;  %4073 = vmatprep.subr.bf16.mxu1 %v5775_v41  ;;  %v5853_v40 = vld [vmem:[%s6645_s4 + $0x234] ss:$8 sps:$4 sm:$0xff]  }
  0x73   : > { %4442 = vmatprep.subr.bf16.mxu0 %v5778_v42  ;;  %v5856_v41 = vld [vmem:[%s6645_s4 + $0xb34] ss:$8 sps:$4 sm:$0xff]   ;;  %v5851_v42 = vld [vmem:[%s6645_s4 + $0x230] ss:$8 sps:$4 sm:$0xff]  }
  0x75   : > { %4074 = vmatpush1.bf16.msra.mxu1 %v5773_v43  ;;  %v5854_v43 = vld [vmem:[%s6645_s4 + $0xb30] ss:$8 sps:$4 sm:$0xff]  }
  0x76   : > { %4443 = vmatpush1.bf16.msra.mxu0 %v5776_v46  ;;  %4075 = vmatprep.subr.bf16.mxu1 %v5781_v47  ;;  %v5862_v46 = vld [vmem:[%s6645_s4 + $0xb44] ss:$8 sps:$4 sm:$0xff]   ;;  %v5857_v47 = vld [vmem:[%s6645_s4 + $0x240] ss:$8 sps:$4 sm:$0xff]  }
  0x77   : > { %4444 = vmatprep.subr.bf16.mxu0 %v5784_v49  ;;  %v5865_v49 = vld [vmem:[%s6645_s4 + $0x254] ss:$8 sps:$4 sm:$0xff]  }
  0x79   : > { %4076 = vmatpush1.bf16.msra.mxu1 %v5779_v52  ;;  %v5863_v52 = vld [vmem:[%s6645_s4 + $0x250] ss:$8 sps:$4 sm:$0xff]  }
  0x7a   : > { %4445 = vmatpush1.bf16.msra.mxu0 %v5782_v53  ;;  %4077 = vmatprep.subr.bf16.mxu1 %v5787_v54  ;;  %v5866_v53 = vld [vmem:[%s6645_s4 + $0xb50] ss:$8 sps:$4 sm:$0xff]   ;;  %v5871_v54 = vld [vmem:[%s6645_s4 + $0x264] ss:$8 sps:$4 sm:$0xff]  }
  0x7b   : > { %4446 = vmatprep.subr.bf16.mxu0 %v5790_v55  ;;  %v5874_v55 = vld [vmem:[%s6645_s4 + $0xb64] ss:$8 sps:$4 sm:$0xff]  }
  0x7d   : > { %4078 = vmatpush1.bf16.msra.mxu1 %v5785_v56  ;;  %v5869_v56 = vld [vmem:[%s6645_s4 + $0x260] ss:$8 sps:$4 sm:$0xff]  }
  0x7e   : > { %4447 = vmatpush1.bf16.msra.mxu0 %v5788_v57  ;;  %4079 = vmatprep.subr.bf16.mxu1 %v5793_v58  ;;  %v5872_v57 = vld [vmem:[%s6645_s4 + $0xb60] ss:$8 sps:$4 sm:$0xff]   ;;  %v5877_v58 = vld [vmem:[%s6645_s4 + $0x274] ss:$8 sps:$4 sm:$0xff]  }
  0x7f   : > { %4448 = vmatprep.subr.bf16.mxu0 %v5796_v59  ;;  %v5880_v59 = vld [vmem:[%s6645_s4 + $0xb74] ss:$8 sps:$4 sm:$0xff]  }
  0x81   : > { %4080 = vmatpush1.bf16.msra.mxu1 %v5791_v60  ;;  %v5875_v60 = vld [vmem:[%s6645_s4 + $0x270] ss:$8 sps:$4 sm:$0xff]  }
  0x82   : > { %4449 = vmatpush1.bf16.msra.mxu0 %v5794_v61  ;;  %4081 = vmatprep.subr.bf16.mxu1 %v5799_v62  ;;  %v5878_v61 = vld [vmem:[%s6645_s4 + $0xb70] ss:$8 sps:$4 sm:$0xff]   ;;  %v5883_v62 = vld [vmem:[%s6645_s4 + $0x284] ss:$8 sps:$4 sm:$0xff]  }
  0x83   : > { %4450 = vmatprep.subr.bf16.mxu0 %v5802_v63  ;;  %v5886_v63 = vld [vmem:[%s6645_s4 + $0xb84] ss:$8 sps:$4 sm:$0xff]  }
  0x85   : > { %4082 = vmatpush1.bf16.msra.mxu1 %v5797_v0  ;;  %v5881_v0 = vld [vmem:[%s6645_s4 + $0x280] ss:$8 sps:$4 sm:$0xff]  }
  0x86   : > { %4451 = vmatpush1.bf16.msra.mxu0 %v5800_v1  ;;  %4083 = vmatprep.subr.bf16.mxu1 %v5805_v2  ;;  %v5884_v1 = vld [vmem:[%s6645_s4 + $0xb80] ss:$8 sps:$4 sm:$0xff]   ;;  %v5889_v2 = vld [vmem:[%s6645_s4 + $0x294] ss:$8 sps:$4 sm:$0xff]  }
  0x87   : > { %4452 = vmatprep.subr.bf16.mxu0 %v5808_v3  ;;  %v5892_v3 = vld [vmem:[%s6645_s4 + $0xb94] ss:$8 sps:$4 sm:$0xff]  }
  0x89   : > { %4084 = vmatpush1.bf16.msra.mxu1 %v5803_v4  ;;  %v5887_v4 = vld [vmem:[%s6645_s4 + $0x290] ss:$8 sps:$4 sm:$0xff]  }
  0x8a   : > { %4453 = vmatpush1.bf16.msra.mxu0 %v5806_v5  ;;  %4085 = vmatprep.subr.bf16.mxu1 %v5811_v6  ;;  %v5890_v5 = vld [vmem:[%s6645_s4 + $0xb90] ss:$8 sps:$4 sm:$0xff]   ;;  %v5895_v6 = vld [vmem:[%s6645_s4 + $0x2a4] ss:$8 sps:$4 sm:$0xff]  }
  0x8b   : > { %4454 = vmatprep.subr.bf16.mxu0 %v5814_v7  ;;  %v5898_v7 = vld [vmem:[%s6645_s4 + $0xba4] ss:$8 sps:$4 sm:$0xff]  }
  0x8d   : > { %4086 = vmatpush1.bf16.msra.mxu1 %v5809_v8  ;;  %v5893_v8 = vld [vmem:[%s6645_s4 + $0x2a0] ss:$8 sps:$4 sm:$0xff]  }
  0x8e   : > { %4455 = vmatpush1.bf16.msra.mxu0 %v5812_v9  ;;  %4087 = vmatprep.subr.bf16.mxu1 %v5817_v10  ;;  %v5896_v9 = vld [vmem:[%s6645_s4 + $0xba0] ss:$8 sps:$4 sm:$0xff]   ;;  %v5901_v10 = vld [vmem:[%s6645_s4 + $0x2b4] ss:$8 sps:$4 sm:$0xff]  }
  0x8f   : > { %4456 = vmatprep.subr.bf16.mxu0 %v5820_v11  ;;  %v5904_v11 = vld [vmem:[%s6645_s4 + $0xbb4] ss:$8 sps:$4 sm:$0xff]  }
  0x91   : > { %4088 = vmatpush1.bf16.msra.mxu1 %v5815_v12  ;;  %v5899_v12 = vld [vmem:[%s6645_s4 + $0x2b0] ss:$8 sps:$4 sm:$0xff]  }
  0x92   : > { %4457 = vmatpush1.bf16.msra.mxu0 %v5818_v13  ;;  %4089 = vmatprep.subr.bf16.mxu1 %v5823_v14  ;;  %v5902_v13 = vld [vmem:[%s6645_s4 + $0xbb0] ss:$8 sps:$4 sm:$0xff]   ;;  %v5907_v14 = vld [vmem:[%s6645_s4 + $0x2c4] ss:$8 sps:$4 sm:$0xff]  }
  0x93   : > { %4458 = vmatprep.subr.bf16.mxu0 %v5826_v15  ;;  %v5910_v15 = vld [vmem:[%s6645_s4 + $0xbc4] ss:$8 sps:$4 sm:$0xff]  }
  0x95   : > { %4090 = vmatpush1.bf16.msra.mxu1 %v5821_v16  ;;  %v5905_v16 = vld [vmem:[%s6645_s4 + $0x2c0] ss:$8 sps:$4 sm:$0xff]  }
  0x96   : > { %4459 = vmatpush1.bf16.msra.mxu0 %v5824_v18  ;;  %4091 = vmatprep.subr.bf16.mxu1 %v5829_v19  ;;  %v5908_v18 = vld [vmem:[%s6645_s4 + $0xbc0] ss:$8 sps:$4 sm:$0xff]   ;;  %v5913_v19 = vld [vmem:[%s6645_s4 + $0x2d4] ss:$8 sps:$4 sm:$0xff]  }
  0x97   : > { %4460 = vmatprep.subr.bf16.mxu0 %v5832_v20  ;;  %v5916_v20 = vld [vmem:[%s6645_s4 + $0xbd4] ss:$8 sps:$4 sm:$0xff]  }
  0x99   : > { %4092 = vmatpush1.bf16.msra.mxu1 %v5827_v22  ;;  %v5914_v22 = vld [vmem:[%s6645_s4 + $0xbd0] ss:$8 sps:$4 sm:$0xff]  }
  0x9a   : > { %4461 = vmatpush1.bf16.msra.mxu0 %v5830_v23  ;;  %4102 = vmatprep.subr.bf16.mxu1 %v5835_v24  ;;  %v5919_v23 = vld [vmem:[%s6645_s4 + $0x2e4] ss:$8 sps:$4 sm:$0xff]  }
  0x9b   : > { %4471 = vmatprep.subr.bf16.mxu0 %v5838_v25  ;;  %v5922_v24 = vld [vmem:[%s6645_s4 + $0xbe4] ss:$8 sps:$4 sm:$0xff]   ;;  %v5917_v25 = vld [vmem:[%s6645_s4 + $0x2e0] ss:$8 sps:$4 sm:$0xff]  }
  0x9c   : > { %4094 = vmatmul.mubr.bf16.vlgmr.msra.gmra.mrb[0].mxu1 %v6734_v17  ;;  %v5845_v17 = vld [vmem:[%s6645_s4 + $0x220] ss:$8 sps:$4 sm:$0xff]  }
  0x9d   : > { %4463 = vmatmul.mubr.bf16.vlgmr.msra.gmra.mrb[0].mxu0 %v6770_v48  ;;  %4103 = vmatpush1.bf16.msra.mxu1 %v5833_v27  ;;  %v5860_v48 = vld [vmem:[%s6645_s4 + $0xb40] ss:$8 sps:$4 sm:$0xff]  }
  0x9e   : > { %4472 = vmatpush1.bf16.msra.mxu0 %v5836_v28  ;;  %4104 = vmatprep.subr.bf16.mxu1 %v5841_v29  ;;  %v5920_v27 = vld [vmem:[%s6645_s4 + $0xbe0] ss:$8 sps:$4 sm:$0xff]   ;;  %v5925_v28 = vld [vmem:[%s6645_s4 + $0x2f4] ss:$8 sps:$4 sm:$0xff]  }
  0x9f   : > { %4473 = vmatprep.subr.bf16.mxu0 %v5844_v30  ;;  %4134 = vmatprep.mubr.bf16.mxu1 %v895_v37  ;;  %v5928_v29 = vld [vmem:[%s6645_s4 + $0xbf4] ss:$8 sps:$4 sm:$0xff]   ;;  %v5923_v30 = vld [vmem:[%s6645_s4 + $0x2f0] ss:$8 sps:$4 sm:$0xff]   ;;  %v5935_v37 = vld [vmem:[%s6645_s4 + $0xc04] ss:$8 sps:$4 sm:$0xff]  }
  0xa0   : > { %4503 = vmatprep.mubr.bf16.mxu0 %v964_v33  ;;  %v880_v33 = vcombine.high %v6821_v31, %v6821_v31  ;;  %v5929_v31 = vld [vmem:[%s6645_s4 + $0x300] ss:$8 sps:$4 sm:$0xff]  }
  0xa1   : > { %4105 = vmatpush1.bf16.msra.mxu1 %v5839_v34  ;;  %v6893_v34 = vld [vmem:[%s6638_s27 + $0x30] sm:$0xff] }
  0xa2   : > { %4474 = vmatpush1.bf16.msra.mxu0 %v5842_v35  ;;  %4106 = vmatprep.subr.bf16.mxu1 %v5847_v36  ;;  %v5926_v35 = vld [vmem:[%s6645_s4 + $0xbf0] ss:$8 sps:$4 sm:$0xff]   ;;  %v5931_v36 = vld [vmem:[%s6645_s4 + $0x304] ss:$8 sps:$4 sm:$0xff]  }
  0xa3   : > { %4475 = vmatprep.subr.bf16.mxu0 %v5850_v38  ;;  %v6899_v38 = vrot.slane %v880_v33, %v6705_v50  ;;  %v6011_v33 = vld [vmem:[%s6645_s4 + $0xcd0] ss:$8 sps:$4 sm:$0xff]  }
  0xa5   : > { %4107 = vmatpush1.bf16.msra.mxu1 %v5845_v17  ;;  %v6903_v17 = vrot.slane %v6893_v34, %v6705_v50 }
  0xa6   : > { %4476 = vmatpush1.bf16.msra.mxu0 %v5848_v39  ;;  %4108 = vmatprep.subr.bf16.mxu1 %v5853_v40  ;;  %v5933_v39 = vld [vmem:[%s6645_s4 + $0xc00] ss:$8 sps:$4 sm:$0xff]   ;;  %v5938_v40 = vld [vmem:[%s6645_s4 + $0x314] ss:$8 sps:$4 sm:$0xff]  }
  0xa7   : > { %4477 = vmatprep.subr.bf16.mxu0 %v5856_v41  ;;  %v5941_v41 = vld [vmem:[%s6645_s4 + $0xc14] ss:$8 sps:$4 sm:$0xff]  }
  0xa9   : > { %4109 = vmatpush1.bf16.msra.mxu1 %v5851_v42  ;;  %v896_v42 = vcombine.high %v6899_v38, %v6899_v38 }
  0xaa   : > { %4478 = vmatpush1.bf16.msra.mxu0 %v5854_v43  ;;  %4110 = vmatprep.subr.bf16.mxu1 %v5859_v45  ;;  %v980_v43 = vcombine.high %v6903_v17, %v6903_v17  ;;  %v5936_v45 = vld [vmem:[%s6645_s4 + $0x310] ss:$8 sps:$4 sm:$0xff]  }
  0xab   : > { %4479 = vmatprep.subr.bf16.mxu0 %v5862_v46  ;;  %v5939_v46 = vld [vmem:[%s6645_s4 + $0xc10] ss:$8 sps:$4 sm:$0xff]  }
  0xad   : > { %4111 = vmatpush1.bf16.msra.mxu1 %v5857_v47  ;;  %v5944_v47 = vld [vmem:[%s6645_s4 + $0x324] ss:$8 sps:$4 sm:$0xff]  }
  0xae   : > { %4480 = vmatpush1.bf16.msra.mxu0 %v5860_v48  ;;  %4112 = vmatprep.subr.bf16.mxu1 %v5865_v49  ;;  %v5947_v48 = vld [vmem:[%s6645_s4 + $0xc24] ss:$8 sps:$4 sm:$0xff]   ;;  %v5942_v49 = vld [vmem:[%s6645_s4 + $0x320] ss:$8 sps:$4 sm:$0xff]  }
  0xaf   : > { %4481 = vmatprep.subr.bf16.mxu0 %v5868_v51  ;;  %v5953_v51 = vld [vmem:[%s6645_s4 + $0xc34] ss:$8 sps:$4 sm:$0xff]  }
  0xb1   : > { %4113 = vmatpush1.bf16.msra.mxu1 %v5863_v52  ;;  %v5948_v52 = vld [vmem:[%s6645_s4 + $0x330] ss:$8 sps:$4 sm:$0xff]  }
  0xb2   : > { %4482 = vmatpush1.bf16.msra.mxu0 %v5866_v53  ;;  %4114 = vmatprep.subr.bf16.mxu1 %v5871_v54  ;;  %v5951_v53 = vld [vmem:[%s6645_s4 + $0xc30] ss:$8 sps:$4 sm:$0xff]   ;;  %v5956_v54 = vld [vmem:[%s6645_s4 + $0x344] ss:$8 sps:$4 sm:$0xff]  }
  0xb3   : > { %4483 = vmatprep.subr.bf16.mxu0 %v5874_v55  ;;  %v5959_v55 = vld [vmem:[%s6645_s4 + $0xc44] ss:$8 sps:$4 sm:$0xff]  }
  0xb5   : > { %4115 = vmatpush1.bf16.msra.mxu1 %v5869_v56  ;;  %v5954_v56 = vld [vmem:[%s6645_s4 + $0x340] ss:$8 sps:$4 sm:$0xff]  }
  0xb6   : > { %4484 = vmatpush1.bf16.msra.mxu0 %v5872_v57  ;;  %4116 = vmatprep.subr.bf16.mxu1 %v5877_v58  ;;  %v5957_v57 = vld [vmem:[%s6645_s4 + $0xc40] ss:$8 sps:$4 sm:$0xff]   ;;  %v5962_v58 = vld [vmem:[%s6645_s4 + $0x354] ss:$8 sps:$4 sm:$0xff]  }
  0xb7   : > { %4485 = vmatprep.subr.bf16.mxu0 %v5880_v59  ;;  %v5965_v59 = vld [vmem:[%s6645_s4 + $0xc54] ss:$8 sps:$4 sm:$0xff]  }
  0xb9   : > { %4117 = vmatpush1.bf16.msra.mxu1 %v5875_v60  ;;  %v5960_v60 = vld [vmem:[%s6645_s4 + $0x350] ss:$8 sps:$4 sm:$0xff]  }
  0xba   : > { %4486 = vmatpush1.bf16.msra.mxu0 %v5878_v61  ;;  %4118 = vmatprep.subr.bf16.mxu1 %v5883_v62  ;;  %v5963_v61 = vld [vmem:[%s6645_s4 + $0xc50] ss:$8 sps:$4 sm:$0xff]   ;;  %v5968_v62 = vld [vmem:[%s6645_s4 + $0x364] ss:$8 sps:$4 sm:$0xff]  }
  0xbb   : > { %4487 = vmatprep.subr.bf16.mxu0 %v5886_v63  ;;  %v5971_v63 = vld [vmem:[%s6645_s4 + $0xc64] ss:$8 sps:$4 sm:$0xff]  }
  0xbd   : > { %4119 = vmatpush1.bf16.msra.mxu1 %v5881_v0  ;;  %v5966_v0 = vld [vmem:[%s6645_s4 + $0x360] ss:$8 sps:$4 sm:$0xff]  }
  0xbe   : > { %4488 = vmatpush1.bf16.msra.mxu0 %v5884_v1  ;;  %4120 = vmatprep.subr.bf16.mxu1 %v5889_v2  ;;  %v5969_v1 = vld [vmem:[%s6645_s4 + $0xc60] ss:$8 sps:$4 sm:$0xff]   ;;  %v5974_v2 = vld [vmem:[%s6645_s4 + $0x374] ss:$8 sps:$4 sm:$0xff]  }
  0xbf   : > { %4489 = vmatprep.subr.bf16.mxu0 %v5892_v3  ;;  %v5977_v3 = vld [vmem:[%s6645_s4 + $0xc74] ss:$8 sps:$4 sm:$0xff]  }
  0xc1   : > { %4121 = vmatpush1.bf16.msra.mxu1 %v5887_v4  ;;  %v5972_v4 = vld [vmem:[%s6645_s4 + $0x370] ss:$8 sps:$4 sm:$0xff]  }
  0xc2   : > { %4490 = vmatpush1.bf16.msra.mxu0 %v5890_v5  ;;  %4122 = vmatprep.subr.bf16.mxu1 %v5895_v6  ;;  %v5975_v5 = vld [vmem:[%s6645_s4 + $0xc70] ss:$8 sps:$4 sm:$0xff]   ;;  %v5980_v6 = vld [vmem:[%s6645_s4 + $0x384] ss:$8 sps:$4 sm:$0xff]  }
  0xc3   : > { %4491 = vmatprep.subr.bf16.mxu0 %v5898_v7  ;;  %v5983_v7 = vld [vmem:[%s6645_s4 + $0xc84] ss:$8 sps:$4 sm:$0xff]  }
  0xc5   : > { %4123 = vmatpush1.bf16.msra.mxu1 %v5893_v8  ;;  %v5978_v8 = vld [vmem:[%s6645_s4 + $0x380] ss:$8 sps:$4 sm:$0xff]  }
  0xc6   : > { %4492 = vmatpush1.bf16.msra.mxu0 %v5896_v9  ;;  %4124 = vmatprep.subr.bf16.mxu1 %v5901_v10  ;;  %v5981_v9 = vld [vmem:[%s6645_s4 + $0xc80] ss:$8 sps:$4 sm:$0xff]   ;;  %v5986_v10 = vld [vmem:[%s6645_s4 + $0x394] ss:$8 sps:$4 sm:$0xff]  }
  0xc7   : > { %4493 = vmatprep.subr.bf16.mxu0 %v5904_v11  ;;  %v5989_v11 = vld [vmem:[%s6645_s4 + $0xc94] ss:$8 sps:$4 sm:$0xff]  }
  0xc9   : > { %4125 = vmatpush1.bf16.msra.mxu1 %v5899_v12  ;;  %v5984_v12 = vld [vmem:[%s6645_s4 + $0x390] ss:$8 sps:$4 sm:$0xff]  }
  0xca   : > { %4494 = vmatpush1.bf16.msra.mxu0 %v5902_v13  ;;  %4126 = vmatprep.subr.bf16.mxu1 %v5907_v14  ;;  %v5987_v13 = vld [vmem:[%s6645_s4 + $0xc90] ss:$8 sps:$4 sm:$0xff]   ;;  %v5992_v14 = vld [vmem:[%s6645_s4 + $0x3a4] ss:$8 sps:$4 sm:$0xff]  }
  0xcb   : > { %4495 = vmatprep.subr.bf16.mxu0 %v5910_v15  ;;  %v5995_v15 = vld [vmem:[%s6645_s4 + $0xca4] ss:$8 sps:$4 sm:$0xff]  }
  0xcd   : > { %4127 = vmatpush1.bf16.msra.mxu1 %v5905_v16  ;;  %v5990_v16 = vld [vmem:[%s6645_s4 + $0x3a0] ss:$8 sps:$4 sm:$0xff]  }
  0xce   : > { %4496 = vmatpush1.bf16.msra.mxu0 %v5908_v18  ;;  %4128 = vmatprep.subr.bf16.mxu1 %v5913_v19  ;;  %v5993_v18 = vld [vmem:[%s6645_s4 + $0xca0] ss:$8 sps:$4 sm:$0xff]   ;;  %v5998_v19 = vld [vmem:[%s6645_s4 + $0x3b4] ss:$8 sps:$4 sm:$0xff]  }
  0xcf   : > { %4497 = vmatprep.subr.bf16.mxu0 %v5916_v20  ;;  %v6001_v20 = vld [vmem:[%s6645_s4 + $0xcb4] ss:$8 sps:$4 sm:$0xff]  }
  0xd1   : > { %4129 = vmatpush1.bf16.msra.mxu1 %v5911_v21  ;;  %v5996_v21 = vld [vmem:[%s6645_s4 + $0x3b0] ss:$8 sps:$4 sm:$0xff]  }
  0xd2   : > { %4498 = vmatpush1.bf16.msra.mxu0 %v5914_v22  ;;  %4130 = vmatprep.subr.bf16.mxu1 %v5919_v23  ;;  %v5999_v22 = vld [vmem:[%s6645_s4 + $0xcb0] ss:$8 sps:$4 sm:$0xff]   ;;  %v6004_v23 = vld [vmem:[%s6645_s4 + $0x3c4] ss:$8 sps:$4 sm:$0xff]  }
  0xd3   : > { %4499 = vmatprep.subr.bf16.mxu0 %v5922_v24  ;;  %v6007_v24 = vld [vmem:[%s6645_s4 + $0xcc4] ss:$8 sps:$4 sm:$0xff]  }
  0xd5   : > { %4131 = vmatpush1.bf16.msra.mxu1 %v5917_v25  ;;  %v6002_v25 = vld [vmem:[%s6645_s4 + $0x3c0] ss:$8 sps:$4 sm:$0xff]  }
  0xd6   : > { %4500 = vmatpush1.bf16.msra.mxu0 %v5920_v27  ;;  %4132 = vmatprep.subr.bf16.mxu1 %v5925_v28  ;;  %v6005_v27 = vld [vmem:[%s6645_s4 + $0xcc0] ss:$8 sps:$4 sm:$0xff]   ;;  %v6010_v28 = vld [vmem:[%s6645_s4 + $0x3d4] ss:$8 sps:$4 sm:$0xff]  }
  0xd7   : > { %4501 = vmatprep.subr.bf16.mxu0 %v5928_v29  ;;  %v6013_v29 = vld [vmem:[%s6645_s4 + $0xcd4] ss:$8 sps:$4 sm:$0xff]  }
  0xd9   : > { %4133 = vmatpush1.bf16.msra.mxu1 %v5923_v30  ;;  %v6008_v30 = vld [vmem:[%s6645_s4 + $0x3d0] ss:$8 sps:$4 sm:$0xff]  }
  0xda   : > { %4502 = vmatpush1.bf16.msra.mxu0 %v5926_v35  ;;  %4143 = vmatprep.subr.bf16.mxu1 %v5931_v36  ;;  %v6016_v35 = vld [vmem:[%s6645_s4 + $0x3e4] ss:$8 sps:$4 sm:$0xff]  }
  0xdb   : > { %4512 = vmatprep.subr.bf16.mxu0 %v5935_v37  ;;  %v6019_v36 = vld [vmem:[%s6645_s4 + $0xce4] ss:$8 sps:$4 sm:$0xff]   ;;  %v6014_v37 = vld [vmem:[%s6645_s4 + $0x3e0] ss:$8 sps:$4 sm:$0xff]  }
  0xdc   : > { %4135 = vmatmul.mubr.bf16.vlgmr.msra.gmra.mrb[0].mxu1 %v6825_v32  ;;  %v5950_v32 = vld [vmem:[%s6645_s4 + $0x334] ss:$8 sps:$4 sm:$0xff]  }
  0xdd   : > { %4504 = vmatmul.mubr.bf16.vlgmr.msra.gmra.mrb[0].mxu0 %v6814_v26  ;;  %4144 = vmatpush1.bf16.msra.mxu1 %v5929_v31  ;;  %v5945_v26 = vld [vmem:[%s6645_s4 + $0xc20] ss:$8 sps:$4 sm:$0xff]  }
  0xde   : > { %4513 = vmatpush1.bf16.msra.mxu0 %v5933_v39  ;;  %4145 = vmatprep.subr.bf16.mxu1 %v5938_v40  ;;  %v6017_v31 = vld [vmem:[%s6645_s4 + $0xce0] ss:$8 sps:$4 sm:$0xff]   ;;  %v6022_v39 = vld [vmem:[%s6645_s4 + $0x3f4] ss:$8 sps:$4 sm:$0xff]  }
  0xdf   : > { %4514 = vmatprep.subr.bf16.mxu0 %v5941_v41  ;;  %4175 = vmatprep.mubr.bf16.mxu1 %v896_v42  ;;  %v6025_v40 = vld [vmem:[%s6645_s4 + $0xcf4] ss:$8 sps:$4 sm:$0xff]   ;;  %v965_v41 = vcombine.high %v6893_v34, %v6893_v34  ;;  %v6027_v34 = vld [vmem:[%s6645_s4 + $0x400] ss:$8 sps:$4 sm:$0xff]  }
  0xe0   : > { %4544 = vmatprep.mubr.bf16.mxu0 %v980_v43  ;;  %v6974_v42 = vld [vmem:[%s6638_s27 + $0x10] sm:$0xff] }
  0xe1   : > { %4146 = vmatpush1.bf16.msra.mxu1 %v5936_v45  ;;  %v6020_v43 = vld [vmem:[%s6645_s4 + $0x3f0] ss:$8 sps:$4 sm:$0xff]  }
  0xe2   : > { %4515 = vmatpush1.bf16.msra.mxu0 %v5939_v46  ;;  %4147 = vmatprep.subr.bf16.mxu1 %v5944_v47  ;;  %v6023_v45 = vld [vmem:[%s6645_s4 + $0xcf0] ss:$8 sps:$4 sm:$0xff]   ;;  %v6029_v46 = vld [vmem:[%s6645_s4 + $0x404] ss:$8 sps:$4 sm:$0xff]  }
  0xe3   : > { %4516 = vmatprep.subr.bf16.mxu0 %v5947_v48  ;;  %v6032_v47 = vld [vmem:[%s6645_s4 + $0xd04] ss:$8 sps:$4 sm:$0xff]   ;;  %v6982_v48 = vrot.slane %v6974_v42, %v6705_v50 }
  0xe5   : > { %4148 = vmatpush1.bf16.msra.mxu1 %v5942_v49  ;;  %v6985_v49 = vrot.slane %v965_v41, %v6705_v50  ;;  %v6105_v41 = vld [vmem:[%s6645_s4 + $0x4d0] ss:$8 sps:$4 sm:$0xff]  }
  0xe6   : > { %4517 = vmatpush1.bf16.msra.mxu0 %v5945_v26  ;;  %4149 = vmatprep.subr.bf16.mxu1 %v5950_v32  ;;  %v6030_v26 = vld [vmem:[%s6645_s4 + $0xd00] ss:$8 sps:$4 sm:$0xff]   ;;  %v6035_v32 = vld [vmem:[%s6645_s4 + $0x414] ss:$8 sps:$4 sm:$0xff]  }
  0xe7   : > { %4518 = vmatprep.subr.bf16.mxu0 %v5953_v51  ;;  %v6038_v51 = vld [vmem:[%s6645_s4 + $0xd14] ss:$8 sps:$4 sm:$0xff]  }
  0xe9   : > { %4150 = vmatpush1.bf16.msra.mxu1 %v5948_v52  ;;  %v912_v52 = vcombine.high %v6982_v48, %v6982_v48 }
  0xea   : > { %4519 = vmatpush1.bf16.msra.mxu0 %v5951_v53  ;;  %4151 = vmatprep.subr.bf16.mxu1 %v5956_v54  ;;  %v981_v53 = vcombine.high %v6985_v49, %v6985_v49  ;;  %v6033_v54 = vld [vmem:[%s6645_s4 + $0x410] ss:$8 sps:$4 sm:$0xff]  }
  0xeb   : > { %4520 = vmatprep.subr.bf16.mxu0 %v5959_v55  ;;  %v6036_v55 = vld [vmem:[%s6645_s4 + $0xd10] ss:$8 sps:$4 sm:$0xff]  }
  0xed   : > { %4152 = vmatpush1.bf16.msra.mxu1 %v5954_v56  ;;  %v6041_v56 = vld [vmem:[%s6645_s4 + $0x424] ss:$8 sps:$4 sm:$0xff]  }
  0xee   : > { %4521 = vmatpush1.bf16.msra.mxu0 %v5957_v57  ;;  %4153 = vmatprep.subr.bf16.mxu1 %v5962_v58  ;;  %v6044_v57 = vld [vmem:[%s6645_s4 + $0xd24] ss:$8 sps:$4 sm:$0xff]   ;;  %v6039_v58 = vld [vmem:[%s6645_s4 + $0x420] ss:$8 sps:$4 sm:$0xff]  }
  0xef   : > { %4522 = vmatprep.subr.bf16.mxu0 %v5965_v59  ;;  %v6050_v59 = vld [vmem:[%s6645_s4 + $0xd34] ss:$8 sps:$4 sm:$0xff]  }
  0xf1   : > { %4154 = vmatpush1.bf16.msra.mxu1 %v5960_v60  ;;  %v6045_v60 = vld [vmem:[%s6645_s4 + $0x430] ss:$8 sps:$4 sm:$0xff]  }
  0xf2   : > { %4523 = vmatpush1.bf16.msra.mxu0 %v5963_v61  ;;  %4155 = vmatprep.subr.bf16.mxu1 %v5968_v62  ;;  %v6048_v61 = vld [vmem:[%s6645_s4 + $0xd30] ss:$8 sps:$4 sm:$0xff]   ;;  %v6053_v62 = vld [vmem:[%s6645_s4 + $0x444] ss:$8 sps:$4 sm:$0xff]  }
  0xf3   : > { %4524 = vmatprep.subr.bf16.mxu0 %v5971_v63  ;;  %v6056_v63 = vld [vmem:[%s6645_s4 + $0xd44] ss:$8 sps:$4 sm:$0xff]  }
  0xf5   : > { %4156 = vmatpush1.bf16.msra.mxu1 %v5966_v0  ;;  %v6051_v0 = vld [vmem:[%s6645_s4 + $0x440] ss:$8 sps:$4 sm:$0xff]  }
  0xf6   : > { %4525 = vmatpush1.bf16.msra.mxu0 %v5969_v1  ;;  %4157 = vmatprep.subr.bf16.mxu1 %v5974_v2  ;;  %v6054_v1 = vld [vmem:[%s6645_s4 + $0xd40] ss:$8 sps:$4 sm:$0xff]   ;;  %v6059_v2 = vld [vmem:[%s6645_s4 + $0x454] ss:$8 sps:$4 sm:$0xff]  }
  0xf7   : > { %4526 = vmatprep.subr.bf16.mxu0 %v5977_v3  ;;  %v6062_v3 = vld [vmem:[%s6645_s4 + $0xd54] ss:$8 sps:$4 sm:$0xff]  }
  0xf9   : > { %4158 = vmatpush1.bf16.msra.mxu1 %v5972_v4  ;;  %v6057_v4 = vld [vmem:[%s6645_s4 + $0x450] ss:$8 sps:$4 sm:$0xff]  }
  0xfa   : > { %4527 = vmatpush1.bf16.msra.mxu0 %v5975_v5  ;;  %4159 = vmatprep.subr.bf16.mxu1 %v5980_v6  ;;  %v6060_v5 = vld [vmem:[%s6645_s4 + $0xd50] ss:$8 sps:$4 sm:$0xff]   ;;  %v6065_v6 = vld [vmem:[%s6645_s4 + $0x464] ss:$8 sps:$4 sm:$0xff]  }
  0xfb   : > { %4528 = vmatprep.subr.bf16.mxu0 %v5983_v7  ;;  %v6068_v7 = vld [vmem:[%s6645_s4 + $0xd64] ss:$8 sps:$4 sm:$0xff]  }
  0xfd   : > { %4160 = vmatpush1.bf16.msra.mxu1 %v5978_v8  ;;  %v6063_v8 = vld [vmem:[%s6645_s4 + $0x460] ss:$8 sps:$4 sm:$0xff]  }
  0xfe   : > { %4529 = vmatpush1.bf16.msra.mxu0 %v5981_v9  ;;  %4161 = vmatprep.subr.bf16.mxu1 %v5986_v10  ;;  %v6066_v9 = vld [vmem:[%s6645_s4 + $0xd60] ss:$8 sps:$4 sm:$0xff]   ;;  %v6071_v10 = vld [vmem:[%s6645_s4 + $0x474] ss:$8 sps:$4 sm:$0xff]  }
  0xff   : > { %4530 = vmatprep.subr.bf16.mxu0 %v5989_v11  ;;  %v6074_v11 = vld [vmem:[%s6645_s4 + $0xd74] ss:$8 sps:$4 sm:$0xff]  }
 0x101   : > { %4162 = vmatpush1.bf16.msra.mxu1 %v5984_v12  ;;  %v6069_v12 = vld [vmem:[%s6645_s4 + $0x470] ss:$8 sps:$4 sm:$0xff]  }
 0x102   : > { %4531 = vmatpush1.bf16.msra.mxu0 %v5987_v13  ;;  %4163 = vmatprep.subr.bf16.mxu1 %v5992_v14  ;;  %v6072_v13 = vld [vmem:[%s6645_s4 + $0xd70] ss:$8 sps:$4 sm:$0xff]   ;;  %v6077_v14 = vld [vmem:[%s6645_s4 + $0x484] ss:$8 sps:$4 sm:$0xff]  }
 0x103   : > { %4532 = vmatprep.subr.bf16.mxu0 %v5995_v15  ;;  %v6080_v15 = vld [vmem:[%s6645_s4 + $0xd84] ss:$8 sps:$4 sm:$0xff]  }
 0x105   : > { %4164 = vmatpush1.bf16.msra.mxu1 %v5990_v16  ;;  %v6075_v16 = vld [vmem:[%s6645_s4 + $0x480] ss:$8 sps:$4 sm:$0xff]  }
 0x106   : > { %4533 = vmatpush1.bf16.msra.mxu0 %v5993_v18  ;;  %4165 = vmatprep.subr.bf16.mxu1 %v5998_v19  ;;  %v6078_v18 = vld [vmem:[%s6645_s4 + $0xd80] ss:$8 sps:$4 sm:$0xff]   ;;  %v6083_v19 = vld [vmem:[%s6645_s4 + $0x494] ss:$8 sps:$4 sm:$0xff]  }
 0x107   : > { %4534 = vmatprep.subr.bf16.mxu0 %v6001_v20  ;;  %v6086_v20 = vld [vmem:[%s6645_s4 + $0xd94] ss:$8 sps:$4 sm:$0xff]  }
 0x109   : > { %4166 = vmatpush1.bf16.msra.mxu1 %v5996_v21  ;;  %v6081_v21 = vld [vmem:[%s6645_s4 + $0x490] ss:$8 sps:$4 sm:$0xff]  }
 0x10a   : > { %4535 = vmatpush1.bf16.msra.mxu0 %v5999_v22  ;;  %4167 = vmatprep.subr.bf16.mxu1 %v6004_v23  ;;  %v6084_v22 = vld [vmem:[%s6645_s4 + $0xd90] ss:$8 sps:$4 sm:$0xff]   ;;  %v6089_v23 = vld [vmem:[%s6645_s4 + $0x4a4] ss:$8 sps:$4 sm:$0xff]  }
 0x10b   : > { %4536 = vmatprep.subr.bf16.mxu0 %v6007_v24  ;;  %v6092_v24 = vld [vmem:[%s6645_s4 + $0xda4] ss:$8 sps:$4 sm:$0xff]  }
 0x10d   : > { %4168 = vmatpush1.bf16.msra.mxu1 %v6002_v25  ;;  %v6087_v25 = vld [vmem:[%s6645_s4 + $0x4a0] ss:$8 sps:$4 sm:$0xff]  }
 0x10e   : > { %4537 = vmatpush1.bf16.msra.mxu0 %v6005_v27  ;;  %4169 = vmatprep.subr.bf16.mxu1 %v6010_v28  ;;  %v6090_v27 = vld [vmem:[%s6645_s4 + $0xda0] ss:$8 sps:$4 sm:$0xff]   ;;  %v6095_v28 = vld [vmem:[%s6645_s4 + $0x4b4] ss:$8 sps:$4 sm:$0xff]  }
 0x10f   : > { %4538 = vmatprep.subr.bf16.mxu0 %v6013_v29  ;;  %v6098_v29 = vld [vmem:[%s6645_s4 + $0xdb4] ss:$8 sps:$4 sm:$0xff]  }
 0x111   : > { %4170 = vmatpush1.bf16.msra.mxu1 %v6008_v30  ;;  %v6093_v30 = vld [vmem:[%s6645_s4 + $0x4b0] ss:$8 sps:$4 sm:$0xff]  }
 0x112   : > { %4539 = vmatpush1.bf16.msra.mxu0 %v6011_v33  ;;  %4171 = vmatprep.subr.bf16.mxu1 %v6016_v35  ;;  %v6096_v33 = vld [vmem:[%s6645_s4 + $0xdb0] ss:$8 sps:$4 sm:$0xff]   ;;  %v6101_v35 = vld [vmem:[%s6645_s4 + $0x4c4] ss:$8 sps:$4 sm:$0xff]  }
 0x113   : > { %4540 = vmatprep.subr.bf16.mxu0 %v6019_v36  ;;  %v6104_v36 = vld [vmem:[%s6645_s4 + $0xdc4] ss:$8 sps:$4 sm:$0xff]  }
 0x115   : > { %4172 = vmatpush1.bf16.msra.mxu1 %v6014_v37  ;;  %v6099_v37 = vld [vmem:[%s6645_s4 + $0x4c0] ss:$8 sps:$4 sm:$0xff]  }
 0x116   : > { %4541 = vmatpush1.bf16.msra.mxu0 %v6017_v31  ;;  %4173 = vmatprep.subr.bf16.mxu1 %v6022_v39  ;;  %v6102_v31 = vld [vmem:[%s6645_s4 + $0xdc0] ss:$8 sps:$4 sm:$0xff]   ;;  %v6107_v39 = vld [vmem:[%s6645_s4 + $0x4d4] ss:$8 sps:$4 sm:$0xff]  }
 0x117   : > { %4542 = vmatprep.subr.bf16.mxu0 %v6025_v40  ;;  %v6110_v40 = vld [vmem:[%s6645_s4 + $0xdd4] ss:$8 sps:$4 sm:$0xff]  }
 0x119   : > { %4174 = vmatpush1.bf16.msra.mxu1 %v6020_v43  ;;  %v6108_v43 = vld [vmem:[%s6645_s4 + $0xdd0] ss:$8 sps:$4 sm:$0xff]  }
 0x11a   : > { %4543 = vmatpush1.bf16.msra.mxu0 %v6023_v45  ;;  %4184 = vmatprep.subr.bf16.mxu1 %v6029_v46  ;;  %v6113_v45 = vld [vmem:[%s6645_s4 + $0x4e4] ss:$8 sps:$4 sm:$0xff]  }
 0x11b   : > { %4553 = vmatprep.subr.bf16.mxu0 %v6032_v47  ;;  %v6116_v46 = vld [vmem:[%s6645_s4 + $0xde4] ss:$8 sps:$4 sm:$0xff]   ;;  %v6111_v47 = vld [vmem:[%s6645_s4 + $0x4e0] ss:$8 sps:$4 sm:$0xff]  }
 0x11c   : > { %4176 = vmatmul.mubr.bf16.vlgmr.msra.gmra.mrb[0].mxu1 %v6899_v38  ;;  %v6042_v38 = vld [vmem:[%s6645_s4 + $0xd20] ss:$8 sps:$4 sm:$0xff]  }
 0x11d   : > { %4545 = vmatmul.mubr.bf16.vlgmr.msra.gmra.mrb[0].mxu0 %v6903_v17  ;;  %4185 = vmatpush1.bf16.msra.mxu1 %v6027_v34  ;;  %v6047_v17 = vld [vmem:[%s6645_s4 + $0x434] ss:$8 sps:$4 sm:$0xff]   ;;  %v6114_v34 = vld [vmem:[%s6645_s4 + $0xde0] ss:$8 sps:$4 sm:$0xff]  }
 0x11e   : > { %4554 = vmatpush1.bf16.msra.mxu0 %v6030_v26  ;;  %4186 = vmatprep.subr.bf16.mxu1 %v6035_v32  ;;  %v6119_v26 = vld [vmem:[%s6645_s4 + $0x4f4] ss:$8 sps:$4 sm:$0xff]  }
 0x11f   : > { %4555 = vmatprep.subr.bf16.mxu0 %v6038_v51  ;;  %4216 = vmatprep.mubr.bf16.mxu1 %v912_v52  ;;  %v6122_v32 = vld [vmem:[%s6645_s4 + $0xdf4] ss:$8 sps:$4 sm:$0xff]   ;;  %v897_v52 = vcombine.high %v6974_v42, %v6974_v42  ;;  %v6123_v42 = vld [vmem:[%s6645_s4 + $0x500] ss:$8 sps:$4 sm:$0xff]  }
 0x120   : > { %4585 = vmatprep.mubr.bf16.mxu0 %v981_v53  ;;  %v7054_v51 = vld [vmem:[%s6638_s27 + $0x38] sm:$0xff] }
 0x121   : > { %4187 = vmatpush1.bf16.msra.mxu1 %v6033_v54  ;;  %v6117_v53 = vld [vmem:[%s6645_s4 + $0x4f0] ss:$8 sps:$4 sm:$0xff]  }
 0x122   : > { %4556 = vmatpush1.bf16.msra.mxu0 %v6036_v55  ;;  %4188 = vmatprep.subr.bf16.mxu1 %v6041_v56  ;;  %v6120_v54 = vld [vmem:[%s6645_s4 + $0xdf0] ss:$8 sps:$4 sm:$0xff]   ;;  %v6125_v55 = vld [vmem:[%s6645_s4 + $0x504] ss:$8 sps:$4 sm:$0xff]  }
 0x123   : > { %4557 = vmatprep.subr.bf16.mxu0 %v6044_v57  ;;  %v6129_v56 = vld [vmem:[%s6645_s4 + $0xe04] ss:$8 sps:$4 sm:$0xff]   ;;  %v7063_v57 = vrot.slane %v897_v52, %v6705_v50  ;;  %v6202_v52 = vld [vmem:[%s6645_s4 + $0x5d0] ss:$8 sps:$4 sm:$0xff]  }
 0x125   : > { %4189 = vmatpush1.bf16.msra.mxu1 %v6039_v58  ;;  %v7067_v58 = vrot.slane %v7054_v51, %v6705_v50 }
 0x126   : > { %4558 = vmatpush1.bf16.msra.mxu0 %v6042_v38  ;;  %4190 = vmatprep.subr.bf16.mxu1 %v6047_v17  ;;  %v6127_v38 = vld [vmem:[%s6645_s4 + $0xe00] ss:$8 sps:$4 sm:$0xff]   ;;  %v6132_v17 = vld [vmem:[%s6645_s4 + $0x514] ss:$8 sps:$4 sm:$0xff]  }
 0x127   : > { %4559 = vmatprep.subr.bf16.mxu0 %v6050_v59  ;;  %v6135_v59 = vld [vmem:[%s6645_s4 + $0xe14] ss:$8 sps:$4 sm:$0xff]  }
 0x129   : > { %4191 = vmatpush1.bf16.msra.mxu1 %v6045_v60  ;;  %v913_v60 = vcombine.high %v7063_v57, %v7063_v57 }
 0x12a   : > { %4560 = vmatpush1.bf16.msra.mxu0 %v6048_v61  ;;  %4192 = vmatprep.subr.bf16.mxu1 %v6053_v62  ;;  %v997_v61 = vcombine.high %v7067_v58, %v7067_v58  ;;  %v6130_v62 = vld [vmem:[%s6645_s4 + $0x510] ss:$8 sps:$4 sm:$0xff]  }
 0x12b   : > { %4561 = vmatprep.subr.bf16.mxu0 %v6056_v63  ;;  %v6133_v63 = vld [vmem:[%s6645_s4 + $0xe10] ss:$8 sps:$4 sm:$0xff]  }
 0x12d   : > { %4193 = vmatpush1.bf16.msra.mxu1 %v6051_v0  ;;  %v6138_v0 = vld [vmem:[%s6645_s4 + $0x524] ss:$8 sps:$4 sm:$0xff]  }
 0x12e   : > { %4562 = vmatpush1.bf16.msra.mxu0 %v6054_v1  ;;  %4194 = vmatprep.subr.bf16.mxu1 %v6059_v2  ;;  %v6141_v1 = vld [vmem:[%s6645_s4 + $0xe24] ss:$8 sps:$4 sm:$0xff]   ;;  %v6144_v2 = vld [vmem:[%s6645_s4 + $0x534] ss:$8 sps:$4 sm:$0xff]  }
 0x12f   : > { %4563 = vmatprep.subr.bf16.mxu0 %v6062_v3  ;;  %v6147_v3 = vld [vmem:[%s6645_s4 + $0xe34] ss:$8 sps:$4 sm:$0xff]  }
 0x131   : > { %4195 = vmatpush1.bf16.msra.mxu1 %v6057_v4  ;;  %v6142_v4 = vld [vmem:[%s6645_s4 + $0x530] ss:$8 sps:$4 sm:$0xff]  }
 0x132   : > { %4564 = vmatpush1.bf16.msra.mxu0 %v6060_v5  ;;  %4196 = vmatprep.subr.bf16.mxu1 %v6065_v6  ;;  %v6145_v5 = vld [vmem:[%s6645_s4 + $0xe30] ss:$8 sps:$4 sm:$0xff]   ;;  %v6150_v6 = vld [vmem:[%s6645_s4 + $0x544] ss:$8 sps:$4 sm:$0xff]  }
 0x133   : > { %4565 = vmatprep.subr.bf16.mxu0 %v6068_v7  ;;  %v6153_v7 = vld [vmem:[%s6645_s4 + $0xe44] ss:$8 sps:$4 sm:$0xff]  }
 0x135   : > { %4197 = vmatpush1.bf16.msra.mxu1 %v6063_v8  ;;  %v6148_v8 = vld [vmem:[%s6645_s4 + $0x540] ss:$8 sps:$4 sm:$0xff]  }
 0x136   : > { %4566 = vmatpush1.bf16.msra.mxu0 %v6066_v9  ;;  %4198 = vmatprep.subr.bf16.mxu1 %v6071_v10  ;;  %v6151_v9 = vld [vmem:[%s6645_s4 + $0xe40] ss:$8 sps:$4 sm:$0xff]   ;;  %v6156_v10 = vld [vmem:[%s6645_s4 + $0x554] ss:$8 sps:$4 sm:$0xff]  }
 0x137   : > { %4567 = vmatprep.subr.bf16.mxu0 %v6074_v11  ;;  %v6159_v11 = vld [vmem:[%s6645_s4 + $0xe54] ss:$8 sps:$4 sm:$0xff]  }
 0x139   : > { %4199 = vmatpush1.bf16.msra.mxu1 %v6069_v12  ;;  %v6154_v12 = vld [vmem:[%s6645_s4 + $0x550] ss:$8 sps:$4 sm:$0xff]  }
 0x13a   : > { %4568 = vmatpush1.bf16.msra.mxu0 %v6072_v13  ;;  %4200 = vmatprep.subr.bf16.mxu1 %v6077_v14  ;;  %v6157_v13 = vld [vmem:[%s6645_s4 + $0xe50] ss:$8 sps:$4 sm:$0xff]   ;;  %v6162_v14 = vld [vmem:[%s6645_s4 + $0x564] ss:$8 sps:$4 sm:$0xff]  }
 0x13b   : > { %4569 = vmatprep.subr.bf16.mxu0 %v6080_v15  ;;  %v6165_v15 = vld [vmem:[%s6645_s4 + $0xe64] ss:$8 sps:$4 sm:$0xff]  }
 0x13d   : > { %4201 = vmatpush1.bf16.msra.mxu1 %v6075_v16  ;;  %v6160_v16 = vld [vmem:[%s6645_s4 + $0x560] ss:$8 sps:$4 sm:$0xff]  }
 0x13e   : > { %4570 = vmatpush1.bf16.msra.mxu0 %v6078_v18  ;;  %4202 = vmatprep.subr.bf16.mxu1 %v6083_v19  ;;  %v6163_v18 = vld [vmem:[%s6645_s4 + $0xe60] ss:$8 sps:$4 sm:$0xff]   ;;  %v6168_v19 = vld [vmem:[%s6645_s4 + $0x574] ss:$8 sps:$4 sm:$0xff]  }
 0x13f   : > { %4571 = vmatprep.subr.bf16.mxu0 %v6086_v20  ;;  %v6171_v20 = vld [vmem:[%s6645_s4 + $0xe74] ss:$8 sps:$4 sm:$0xff]  }
 0x141   : > { %4203 = vmatpush1.bf16.msra.mxu1 %v6081_v21  ;;  %v6166_v21 = vld [vmem:[%s6645_s4 + $0x570] ss:$8 sps:$4 sm:$0xff]  }
 0x142   : > { %4572 = vmatpush1.bf16.msra.mxu0 %v6084_v22  ;;  %4204 = vmatprep.subr.bf16.mxu1 %v6089_v23  ;;  %v6169_v22 = vld [vmem:[%s6645_s4 + $0xe70] ss:$8 sps:$4 sm:$0xff]   ;;  %v6174_v23 = vld [vmem:[%s6645_s4 + $0x584] ss:$8 sps:$4 sm:$0xff]  }
 0x143   : > { %4573 = vmatprep.subr.bf16.mxu0 %v6092_v24  ;;  %v6177_v24 = vld [vmem:[%s6645_s4 + $0xe84] ss:$8 sps:$4 sm:$0xff]  }
 0x145   : > { %4205 = vmatpush1.bf16.msra.mxu1 %v6087_v25  ;;  %v6172_v25 = vld [vmem:[%s6645_s4 + $0x580] ss:$8 sps:$4 sm:$0xff]  }
 0x146   : > { %4574 = vmatpush1.bf16.msra.mxu0 %v6090_v27  ;;  %4206 = vmatprep.subr.bf16.mxu1 %v6095_v28  ;;  %v6175_v27 = vld [vmem:[%s6645_s4 + $0xe80] ss:$8 sps:$4 sm:$0xff]   ;;  %v6180_v28 = vld [vmem:[%s6645_s4 + $0x594] ss:$8 sps:$4 sm:$0xff]  }
 0x147   : > { %4575 = vmatprep.subr.bf16.mxu0 %v6098_v29  ;;  %v6183_v29 = vld [vmem:[%s6645_s4 + $0xe94] ss:$8 sps:$4 sm:$0xff]  }
 0x149   : > { %4207 = vmatpush1.bf16.msra.mxu1 %v6093_v30  ;;  %v6178_v30 = vld [vmem:[%s6645_s4 + $0x590] ss:$8 sps:$4 sm:$0xff]  }
 0x14a   : > { %4576 = vmatpush1.bf16.msra.mxu0 %v6096_v33  ;;  %4208 = vmatprep.subr.bf16.mxu1 %v6101_v35  ;;  %v6181_v33 = vld [vmem:[%s6645_s4 + $0xe90] ss:$8 sps:$4 sm:$0xff]   ;;  %v6186_v35 = vld [vmem:[%s6645_s4 + $0x5a4] ss:$8 sps:$4 sm:$0xff]  }
 0x14b   : > { %4577 = vmatprep.subr.bf16.mxu0 %v6104_v36  ;;  %v6189_v36 = vld [vmem:[%s6645_s4 + $0xea4] ss:$8 sps:$4 sm:$0xff]  }
 0x14d   : > { %4209 = vmatpush1.bf16.msra.mxu1 %v6099_v37  ;;  %v6184_v37 = vld [vmem:[%s6645_s4 + $0x5a0] ss:$8 sps:$4 sm:$0xff]  }
 0x14e   : > { %4578 = vmatpush1.bf16.msra.mxu0 %v6102_v31  ;;  %4210 = vmatprep.subr.bf16.mxu1 %v6107_v39  ;;  %v6187_v31 = vld [vmem:[%s6645_s4 + $0xea0] ss:$8 sps:$4 sm:$0xff]   ;;  %v6192_v39 = vld [vmem:[%s6645_s4 + $0x5b4] ss:$8 sps:$4 sm:$0xff]  }
 0x14f   : > { %4579 = vmatprep.subr.bf16.mxu0 %v6110_v40  ;;  %v6195_v40 = vld [vmem:[%s6645_s4 + $0xeb4] ss:$8 sps:$4 sm:$0xff]  }
 0x151   : > { %4211 = vmatpush1.bf16.msra.mxu1 %v6105_v41  ;;  %v6190_v41 = vld [vmem:[%s6645_s4 + $0x5b0] ss:$8 sps:$4 sm:$0xff]  }
 0x152   : > { %4580 = vmatpush1.bf16.msra.mxu0 %v6108_v43  ;;  %4212 = vmatprep.subr.bf16.mxu1 %v6113_v45  ;;  %v6193_v43 = vld [vmem:[%s6645_s4 + $0xeb0] ss:$8 sps:$4 sm:$0xff]   ;;  %v6198_v45 = vld [vmem:[%s6645_s4 + $0x5c4] ss:$8 sps:$4 sm:$0xff]  }
 0x153   : > { %4581 = vmatprep.subr.bf16.mxu0 %v6116_v46  ;;  %v6201_v46 = vld [vmem:[%s6645_s4 + $0xec4] ss:$8 sps:$4 sm:$0xff]  }
 0x155   : > { %4213 = vmatpush1.bf16.msra.mxu1 %v6111_v47  ;;  %v6196_v47 = vld [vmem:[%s6645_s4 + $0x5c0] ss:$8 sps:$4 sm:$0xff]  }
 0x156   : > { %4582 = vmatpush1.bf16.msra.mxu0 %v6114_v34  ;;  %4214 = vmatprep.subr.bf16.mxu1 %v6119_v26  ;;  %v6199_v34 = vld [vmem:[%s6645_s4 + $0xec0] ss:$8 sps:$4 sm:$0xff]   ;;  %v6204_v26 = vld [vmem:[%s6645_s4 + $0x5d4] ss:$8 sps:$4 sm:$0xff]  }
 0x157   : > { %4583 = vmatprep.subr.bf16.mxu0 %v6122_v32  ;;  %v6207_v32 = vld [vmem:[%s6645_s4 + $0xed4] ss:$8 sps:$4 sm:$0xff]  }
 0x159   : > { %4215 = vmatpush1.bf16.msra.mxu1 %v6117_v53  ;;  %v6205_v53 = vld [vmem:[%s6645_s4 + $0xed0] ss:$8 sps:$4 sm:$0xff]  }
 0x15a   : > { %4584 = vmatpush1.bf16.msra.mxu0 %v6120_v54  ;;  %4225 = vmatprep.subr.bf16.mxu1 %v6125_v55  ;;  %v6210_v54 = vld [vmem:[%s6645_s4 + $0x5e4] ss:$8 sps:$4 sm:$0xff]  }
 0x15b   : > { %4594 = vmatprep.subr.bf16.mxu0 %v6129_v56  ;;  %v6213_v55 = vld [vmem:[%s6645_s4 + $0xee4] ss:$8 sps:$4 sm:$0xff]   ;;  %v6208_v56 = vld [vmem:[%s6645_s4 + $0x5e0] ss:$8 sps:$4 sm:$0xff]  }
 0x15c   : > { %4217 = vmatmul.mubr.bf16.vlgmr.msra.gmra.mrb[0].mxu1 %v6982_v48  ;;  %v6136_v48 = vld [vmem:[%s6645_s4 + $0x520] ss:$8 sps:$4 sm:$0xff]  }
 0x15d   : > { %4586 = vmatmul.mubr.bf16.vlgmr.msra.gmra.mrb[0].mxu0 %v6985_v49  ;;  %4226 = vmatpush1.bf16.msra.mxu1 %v6123_v42  ;;  %v6139_v49 = vld [vmem:[%s6645_s4 + $0xe20] ss:$8 sps:$4 sm:$0xff]  }
 0x15e   : > { %4595 = vmatpush1.bf16.msra.mxu0 %v6127_v38  ;;  %4227 = vmatprep.subr.bf16.mxu1 %v6132_v17  ;;  %v6211_v42 = vld [vmem:[%s6645_s4 + $0xee0] ss:$8 sps:$4 sm:$0xff]   ;;  %v6216_v38 = vld [vmem:[%s6645_s4 + $0x5f4] ss:$8 sps:$4 sm:$0xff]  }
 0x15f   : > { %4596 = vmatprep.subr.bf16.mxu0 %v6135_v59  ;;  %4257 = vmatprep.mubr.bf16.mxu1 %v913_v60  ;;  %v6219_v17 = vld [vmem:[%s6645_s4 + $0xef4] ss:$8 sps:$4 sm:$0xff]   ;;  %v982_v59 = vcombine.high %v7054_v51, %v7054_v51  ;;  %v6221_v51 = vld [vmem:[%s6645_s4 + $0x600] ss:$8 sps:$4 sm:$0xff]  }
 0x160   : > { %4626 = vmatprep.mubr.bf16.mxu0 %v997_v61  ;;  %v7138_v60 = vld [vmem:[%s6638_s27 + $0x18] sm:$0xff] }
 0x161   : > { %4228 = vmatpush1.bf16.msra.mxu1 %v6130_v62  ;;  %v6214_v61 = vld [vmem:[%s6645_s4 + $0x5f0] ss:$8 sps:$4 sm:$0xff]  }
 0x162   : > { %4597 = vmatpush1.bf16.msra.mxu0 %v6133_v63  ;;  %4229 = vmatprep.subr.bf16.mxu1 %v6138_v0  ;;  %v6217_v62 = vld [vmem:[%s6645_s4 + $0xef0] ss:$8 sps:$4 sm:$0xff]   ;;  %v6223_v63 = vld [vmem:[%s6645_s4 + $0x604] ss:$8 sps:$4 sm:$0xff]  }
 0x163   : > { %4598 = vmatprep.subr.bf16.mxu0 %v6141_v1  ;;  %v6226_v0 = vld [vmem:[%s6645_s4 + $0xf04] ss:$8 sps:$4 sm:$0xff]   ;;  %v7146_v1 = vrot.slane %v7138_v60, %v6705_v50 }
 0x165   : > { %4230 = vmatpush1.bf16.msra.mxu1 %v6136_v48  ;;  %v7149_v48 = vrot.slane %v982_v59, %v6705_v50  ;;  %v6299_v59 = vld [vmem:[%s6645_s4 + $0x6d0] ss:$8 sps:$4 sm:$0xff]  }
 0x166   : > { %4599 = vmatpush1.bf16.msra.mxu0 %v6139_v49  ;;  %4231 = vmatprep.subr.bf16.mxu1 %v6144_v2  ;;  %v6224_v49 = vld [vmem:[%s6645_s4 + $0xf00] ss:$8 sps:$4 sm:$0xff]   ;;  %v6229_v2 = vld [vmem:[%s6645_s4 + $0x614] ss:$8 sps:$4 sm:$0xff]  }
 0x167   : > { %4600 = vmatprep.subr.bf16.mxu0 %v6147_v3  ;;  %v6232_v3 = vld [vmem:[%s6645_s4 + $0xf14] ss:$8 sps:$4 sm:$0xff]  }
 0x169   : > { %4232 = vmatpush1.bf16.msra.mxu1 %v6142_v4  ;;  %v929_v4 = vcombine.high %v7146_v1, %v7146_v1 }
 0x16a   : > { %4601 = vmatpush1.bf16.msra.mxu0 %v6145_v5  ;;  %4233 = vmatprep.subr.bf16.mxu1 %v6150_v6  ;;  %v998_v5 = vcombine.high %v7149_v48, %v7149_v48  ;;  %v6227_v6 = vld [vmem:[%s6645_s4 + $0x610] ss:$8 sps:$4 sm:$0xff]  }
 0x16b   : > { %4602 = vmatprep.subr.bf16.mxu0 %v6153_v7  ;;  %v6230_v7 = vld [vmem:[%s6645_s4 + $0xf10] ss:$8 sps:$4 sm:$0xff]  }
 0x16d   : > { %4234 = vmatpush1.bf16.msra.mxu1 %v6148_v8  ;;  %v6235_v8 = vld [vmem:[%s6645_s4 + $0x624] ss:$8 sps:$4 sm:$0xff]  }
 0x16e   : > { %4603 = vmatpush1.bf16.msra.mxu0 %v6151_v9  ;;  %4235 = vmatprep.subr.bf16.mxu1 %v6156_v10  ;;  %v6238_v9 = vld [vmem:[%s6645_s4 + $0xf24] ss:$8 sps:$4 sm:$0xff]   ;;  %v6241_v10 = vld [vmem:[%s6645_s4 + $0x634] ss:$8 sps:$4 sm:$0xff]  }
 0x16f   : > { %4604 = vmatprep.subr.bf16.mxu0 %v6159_v11  ;;  %v6244_v11 = vld [vmem:[%s6645_s4 + $0xf34] ss:$8 sps:$4 sm:$0xff]  }
 0x171   : > { %4236 = vmatpush1.bf16.msra.mxu1 %v6154_v12  ;;  %v6239_v12 = vld [vmem:[%s6645_s4 + $0x630] ss:$8 sps:$4 sm:$0xff]  }
 0x172   : > { %4605 = vmatpush1.bf16.msra.mxu0 %v6157_v13  ;;  %4237 = vmatprep.subr.bf16.mxu1 %v6162_v14  ;;  %v6242_v13 = vld [vmem:[%s6645_s4 + $0xf30] ss:$8 sps:$4 sm:$0xff]   ;;  %v6247_v14 = vld [vmem:[%s6645_s4 + $0x644] ss:$8 sps:$4 sm:$0xff]  }
 0x173   : > { %4606 = vmatprep.subr.bf16.mxu0 %v6165_v15  ;;  %v6250_v15 = vld [vmem:[%s6645_s4 + $0xf44] ss:$8 sps:$4 sm:$0xff]  }
 0x175   : > { %4238 = vmatpush1.bf16.msra.mxu1 %v6160_v16  ;;  %v6245_v16 = vld [vmem:[%s6645_s4 + $0x640] ss:$8 sps:$4 sm:$0xff]  }
 0x176   : > { %4607 = vmatpush1.bf16.msra.mxu0 %v6163_v18  ;;  %4239 = vmatprep.subr.bf16.mxu1 %v6168_v19  ;;  %v6248_v18 = vld [vmem:[%s6645_s4 + $0xf40] ss:$8 sps:$4 sm:$0xff]   ;;  %v6253_v19 = vld [vmem:[%s6645_s4 + $0x654] ss:$8 sps:$4 sm:$0xff]  }
 0x177   : > { %4608 = vmatprep.subr.bf16.mxu0 %v6171_v20  ;;  %v6256_v20 = vld [vmem:[%s6645_s4 + $0xf54] ss:$8 sps:$4 sm:$0xff]  }
 0x179   : > { %4240 = vmatpush1.bf16.msra.mxu1 %v6166_v21  ;;  %v6251_v21 = vld [vmem:[%s6645_s4 + $0x650] ss:$8 sps:$4 sm:$0xff]  }
 0x17a   : > { %4609 = vmatpush1.bf16.msra.mxu0 %v6169_v22  ;;  %4241 = vmatprep.subr.bf16.mxu1 %v6174_v23  ;;  %v6254_v22 = vld [vmem:[%s6645_s4 + $0xf50] ss:$8 sps:$4 sm:$0xff]   ;;  %v6259_v23 = vld [vmem:[%s6645_s4 + $0x664] ss:$8 sps:$4 sm:$0xff]  }
 0x17b   : > { %4610 = vmatprep.subr.bf16.mxu0 %v6177_v24  ;;  %v6262_v24 = vld [vmem:[%s6645_s4 + $0xf64] ss:$8 sps:$4 sm:$0xff]  }
 0x17d   : > { %4242 = vmatpush1.bf16.msra.mxu1 %v6172_v25  ;;  %v6257_v25 = vld [vmem:[%s6645_s4 + $0x660] ss:$8 sps:$4 sm:$0xff]  }
 0x17e   : > { %4611 = vmatpush1.bf16.msra.mxu0 %v6175_v27  ;;  %4243 = vmatprep.subr.bf16.mxu1 %v6180_v28  ;;  %v6260_v27 = vld [vmem:[%s6645_s4 + $0xf60] ss:$8 sps:$4 sm:$0xff]   ;;  %v6265_v28 = vld [vmem:[%s6645_s4 + $0x674] ss:$8 sps:$4 sm:$0xff]  }
 0x17f   : > { %4612 = vmatprep.subr.bf16.mxu0 %v6183_v29  ;;  %v6268_v29 = vld [vmem:[%s6645_s4 + $0xf74] ss:$8 sps:$4 sm:$0xff]  }
 0x181   : > { %4244 = vmatpush1.bf16.msra.mxu1 %v6178_v30  ;;  %v6263_v30 = vld [vmem:[%s6645_s4 + $0x670] ss:$8 sps:$4 sm:$0xff]  }
 0x182   : > { %4613 = vmatpush1.bf16.msra.mxu0 %v6181_v33  ;;  %4245 = vmatprep.subr.bf16.mxu1 %v6186_v35  ;;  %v6266_v33 = vld [vmem:[%s6645_s4 + $0xf70] ss:$8 sps:$4 sm:$0xff]   ;;  %v6271_v35 = vld [vmem:[%s6645_s4 + $0x684] ss:$8 sps:$4 sm:$0xff]  }
 0x183   : > { %4614 = vmatprep.subr.bf16.mxu0 %v6189_v36  ;;  %v6274_v36 = vld [vmem:[%s6645_s4 + $0xf84] ss:$8 sps:$4 sm:$0xff]  }
 0x185   : > { %4246 = vmatpush1.bf16.msra.mxu1 %v6184_v37  ;;  %v6269_v37 = vld [vmem:[%s6645_s4 + $0x680] ss:$8 sps:$4 sm:$0xff]  }
 0x186   : > { %4615 = vmatpush1.bf16.msra.mxu0 %v6187_v31  ;;  %4247 = vmatprep.subr.bf16.mxu1 %v6192_v39  ;;  %v6272_v31 = vld [vmem:[%s6645_s4 + $0xf80] ss:$8 sps:$4 sm:$0xff]   ;;  %v6277_v39 = vld [vmem:[%s6645_s4 + $0x694] ss:$8 sps:$4 sm:$0xff]  }
 0x187   : > { %4616 = vmatprep.subr.bf16.mxu0 %v6195_v40  ;;  %v6280_v40 = vld [vmem:[%s6645_s4 + $0xf94] ss:$8 sps:$4 sm:$0xff]  }
 0x189   : > { %4248 = vmatpush1.bf16.msra.mxu1 %v6190_v41  ;;  %v6275_v41 = vld [vmem:[%s6645_s4 + $0x690] ss:$8 sps:$4 sm:$0xff]  }
 0x18a   : > { %4617 = vmatpush1.bf16.msra.mxu0 %v6193_v43  ;;  %4249 = vmatprep.subr.bf16.mxu1 %v6198_v45  ;;  %v6278_v43 = vld [vmem:[%s6645_s4 + $0xf90] ss:$8 sps:$4 sm:$0xff]   ;;  %v6283_v45 = vld [vmem:[%s6645_s4 + $0x6a4] ss:$8 sps:$4 sm:$0xff]  }
 0x18b   : > { %4618 = vmatprep.subr.bf16.mxu0 %v6201_v46  ;;  %v6286_v46 = vld [vmem:[%s6645_s4 + $0xfa4] ss:$8 sps:$4 sm:$0xff]  }
 0x18d   : > { %4250 = vmatpush1.bf16.msra.mxu1 %v6196_v47  ;;  %v6281_v47 = vld [vmem:[%s6645_s4 + $0x6a0] ss:$8 sps:$4 sm:$0xff]  }
 0x18e   : > { %4619 = vmatpush1.bf16.msra.mxu0 %v6199_v34  ;;  %4251 = vmatprep.subr.bf16.mxu1 %v6204_v26  ;;  %v6284_v34 = vld [vmem:[%s6645_s4 + $0xfa0] ss:$8 sps:$4 sm:$0xff]   ;;  %v6289_v26 = vld [vmem:[%s6645_s4 + $0x6b4] ss:$8 sps:$4 sm:$0xff]  }
 0x18f   : > { %4620 = vmatprep.subr.bf16.mxu0 %v6207_v32  ;;  %v6292_v32 = vld [vmem:[%s6645_s4 + $0xfb4] ss:$8 sps:$4 sm:$0xff]  }
 0x191   : > { %4252 = vmatpush1.bf16.msra.mxu1 %v6202_v52  ;;  %v6287_v52 = vld [vmem:[%s6645_s4 + $0x6b0] ss:$8 sps:$4 sm:$0xff]  }
 0x192   : > { %4621 = vmatpush1.bf16.msra.mxu0 %v6205_v53  ;;  %4253 = vmatprep.subr.bf16.mxu1 %v6210_v54  ;;  %v6290_v53 = vld [vmem:[%s6645_s4 + $0xfb0] ss:$8 sps:$4 sm:$0xff]   ;;  %v6295_v54 = vld [vmem:[%s6645_s4 + $0x6c4] ss:$8 sps:$4 sm:$0xff]  }
 0x193   : > { %4622 = vmatprep.subr.bf16.mxu0 %v6213_v55  ;;  %v6298_v55 = vld [vmem:[%s6645_s4 + $0xfc4] ss:$8 sps:$4 sm:$0xff]  }
 0x195   : > { %4254 = vmatpush1.bf16.msra.mxu1 %v6208_v56  ;;  %v6293_v56 = vld [vmem:[%s6645_s4 + $0x6c0] ss:$8 sps:$4 sm:$0xff]  }
 0x196   : > { %4623 = vmatpush1.bf16.msra.mxu0 %v6211_v42  ;;  %4255 = vmatprep.subr.bf16.mxu1 %v6216_v38  ;;  %v6296_v42 = vld [vmem:[%s6645_s4 + $0xfc0] ss:$8 sps:$4 sm:$0xff]   ;;  %v6301_v38 = vld [vmem:[%s6645_s4 + $0x6d4] ss:$8 sps:$4 sm:$0xff]  }
 0x197   : > { %4624 = vmatprep.subr.bf16.mxu0 %v6219_v17  ;;  %v6304_v17 = vld [vmem:[%s6645_s4 + $0xfd4] ss:$8 sps:$4 sm:$0xff]  }
 0x199   : > { %4256 = vmatpush1.bf16.msra.mxu1 %v6214_v61  ;;  %v6302_v61 = vld [vmem:[%s6645_s4 + $0xfd0] ss:$8 sps:$4 sm:$0xff]  }
 0x19a   : > { %4625 = vmatpush1.bf16.msra.mxu0 %v6217_v62  ;;  %4266 = vmatprep.subr.bf16.mxu1 %v6223_v63  ;;  %v6307_v62 = vld [vmem:[%s6645_s4 + $0x6e4] ss:$8 sps:$4 sm:$0xff]  }
 0x19b   : > { %4635 = vmatprep.subr.bf16.mxu0 %v6226_v0  ;;  %v6310_v63 = vld [vmem:[%s6645_s4 + $0xfe4] ss:$8 sps:$4 sm:$0xff]   ;;  %v6305_v0 = vld [vmem:[%s6645_s4 + $0x6e0] ss:$8 sps:$4 sm:$0xff]  }
 0x19c   : > { %4258 = vmatmul.mubr.bf16.vlgmr.msra.gmra.mrb[0].mxu1 %v7063_v57  ;;  %v6233_v57 = vld [vmem:[%s6645_s4 + $0x620] ss:$8 sps:$4 sm:$0xff]  }
 0x19d   : > { %4627 = vmatmul.mubr.bf16.vlgmr.msra.gmra.mrb[0].mxu0 %v7067_v58  ;;  %4267 = vmatpush1.bf16.msra.mxu1 %v6221_v51  ;;  %v6236_v58 = vld [vmem:[%s6645_s4 + $0xf20] ss:$8 sps:$4 sm:$0xff]  }
 0x19e   : > { %4636 = vmatpush1.bf16.msra.mxu0 %v6224_v49  ;;  %4268 = vmatprep.subr.bf16.mxu1 %v6229_v2  ;;  %v6308_v51 = vld [vmem:[%s6645_s4 + $0xfe0] ss:$8 sps:$4 sm:$0xff]   ;;  %v6313_v49 = vld [vmem:[%s6645_s4 + $0x6f4] ss:$8 sps:$4 sm:$0xff]  }
 0x19f   : > { %4637 = vmatprep.subr.bf16.mxu0 %v6232_v3  ;;  %4298 = vmatprep.mubr.bf16.mxu1 %v929_v4  ;;  %v6316_v2 = vld [vmem:[%s6645_s4 + $0xff4] ss:$8 sps:$4 sm:$0xff]   ;;  %v914_v3 = vcombine.high %v7138_v60, %v7138_v60  ;;  %v7220_v4 = vld [vmem:[%s6638_s27 + $0x40] sm:$0xff] }
 0x1a0   : > { %4667 = vmatprep.mubr.bf16.mxu0 %v998_v5  ;;  %v6311_v5 = vld [vmem:[%s6645_s4 + $0x6f0] ss:$8 sps:$4 sm:$0xff]   ;;  %v6317_v60 = vld [vmem:[%s6645_s4 + $0x700] ss:$8 sps:$4 sm:$0xff]  }
 0x1a1   : > { %4269 = vmatpush1.bf16.msra.mxu1 %v6227_v6  ;;  %v6314_v6 = vld [vmem:[%s6645_s4 + $0xff0] ss:$8 sps:$4 sm:$0xff]  }
 0x1a2   : > { %4638 = vmatpush1.bf16.msra.mxu0 %v6230_v7  ;;  %4270 = vmatprep.subr.bf16.mxu1 %v6235_v8  ;;  %v6319_v7 = vld [vmem:[%s6645_s4 + $0x704] ss:$8 sps:$4 sm:$0xff]  }
 0x1a3   : > { %4639 = vmatprep.subr.bf16.mxu0 %v6238_v9  ;;  %v6323_v8 = vld [vmem:[%s6645_s4 + $0x1004] ss:$8 sps:$4 sm:$0xff]   ;;  %v7227_v9 = vrot.slane %v914_v3, %v6705_v50  ;;  %v6396_v3 = vld [vmem:[%s6645_s4 + $0x7d0] ss:$8 sps:$4 sm:$0xff]  }
 0x1a5   : > { %4271 = vmatpush1.bf16.msra.mxu1 %v6233_v57  ;;  %v7231_v57 = vrot.slane %v7220_v4, %v6705_v50 }
 0x1a6   : > { %4640 = vmatpush1.bf16.msra.mxu0 %v6236_v58  ;;  %4272 = vmatprep.subr.bf16.mxu1 %v6241_v10  ;;  %v6321_v58 = vld [vmem:[%s6645_s4 + $0x1000] ss:$8 sps:$4 sm:$0xff]   ;;  %v6326_v10 = vld [vmem:[%s6645_s4 + $0x714] ss:$8 sps:$4 sm:$0xff]  }
 0x1a7   : > { %4641 = vmatprep.subr.bf16.mxu0 %v6244_v11  ;;  %v6329_v11 = vld [vmem:[%s6645_s4 + $0x1014] ss:$8 sps:$4 sm:$0xff]  }
 0x1a9   : > { %4273 = vmatpush1.bf16.msra.mxu1 %v6239_v12  ;;  %v930_v12 = vcombine.high %v7227_v9, %v7227_v9 }
 0x1aa   : > { %4642 = vmatpush1.bf16.msra.mxu0 %v6242_v13  ;;  %4274 = vmatprep.subr.bf16.mxu1 %v6247_v14  ;;  %v1014_v13 = vcombine.high %v7231_v57, %v7231_v57  ;;  %v6324_v14 = vld [vmem:[%s6645_s4 + $0x710] ss:$8 sps:$4 sm:$0xff]  }
 0x1ab   : > { %4643 = vmatprep.subr.bf16.mxu0 %v6250_v15  ;;  %v6327_v15 = vld [vmem:[%s6645_s4 + $0x1010] ss:$8 sps:$4 sm:$0xff]  }
 0x1ad   : > { %4275 = vmatpush1.bf16.msra.mxu1 %v6245_v16  ;;  %v6332_v16 = vld [vmem:[%s6645_s4 + $0x724] ss:$8 sps:$4 sm:$0xff]  }
 0x1ae   : > { %4644 = vmatpush1.bf16.msra.mxu0 %v6248_v18  ;;  %4276 = vmatprep.subr.bf16.mxu1 %v6253_v19  ;;  %v6335_v18 = vld [vmem:[%s6645_s4 + $0x1024] ss:$8 sps:$4 sm:$0xff]   ;;  %v6338_v19 = vld [vmem:[%s6645_s4 + $0x734] ss:$8 sps:$4 sm:$0xff]  }
 0x1af   : > { %4645 = vmatprep.subr.bf16.mxu0 %v6256_v20  ;;  %v6341_v20 = vld [vmem:[%s6645_s4 + $0x1034] ss:$8 sps:$4 sm:$0xff]  }
 0x1b1   : > { %4277 = vmatpush1.bf16.msra.mxu1 %v6251_v21  ;;  %v6336_v21 = vld [vmem:[%s6645_s4 + $0x730] ss:$8 sps:$4 sm:$0xff]  }
 0x1b2   : > { %4646 = vmatpush1.bf16.msra.mxu0 %v6254_v22  ;;  %4278 = vmatprep.subr.bf16.mxu1 %v6259_v23  ;;  %v6339_v22 = vld [vmem:[%s6645_s4 + $0x1030] ss:$8 sps:$4 sm:$0xff]   ;;  %v6344_v23 = vld [vmem:[%s6645_s4 + $0x744] ss:$8 sps:$4 sm:$0xff]  }
 0x1b3   : > { %4647 = vmatprep.subr.bf16.mxu0 %v6262_v24  ;;  %v6347_v24 = vld [vmem:[%s6645_s4 + $0x1044] ss:$8 sps:$4 sm:$0xff]  }
 0x1b5   : > { %4279 = vmatpush1.bf16.msra.mxu1 %v6257_v25  ;;  %v6342_v25 = vld [vmem:[%s6645_s4 + $0x740] ss:$8 sps:$4 sm:$0xff]  }
 0x1b6   : > { %4648 = vmatpush1.bf16.msra.mxu0 %v6260_v27  ;;  %4280 = vmatprep.subr.bf16.mxu1 %v6265_v28  ;;  %v6345_v27 = vld [vmem:[%s6645_s4 + $0x1040] ss:$8 sps:$4 sm:$0xff]   ;;  %v6350_v28 = vld [vmem:[%s6645_s4 + $0x754] ss:$8 sps:$4 sm:$0xff]  }
 0x1b7   : > { %4649 = vmatprep.subr.bf16.mxu0 %v6268_v29  ;;  %v6353_v29 = vld [vmem:[%s6645_s4 + $0x1054] ss:$8 sps:$4 sm:$0xff]  }
 0x1b9   : > { %4281 = vmatpush1.bf16.msra.mxu1 %v6263_v30  ;;  %v6348_v30 = vld [vmem:[%s6645_s4 + $0x750] ss:$8 sps:$4 sm:$0xff]  }
 0x1ba   : > { %4650 = vmatpush1.bf16.msra.mxu0 %v6266_v33  ;;  %4282 = vmatprep.subr.bf16.mxu1 %v6271_v35  ;;  %v6351_v33 = vld [vmem:[%s6645_s4 + $0x1050] ss:$8 sps:$4 sm:$0xff]   ;;  %v6356_v35 = vld [vmem:[%s6645_s4 + $0x764] ss:$8 sps:$4 sm:$0xff]  }
 0x1bb   : > { %4651 = vmatprep.subr.bf16.mxu0 %v6274_v36  ;;  %v6359_v36 = vld [vmem:[%s6645_s4 + $0x1064] ss:$8 sps:$4 sm:$0xff]  }
 0x1bd   : > { %4283 = vmatpush1.bf16.msra.mxu1 %v6269_v37  ;;  %v6354_v37 = vld [vmem:[%s6645_s4 + $0x760] ss:$8 sps:$4 sm:$0xff]  }
 0x1be   : > { %4652 = vmatpush1.bf16.msra.mxu0 %v6272_v31  ;;  %4284 = vmatprep.subr.bf16.mxu1 %v6277_v39  ;;  %v6357_v31 = vld [vmem:[%s6645_s4 + $0x1060] ss:$8 sps:$4 sm:$0xff]   ;;  %v6362_v39 = vld [vmem:[%s6645_s4 + $0x774] ss:$8 sps:$4 sm:$0xff]  }
 0x1bf   : > { %4653 = vmatprep.subr.bf16.mxu0 %v6280_v40  ;;  %v6365_v40 = vld [vmem:[%s6645_s4 + $0x1074] ss:$8 sps:$4 sm:$0xff]  }
 0x1c1   : > { %4285 = vmatpush1.bf16.msra.mxu1 %v6275_v41  ;;  %v6360_v41 = vld [vmem:[%s6645_s4 + $0x770] ss:$8 sps:$4 sm:$0xff]  }
 0x1c2   : > { %4654 = vmatpush1.bf16.msra.mxu0 %v6278_v43  ;;  %4286 = vmatprep.subr.bf16.mxu1 %v6283_v45  ;;  %v6363_v43 = vld [vmem:[%s6645_s4 + $0x1070] ss:$8 sps:$4 sm:$0xff]   ;;  %v6368_v45 = vld [vmem:[%s6645_s4 + $0x784] ss:$8 sps:$4 sm:$0xff]  }
 0x1c3   : > { %4655 = vmatprep.subr.bf16.mxu0 %v6286_v46  ;;  %v6371_v46 = vld [vmem:[%s6645_s4 + $0x1084] ss:$8 sps:$4 sm:$0xff]  }
 0x1c5   : > { %4287 = vmatpush1.bf16.msra.mxu1 %v6281_v47  ;;  %v6366_v47 = vld [vmem:[%s6645_s4 + $0x780] ss:$8 sps:$4 sm:$0xff]  }
 0x1c6   : > { %4656 = vmatpush1.bf16.msra.mxu0 %v6284_v34  ;;  %4288 = vmatprep.subr.bf16.mxu1 %v6289_v26  ;;  %v6369_v34 = vld [vmem:[%s6645_s4 + $0x1080] ss:$8 sps:$4 sm:$0xff]   ;;  %v6374_v26 = vld [vmem:[%s6645_s4 + $0x794] ss:$8 sps:$4 sm:$0xff]  }
 0x1c7   : > { %4657 = vmatprep.subr.bf16.mxu0 %v6292_v32  ;;  %v6377_v32 = vld [vmem:[%s6645_s4 + $0x1094] ss:$8 sps:$4 sm:$0xff]  }
 0x1c9   : > { %4289 = vmatpush1.bf16.msra.mxu1 %v6287_v52  ;;  %v6372_v52 = vld [vmem:[%s6645_s4 + $0x790] ss:$8 sps:$4 sm:$0xff]  }
 0x1ca   : > { %4658 = vmatpush1.bf16.msra.mxu0 %v6290_v53  ;;  %4290 = vmatprep.subr.bf16.mxu1 %v6295_v54  ;;  %v6375_v53 = vld [vmem:[%s6645_s4 + $0x1090] ss:$8 sps:$4 sm:$0xff]   ;;  %v6380_v54 = vld [vmem:[%s6645_s4 + $0x7a4] ss:$8 sps:$4 sm:$0xff]  }
 0x1cb   : > { %4659 = vmatprep.subr.bf16.mxu0 %v6298_v55  ;;  %v6383_v55 = vld [vmem:[%s6645_s4 + $0x10a4] ss:$8 sps:$4 sm:$0xff]  }
 0x1cd   : > { %4291 = vmatpush1.bf16.msra.mxu1 %v6293_v56  ;;  %v6378_v56 = vld [vmem:[%s6645_s4 + $0x7a0] ss:$8 sps:$4 sm:$0xff]  }
 0x1ce   : > { %4660 = vmatpush1.bf16.msra.mxu0 %v6296_v42  ;;  %4292 = vmatprep.subr.bf16.mxu1 %v6301_v38  ;;  %v6381_v42 = vld [vmem:[%s6645_s4 + $0x10a0] ss:$8 sps:$4 sm:$0xff]   ;;  %v6386_v38 = vld [vmem:[%s6645_s4 + $0x7b4] ss:$8 sps:$4 sm:$0xff]  }
 0x1cf   : > { %4661 = vmatprep.subr.bf16.mxu0 %v6304_v17  ;;  %v6389_v17 = vld [vmem:[%s6645_s4 + $0x10b4] ss:$8 sps:$4 sm:$0xff]  }
 0x1d1   : > { %4293 = vmatpush1.bf16.msra.mxu1 %v6299_v59  ;;  %v6384_v59 = vld [vmem:[%s6645_s4 + $0x7b0] ss:$8 sps:$4 sm:$0xff]  }
 0x1d2   : > { %4662 = vmatpush1.bf16.msra.mxu0 %v6302_v61  ;;  %4294 = vmatprep.subr.bf16.mxu1 %v6307_v62  ;;  %v6387_v61 = vld [vmem:[%s6645_s4 + $0x10b0] ss:$8 sps:$4 sm:$0xff]   ;;  %v6392_v62 = vld [vmem:[%s6645_s4 + $0x7c4] ss:$8 sps:$4 sm:$0xff]  }
 0x1d3   : > { %4663 = vmatprep.subr.bf16.mxu0 %v6310_v63  ;;  %v6395_v63 = vld [vmem:[%s6645_s4 + $0x10c4] ss:$8 sps:$4 sm:$0xff]  }
 0x1d5   : > { %4295 = vmatpush1.bf16.msra.mxu1 %v6305_v0  ;;  %v6390_v0 = vld [vmem:[%s6645_s4 + $0x7c0] ss:$8 sps:$4 sm:$0xff]  }
 0x1d6   : > { %4664 = vmatpush1.bf16.msra.mxu0 %v6308_v51  ;;  %4296 = vmatprep.subr.bf16.mxu1 %v6313_v49  ;;  %v6393_v51 = vld [vmem:[%s6645_s4 + $0x10c0] ss:$8 sps:$4 sm:$0xff]   ;;  %v6398_v49 = vld [vmem:[%s6645_s4 + $0x7d4] ss:$8 sps:$4 sm:$0xff]  }
 0x1d7   : > { %4665 = vmatprep.subr.bf16.mxu0 %v6316_v2  ;;  %v6401_v2 = vld [vmem:[%s6645_s4 + $0x10d4] ss:$8 sps:$4 sm:$0xff]  }
 0x1d9   : > { %4297 = vmatpush1.bf16.msra.mxu1 %v6311_v5  ;;  %v6399_v5 = vld [vmem:[%s6645_s4 + $0x10d0] ss:$8 sps:$4 sm:$0xff]  }
 0x1da   : > { %4666 = vmatpush1.bf16.msra.mxu0 %v6314_v6  ;;  %4307 = vmatprep.subr.bf16.mxu1 %v6319_v7  ;;  %v6404_v6 = vld [vmem:[%s6645_s4 + $0x7e4] ss:$8 sps:$4 sm:$0xff]  }
 0x1db   : > { %4676 = vmatprep.subr.bf16.mxu0 %v6323_v8  ;;  %v6407_v7 = vld [vmem:[%s6645_s4 + $0x10e4] ss:$8 sps:$4 sm:$0xff]   ;;  %v6402_v8 = vld [vmem:[%s6645_s4 + $0x7e0] ss:$8 sps:$4 sm:$0xff]  }
 0x1dc   : > { %4299 = vmatmul.mubr.bf16.vlgmr.msra.gmra.mrb[0].mxu1 %v7146_v1  ;;  %v6330_v1 = vld [vmem:[%s6645_s4 + $0x720] ss:$8 sps:$4 sm:$0xff]  }
 0x1dd   : > { %4668 = vmatmul.mubr.bf16.vlgmr.msra.gmra.mrb[0].mxu0 %v7149_v48  ;;  %4308 = vmatpush1.bf16.msra.mxu1 %v6317_v60  ;;  %v6333_v48 = vld [vmem:[%s6645_s4 + $0x1020] ss:$8 sps:$4 sm:$0xff]  }
 0x1de   : > { %4677 = vmatpush1.bf16.msra.mxu0 %v6321_v58  ;;  %4309 = vmatprep.subr.bf16.mxu1 %v6326_v10  ;;  %v6405_v60 = vld [vmem:[%s6645_s4 + $0x10e0] ss:$8 sps:$4 sm:$0xff]   ;;  %v6410_v58 = vld [vmem:[%s6645_s4 + $0x7f4] ss:$8 sps:$4 sm:$0xff]  }
 0x1df   : > { %4678 = vmatprep.subr.bf16.mxu0 %v6329_v11  ;;  %4339 = vmatprep.mubr.bf16.mxu1 %v930_v12  ;;  %v6413_v10 = vld [vmem:[%s6645_s4 + $0x10f4] ss:$8 sps:$4 sm:$0xff]   ;;  %v999_v11 = vcombine.high %v7220_v4, %v7220_v4  ;;  %v6408_v12 = vld [vmem:[%s6645_s4 + $0x7f0] ss:$8 sps:$4 sm:$0xff]   ;;  %v6415_v4 = vld [vmem:[%s6645_s4 + $0x800] ss:$8 sps:$4 sm:$0xff]  }
 0x1e0   : > { %4708 = vmatprep.mubr.bf16.mxu0 %v1014_v13  ;;  %v6411_v13 = vld [vmem:[%s6645_s4 + $0x10f0] ss:$8 sps:$4 sm:$0xff]  }
 0x1e1   : > { %4310 = vmatpush1.bf16.msra.mxu1 %v6324_v14  ;;  %v6417_v14 = vld [vmem:[%s6645_s4 + $0x804] ss:$8 sps:$4 sm:$0xff]  }
 0x1e2   : > { %4679 = vmatpush1.bf16.msra.mxu0 %v6327_v15  ;;  %4311 = vmatprep.subr.bf16.mxu1 %v6332_v16  ;;  %v6420_v15 = vld [vmem:[%s6645_s4 + $0x1104] ss:$8 sps:$4 sm:$0xff]  }
 0x1e3   : > { %4680 = vmatprep.subr.bf16.mxu0 %v6335_v18  ;;  %v7306_v16 = vld.sshfl [vmem:[%s6638_s27 + $0x20] sm:$0xff pattern:$0x76325410]  ;;  %v7309_v18 = vrot.slane %v999_v11, %v6705_v50  ;;  %v6421_v50 = vld [vmem:[%s6645_s4 + $0x810] ss:$8 sps:$4 sm:$0xff]  }
 0x1e4   : > { %v6501_v11 = vld [vmem:[%s6645_s4 + $0x8e4] ss:$8 sps:$4 sm:$0xff]  }
 0x1e5   : > { %4312 = vmatpush1.bf16.msra.mxu1 %v6330_v1  ;;  %v6418_v1 = vld [vmem:[%s6645_s4 + $0x1100] ss:$8 sps:$4 sm:$0xff]  }
 0x1e6   : > { %4681 = vmatpush1.bf16.msra.mxu0 %v6333_v48  ;;  %4313 = vmatprep.subr.bf16.mxu1 %v6338_v19  ;;  %v6423_v48 = vld [vmem:[%s6645_s4 + $0x814] ss:$8 sps:$4 sm:$0xff]  }
 0x1e7   : > { %4682 = vmatprep.subr.bf16.mxu0 %v6341_v20  ;;  %v6426_v19 = vld [vmem:[%s6645_s4 + $0x1114] ss:$8 sps:$4 sm:$0xff]   ;;  %v946_v20 = vcombine.high %v7306_v16, %v7306_v16 }
 0x1e9   : > { %4314 = vmatpush1.bf16.msra.mxu1 %v6336_v21  ;;  %v1015_v21 = vcombine.high %v7309_v18, %v7309_v18 }
 0x1ea   : > { %4683 = vmatpush1.bf16.msra.mxu0 %v6339_v22  ;;  %4315 = vmatprep.subr.bf16.mxu1 %v6344_v23  ;;  %v6424_v22 = vld [vmem:[%s6645_s4 + $0x1110] ss:$8 sps:$4 sm:$0xff]   ;;  %v6429_v23 = vld [vmem:[%s6645_s4 + $0x824] ss:$8 sps:$4 sm:$0xff]  }
 0x1eb   : > { %4684 = vmatprep.subr.bf16.mxu0 %v6347_v24  ;;  %v6432_v24 = vld [vmem:[%s6645_s4 + $0x1124] ss:$8 sps:$4 sm:$0xff]  }
 0x1ed   : > { %4316 = vmatpush1.bf16.msra.mxu1 %v6342_v25  ;;  %v6435_v25 = vld [vmem:[%s6645_s4 + $0x834] ss:$8 sps:$4 sm:$0xff]  }
 0x1ee   : > { %4685 = vmatpush1.bf16.msra.mxu0 %v6345_v27  ;;  %4317 = vmatprep.subr.bf16.mxu1 %v6350_v28  ;;  %v6438_v27 = vld [vmem:[%s6645_s4 + $0x1134] ss:$8 sps:$4 sm:$0xff]   ;;  %v6433_v28 = vld [vmem:[%s6645_s4 + $0x830] ss:$8 sps:$4 sm:$0xff]  }
 0x1ef   : > { %4686 = vmatprep.subr.bf16.mxu0 %v6353_v29  ;;  %v6436_v29 = vld [vmem:[%s6645_s4 + $0x1130] ss:$8 sps:$4 sm:$0xff]  }
 0x1f1   : > { %4318 = vmatpush1.bf16.msra.mxu1 %v6348_v30  ;;  %v6441_v30 = vld [vmem:[%s6645_s4 + $0x844] ss:$8 sps:$4 sm:$0xff]  }
 0x1f2   : > { %4687 = vmatpush1.bf16.msra.mxu0 %v6351_v33  ;;  %4319 = vmatprep.subr.bf16.mxu1 %v6356_v35  ;;  %v6444_v33 = vld [vmem:[%s6645_s4 + $0x1144] ss:$8 sps:$4 sm:$0xff]   ;;  %v6439_v35 = vld [vmem:[%s6645_s4 + $0x840] ss:$8 sps:$4 sm:$0xff]  }
 0x1f3   : > { %4688 = vmatprep.subr.bf16.mxu0 %v6359_v36  ;;  %v6442_v36 = vld [vmem:[%s6645_s4 + $0x1140] ss:$8 sps:$4 sm:$0xff]  }
 0x1f5   : > { %4320 = vmatpush1.bf16.msra.mxu1 %v6354_v37  ;;  %v6447_v37 = vld [vmem:[%s6645_s4 + $0x854] ss:$8 sps:$4 sm:$0xff]  }
 0x1f6   : > { %4689 = vmatpush1.bf16.msra.mxu0 %v6357_v31  ;;  %4321 = vmatprep.subr.bf16.mxu1 %v6362_v39  ;;  %v6450_v31 = vld [vmem:[%s6645_s4 + $0x1154] ss:$8 sps:$4 sm:$0xff]   ;;  %v6445_v39 = vld [vmem:[%s6645_s4 + $0x850] ss:$8 sps:$4 sm:$0xff]  }
 0x1f7   : > { %4690 = vmatprep.subr.bf16.mxu0 %v6365_v40  ;;  %v6448_v40 = vld [vmem:[%s6645_s4 + $0x1150] ss:$8 sps:$4 sm:$0xff]  }
 0x1f9   : > { %4322 = vmatpush1.bf16.msra.mxu1 %v6360_v41  ;;  %v6453_v41 = vld [vmem:[%s6645_s4 + $0x864] ss:$8 sps:$4 sm:$0xff]  }
 0x1fa   : > { %4691 = vmatpush1.bf16.msra.mxu0 %v6363_v43  ;;  %4323 = vmatprep.subr.bf16.mxu1 %v6368_v45  ;;  %v6456_v43 = vld [vmem:[%s6645_s4 + $0x1164] ss:$8 sps:$4 sm:$0xff]   ;;  %v6451_v45 = vld [vmem:[%s6645_s4 + $0x860] ss:$8 sps:$4 sm:$0xff]  }
 0x1fb   : > { %4692 = vmatprep.subr.bf16.mxu0 %v6371_v46  ;;  %v6454_v46 = vld [vmem:[%s6645_s4 + $0x1160] ss:$8 sps:$4 sm:$0xff]  }
 0x1fd   : > { %4324 = vmatpush1.bf16.msra.mxu1 %v6366_v47  ;;  %v6459_v47 = vld [vmem:[%s6645_s4 + $0x874] ss:$8 sps:$4 sm:$0xff]  }
 0x1fe   : > { %4693 = vmatpush1.bf16.msra.mxu0 %v6369_v34  ;;  %4325 = vmatprep.subr.bf16.mxu1 %v6374_v26  ;;  %v6462_v34 = vld [vmem:[%s6645_s4 + $0x1174] ss:$8 sps:$4 sm:$0xff]   ;;  %v6457_v26 = vld [vmem:[%s6645_s4 + $0x870] ss:$8 sps:$4 sm:$0xff]  }
 0x1ff   : > { %4694 = vmatprep.subr.bf16.mxu0 %v6377_v32  ;;  %v6460_v32 = vld [vmem:[%s6645_s4 + $0x1170] ss:$8 sps:$4 sm:$0xff]  }
 0x201   : > { %4326 = vmatpush1.bf16.msra.mxu1 %v6372_v52  ;;  %v6465_v52 = vld [vmem:[%s6645_s4 + $0x884] ss:$8 sps:$4 sm:$0xff]  }
 0x202   : > { %4695 = vmatpush1.bf16.msra.mxu0 %v6375_v53  ;;  %4327 = vmatprep.subr.bf16.mxu1 %v6380_v54  ;;  %v6468_v53 = vld [vmem:[%s6645_s4 + $0x1184] ss:$8 sps:$4 sm:$0xff]   ;;  %v6463_v54 = vld [vmem:[%s6645_s4 + $0x880] ss:$8 sps:$4 sm:$0xff]  }
 0x203   : > { %4696 = vmatprep.subr.bf16.mxu0 %v6383_v55  ;;  %v6466_v55 = vld [vmem:[%s6645_s4 + $0x1180] ss:$8 sps:$4 sm:$0xff]  }
 0x205   : > { %4328 = vmatpush1.bf16.msra.mxu1 %v6378_v56  ;;  %v6471_v56 = vld [vmem:[%s6645_s4 + $0x894] ss:$8 sps:$4 sm:$0xff]  }
 0x206   : > { %4697 = vmatpush1.bf16.msra.mxu0 %v6381_v42  ;;  %4329 = vmatprep.subr.bf16.mxu1 %v6386_v38  ;;  %v6474_v42 = vld [vmem:[%s6645_s4 + $0x1194] ss:$8 sps:$4 sm:$0xff]   ;;  %v6469_v38 = vld [vmem:[%s6645_s4 + $0x890] ss:$8 sps:$4 sm:$0xff]  }
 0x207   : > { %4698 = vmatprep.subr.bf16.mxu0 %v6389_v17  ;;  %v6472_v17 = vld [vmem:[%s6645_s4 + $0x1190] ss:$8 sps:$4 sm:$0xff]  }
 0x209   : > { %4330 = vmatpush1.bf16.msra.mxu1 %v6384_v59  ;;  %v6477_v59 = vld [vmem:[%s6645_s4 + $0x8a4] ss:$8 sps:$4 sm:$0xff]  }
 0x20a   : > { %4699 = vmatpush1.bf16.msra.mxu0 %v6387_v61  ;;  %4331 = vmatprep.subr.bf16.mxu1 %v6392_v62  ;;  %v6480_v61 = vld [vmem:[%s6645_s4 + $0x11a4] ss:$8 sps:$4 sm:$0xff]   ;;  %v6475_v62 = vld [vmem:[%s6645_s4 + $0x8a0] ss:$8 sps:$4 sm:$0xff]  }
 0x20b   : > { %4700 = vmatprep.subr.bf16.mxu0 %v6395_v63  ;;  %v6478_v63 = vld [vmem:[%s6645_s4 + $0x11a0] ss:$8 sps:$4 sm:$0xff]  }
 0x20d   : > { %4332 = vmatpush1.bf16.msra.mxu1 %v6390_v0  ;;  %v6483_v0 = vld [vmem:[%s6645_s4 + $0x8b4] ss:$8 sps:$4 sm:$0xff]  }
 0x20e   : > { %4701 = vmatpush1.bf16.msra.mxu0 %v6393_v51  ;;  %4333 = vmatprep.subr.bf16.mxu1 %v6398_v49  ;;  %v6486_v51 = vld [vmem:[%s6645_s4 + $0x11b4] ss:$8 sps:$4 sm:$0xff]   ;;  %v6481_v49 = vld [vmem:[%s6645_s4 + $0x8b0] ss:$8 sps:$4 sm:$0xff]  }
 0x20f   : > { %4702 = vmatprep.subr.bf16.mxu0 %v6401_v2  ;;  %v6484_v2 = vld [vmem:[%s6645_s4 + $0x11b0] ss:$8 sps:$4 sm:$0xff]  }
 0x211   : > { %4334 = vmatpush1.bf16.msra.mxu1 %v6396_v3  ;;  %v6489_v3 = vld [vmem:[%s6645_s4 + $0x8c4] ss:$8 sps:$4 sm:$0xff]  }
 0x212   : > { %4703 = vmatpush1.bf16.msra.mxu0 %v6399_v5  ;;  %4335 = vmatprep.subr.bf16.mxu1 %v6404_v6  ;;  %v6492_v5 = vld [vmem:[%s6645_s4 + $0x11c4] ss:$8 sps:$4 sm:$0xff]   ;;  %v6487_v6 = vld [vmem:[%s6645_s4 + $0x8c0] ss:$8 sps:$4 sm:$0xff]  }
 0x213   : > { %4704 = vmatprep.subr.bf16.mxu0 %v6407_v7  ;;  %v6490_v7 = vld [vmem:[%s6645_s4 + $0x11c0] ss:$8 sps:$4 sm:$0xff]  }
 0x215   : > { %4336 = vmatpush1.bf16.msra.mxu1 %v6402_v8  ;;  %v6495_v8 = vld [vmem:[%s6645_s4 + $0x8d4] ss:$8 sps:$4 sm:$0xff]  }
 0x216   : > { %4705 = vmatpush1.bf16.msra.mxu0 %v6405_v60  ;;  %4337 = vmatprep.subr.bf16.mxu1 %v6410_v58  ;;  %v6498_v60 = vld [vmem:[%s6645_s4 + $0x11d4] ss:$8 sps:$4 sm:$0xff]   ;;  %v6493_v58 = vld [vmem:[%s6645_s4 + $0x8d0] ss:$8 sps:$4 sm:$0xff]  }
 0x217   : > { %4706 = vmatprep.subr.bf16.mxu0 %v6413_v10  ;;  %v6496_v10 = vld [vmem:[%s6645_s4 + $0x11d0] ss:$8 sps:$4 sm:$0xff]  }
 0x219   : > { %4338 = vmatpush1.bf16.msra.mxu1 %v6408_v12  ;;  %v6504_v12 = vld [vmem:[%s6645_s4 + $0x11e4] ss:$8 sps:$4 sm:$0xff]  }
 0x21a   : > { %4707 = vmatpush1.bf16.msra.mxu0 %v6411_v13  ;;  %4348 = vmatprep.subr.bf16.mxu1 %v6417_v14  ;;  %v6499_v13 = vld [vmem:[%s6645_s4 + $0x8e0] ss:$8 sps:$4 sm:$0xff]  }
 0x21b   : > { %4717 = vmatprep.subr.bf16.mxu0 %v6420_v15  ;;  %v6502_v14 = vld [vmem:[%s6645_s4 + $0x11e0] ss:$8 sps:$4 sm:$0xff]   ;;  %v6507_v15 = vld [vmem:[%s6645_s4 + $0x8f4] ss:$8 sps:$4 sm:$0xff]  }
 0x21c   : > { %4340 = vmatmul.mubr.bf16.vlgmr.msra.gmra.mrb[0].mxu1 %v7227_v9  ;;  %v6427_v9 = vld [vmem:[%s6645_s4 + $0x820] ss:$8 sps:$4 sm:$0xff]  }
 0x21d   : > { %4709 = vmatmul.mubr.bf16.vlgmr.msra.gmra.mrb[0].mxu0 %v7231_v57  ;;  %4349 = vmatpush1.bf16.msra.mxu1 %v6415_v4  ;;  %v6430_v57 = vld [vmem:[%s6645_s4 + $0x1120] ss:$8 sps:$4 sm:$0xff]   ;;  %v6510_v4 = vld [vmem:[%s6645_s4 + $0x11f4] ss:$8 sps:$4 sm:$0xff]  }
 0x21e   : > { %4718 = vmatpush1.bf16.msra.mxu0 %v6418_v1  ;;  %4350 = vmatprep.subr.bf16.mxu1 %v6423_v48  ;;  %v6505_v1 = vld [vmem:[%s6645_s4 + $0x8f0] ss:$8 sps:$4 sm:$0xff]  }
 0x21f   : > { %4719 = vmatprep.subr.bf16.mxu0 %v6426_v19  ;;  %4380 = vmatprep.mubr.bf16.mxu1 %v946_v20  ;;  %v6508_v48 = vld [vmem:[%s6645_s4 + $0x11f0] ss:$8 sps:$4 sm:$0xff]   ;;  %v6514_v19 = vld [vmem:[%s6645_s4 + $0x1204] ss:$8 sps:$4 sm:$0xff]   ;;  %v6512_v20 = vld [vmem:[%s6645_s4 + $0x1200] ss:$8 sps:$4 sm:$0xff]  }
 0x220   : > { %4749 = vmatprep.mubr.bf16.mxu0 %v1015_v21  ;;  %v6517_v21 = vld [vmem:[%s6645_s4 + $0x1214] ss:$8 sps:$4 sm:$0xff]  }
 0x221   : > { %4351 = vmatpush1.bf16.msra.mxu1 %v6421_v50  ;;  %v6515_v50 = vld [vmem:[%s6645_s4 + $0x1210] ss:$8 sps:$4 sm:$0xff]  }
 0x222   : > { %4720 = vmatpush1.bf16.msra.mxu0 %v6424_v22  ;;  %4352 = vmatprep.subr.bf16.mxu1 %v6429_v23  ;;  %v6580_v22 = vmov 0   ;;  %v6520_v23 = vld [vmem:[%s6645_s4 + $0x1224] ss:$8 sps:$4 sm:$0xff]  }
 0x223   : > { %4721 = vmatprep.subr.bf16.mxu0 %v6432_v24  ;;  %v6518_v24 = vld [vmem:[%s6645_s4 + $0x1220] ss:$8 sps:$4 sm:$0xff]  }
 0x225   : > { %4353 = vmatpush1.bf16.msra.mxu1 %v6427_v9  ;;  %v6523_v9 = vld [vmem:[%s6645_s4 + $0x1234] ss:$8 sps:$4 sm:$0xff]  }
 0x226   : > { %4722 = vmatpush1.bf16.msra.mxu0 %v6430_v57  ;;  %4354 = vmatprep.subr.bf16.mxu1 %v6435_v25  ;;  %v6524_v57 = vld [vmem:[%s6645_s4 + $0x1240] ss:$8 sps:$4 sm:$0xff]   ;;  %v6529_v25 = vld [vmem:[%s6645_s4 + $0x1254] ss:$8 sps:$4 sm:$0xff]  }
 0x227   : > { %4723 = vmatprep.subr.bf16.mxu0 %v6438_v27  ;;  %v6527_v27 = vld [vmem:[%s6645_s4 + $0x1250] ss:$8 sps:$4 sm:$0xff]  }
 0x229   : > { %4355 = vmatpush1.bf16.msra.mxu1 %v6433_v28  ;;  %v6532_v28 = vld [vmem:[%s6645_s4 + $0x1264] ss:$8 sps:$4 sm:$0xff]  }
 0x22a   : > { %4724 = vmatpush1.bf16.msra.mxu0 %v6436_v29  ;;  %4356 = vmatprep.subr.bf16.mxu1 %v6441_v30  ;;  %v6530_v29 = vld [vmem:[%s6645_s4 + $0x1260] ss:$8 sps:$4 sm:$0xff]   ;;  %v6535_v30 = vld [vmem:[%s6645_s4 + $0x1274] ss:$8 sps:$4 sm:$0xff]  }
 0x22b   : > { %4725 = vmatprep.subr.bf16.mxu0 %v6444_v33  ;;  %v6533_v33 = vld [vmem:[%s6645_s4 + $0x1270] ss:$8 sps:$4 sm:$0xff]  }
 0x22d   : > { %4357 = vmatpush1.bf16.msra.mxu1 %v6439_v35  ;;  %v4929_v35 = vld.sshfl [vmem:[%s6638_s27 + $0x48] sm:$0x3 pattern:$0x76325410] }
 0x22e   : > { %4726 = vmatpush1.bf16.msra.mxu0 %v6442_v36  ;;  %4358 = vmatprep.subr.bf16.mxu1 %v6447_v37 }
 0x22f   : > { %4727 = vmatprep.subr.bf16.mxu0 %v6450_v31 }
 0x231   : > { %4359 = vmatpush1.bf16.msra.mxu1 %v6445_v39 }
 0x232   : > { %4728 = vmatpush1.bf16.msra.mxu0 %v6448_v40  ;;  %4360 = vmatprep.subr.bf16.mxu1 %v6453_v41 }
 0x233   : > { %4729 = vmatprep.subr.bf16.mxu0 %v6456_v43 }
 0x235   : > { %4361 = vmatpush1.bf16.msra.mxu1 %v6451_v45 }
 0x236   : > { %4730 = vmatpush1.bf16.msra.mxu0 %v6454_v46  ;;  %4362 = vmatprep.subr.bf16.mxu1 %v6459_v47  ;;  %v250_v47 = vld [vmem:[#allocation2] sm:$0xff] }
 0x237   : > { %4731 = vmatprep.subr.bf16.mxu0 %v6462_v34 }
 0x239   : > { %4363 = vmatpush1.bf16.msra.mxu1 %v6457_v26 }
 0x23a   : > { %4732 = vmatpush1.bf16.msra.mxu0 %v6460_v32  ;;  %4364 = vmatprep.subr.bf16.mxu1 %v6465_v52  ;;  %v4810_v52 = vld [vmem:[%s236_s7] sm:$0x3] (!%p5522_p9) }
 0x23b   : > { %4733 = vmatprep.subr.bf16.mxu0 %v6468_v53  ;;  %v4814_v53 = vsub.s32 (!%p5522_p9), 0, %v6697_v44 }
 0x23d   : > { %4365 = vmatpush1.bf16.msra.mxu1 %v6463_v54  ;;  %v4818_v54 = vsub.s32 (!%p5522_p9), 1, %v6697_v44 }
 0x23e   : > { %4734 = vmatpush1.bf16.msra.mxu0 %v6466_v55  ;;  %4366 = vmatprep.subr.bf16.mxu1 %v6471_v56  ;;  %v4815_v55 = vrot.slane (!%p5522_p9), %v4810_v52, %v4814_v53 }
 0x23f   : > { %4735 = vmatprep.subr.bf16.mxu0 %v6474_v42  ;;  %v4819_v56 = vrot.slane (!%p5522_p9), %v4810_v52, %v4818_v54 }
 0x241   : > { %4367 = vmatpush1.bf16.msra.mxu1 %v6469_v38  ;;  %v4820_v38 = vcombine.low (!%p5522_p9), %v4815_v55, %v4819_v56 }
 0x242   : > { %4736 = vmatpush1.bf16.msra.mxu0 %v6472_v17  ;;  %4368 = vmatprep.subr.bf16.mxu1 %v6477_v59 }
 0x243   : > { %4737 = vmatprep.subr.bf16.mxu0 %v6480_v61 }
 0x245   : > { %4369 = vmatpush1.bf16.msra.mxu1 %v6475_v62 }
 0x246   : > { %4738 = vmatpush1.bf16.msra.mxu0 %v6478_v63  ;;  %4370 = vmatprep.subr.bf16.mxu1 %v6483_v0 }
 0x247   : > { %4739 = vmatprep.subr.bf16.mxu0 %v6486_v51 }
 0x249   : > { %4371 = vmatpush1.bf16.msra.mxu1 %v6481_v49 }
 0x24a   : > { %4740 = vmatpush1.bf16.msra.mxu0 %v6484_v2  ;;  %4372 = vmatprep.subr.bf16.mxu1 %v6489_v3 }
 0x24b   : > { %4741 = vmatprep.subr.bf16.mxu0 %v6492_v5 }
 0x24d   : > { %4373 = vmatpush1.bf16.msra.mxu1 %v6487_v6 }
 0x24e   : > { %4742 = vmatpush1.bf16.msra.mxu0 %v6490_v7  ;;  %4374 = vmatprep.subr.bf16.mxu1 %v6495_v8 }
 0x24f   : > { %4743 = vmatprep.subr.bf16.mxu0 %v6498_v60 }
 0x251   : > { %4375 = vmatpush1.bf16.msra.mxu1 %v6493_v58 }
 0x252   : > { %4744 = vmatpush1.bf16.msra.mxu0 %v6496_v10  ;;  %4376 = vmatprep.subr.bf16.mxu1 %v6501_v11 }
 0x253   : > { %4745 = vmatprep.subr.bf16.mxu0 %v6504_v12 }
 0x255   : > { %4377 = vmatpush1.bf16.msra.mxu1 %v6499_v13 }
 0x256   : > { %4746 = vmatpush1.bf16.msra.mxu0 %v6502_v14  ;;  %4378 = vmatprep.subr.bf16.mxu1 %v6507_v15 }
 0x257   : > { %4747 = vmatprep.subr.bf16.mxu0 %v6510_v4 }
 0x259   : > { %4379 = vmatpush1.bf16.msra.mxu1 %v6505_v1 }
 0x25a   : > { %4748 = vmatpush1.bf16.msra.mxu0 %v6508_v48 }
 0x25b   : > { %4758 = vmatprep.subr.bf16.mxu0 %v6514_v19 }
 0x25c   : > { %4381 = vmatmul.mubr.bf16.vlgmr.msra.gmra.mrb[0].mxu1 %v7306_v16  ;;  %v6521_v16 = vld [vmem:[%s6645_s4 + $0x1230] ss:$8 sps:$4 sm:$0xff]  }
 0x25d   : > { %4750 = vmatmul.mubr.bf16.vlgmr.msra.gmra.mrb[0].mxu0 %v7309_v18  ;;  %v6526_v18 = vld [vmem:[%s6645_s4 + $0x1244] ss:$8 sps:$4 sm:$0xff]  }
 0x25e   : > { %4759 = vmatpush1.bf16.msra.mxu0 %v6512_v20  ;;  %4790 = vmatprep.mubr.bf16.mxu0 %v6580_v22 }
 0x25f   : > { %4760 = vmatprep.subr.bf16.mxu0 %v6517_v21 }
 0x262   : > { %4761 = vmatpush1.bf16.msra.mxu0 %v6515_v50 }
 0x263   : > { %4762 = vmatprep.subr.bf16.mxu0 %v6520_v23 }
 0x266   : > { %4763 = vmatpush1.bf16.msra.mxu0 %v6518_v24 }
 0x267   : > { %4764 = vmatprep.subr.bf16.mxu0 %v6523_v9 }
 0x26a   : > { %4765 = vmatpush1.bf16.msra.mxu0 %v6521_v16 }
 0x26b   : > { %4766 = vmatprep.subr.bf16.mxu0 %v6526_v18 }
 0x26e   : > { %4767 = vmatpush1.bf16.msra.mxu0 %v6524_v57 }
 0x26f   : > { %4768 = vmatprep.subr.bf16.mxu0 %v6529_v25 }
 0x272   : > { %4769 = vmatpush1.bf16.msra.mxu0 %v6527_v27 }
 0x273   : > { %4770 = vmatprep.subr.bf16.mxu0 %v6532_v28 }
 0x276   : > { %4771 = vmatpush1.bf16.msra.mxu0 %v6530_v29 }
 0x277   : > { %4772 = vmatprep.subr.bf16.mxu0 %v6535_v30 }
 0x27a   : > { %4773 = vmatpush1.bf16.msra.mxu0 %v6533_v33 }
 0x27d   : > { %4791 = vmatmul.mubr.bf16.vlgmr.msra.gmra.mrb[0].mxu0 %v4929_v35 }
 0x32f   : > { %v4382_v36 = vpop.f32.mrb[0].mxu1 }
 0x330   : > { %v4384_v37 = vpop.f32.mrb[1].mxu1 }
 0x331   : > { %v4386_v31 = vpop.f32.mrb[2].mxu1 }
 0x332   : > { %v4387_v39 = vpop.f32.mrb[3].mxu1 }
 0x350   : > { %v4792_v40 = vpop.f32.mrb[0].mxu0 }
 0x351   : > { %v5526_v41 = vadd.f32 %v4792_v40, %v4382_v36  ;;  %v4794_v43 = vpop.f32.mrb[1].mxu0 }
 0x352   : > { %v5527_v45 = vadd.f32 %v4794_v43, %v4384_v37  ;;  %v4796_v46 = vpop.f32.mrb[2].mxu0  ;;  %4808 = sbr.rel (%p5522_p9) target bundleno = 869 (0x365), region = 40 }
 0x353   : > { %v4797_v34 = vpop.f32.mrb[3].mxu0 }
 0x354   : > { %v4801_v26 = vcombine.low %v5526_v41, %v5527_v45 }
 0x356   : > { %v4803_v32 = vadd.f32 %v4801_v26, %v250_v47 }
 0x358   : > { %4804 = vst [vmem:[#allocation2] sm:$0xff] %v4803_v32 }
 0x35f   : > { %v4809_v42 = vld [vmem:[#allocation2] sm:$0xff] }
 0x360   : > { %v4822_v17 = vadd.f32 %v4820_v38, %v4809_v42 }
 0x362   : > { %v4823_v59 = vmax.f32 %v4822_v17, 0.0 }
 0x364   : > { %4824 = vst [vmem:[%s6655_s11] sm:$0xff] %v4823_v59 }
 0x365 PF: > { %s13_s16 = sadd.s32 1, %s6576_s16   ;;  %s7426_s12 = smov %s6568_s14 }
 0x366   : > { %p10_p10 = scmp.ge.s32.totalorder %s13_s16, 10   ;;  %s7427_s13 = smov %s6572_s15 }
 0x367   : > { %s7428_s14 = smov %s7431_s17  ;;  %s7429_s15 = smov %s7435_s18 }
 0x368   :  { %12 = sbr.rel (!%p10_p10) target bundleno = 3 (0x3), region = 76 }

</bundles_post_ra>
